<compile_context>
chip_gen: v6e
topology: v6e:2x2x1
jax: 0.10.0
libtpu: 0.0.40
codegen_flags: <defaults>
</compile_context>

<pallas_src>
import functools

import jax
import jax.numpy as jnp
from jax.experimental import pallas as pl
from jax.experimental.pallas import tpu as pltpu

TM_MAX = 1024               # max batch-tile rows per grid step
LANE = 128                  # padded output lane width (num_classes -> 128)
IN_FEATURES = 3 * 32 * 32   # 3072
H1, H2, H3 = 512, 256, 128


def _round_up(n, m):
    return ((n + m - 1) // m) * m


def _pick_block_rows(batch):
    """Pick the batch-tile height.

    Big tiles amortize the ~0.35us/step grid overhead; small batches get a
    tile that just covers them; batches in (TM_MAX, 2*TM_MAX] are split into
    two balanced tiles so the 'parallel' grid axis keeps both v7x TCs busy.
    """
    rows = _round_up(max(batch, 1), 8)
    if rows <= TM_MAX:
        return rows
    if rows <= 2 * TM_MAX:
        return _round_up((rows + 1) // 2, 8)
    return TM_MAX


def mlp_kernel(x_ref,
               w1_ref, b1_ref,
               w2_ref, b2_ref,
               w3_ref, b3_ref,
               w4_ref, b4_ref,
               o_ref,
               h1_ref, h2_ref):
    """Fused fc1->relu->fc2->relu->fc3->relu->fc4 on one (block_m, 3072) tile."""
    # f32 -> bf16 cast on the VPU (no separate HBM cast pass in the wrapper).
    x = x_ref[...].astype(jnp.bfloat16)                               # (bm, 3072)

    a1 = jnp.dot(x, w1_ref[...], preferred_element_type=jnp.float32)     # (bm, 512) f32
    h1_ref[...] = jnp.maximum(a1 + b1_ref[...], 0.0).astype(jnp.bfloat16)

    a2 = jnp.dot(h1_ref[...], w2_ref[...], preferred_element_type=jnp.float32)
    h2_ref[...] = jnp.maximum(a2 + b2_ref[...], 0.0).astype(jnp.bfloat16)

    a3 = jnp.dot(h2_ref[...], w3_ref[...], preferred_element_type=jnp.float32)
    h3 = jnp.maximum(a3 + b3_ref[...], 0.0).astype(jnp.bfloat16)      # (bm,128) in vregs

    a4 = jnp.dot(h3, w4_ref[...], preferred_element_type=jnp.float32)    # (bm, 128) f32
    o_ref[...] = (a4 + b4_ref[...]).astype(o_ref.dtype)


@functools.partial(jax.jit, static_argnames=("num_classes", "single_buffer_weights"))
def resnet18fc_forward(x, params, num_classes=10, single_buffer_weights=True):
    """x: (B, 3, 32, 32) float32 (NCHW, as in PyTorch). Returns (B, num_classes) f32."""
    B = x.shape[0]
    x2d = x.reshape(B, -1)                 # row-major flatten (== torch .view); stays f32
    block_m = _pick_block_rows(B)
    grid = (pl.cdiv(B, block_m),)          # partial edge block handled by Pallas (no pad)

    (w1, b1), (w2, b2), (w3, b3), (w4, b4) = params
    # Pad the final layer's output columns up to 128 lanes (tiny, zeros).
    w4p = jnp.pad(w4, ((0, 0), (0, LANE - num_classes)))
    b4p = jnp.pad(b4, ((0, 0), (0, LANE - num_classes)))

    tile_map = lambda i: (i, 0)            # batch-tiled x / out
    resident_map = lambda i: (0, 0)        # constant block -> loaded once, VMEM-resident

    def resident_spec(shape):
        if single_buffer_weights:
            try:
                # Single buffer: block never changes, second pipeline buffer is waste.
                return pl.BlockSpec(shape, resident_map, pipeline_mode=pl.Buffered(1))
            except TypeError:
                pass  # older jax without pipeline_mode: fall back to default buffering
        return pl.BlockSpec(shape, resident_map)

    in_specs = [
        pl.BlockSpec((block_m, IN_FEATURES), tile_map),   # x tile (f32, pipelined)
        resident_spec(w1.shape), resident_spec(b1.shape),
        resident_spec(w2.shape), resident_spec(b2.shape),
        resident_spec(w3.shape), resident_spec(b3.shape),
        resident_spec(w4p.shape), resident_spec(b4p.shape),
    ]

    rows = grid[0] * block_m
    flops = 2 * rows * (IN_FEATURES * H1 + H1 * H2 + H2 * H3 + H3 * LANE)
    bytes_accessed = (int(x2d.size) * 4
                      + sum(int(w.size) * w.dtype.itemsize for w in (w1, w2, w3, w4p))
                      + sum(int(b.size) * b.dtype.itemsize for b in (b1, b2, b3, b4p))
                      + rows * LANE * 4)

    # VMEM budget: 2 f32 x tiles + 2 out tiles + bf16 scratch + weights/slack.
    vmem_budget = (2 * block_m * IN_FEATURES * 4
                   + 2 * block_m * LANE * 4
                   + block_m * (H1 + H2) * 2
                   + 4 * (1 << 20))
    vmem_limit = min(_round_up(vmem_budget, 1 << 20) + (8 << 20), 48 << 20)

    out = pl.pallas_call(
        mlp_kernel,
        out_shape=jax.ShapeDtypeStruct((B, LANE), jnp.float32),
        grid_spec=pltpu.PrefetchScalarGridSpec(
            num_scalar_prefetch=0,
            grid=grid,
            in_specs=in_specs,
            out_specs=pl.BlockSpec((block_m, LANE), tile_map),
            scratch_shapes=[
                pltpu.VMEM((block_m, H1), jnp.bfloat16),
                pltpu.VMEM((block_m, H2), jnp.bfloat16),
            ],
        ),
        compiler_params=pltpu.CompilerParams(
            dimension_semantics=("parallel",),
            vmem_limit_bytes=vmem_limit,
        ),
        cost_estimate=pl.CostEstimate(
            flops=flops, transcendentals=0, bytes_accessed=bytes_accessed),
    )(x2d, w1, b1, w2, b2, w3, b3, w4p, b4p)

    return out[:, :num_classes]


def init_params(key, num_classes=10):
    """Deterministic init mirroring nn.Linear default (U(-1/sqrt(fan_in), +...)).

    Weights are stored as (in, out) = transpose of PyTorch's (out, in) layout,
    and kept in bf16 in HBM (halves the dominant w1 DMA, matches MXU datapath).
    Biases stay f32 (bias-add happens after the f32 accumulate).
    """
    dims = [IN_FEATURES, H1, H2, H3, num_classes]
    params = []
    for i in range(4):
        fan_in, fan_out = dims[i], dims[i + 1]
        key, kw, kb = jax.random.split(key, 3)
        bound = 1.0 / jnp.sqrt(jnp.float32(fan_in))
        w = jax.random.uniform(kw, (fan_in, fan_out), jnp.float32, -bound, bound)
        b = jax.random.uniform(kb, (1, fan_out), jnp.float32, -bound, bound)
        params.append((w.astype(jnp.bfloat16), b))
    return params


def reference_forward(x, params):
    """Pure-JAX f32 reference (same bf16 weights, f32 math) for correctness."""
    h = x.reshape(x.shape[0], -1)
    (w1, b1), (w2, b2), (w3, b3), (w4, b4) = params
    h = jnp.maximum(h @ w1.astype(jnp.float32) + b1, 0.0)
    h = jnp.maximum(h @ w2.astype(jnp.float32) + b2, 0.0)
    h = jnp.maximum(h @ w3.astype(jnp.float32) + b3, 0.0)
    return h @ w4.astype(jnp.float32) + b4


if __name__ == "__main__":
    key = jax.random.PRNGKey(0)
    key, kx = jax.random.split(key)

    num_classes = 10
    B = 2
    # Input must be (B, 3, 32, 32) because fc1 expects 3*32*32 = 3072 features.
    x = jax.random.normal(kx, (B, 3, 32, 32), dtype=jnp.float32)

    params = init_params(key, num_classes=num_classes)

    try:
        out = jax.block_until_ready(
            resnet18fc_forward(x, params, num_classes=num_classes))
    except Exception:
        # Fallback for jax versions that reject single-buffered resident inputs.
        out = jax.block_until_ready(
            resnet18fc_forward(x, params, num_classes=num_classes,
                               single_buffer_weights=False))

    ref = reference_forward(x, params)
    assert out.shape == (B, num_classes)
    # bf16 matmul operands (f32 accumulate) -> loosened tolerance vs f32 reference.
    assert jnp.allclose(out, ref, atol=5e-2, rtol=5e-2), "mismatch vs JAX reference"

    print("KERNEL_OK")
</pallas_src>

<mosaic_0001>
module attributes {stable_mosaic.version = 11 : i64} {
  func.func @mlp_kernel(%arg0: i32, %arg1: memref<8x3072xf32, #tpu.memory_space<vmem>>, %arg2: memref<3072x512xbf16, #tpu.memory_space<vmem>>, %arg3: memref<1x512xf32, #tpu.memory_space<vmem>>, %arg4: memref<512x256xbf16, #tpu.memory_space<vmem>>, %arg5: memref<1x256xf32, #tpu.memory_space<vmem>>, %arg6: memref<256x128xbf16, #tpu.memory_space<vmem>>, %arg7: memref<1x128xf32, #tpu.memory_space<vmem>>, %arg8: memref<128x128xbf16, #tpu.memory_space<vmem>>, %arg9: memref<1x128xf32, #tpu.memory_space<vmem>>, %arg10: memref<8x128xf32, #tpu.memory_space<vmem>>, %arg11: memref<8x512xbf16, #tpu.memory_space<vmem>>, %arg12: memref<8x256xbf16, #tpu.memory_space<vmem>>) attributes {dimension_semantics = [#tpu.dimension_semantics<parallel>], iteration_bounds = array<i64: 1>, scalar_prefetch = 0 : i64, scratch_operands = 2 : i64, tpu.core_type = #tpu.core_type<tc>, window_params = [{transform_indices = @transform_0, window_bounds = array<i64: 8, 3072>}, {pipeline_mode = #tpu.pipeline_mode<synchronous>, transform_indices = @transform_1, window_bounds = array<i64: 3072, 512>}, {pipeline_mode = #tpu.pipeline_mode<synchronous>, transform_indices = @transform_2, window_bounds = array<i64: 1, 512>}, {pipeline_mode = #tpu.pipeline_mode<synchronous>, transform_indices = @transform_3, window_bounds = array<i64: 512, 256>}, {pipeline_mode = #tpu.pipeline_mode<synchronous>, transform_indices = @transform_4, window_bounds = array<i64: 1, 256>}, {pipeline_mode = #tpu.pipeline_mode<synchronous>, transform_indices = @transform_5, window_bounds = array<i64: 256, 128>}, {pipeline_mode = #tpu.pipeline_mode<synchronous>, transform_indices = @transform_6, window_bounds = array<i64: 1, 128>}, {pipeline_mode = #tpu.pipeline_mode<synchronous>, transform_indices = @transform_7, window_bounds = array<i64: 128, 128>}, {pipeline_mode = #tpu.pipeline_mode<synchronous>, transform_indices = @transform_8, window_bounds = array<i64: 1, 128>}, {transform_indices = @transform_9, window_bounds = array<i64: 8, 128>}]} {
    %c0 = arith.constant 0 : index
    %c0_0 = arith.constant 0 : index
    %0 = vector.load %arg1[%c0, %c0_0] : memref<8x3072xf32, #tpu.memory_space<vmem>>, vector<8x3072xf32>
    %1 = arith.truncf %0 : vector<8x3072xf32> to vector<8x3072xbf16>
    %c0_1 = arith.constant 0 : index
    %c0_2 = arith.constant 0 : index
    %2 = vector.load %arg2[%c0_1, %c0_2] : memref<3072x512xbf16, #tpu.memory_space<vmem>>, vector<3072x512xbf16>
    %cst = arith.constant dense<0.000000e+00> : vector<8x512xf32>
    %3 = tpu.matmul %1, %2, %cst {dimension_numbers = #tpu.dot_dimension_numbers<[1], [0], [0], [1], [0, 0, 1, 1], [], []>} : vector<8x3072xbf16>, vector<3072x512xbf16>, vector<8x512xf32> -> vector<8x512xf32>
    %c0_3 = arith.constant 0 : index
    %c0_4 = arith.constant 0 : index
    %4 = vector.load %arg3[%c0_3, %c0_4] : memref<1x512xf32, #tpu.memory_space<vmem>>, vector<1x512xf32>
    %5 = vector.broadcast %4 : vector<1x512xf32> to vector<8x512xf32>
    %6 = arith.addf %3, %5 : vector<8x512xf32>
    %cst_5 = arith.constant 0.000000e+00 : f32
    %7 = vector.broadcast %cst_5 : f32 to vector<8x512xf32>
    %8 = arith.maximumf %6, %7 : vector<8x512xf32>
    %9 = arith.truncf %8 : vector<8x512xf32> to vector<8x512xbf16>
    %c0_6 = arith.constant 0 : index
    %c0_7 = arith.constant 0 : index
    %10 = vector.load %arg11[%c0_6, %c0_7] : memref<8x512xbf16, #tpu.memory_space<vmem>>, vector<8x512xbf16>
    tpu.vector_store %arg11[%c0_6, %c0_7], %9 {strides = array<i32>} : memref<8x512xbf16, #tpu.memory_space<vmem>>, vector<8x512xbf16>,
    %c0_8 = arith.constant 0 : index
    %c0_9 = arith.constant 0 : index
    %11 = vector.load %arg11[%c0_8, %c0_9] : memref<8x512xbf16, #tpu.memory_space<vmem>>, vector<8x512xbf16>
    %c0_10 = arith.constant 0 : index
    %c0_11 = arith.constant 0 : index
    %12 = vector.load %arg4[%c0_10, %c0_11] : memref<512x256xbf16, #tpu.memory_space<vmem>>, vector<512x256xbf16>
    %cst_12 = arith.constant dense<0.000000e+00> : vector<8x256xf32>
    %13 = tpu.matmul %11, %12, %cst_12 {dimension_numbers = #tpu.dot_dimension_numbers<[1], [0], [0], [1], [0, 0, 1, 1], [], []>} : vector<8x512xbf16>, vector<512x256xbf16>, vector<8x256xf32> -> vector<8x256xf32>
    %c0_13 = arith.constant 0 : index
    %c0_14 = arith.constant 0 : index
    %14 = vector.load %arg5[%c0_13, %c0_14] : memref<1x256xf32, #tpu.memory_space<vmem>>, vector<1x256xf32>
    %15 = vector.broadcast %14 : vector<1x256xf32> to vector<8x256xf32>
    %16 = arith.addf %13, %15 : vector<8x256xf32>
    %cst_15 = arith.constant 0.000000e+00 : f32
    %17 = vector.broadcast %cst_15 : f32 to vector<8x256xf32>
    %18 = arith.maximumf %16, %17 : vector<8x256xf32>
    %19 = arith.truncf %18 : vector<8x256xf32> to vector<8x256xbf16>
    %c0_16 = arith.constant 0 : index
    %c0_17 = arith.constant 0 : index
    %20 = vector.load %arg12[%c0_16, %c0_17] : memref<8x256xbf16, #tpu.memory_space<vmem>>, vector<8x256xbf16>
    tpu.vector_store %arg12[%c0_16, %c0_17], %19 {strides = array<i32>} : memref<8x256xbf16, #tpu.memory_space<vmem>>, vector<8x256xbf16>,
    %c0_18 = arith.constant 0 : index
    %c0_19 = arith.constant 0 : index
    %21 = vector.load %arg12[%c0_18, %c0_19] : memref<8x256xbf16, #tpu.memory_space<vmem>>, vector<8x256xbf16>
    %c0_20 = arith.constant 0 : index
    %c0_21 = arith.constant 0 : index
    %22 = vector.load %arg6[%c0_20, %c0_21] : memref<256x128xbf16, #tpu.memory_space<vmem>>, vector<256x128xbf16>
    %cst_22 = arith.constant dense<0.000000e+00> : vector<8x128xf32>
    %23 = tpu.matmul %21, %22, %cst_22 {dimension_numbers = #tpu.dot_dimension_numbers<[1], [0], [0], [1], [0, 0, 1, 1], [], []>} : vector<8x256xbf16>, vector<256x128xbf16>, vector<8x128xf32> -> vector<8x128xf32>
    %c0_23 = arith.constant 0 : index
    %c0_24 = arith.constant 0 : index
    %24 = vector.load %arg7[%c0_23, %c0_24] : memref<1x128xf32, #tpu.memory_space<vmem>>, vector<1x128xf32>
    %25 = vector.broadcast %24 : vector<1x128xf32> to vector<8x128xf32>
    %26 = arith.addf %23, %25 : vector<8x128xf32>
    %cst_25 = arith.constant 0.000000e+00 : f32
    %27 = vector.broadcast %cst_25 : f32 to vector<8x128xf32>
    %28 = arith.maximumf %26, %27 : vector<8x128xf32>
    %29 = arith.truncf %28 : vector<8x128xf32> to vector<8x128xbf16>
    %c0_26 = arith.constant 0 : index
    %c0_27 = arith.constant 0 : index
    %30 = vector.load %arg8[%c0_26, %c0_27] : memref<128x128xbf16, #tpu.memory_space<vmem>>, vector<128x128xbf16>
    %cst_28 = arith.constant dense<0.000000e+00> : vector<8x128xf32>
    %31 = tpu.matmul %29, %30, %cst_28 {dimension_numbers = #tpu.dot_dimension_numbers<[1], [0], [0], [1], [0, 0, 1, 1], [], []>} : vector<8x128xbf16>, vector<128x128xbf16>, vector<8x128xf32> -> vector<8x128xf32>
    %c0_29 = arith.constant 0 : index
    %c0_30 = arith.constant 0 : index
    %32 = vector.load %arg9[%c0_29, %c0_30] : memref<1x128xf32, #tpu.memory_space<vmem>>, vector<1x128xf32>
    %33 = vector.broadcast %32 : vector<1x128xf32> to vector<8x128xf32>
    %34 = arith.addf %31, %33 : vector<8x128xf32>
    %c0_31 = arith.constant 0 : index
    %c0_32 = arith.constant 0 : index
    %35 = vector.load %arg10[%c0_31, %c0_32] : memref<8x128xf32, #tpu.memory_space<vmem>>, vector<8x128xf32>
    tpu.vector_store %arg10[%c0_31, %c0_32], %34 {strides = array<i32>} : memref<8x128xf32, #tpu.memory_space<vmem>>, vector<8x128xf32>,
    return
  }
  func.func @transform_0(%arg0: i32) -> (i32, i32) {
    %c0_i32 = arith.constant 0 : i32
    %c0_i32_0 = arith.constant 0 : i32
    return %arg0, %c0_i32 : i32, i32
  }
  func.func @transform_1(%arg0: i32) -> (i32, i32) {
    %c0_i32 = arith.constant 0 : i32
    %c0_i32_0 = arith.constant 0 : i32
    %c0_i32_1 = arith.constant 0 : i32
    return %c0_i32, %c0_i32_0 : i32, i32
  }
  func.func @transform_2(%arg0: i32) -> (i32, i32) {
    %c0_i32 = arith.constant 0 : i32
    %c0_i32_0 = arith.constant 0 : i32
    %c0_i32_1 = arith.constant 0 : i32
    return %c0_i32, %c0_i32_0 : i32, i32
  }
  func.func @transform_3(%arg0: i32) -> (i32, i32) {
    %c0_i32 = arith.constant 0 : i32
    %c0_i32_0 = arith.constant 0 : i32
    %c0_i32_1 = arith.constant 0 : i32
    return %c0_i32, %c0_i32_0 : i32, i32
  }
  func.func @transform_4(%arg0: i32) -> (i32, i32) {
    %c0_i32 = arith.constant 0 : i32
    %c0_i32_0 = arith.constant 0 : i32
    %c0_i32_1 = arith.constant 0 : i32
    return %c0_i32, %c0_i32_0 : i32, i32
  }
  func.func @transform_5(%arg0: i32) -> (i32, i32) {
    %c0_i32 = arith.constant 0 : i32
    %c0_i32_0 = arith.constant 0 : i32
    %c0_i32_1 = arith.constant 0 : i32
    return %c0_i32, %c0_i32_0 : i32, i32
  }
  func.func @transform_6(%arg0: i32) -> (i32, i32) {
    %c0_i32 = arith.constant 0 : i32
    %c0_i32_0 = arith.constant 0 : i32
    %c0_i32_1 = arith.constant 0 : i32
    return %c0_i32, %c0_i32_0 : i32, i32
  }
  func.func @transform_7(%arg0: i32) -> (i32, i32) {
    %c0_i32 = arith.constant 0 : i32
    %c0_i32_0 = arith.constant 0 : i32
    %c0_i32_1 = arith.constant 0 : i32
    return %c0_i32, %c0_i32_0 : i32, i32
  }
  func.func @transform_8(%arg0: i32) -> (i32, i32) {
    %c0_i32 = arith.constant 0 : i32
    %c0_i32_0 = arith.constant 0 : i32
    %c0_i32_1 = arith.constant 0 : i32
    return %c0_i32, %c0_i32_0 : i32, i32
  }
  func.func @transform_9(%arg0: i32) -> (i32, i32) {
    %c0_i32 = arith.constant 0 : i32
    %c0_i32_0 = arith.constant 0 : i32
    return %arg0, %c0_i32 : i32, i32
  }
}

module attributes {stable_mosaic.version = 11 : i64} {
  func.func @mlp_kernel(%arg0: i32, %arg1: memref<8x3072xf32, #tpu.memory_space<vmem>>, %arg2: memref<3072x512xbf16, #tpu.memory_space<vmem>>, %arg3: memref<1x512xf32, #tpu.memory_space<vmem>>, %arg4: memref<512x256xbf16, #tpu.memory_space<vmem>>, %arg5: memref<1x256xf32, #tpu.memory_space<vmem>>, %arg6: memref<256x128xbf16, #tpu.memory_space<vmem>>, %arg7: memref<1x128xf32, #tpu.memory_space<vmem>>, %arg8: memref<128x128xbf16, #tpu.memory_space<vmem>>, %arg9: memref<1x128xf32, #tpu.memory_space<vmem>>, %arg10: memref<8x128xf32, #tpu.memory_space<vmem>>, %arg11: memref<8x512xbf16, #tpu.memory_space<vmem>>, %arg12: memref<8x256xbf16, #tpu.memory_space<vmem>>) attributes {dimension_semantics = [#tpu.dimension_semantics<parallel>], iteration_bounds = array<i64: 1>, scalar_prefetch = 0 : i64, scratch_operands = 2 : i64, tpu.core_type = #tpu.core_type<tc>, window_params = [{transform_indices = @transform_0, window_bounds = array<i64: 8, 3072>}, {pipeline_mode = #tpu.pipeline_mode<synchronous>, transform_indices = @transform_1, window_bounds = array<i64: 3072, 512>}, {pipeline_mode = #tpu.pipeline_mode<synchronous>, transform_indices = @transform_2, window_bounds = array<i64: 1, 512>}, {pipeline_mode = #tpu.pipeline_mode<synchronous>, transform_indices = @transform_3, window_bounds = array<i64: 512, 256>}, {pipeline_mode = #tpu.pipeline_mode<synchronous>, transform_indices = @transform_4, window_bounds = array<i64: 1, 256>}, {pipeline_mode = #tpu.pipeline_mode<synchronous>, transform_indices = @transform_5, window_bounds = array<i64: 256, 128>}, {pipeline_mode = #tpu.pipeline_mode<synchronous>, transform_indices = @transform_6, window_bounds = array<i64: 1, 128>}, {pipeline_mode = #tpu.pipeline_mode<synchronous>, transform_indices = @transform_7, window_bounds = array<i64: 128, 128>}, {pipeline_mode = #tpu.pipeline_mode<synchronous>, transform_indices = @transform_8, window_bounds = array<i64: 1, 128>}, {transform_indices = @transform_9, window_bounds = array<i64: 8, 128>}]} {
    %c0 = arith.constant 0 : index
    %c0_0 = arith.constant 0 : index
    %0 = vector.load %arg1[%c0, %c0_0] : memref<8x3072xf32, #tpu.memory_space<vmem>>, vector<8x3072xf32>
    %1 = arith.truncf %0 : vector<8x3072xf32> to vector<8x3072xbf16>
    %c0_1 = arith.constant 0 : index
    %c0_2 = arith.constant 0 : index
    %2 = vector.load %arg2[%c0_1, %c0_2] : memref<3072x512xbf16, #tpu.memory_space<vmem>>, vector<3072x512xbf16>
    %cst = arith.constant dense<0.000000e+00> : vector<8x512xf32>
    %3 = tpu.matmul %1, %2, %cst {dimension_numbers = #tpu.dot_dimension_numbers<[1], [0], [0], [1], [0, 0, 1, 1], [], []>} : vector<8x3072xbf16>, vector<3072x512xbf16>, vector<8x512xf32> -> vector<8x512xf32>
    %c0_3 = arith.constant 0 : index
    %c0_4 = arith.constant 0 : index
    %4 = vector.load %arg3[%c0_3, %c0_4] : memref<1x512xf32, #tpu.memory_space<vmem>>, vector<1x512xf32>
    %5 = vector.broadcast %4 : vector<1x512xf32> to vector<8x512xf32>
    %6 = arith.addf %3, %5 : vector<8x512xf32>
    %cst_5 = arith.constant 0.000000e+00 : f32
    %7 = vector.broadcast %cst_5 : f32 to vector<8x512xf32>
    %8 = arith.maximumf %6, %7 : vector<8x512xf32>
    %9 = arith.truncf %8 : vector<8x512xf32> to vector<8x512xbf16>
    %c0_6 = arith.constant 0 : index
    %c0_7 = arith.constant 0 : index
    %10 = vector.load %arg11[%c0_6, %c0_7] : memref<8x512xbf16, #tpu.memory_space<vmem>>, vector<8x512xbf16>
    tpu.vector_store %arg11[%c0_6, %c0_7], %9 {strides = array<i32>} : memref<8x512xbf16, #tpu.memory_space<vmem>>, vector<8x512xbf16>,
    %c0_8 = arith.constant 0 : index
    %c0_9 = arith.constant 0 : index
    %11 = vector.load %arg11[%c0_8, %c0_9] : memref<8x512xbf16, #tpu.memory_space<vmem>>, vector<8x512xbf16>
    %c0_10 = arith.constant 0 : index
    %c0_11 = arith.constant 0 : index
    %12 = vector.load %arg4[%c0_10, %c0_11] : memref<512x256xbf16, #tpu.memory_space<vmem>>, vector<512x256xbf16>
    %cst_12 = arith.constant dense<0.000000e+00> : vector<8x256xf32>
    %13 = tpu.matmul %11, %12, %cst_12 {dimension_numbers = #tpu.dot_dimension_numbers<[1], [0], [0], [1], [0, 0, 1, 1], [], []>} : vector<8x512xbf16>, vector<512x256xbf16>, vector<8x256xf32> -> vector<8x256xf32>
    %c0_13 = arith.constant 0 : index
    %c0_14 = arith.constant 0 : index
    %14 = vector.load %arg5[%c0_13, %c0_14] : memref<1x256xf32, #tpu.memory_space<vmem>>, vector<1x256xf32>
    %15 = vector.broadcast %14 : vector<1x256xf32> to vector<8x256xf32>
    %16 = arith.addf %13, %15 : vector<8x256xf32>
    %cst_15 = arith.constant 0.000000e+00 : f32
    %17 = vector.broadcast %cst_15 : f32 to vector<8x256xf32>
    %18 = arith.maximumf %16, %17 : vector<8x256xf32>
    %19 = arith.truncf %18 : vector<8x256xf32> to vector<8x256xbf16>
    %c0_16 = arith.constant 0 : index
    %c0_17 = arith.constant 0 : index
    %20 = vector.load %arg12[%c0_16, %c0_17] : memref<8x256xbf16, #tpu.memory_space<vmem>>, vector<8x256xbf16>
    tpu.vector_store %arg12[%c0_16, %c0_17], %19 {strides = array<i32>} : memref<8x256xbf16, #tpu.memory_space<vmem>>, vector<8x256xbf16>,
    %c0_18 = arith.constant 0 : index
    %c0_19 = arith.constant 0 : index
    %21 = vector.load %arg12[%c0_18, %c0_19] : memref<8x256xbf16, #tpu.memory_space<vmem>>, vector<8x256xbf16>
    %c0_20 = arith.constant 0 : index
    %c0_21 = arith.constant 0 : index
    %22 = vector.load %arg6[%c0_20, %c0_21] : memref<256x128xbf16, #tpu.memory_space<vmem>>, vector<256x128xbf16>
    %cst_22 = arith.constant dense<0.000000e+00> : vector<8x128xf32>
    %23 = tpu.matmul %21, %22, %cst_22 {dimension_numbers = #tpu.dot_dimension_numbers<[1], [0], [0], [1], [0, 0, 1, 1], [], []>} : vector<8x256xbf16>, vector<256x128xbf16>, vector<8x128xf32> -> vector<8x128xf32>
    %c0_23 = arith.constant 0 : index
    %c0_24 = arith.constant 0 : index
    %24 = vector.load %arg7[%c0_23, %c0_24] : memref<1x128xf32, #tpu.memory_space<vmem>>, vector<1x128xf32>
    %25 = vector.broadcast %24 : vector<1x128xf32> to vector<8x128xf32>
    %26 = arith.addf %23, %25 : vector<8x128xf32>
    %cst_25 = arith.constant 0.000000e+00 : f32
    %27 = vector.broadcast %cst_25 : f32 to vector<8x128xf32>
    %28 = arith.maximumf %26, %27 : vector<8x128xf32>
    %29 = arith.truncf %28 : vector<8x128xf32> to vector<8x128xbf16>
    %c0_26 = arith.constant 0 : index
    %c0_27 = arith.constant 0 : index
    %30 = vector.load %arg8[%c0_26, %c0_27] : memref<128x128xbf16, #tpu.memory_space<vmem>>, vector<128x128xbf16>
    %cst_28 = arith.constant dense<0.000000e+00> : vector<8x128xf32>
    %31 = tpu.matmul %29, %30, %cst_28 {dimension_numbers = #tpu.dot_dimension_numbers<[1], [0], [0], [1], [0, 0, 1, 1], [], []>} : vector<8x128xbf16>, vector<128x128xbf16>, vector<8x128xf32> -> vector<8x128xf32>
    %c0_29 = arith.constant 0 : index
    %c0_30 = arith.constant 0 : index
    %32 = vector.load %arg9[%c0_29, %c0_30] : memref<1x128xf32, #tpu.memory_space<vmem>>, vector<1x128xf32>
    %33 = vector.broadcast %32 : vector<1x128xf32> to vector<8x128xf32>
    %34 = arith.addf %31, %33 : vector<8x128xf32>
    %c0_31 = arith.constant 0 : index
    %c0_32 = arith.constant 0 : index
    %35 = vector.load %arg10[%c0_31, %c0_32] : memref<8x128xf32, #tpu.memory_space<vmem>>, vector<8x128xf32>
    tpu.vector_store %arg10[%c0_31, %c0_32], %34 {strides = array<i32>} : memref<8x128xf32, #tpu.memory_space<vmem>>, vector<8x128xf32>,
    return
  }
  func.func @transform_0(%arg0: i32) -> (i32, i32) {
    %c0_i32 = arith.constant 0 : i32
    %c0_i32_0 = arith.constant 0 : i32
    return %arg0, %c0_i32 : i32, i32
  }
  func.func @transform_1(%arg0: i32) -> (i32, i32) {
    %c0_i32 = arith.constant 0 : i32
    %c0_i32_0 = arith.constant 0 : i32
    %c0_i32_1 = arith.constant 0 : i32
    return %c0_i32, %c0_i32_0 : i32, i32
  }
  func.func @transform_2(%arg0: i32) -> (i32, i32) {
    %c0_i32 = arith.constant 0 : i32
    %c0_i32_0 = arith.constant 0 : i32
    %c0_i32_1 = arith.constant 0 : i32
    return %c0_i32, %c0_i32_0 : i32, i32
  }
  func.func @transform_3(%arg0: i32) -> (i32, i32) {
    %c0_i32 = arith.constant 0 : i32
    %c0_i32_0 = arith.constant 0 : i32
    %c0_i32_1 = arith.constant 0 : i32
    return %c0_i32, %c0_i32_0 : i32, i32
  }
  func.func @transform_4(%arg0: i32) -> (i32, i32) {
    %c0_i32 = arith.constant 0 : i32
    %c0_i32_0 = arith.constant 0 : i32
    %c0_i32_1 = arith.constant 0 : i32
    return %c0_i32, %c0_i32_0 : i32, i32
  }
  func.func @transform_5(%arg0: i32) -> (i32, i32) {
    %c0_i32 = arith.constant 0 : i32
    %c0_i32_0 = arith.constant 0 : i32
    %c0_i32_1 = arith.constant 0 : i32
    return %c0_i32, %c0_i32_0 : i32, i32
  }
  func.func @transform_6(%arg0: i32) -> (i32, i32) {
    %c0_i32 = arith.constant 0 : i32
    %c0_i32_0 = arith.constant 0 : i32
    %c0_i32_1 = arith.constant 0 : i32
    return %c0_i32, %c0_i32_0 : i32, i32
  }
  func.func @transform_7(%arg0: i32) -> (i32, i32) {
    %c0_i32 = arith.constant 0 : i32
    %c0_i32_0 = arith.constant 0 : i32
    %c0_i32_1 = arith.constant 0 : i32
    return %c0_i32, %c0_i32_0 : i32, i32
  }
  func.func @transform_8(%arg0: i32) -> (i32, i32) {
    %c0_i32 = arith.constant 0 : i32
    %c0_i32_0 = arith.constant 0 : i32
    %c0_i32_1 = arith.constant 0 : i32
    return %c0_i32, %c0_i32_0 : i32, i32
  }
  func.func @transform_9(%arg0: i32) -> (i32, i32) {
    %c0_i32 = arith.constant 0 : i32
    %c0_i32_0 = arith.constant 0 : i32
    return %arg0, %c0_i32 : i32, i32
  }
}

</mosaic_0001>

<bundles_post_ra>
// kernel: resnet18fc_forward.1
= control target key start
LH: loop header
LB: loop body
LE: loop exit
PB: predicated region body
PF: predicated region fallthrough
CT: control target
= control target key end

     0   :  { %14 = vsyncpa [#allocation5], 0  ;;  %s9743_s0 = inlined_call_operand.vmem [shape: f32[2,3072], index: 0, kind: input, shape index: {}]   ;;  %s9744_s1 = inlined_call_operand.hbm [shape: bf16[3072,512], index: 1, kind: input, shape index: {}]   ;;  %s9745_s2 = inlined_call_operand.hbm [shape: f32[1,512], index: 2, kind: input, shape index: {}]   ;;  %s9746_s3 = inlined_call_operand.hbm [shape: bf16[512,256], index: 3, kind: input, shape index: {}]   ;;  %s9747_s4 = inlined_call_operand.hbm [shape: f32[1,256], index: 4, kind: input, shape index: {}]   ;;  %s9748_s5 = inlined_call_operand.hbm [shape: bf16[256,128], index: 5, kind: input, shape index: {}]   ;;  %s9749_s6 = inlined_call_operand.hbm [shape: f32[1,128], index: 6, kind: input, shape index: {}]   ;;  %s9750_s7 = inlined_call_operand.vmem [shape: bf16[128,128], index: 7, kind: input, shape index: {}]   ;;  %s9751_s8 = inlined_call_operand.vmem [shape: f32[1,128], index: 8, kind: input, shape index: {}]   ;;  %s9752_s9 = inlined_call_operand.hbm [shape: f32[2,128], index: 9, kind: output, shape index: {}]  }
   0x1   :  { %15 = vsyncpa [#allocation8], 0 }
   0x2   :  { %16 = vsyncpa [#allocation11], 0 }
   0x3   :  { %17 = vsyncpa [#allocation14], 0 }
   0x4   :  { %18 = vsyncpa [#allocation6], 0  ;;  %s9284_s30 = smov [#allocation7]   ;;  %s9285_s11 = smov [#allocation10]  }
   0x5   :  { %s39_s10 = sshll.u32 %s9284_s30, 4  ;;  %s61_s12 = sshll.u32 %s9285_s11, 4  ;;  %s40_s10 = int_to_ptr.vmem [resolvable:$true] %s39_s10  ;;  %s62_s12 = int_to_ptr.vmem [resolvable:$true] %s61_s12 }
   0x6   :  { %s9142_s13 = scalar_lea.vmem %s40_s10, 64  ;;  %p9147_p1 = scmp.lt.s32.totalorder %s40_s10, %s40_s10 }
   0x7   :  { %p9143_p0 = scmp.ne.s32.totalorder %s40_s10, %s9142_s13  ;;  %p9148_p2 = scmp.lt.s32.totalorder %s9142_s13, %s9142_s13 }
   0x9   :  { %p9149_p3 = por %p9148_p2, %p9147_p1 }
   0xb   :  { %p9150_p4 = pnand %p9149_p3, %p9143_p0 }
   0xd   :  { %9153 = shalt.err (!%p9150_p4)
}
   0xe   :  { %42 = dma.hbm_to_vmem [thread:$0]  %s9745_s2, 64, %s40_s10, [#allocation8]  }
   0xf   :  { %s9162_s16 = scalar_lea.vmem %s62_s12, 32  ;;  %p9167_p6 = scmp.lt.s32.totalorder %s62_s12, %s62_s12 }
  0x10   :  { %p9163_p5 = scmp.ne.s32.totalorder %s62_s12, %s9162_s16  ;;  %p9168_p7 = scmp.lt.s32.totalorder %s9162_s16, %s9162_s16 }
  0x12   :  { %p9169_p8 = por %p9168_p7, %p9167_p6 }
  0x14   :  { %p9170_p9 = pnand %p9169_p8, %p9163_p5 }
  0x16   :  { %9173 = shalt.err (!%p9170_p9)
}
  0x17   :  { %64 = dma.hbm_to_vmem [thread:$0]  %s9747_s4, 32, %s62_s12, [#allocation11]  }
  0x18   :  { %s9286_s19 = smov [#allocation4]  }
  0x19   :  { %s26_s20 = sshll.u32 %s9286_s19, 4  ;;  %s27_s20 = int_to_ptr.vmem [resolvable:$true] %s26_s20 }
  0x1a   :  { %s9182_s21 = scalar_lea.vmem %s27_s20, 98304  ;;  %p9187_p11 = scmp.lt.s32.totalorder %s27_s20, %s27_s20 }
  0x1b   :  { %p9183_p10 = scmp.ne.s32.totalorder %s27_s20, %s9182_s21  ;;  %p9188_p12 = scmp.lt.s32.totalorder %s9182_s21, %s9182_s21 }
  0x1d   :  { %p9189_p13 = por %p9188_p12, %p9187_p11 }
  0x1f   :  { %p9190_p0 = pnand %p9189_p13, %p9183_p10 }
  0x21   :  { %9193 = shalt.err (!%p9190_p0)
}
  0x22   :  { %s9287_s2 = smov 256   ;;  %s9288_s22 = smov 16  }
  0x23   :  { %32 = dma.hbm_to_vmem [thread:$0]  %s9744_s1, 98304, %s27_s20, [#allocation5], %s9287_s2, %s9287_s2, %s9288_s22  }
  0x24   :  { %s9289_s25 = smov [#allocation9]  }
  0x25   :  { %s48_s26 = sshll.u32 %s9289_s25, 4  ;;  %s49_s26 = int_to_ptr.vmem [resolvable:$true] %s48_s26 }
  0x26   :  { %s9202_s4 = scalar_lea.vmem %s49_s26, 8192  ;;  %p9207_p2 = scmp.lt.s32.totalorder %s49_s26, %s49_s26 }
  0x27   :  { %p9203_p1 = scmp.ne.s32.totalorder %s49_s26, %s9202_s4  ;;  %p9208_p3 = scmp.lt.s32.totalorder %s9202_s4, %s9202_s4 }
  0x29   :  { %p9209_p4 = por %p9208_p3, %p9207_p2 }
  0x2b   :  { %p9210_p5 = pnand %p9209_p4, %p9203_p1 }
  0x2d   :  { %9213 = shalt.err (!%p9210_p5)
}
  0x2e   :  { %s9290_s27 = smov 128   ;;  %s9291_s28 = smov 8  }
  0x2f   :  { %54 = dma.hbm_to_vmem [thread:$0]  %s9746_s3, 8192, %s49_s26, [#allocation8], %s9290_s27, %s9290_s27, %s9291_s28  }
  0x30   :  { %s9292_s10 = smov [#allocation12]  }
  0x31   :  { %s70_s11 = sshll.u32 %s9292_s10, 4  ;;  %s71_s11 = int_to_ptr.vmem [resolvable:$true] %s70_s11 }
  0x32   :  { %s9222_s1 = scalar_lea.vmem %s71_s11, 2048  ;;  %p9227_p7 = scmp.lt.s32.totalorder %s71_s11, %s71_s11 }
  0x33   :  { %p9223_p6 = scmp.ne.s32.totalorder %s71_s11, %s9222_s1  ;;  %p9228_p8 = scmp.lt.s32.totalorder %s9222_s1, %s9222_s1 }
  0x35   :  { %p9229_p9 = por %p9228_p8, %p9227_p7 }
  0x37   :  { %p9230_p10 = pnand %p9229_p9, %p9223_p6 }
  0x39   :  { %9233 = shalt.err (!%p9230_p10)
}
  0x3a   :  { %s9293_s12 = smov 64   ;;  %s9294_s13 = smov 4  }
  0x3b   :  { %76 = dma.hbm_to_vmem [thread:$0]  %s9748_s5, 2048, %s71_s11, [#allocation11], %s9293_s12, %s9293_s12, %s9294_s13  }
  0x3c   :  { %s9295_s16 = smov [#allocation13]  }
  0x3d   :  { %s83_s17 = sshll.u32 %s9295_s16, 4  ;;  %s84_s17 = int_to_ptr.vmem [resolvable:$true] %s83_s17 }
  0x3e   :  { %s9242_s3 = scalar_lea.vmem %s84_s17, 16  ;;  %s9246_s18 = scalar_lea.vmem %s84_s17, 32 }
  0x3f   :  { %p9243_p11 = scmp.ne.s32.totalorder %s84_s17, %s9242_s3  ;;  %p9247_p12 = scmp.lt.s32.totalorder %s84_s17, %s84_s17 }
  0x40   :  { %p9248_p13 = scmp.lt.s32.totalorder %s9246_s18, %s9242_s3 }
  0x42   :  { %p9249_p0 = por %p9248_p13, %p9247_p12 }
  0x44   :  { %p9250_p1 = pnand %p9249_p0, %p9243_p11 }
  0x46   :  { %9253 = shalt.err (!%p9250_p1)
}
  0x47   :  { %86 = dma.hbm_to_vmem [thread:$0]  %s9749_s6, 16, %s84_s17, [#allocation14]  }
  0x48   :  { %9274 = dma.done.wait [#allocation5], 98304  }
  0x49   :  { %9275 = vsyncadd [#allocation5], 4294868992 }
  0x4a   :  { %9276 = dma.done.wait [#allocation8], 8256  }
  0x4b   :  { %9277 = vsyncadd [#allocation8], 4294959040 }
  0x4c   :  { %9278 = dma.done.wait [#allocation11], 2080  }
  0x4d   :  { %9279 = vsyncadd [#allocation11], 4294965216 }
  0x4e   :  { %9280 = dma.done.wait [#allocation14], 16  }
  0x4f   :  { %9281 = vsyncadd [#allocation14], 4294967280  ;;  %v7825_v0 = vld [vmem:[#allocation4 + $0xe4] ss:$16 sps:$4 sm:$0xff]   ;;  %v7829_v2 = vld [vmem:[#allocation4 + $0xe0] ss:$16 sps:$4 sm:$0xff]   ;;  %v165_v40 = vlaneseq }
  0x50   :  { %v7827_v1 = vld [vmem:[#allocation4 + $0x2e4] ss:$16 sps:$4 sm:$0xff]   ;;  %5052 = vmatprep.subr.bf16.mxu0 %v7825_v0  ;;  %v7830_v3 = vld [vmem:[#allocation4 + $0x2e0] ss:$16 sps:$4 sm:$0xff]   ;;  %v9296_v38 = vmov 1983009808  }
  0x51   :  { %5093 = vmatprep.subr.bf16.mxu1 %v7827_v1  ;;  %v7831_v4 = vld [vmem:[#allocation4 + $0xc4] ss:$16 sps:$4 sm:$0xff]   ;;  %5053 = vmatpush1.bf16.msra.mxu0 %v7829_v2  ;;  %v7835_v6 = vld [vmem:[#allocation4 + $0xc0] ss:$16 sps:$4 sm:$0xff]   ;;  %v163_v39 = vunpack.c.l.s4 %v9296_v38  ;;  %v9370_v46 = vshrl.u32 %v165_v40, 7  ;;  %vm9298_vm0 = vmmov 0  }
  0x52   :  { %5094 = vmatpush1.bf16.msra.mxu1 %v7830_v3  ;;  %v7833_v5 = vld [vmem:[#allocation4 + $0x2c4] ss:$16 sps:$4 sm:$0xff]   ;;  %5054 = vmatprep.subr.bf16.mxu0 %v7831_v4  ;;  %v7836_v7 = vld [vmem:[#allocation4 + $0x2c0] ss:$16 sps:$4 sm:$0xff]  }
  0x53   :  { %5095 = vmatprep.subr.bf16.mxu1 %v7833_v5  ;;  %v7837_v8 = vld [vmem:[#allocation4 + $0xa4] ss:$16 sps:$4 sm:$0xff]   ;;  %v7841_v10 = vld [vmem:[#allocation4 + $0xa0] ss:$16 sps:$4 sm:$0xff]   ;;  %v164_v45 = vunpack.c.0.s8 %v163_v39 }
  0x54   :  { %v7839_v9 = vld [vmem:[#allocation4 + $0x2a4] ss:$16 sps:$4 sm:$0xff]   ;;  %v7842_v11 = vld [vmem:[#allocation4 + $0x2a0] ss:$16 sps:$4 sm:$0xff]  }
  0x55   :  { %5055 = vmatpush1.bf16.msra.mxu0 %v7835_v6  ;;  %v7843_v12 = vld [vmem:[#allocation4 + $0x84] ss:$16 sps:$4 sm:$0xff]   ;;  %v7847_v14 = vld [vmem:[#allocation4 + $0x80] ss:$16 sps:$4 sm:$0xff]   ;;  %v9373_v53 = vsub.s32 %v164_v45, %v9370_v46 }
  0x56   :  { %5096 = vmatpush1.bf16.msra.mxu1 %v7836_v7  ;;  %5056 = vmatprep.subr.bf16.mxu0 %v7837_v8  ;;  %v7845_v13 = vld [vmem:[#allocation4 + $0x284] ss:$16 sps:$4 sm:$0xff]   ;;  %v7848_v15 = vld [vmem:[#allocation4 + $0x280] ss:$16 sps:$4 sm:$0xff]  }
  0x57   :  { %5097 = vmatprep.subr.bf16.mxu1 %v7839_v9  ;;  %v7849_v16 = vld [vmem:[#allocation4 + $0x64] ss:$16 sps:$4 sm:$0xff]   ;;  %v7853_v18 = vld [vmem:[#allocation4 + $0x60] ss:$16 sps:$4 sm:$0xff]  }
  0x58   :  { %v7851_v17 = vld [vmem:[#allocation4 + $0x264] ss:$16 sps:$4 sm:$0xff]   ;;  %v7854_v19 = vld [vmem:[#allocation4 + $0x260] ss:$16 sps:$4 sm:$0xff]  }
  0x59   :  { %5057 = vmatpush1.bf16.msra.mxu0 %v7841_v10  ;;  %v7855_v20 = vld [vmem:[#allocation4 + $0x44] ss:$16 sps:$4 sm:$0xff]   ;;  %v7859_v22 = vld [vmem:[#allocation4 + $0x40] ss:$16 sps:$4 sm:$0xff]  }
  0x5a   :  { %5098 = vmatpush1.bf16.msra.mxu1 %v7842_v11  ;;  %5058 = vmatprep.subr.bf16.mxu0 %v7843_v12  ;;  %v7857_v21 = vld [vmem:[#allocation4 + $0x244] ss:$16 sps:$4 sm:$0xff]   ;;  %v7860_v23 = vld [vmem:[#allocation4 + $0x240] ss:$16 sps:$4 sm:$0xff]  }
  0x5b   :  { %5099 = vmatprep.subr.bf16.mxu1 %v7845_v13  ;;  %v7861_v24 = vld [vmem:[#allocation4 + $0x24] ss:$16 sps:$4 sm:$0xff]   ;;  %v7865_v26 = vld [vmem:[#allocation4 + $0x20] ss:$16 sps:$4 sm:$0xff]  }
  0x5c   :  { %v7863_v25 = vld [vmem:[#allocation4 + $0x224] ss:$16 sps:$4 sm:$0xff]   ;;  %v7866_v27 = vld [vmem:[#allocation4 + $0x220] ss:$16 sps:$4 sm:$0xff]  }
  0x5d   :  { %5059 = vmatpush1.bf16.msra.mxu0 %v7847_v14  ;;  %v7867_v28 = vld [vmem:[#allocation4 + $0x4] ss:$16 sps:$4 sm:$0xff]   ;;  %v7871_v30 = vld [vmem:[#allocation4] ss:$16 sps:$4 sm:$0xff]  }
  0x5e   :  { %5100 = vmatpush1.bf16.msra.mxu1 %v7848_v15  ;;  %5060 = vmatprep.subr.bf16.mxu0 %v7849_v16  ;;  %v7869_v29 = vld [vmem:[#allocation4 + $0x204] ss:$16 sps:$4 sm:$0xff]   ;;  %v7872_v31 = vld [vmem:[#allocation4 + $0x200] ss:$16 sps:$4 sm:$0xff]  }
  0x5f   :  { %5101 = vmatprep.subr.bf16.mxu1 %v7851_v17  ;;  %v7873_v32 = vld [vmem:[#allocation4 + $0x1e4] ss:$16 sps:$4 sm:$0xff]   ;;  %v7877_v34 = vld [vmem:[#allocation4 + $0x1e0] ss:$16 sps:$4 sm:$0xff]  }
  0x60   :  { %v7875_v33 = vld [vmem:[#allocation4 + $0x3e4] ss:$16 sps:$4 sm:$0xff]   ;;  %v7878_v35 = vld [vmem:[#allocation4 + $0x3e0] ss:$16 sps:$4 sm:$0xff]  }
  0x61   :  { %5061 = vmatpush1.bf16.msra.mxu0 %v7853_v18  ;;  %v7879_v36 = vld [vmem:[#allocation4 + $0x1c4] ss:$16 sps:$4 sm:$0xff]   ;;  %v7883_v41 = vld [vmem:[#allocation4 + $0x1c0] ss:$16 sps:$4 sm:$0xff]  }
  0x62   :  { %5102 = vmatpush1.bf16.msra.mxu1 %v7854_v19  ;;  %5062 = vmatprep.subr.bf16.mxu0 %v7855_v20  ;;  %v7881_v37 = vld [vmem:[#allocation4 + $0x3c4] ss:$16 sps:$4 sm:$0xff]   ;;  %v7884_v42 = vld [vmem:[#allocation4 + $0x3c0] ss:$16 sps:$4 sm:$0xff]  }
  0x63   :  { %5103 = vmatprep.subr.bf16.mxu1 %v7857_v21  ;;  %v7885_v43 = vld [vmem:[#allocation4 + $0x1a4] ss:$16 sps:$4 sm:$0xff]   ;;  %v7889_v47 = vld [vmem:[#allocation4 + $0x1a0] ss:$16 sps:$4 sm:$0xff]  }
  0x64   :  { %v7887_v44 = vld [vmem:[#allocation4 + $0x3a4] ss:$16 sps:$4 sm:$0xff]   ;;  %v7890_v48 = vld [vmem:[#allocation4 + $0x3a0] ss:$16 sps:$4 sm:$0xff]  }
  0x65   :  { %5063 = vmatpush1.bf16.msra.mxu0 %v7859_v22  ;;  %v7891_v49 = vld [vmem:[#allocation4 + $0x184] ss:$16 sps:$4 sm:$0xff]   ;;  %v7895_v51 = vld [vmem:[#allocation4 + $0x180] ss:$16 sps:$4 sm:$0xff]  }
  0x66   :  { %5104 = vmatpush1.bf16.msra.mxu1 %v7860_v23  ;;  %5064 = vmatprep.subr.bf16.mxu0 %v7861_v24  ;;  %v7893_v50 = vld [vmem:[#allocation4 + $0x384] ss:$16 sps:$4 sm:$0xff]   ;;  %v7896_v52 = vld [vmem:[#allocation4 + $0x380] ss:$16 sps:$4 sm:$0xff]  }
  0x67   :  { %5105 = vmatprep.subr.bf16.mxu1 %v7863_v25  ;;  %v7897_v54 = vld [vmem:[#allocation4 + $0x164] ss:$16 sps:$4 sm:$0xff]   ;;  %v7921_v56 = vld [vmem:[%s9743_s0] ss:$48 sps:$4 sm:$0xff]  }
  0x68   :  { %v7899_v55 = vld [vmem:[#allocation4 + $0x364] ss:$16 sps:$4 sm:$0xff]   ;;  %v7923_v57 = vld [vmem:[%s9743_s0 + $0x60] ss:$48 sps:$4 sm:$0xff]   ;;  %v168_v60 = vrot.slane %v7921_v56, %v9373_v53  ;;  %v8027_v56 = vld [vmem:[%s9743_s0 + $0xc] ss:$48 sps:$4 sm:$0xff]  }
  0x69   :  { %5065 = vmatpush1.bf16.msra.mxu0 %v7865_v26  ;;  %v7925_v58 = vld [vmem:[%s9743_s0 + $0x4] ss:$48 sps:$4 sm:$0xff]   ;;  %v182_v61 = vrot.slane %v7923_v57, %v9373_v53  ;;  %v7901_v63 = vld [vmem:[#allocation4 + $0x160] ss:$16 sps:$4 sm:$0xff]   ;;  %v8028_v57 = vld [vmem:[%s9743_s0 + $0x6c] ss:$48 sps:$4 sm:$0xff]  }
  0x6a   :  { %5106 = vmatpush1.bf16.msra.mxu1 %v7866_v27  ;;  %5066 = vmatprep.subr.bf16.mxu0 %v7867_v28  ;;  %v7926_v59 = vld [vmem:[%s9743_s0 + $0x64] ss:$48 sps:$4 sm:$0xff]   ;;  %v175_v62 = vrot.slane %v7925_v58, %v9373_v53  ;;  %v7902_v0 = vld [vmem:[#allocation4 + $0x360] ss:$16 sps:$4 sm:$0xff]  }
  0x6b   :  { %5107 = vmatprep.subr.bf16.mxu1 %v7869_v29  ;;  %v189_v1 = vrot.slane %v7926_v59, %v9373_v53  ;;  %v7903_v2 = vld [vmem:[#allocation4 + $0x144] ss:$16 sps:$4 sm:$0xff]   ;;  %v191_v3 = vcombine.high %v168_v60, %v182_v61  ;;  %v7907_v7 = vld [vmem:[#allocation4 + $0x140] ss:$16 sps:$4 sm:$0xff]   ;;  %v190_v18 = vcombine.low %v168_v60, %v182_v61 }
  0x6c   :  { %v7905_v4 = vld [vmem:[#allocation4 + $0x344] ss:$16 sps:$4 sm:$0xff]   ;;  %v7908_v8 = vld [vmem:[#allocation4 + $0x340] ss:$16 sps:$4 sm:$0xff]  }
  0x6d   :  { %5067 = vmatpush1.bf16.msra.mxu0 %v7871_v30  ;;  %v193_v5 = vcombine.high %v175_v62, %v189_v1  ;;  %v9391_v6 = vpack.c.bf16 %v191_v3, %v191_v3  ;;  %v7909_v10 = vld [vmem:[#allocation4 + $0x124] ss:$16 sps:$4 sm:$0xff]   ;;  %v7913_v12 = vld [vmem:[#allocation4 + $0x120] ss:$16 sps:$4 sm:$0xff]   ;;  %v192_v19 = vcombine.low %v175_v62, %v189_v1  ;;  %v9397_v22 = vpack.c.bf16 %v190_v18, %v190_v18 }
  0x6e   :  { %5108 = vmatpush1.bf16.msra.mxu1 %v7872_v31  ;;  %5068 = vmatprep.subr.bf16.mxu0 %v7873_v32  ;;  %v7911_v11 = vld [vmem:[#allocation4 + $0x324] ss:$16 sps:$4 sm:$0xff]   ;;  %v7914_v13 = vld [vmem:[#allocation4 + $0x320] ss:$16 sps:$4 sm:$0xff]  }
  0x6f   :  { %5109 = vmatprep.subr.bf16.mxu1 %v7875_v33  ;;  %v9393_v9 = vpack.c.bf16 %v193_v5, %v193_v5  ;;  %5084 = vmatprep.mubr.bf16.mxu0 %v9391_v6  ;;  %v7915_v14 = vld [vmem:[#allocation4 + $0x104] ss:$16 sps:$4 sm:$0xff]   ;;  %v7919_v16 = vld [vmem:[#allocation4 + $0x100] ss:$16 sps:$4 sm:$0xff]   ;;  %v9399_v23 = vpack.c.bf16 %v192_v19, %v192_v19 }
  0x70   :  { %v7917_v15 = vld [vmem:[#allocation4 + $0x304] ss:$16 sps:$4 sm:$0xff]   ;;  %v7920_v17 = vld [vmem:[#allocation4 + $0x300] ss:$16 sps:$4 sm:$0xff]  }
  0x71   :  { %5069 = vmatpush2.bf16.msra.mxu0 %v7877_v34  ;;  %5125 = vmatprep.mubr.bf16.mxu1 %v9393_v9  ;;  %v7929_v20 = vld [vmem:[#allocation4 + $0x4e4] ss:$16 sps:$4 sm:$0xff]   ;;  %v7927_v24 = vld [vmem:[#allocation4 + $0x4e0] ss:$16 sps:$4 sm:$0xff]  }
  0x72   :  { %5110 = vmatpush2.bf16.msra.mxu1 %v7878_v35  ;;  %5070 = vmatprep.subr.bf16.mxu0 %v7879_v36  ;;  %v7932_v21 = vld [vmem:[#allocation4 + $0x6e4] ss:$16 sps:$4 sm:$0xff]   ;;  %v7930_v25 = vld [vmem:[#allocation4 + $0x6e0] ss:$16 sps:$4 sm:$0xff]  }
  0x73   :  { %5111 = vmatprep.subr.bf16.mxu1 %v7881_v37  ;;  %v7935_v26 = vld [vmem:[#allocation4 + $0x4c4] ss:$16 sps:$4 sm:$0xff]   ;;  %v7933_v28 = vld [vmem:[#allocation4 + $0x4c0] ss:$16 sps:$4 sm:$0xff]  }
  0x74   :  { %v7938_v27 = vld [vmem:[#allocation4 + $0x6c4] ss:$16 sps:$4 sm:$0xff]   ;;  %v7936_v29 = vld [vmem:[#allocation4 + $0x6c0] ss:$16 sps:$4 sm:$0xff]  }
  0x75   :  { %5071 = vmatpush2.bf16.msra.mxu0 %v7883_v41  ;;  %v7941_v30 = vld [vmem:[#allocation4 + $0x4a4] ss:$16 sps:$4 sm:$0xff]   ;;  %v7939_v32 = vld [vmem:[#allocation4 + $0x4a0] ss:$16 sps:$4 sm:$0xff]  }
  0x76   :  { %5112 = vmatpush2.bf16.msra.mxu1 %v7884_v42  ;;  %5072 = vmatprep.subr.bf16.mxu0 %v7885_v43  ;;  %v7944_v31 = vld [vmem:[#allocation4 + $0x6a4] ss:$16 sps:$4 sm:$0xff]   ;;  %v7942_v33 = vld [vmem:[#allocation4 + $0x6a0] ss:$16 sps:$4 sm:$0xff]  }
  0x77   :  { %5113 = vmatprep.subr.bf16.mxu1 %v7887_v44  ;;  %v7947_v34 = vld [vmem:[#allocation4 + $0x484] ss:$16 sps:$4 sm:$0xff]   ;;  %v7945_v36 = vld [vmem:[#allocation4 + $0x480] ss:$16 sps:$4 sm:$0xff]  }
  0x78   :  { %v7950_v35 = vld [vmem:[#allocation4 + $0x684] ss:$16 sps:$4 sm:$0xff]   ;;  %v7948_v37 = vld [vmem:[#allocation4 + $0x680] ss:$16 sps:$4 sm:$0xff]  }
  0x79   :  { %5073 = vmatpush2.bf16.msra.mxu0 %v7889_v47  ;;  %v7953_v38 = vld [vmem:[#allocation4 + $0x464] ss:$16 sps:$4 sm:$0xff]   ;;  %v7951_v40 = vld [vmem:[#allocation4 + $0x460] ss:$16 sps:$4 sm:$0xff]  }
  0x7a   :  { %5114 = vmatpush2.bf16.msra.mxu1 %v7890_v48  ;;  %5074 = vmatprep.subr.bf16.mxu0 %v7891_v49  ;;  %v7956_v39 = vld [vmem:[#allocation4 + $0x664] ss:$16 sps:$4 sm:$0xff]   ;;  %v7954_v41 = vld [vmem:[#allocation4 + $0x660] ss:$16 sps:$4 sm:$0xff]  }
  0x7b   :  { %5115 = vmatprep.subr.bf16.mxu1 %v7893_v50  ;;  %v7959_v42 = vld [vmem:[#allocation4 + $0x444] ss:$16 sps:$4 sm:$0xff]   ;;  %v7957_v44 = vld [vmem:[#allocation4 + $0x440] ss:$16 sps:$4 sm:$0xff]  }
  0x7c   :  { %v7962_v43 = vld [vmem:[#allocation4 + $0x644] ss:$16 sps:$4 sm:$0xff]   ;;  %v7960_v45 = vld [vmem:[#allocation4 + $0x640] ss:$16 sps:$4 sm:$0xff]  }
  0x7d   :  { %5075 = vmatpush2.bf16.msra.mxu0 %v7895_v51  ;;  %v7965_v47 = vld [vmem:[#allocation4 + $0x424] ss:$16 sps:$4 sm:$0xff]   ;;  %v7963_v49 = vld [vmem:[#allocation4 + $0x420] ss:$16 sps:$4 sm:$0xff]  }
  0x7e   :  { %5116 = vmatpush2.bf16.msra.mxu1 %v7896_v52  ;;  %5076 = vmatprep.subr.bf16.mxu0 %v7897_v54  ;;  %v7968_v48 = vld [vmem:[#allocation4 + $0x624] ss:$16 sps:$4 sm:$0xff]   ;;  %v7966_v50 = vld [vmem:[#allocation4 + $0x620] ss:$16 sps:$4 sm:$0xff]   ;;  %v8023_v54 = vld [vmem:[%s9743_s0 + $0x8] ss:$48 sps:$4 sm:$0xff]  }
  0x7f   :  { %5117 = vmatprep.subr.bf16.mxu1 %v7899_v55  ;;  %v7971_v51 = vld [vmem:[#allocation4 + $0x404] ss:$16 sps:$4 sm:$0xff]   ;;  %v8025_v55 = vld [vmem:[%s9743_s0 + $0x68] ss:$48 sps:$4 sm:$0xff]   ;;  %v7969_v58 = vld [vmem:[#allocation4 + $0x400] ss:$16 sps:$4 sm:$0xff]   ;;  %v9416_v60 = vrot.slane %v8023_v54, %v9373_v53 }
  0x80   :  { %v7974_v52 = vld [vmem:[#allocation4 + $0x604] ss:$16 sps:$4 sm:$0xff]   ;;  %v7972_v59 = vld [vmem:[#allocation4 + $0x600] ss:$16 sps:$4 sm:$0xff]   ;;  %v9419_v61 = vrot.slane %v8025_v55, %v9373_v53 }
  0x81   :  { %5077 = vmatpush2.bf16.msra.mxu0 %v7901_v63  ;;  %v7977_v62 = vld [vmem:[#allocation4 + $0x5e4] ss:$16 sps:$4 sm:$0xff]   ;;  %v9422_v63 = vrot.slane %v8027_v56, %v9373_v53  ;;  %v7978_v5 = vld [vmem:[#allocation4 + $0x7e0] ss:$16 sps:$4 sm:$0xff]  }
  0x82   :  { %5118 = vmatpush2.bf16.msra.mxu1 %v7902_v0  ;;  %5078 = vmatprep.subr.bf16.mxu0 %v7903_v2  ;;  %v9425_v0 = vrot.slane %v8028_v57, %v9373_v53  ;;  %v7980_v1 = vld [vmem:[#allocation4 + $0x7e4] ss:$16 sps:$4 sm:$0xff]   ;;  %v227_v2 = vcombine.high %v9416_v60, %v9419_v61  ;;  %v8041_v56 = vld [vmem:[#allocation4 + $0x8a0] ss:$16 sps:$4 sm:$0xff]  }
  0x83   :  { %5119 = vmatprep.subr.bf16.mxu1 %v7905_v4  ;;  %v7975_v4 = vld [vmem:[#allocation4 + $0x5e0] ss:$16 sps:$4 sm:$0xff]   ;;  %v7995_v18 = vld [vmem:[#allocation4 + $0x584] ss:$16 sps:$4 sm:$0xff]  }
  0x84   :  { %v229_v3 = vcombine.high %v9422_v63, %v9425_v0  ;;  %v7998_v19 = vld [vmem:[#allocation4 + $0x784] ss:$16 sps:$4 sm:$0xff]   ;;  %v8044_v57 = vld [vmem:[#allocation4 + $0xaa0] ss:$16 sps:$4 sm:$0xff]  }
  0x85   :  { %5079 = vmatpush2.bf16.msra.mxu0 %v7907_v7  ;;  %v9431_v7 = vpack.c.bf16 %v227_v2, %v227_v2  ;;  %v8043_v54 = vld [vmem:[#allocation4 + $0x8a4] ss:$16 sps:$4 sm:$0xff]  }
  0x86   :  { %5120 = vmatpush2.bf16.msra.mxu1 %v7908_v8  ;;  %5080 = vmatprep.subr.bf16.mxu0 %v7909_v10  ;;  %v7983_v8 = vld [vmem:[#allocation4 + $0x5c4] ss:$16 sps:$4 sm:$0xff]   ;;  %v9433_v10 = vpack.c.bf16 %v229_v3, %v229_v3 }
  0x87   :  { %5121 = vmatprep.subr.bf16.mxu1 %v7911_v11  ;;  %v7986_v11 = vld [vmem:[#allocation4 + $0x7c4] ss:$16 sps:$4 sm:$0xff]  }
  0x88   :  { %v8046_v55 = vld [vmem:[#allocation4 + $0xaa4] ss:$16 sps:$4 sm:$0xff]  }
  0x89   :  { %5081 = vmatpush2.bf16.msra.mxu0 %v7913_v12  ;;  %v7981_v12 = vld [vmem:[#allocation4 + $0x5c0] ss:$16 sps:$4 sm:$0xff]  }
  0x8a   :  { %5122 = vmatpush2.bf16.msra.mxu1 %v7914_v13  ;;  %5082 = vmatprep.subr.bf16.mxu0 %v7915_v14  ;;  %v7984_v13 = vld [vmem:[#allocation4 + $0x7c0] ss:$16 sps:$4 sm:$0xff]   ;;  %v7989_v14 = vld [vmem:[#allocation4 + $0x5a4] ss:$16 sps:$4 sm:$0xff]  }
  0x8b   :  { %5123 = vmatprep.subr.bf16.mxu1 %v7917_v15  ;;  %v7992_v15 = vld [vmem:[#allocation4 + $0x7a4] ss:$16 sps:$4 sm:$0xff]  }
  0x8d   :  { %5083 = vmatpush2.bf16.msra.mxu0 %v7919_v16  ;;  %v7987_v16 = vld [vmem:[#allocation4 + $0x5a0] ss:$16 sps:$4 sm:$0xff]  }
  0x8e   :  { %5124 = vmatpush2.bf16.msra.mxu1 %v7920_v17  ;;  %5134 = vmatprep.subr.bf16.mxu0 %v7929_v20  ;;  %v7990_v17 = vld [vmem:[#allocation4 + $0x7a0] ss:$16 sps:$4 sm:$0xff]  }
  0x8f   :  { %5175 = vmatprep.subr.bf16.mxu1 %v7932_v21  ;;  %v7993_v20 = vld [vmem:[#allocation4 + $0x580] ss:$16 sps:$4 sm:$0xff]  }
  0x90   :  { %5085 = vmatmul.mubr.bf16.vlgmr.msra.gmra.mxu0 %v9397_v22  ;;  %v7996_v21 = vld [vmem:[#allocation4 + $0x780] ss:$16 sps:$4 sm:$0xff]  }
  0x91   :  { %5126 = vmatmul.mubr.bf16.vlgmr.msra.gmra.mxu1 %v9399_v23  ;;  %5135 = vmatpush1.bf16.msra.mxu0 %v7927_v24  ;;  %v8001_v24 = vld [vmem:[#allocation4 + $0x564] ss:$16 sps:$4 sm:$0xff]  }
  0x92   :  { %5176 = vmatpush1.bf16.msra.mxu1 %v7930_v25  ;;  %5136 = vmatprep.subr.bf16.mxu0 %v7935_v26  ;;  %v8004_v25 = vld [vmem:[#allocation4 + $0x764] ss:$16 sps:$4 sm:$0xff]   ;;  %v7999_v26 = vld [vmem:[#allocation4 + $0x560] ss:$16 sps:$4 sm:$0xff]  }
  0x93   :  { %5177 = vmatprep.subr.bf16.mxu1 %v7938_v27  ;;  %5166 = vmatprep.mubr.bf16.mxu0 %v9431_v7  ;;  %v8002_v27 = vld [vmem:[#allocation4 + $0x760] ss:$16 sps:$4 sm:$0xff]  }
  0x94   :  { %5207 = vmatprep.mubr.bf16.mxu1 %v9433_v10 }
  0x95   :  { %5137 = vmatpush1.bf16.msra.mxu0 %v7933_v28  ;;  %v8007_v28 = vld [vmem:[#allocation4 + $0x544] ss:$16 sps:$4 sm:$0xff]  }
  0x96   :  { %5178 = vmatpush1.bf16.msra.mxu1 %v7936_v29  ;;  %5138 = vmatprep.subr.bf16.mxu0 %v7941_v30  ;;  %v8010_v29 = vld [vmem:[#allocation4 + $0x744] ss:$16 sps:$4 sm:$0xff]   ;;  %v8005_v30 = vld [vmem:[#allocation4 + $0x540] ss:$16 sps:$4 sm:$0xff]  }
  0x97   :  { %5179 = vmatprep.subr.bf16.mxu1 %v7944_v31  ;;  %v8008_v31 = vld [vmem:[#allocation4 + $0x740] ss:$16 sps:$4 sm:$0xff]  }
  0x99   :  { %5139 = vmatpush1.bf16.msra.mxu0 %v7939_v32  ;;  %v8013_v32 = vld [vmem:[#allocation4 + $0x524] ss:$16 sps:$4 sm:$0xff]  }
  0x9a   :  { %5180 = vmatpush1.bf16.msra.mxu1 %v7942_v33  ;;  %5140 = vmatprep.subr.bf16.mxu0 %v7947_v34  ;;  %v8016_v33 = vld [vmem:[#allocation4 + $0x724] ss:$16 sps:$4 sm:$0xff]   ;;  %v8011_v34 = vld [vmem:[#allocation4 + $0x520] ss:$16 sps:$4 sm:$0xff]  }
  0x9b   :  { %5181 = vmatprep.subr.bf16.mxu1 %v7950_v35  ;;  %v8014_v35 = vld [vmem:[#allocation4 + $0x720] ss:$16 sps:$4 sm:$0xff]  }
  0x9d   :  { %5141 = vmatpush1.bf16.msra.mxu0 %v7945_v36  ;;  %v8019_v36 = vld [vmem:[#allocation4 + $0x504] ss:$16 sps:$4 sm:$0xff]  }
  0x9e   :  { %5182 = vmatpush1.bf16.msra.mxu1 %v7948_v37  ;;  %5142 = vmatprep.subr.bf16.mxu0 %v7953_v38  ;;  %v8022_v37 = vld [vmem:[#allocation4 + $0x704] ss:$16 sps:$4 sm:$0xff]   ;;  %v8017_v38 = vld [vmem:[#allocation4 + $0x500] ss:$16 sps:$4 sm:$0xff]  }
  0x9f   :  { %5183 = vmatprep.subr.bf16.mxu1 %v7956_v39  ;;  %v8020_v39 = vld [vmem:[#allocation4 + $0x700] ss:$16 sps:$4 sm:$0xff]  }
  0xa1   :  { %5143 = vmatpush1.bf16.msra.mxu0 %v7951_v40  ;;  %v226_v40 = vcombine.low %v9416_v60, %v9419_v61  ;;  %v8129_v60 = vld [vmem:[%s9743_s0 + $0x14] ss:$48 sps:$4 sm:$0xff]  }
  0xa2   :  { %5184 = vmatpush1.bf16.msra.mxu1 %v7954_v41  ;;  %5144 = vmatprep.subr.bf16.mxu0 %v7959_v42  ;;  %v228_v41 = vcombine.low %v9422_v63, %v9425_v0  ;;  %v8031_v42 = vld [vmem:[#allocation4 + $0x8e4] ss:$16 sps:$4 sm:$0xff]   ;;  %v9466_v2 = vrot.slane %v8129_v60, %v9373_v53 }
  0xa3   :  { %5185 = vmatprep.subr.bf16.mxu1 %v7962_v43  ;;  %v8034_v43 = vld [vmem:[#allocation4 + $0xae4] ss:$16 sps:$4 sm:$0xff]  }
  0xa4   :  { %v8130_v61 = vld [vmem:[%s9743_s0 + $0x74] ss:$48 sps:$4 sm:$0xff]  }
  0xa5   :  { %5145 = vmatpush1.bf16.msra.mxu0 %v7957_v44  ;;  %v9441_v44 = vpack.c.bf16 %v226_v40, %v226_v40  ;;  %v8052_v0 = vld [vmem:[#allocation4 + $0xa84] ss:$16 sps:$4 sm:$0xff]   ;;  %v9469_v3 = vrot.slane %v8130_v61, %v9373_v53 }
  0xa6   :  { %5186 = vmatpush1.bf16.msra.mxu1 %v7960_v45  ;;  %5146 = vmatprep.subr.bf16.mxu0 %v7965_v47  ;;  %v9443_v45 = vpack.c.bf16 %v228_v41, %v228_v41  ;;  %v8029_v47 = vld [vmem:[#allocation4 + $0x8e0] ss:$16 sps:$4 sm:$0xff]   ;;  %v8091_v40 = vld [vmem:[#allocation4 + $0x9a4] ss:$16 sps:$4 sm:$0xff]  }
  0xa7   :  { %5187 = vmatprep.subr.bf16.mxu1 %v7968_v48  ;;  %v8032_v48 = vld [vmem:[#allocation4 + $0xae0] ss:$16 sps:$4 sm:$0xff]   ;;  %v8094_v41 = vld [vmem:[#allocation4 + $0xba4] ss:$16 sps:$4 sm:$0xff]  }
  0xa8   :  { %v8115_v60 = vld [vmem:[#allocation4 + $0x924] ss:$16 sps:$4 sm:$0xff]  }
  0xa9   :  { %5147 = vmatpush1.bf16.msra.mxu0 %v7963_v49  ;;  %v8037_v49 = vld [vmem:[#allocation4 + $0x8c4] ss:$16 sps:$4 sm:$0xff]  }
  0xaa   :  { %5188 = vmatpush1.bf16.msra.mxu1 %v7966_v50  ;;  %5148 = vmatprep.subr.bf16.mxu0 %v7971_v51  ;;  %v8040_v50 = vld [vmem:[#allocation4 + $0xac4] ss:$16 sps:$4 sm:$0xff]   ;;  %v8035_v51 = vld [vmem:[#allocation4 + $0x8c0] ss:$16 sps:$4 sm:$0xff]  }
  0xab   :  { %5189 = vmatprep.subr.bf16.mxu1 %v7974_v52  ;;  %v8038_v52 = vld [vmem:[#allocation4 + $0xac0] ss:$16 sps:$4 sm:$0xff]   ;;  %v8118_v61 = vld [vmem:[#allocation4 + $0xb24] ss:$16 sps:$4 sm:$0xff]  }
  0xad   :  { %5149 = vmatpush1.bf16.msra.mxu0 %v7969_v58  ;;  %v8125_v58 = vld [vmem:[%s9743_s0 + $0x10] ss:$48 sps:$4 sm:$0xff]  }
  0xae   :  { %5190 = vmatpush1.bf16.msra.mxu1 %v7972_v59  ;;  %5150 = vmatprep.subr.bf16.mxu0 %v7977_v62  ;;  %v8127_v59 = vld [vmem:[%s9743_s0 + $0x70] ss:$48 sps:$4 sm:$0xff]   ;;  %v8049_v62 = vld [vmem:[#allocation4 + $0x884] ss:$16 sps:$4 sm:$0xff]   ;;  %v9460_v63 = vrot.slane %v8125_v58, %v9373_v53 }
  0xaf   :  { %5191 = vmatprep.subr.bf16.mxu1 %v7980_v1  ;;  %v9463_v1 = vrot.slane %v8127_v59, %v9373_v53  ;;  %v8107_v58 = vld [vmem:[#allocation4 + $0x940] ss:$16 sps:$4 sm:$0xff]  }
  0xb0   :  { %v8110_v59 = vld [vmem:[#allocation4 + $0xb40] ss:$16 sps:$4 sm:$0xff]  }
  0xb1   :  { %5151 = vmatpush2.bf16.msra.mxu0 %v7975_v4  ;;  %v8047_v4 = vld [vmem:[#allocation4 + $0x880] ss:$16 sps:$4 sm:$0xff]  }
  0xb2   :  { %5192 = vmatpush2.bf16.msra.mxu1 %v7978_v5  ;;  %5152 = vmatprep.subr.bf16.mxu0 %v7983_v8  ;;  %v8050_v5 = vld [vmem:[#allocation4 + $0xa80] ss:$16 sps:$4 sm:$0xff]   ;;  %v263_v8 = vcombine.high %v9460_v63, %v9463_v1 }
  0xb3   :  { %5193 = vmatprep.subr.bf16.mxu1 %v7986_v11  ;;  %v265_v11 = vcombine.high %v9466_v2, %v9469_v3 }
  0xb5   :  { %5153 = vmatpush2.bf16.msra.mxu0 %v7981_v12  ;;  %v8055_v12 = vld [vmem:[#allocation4 + $0x864] ss:$16 sps:$4 sm:$0xff]  }
  0xb6   :  { %5194 = vmatpush2.bf16.msra.mxu1 %v7984_v13  ;;  %5154 = vmatprep.subr.bf16.mxu0 %v7989_v14  ;;  %v8058_v13 = vld [vmem:[#allocation4 + $0xa64] ss:$16 sps:$4 sm:$0xff]   ;;  %v9475_v14 = vpack.c.bf16 %v263_v8, %v263_v8  ;;  %v8113_v8 = vld [vmem:[#allocation4 + $0x920] ss:$16 sps:$4 sm:$0xff]  }
  0xb7   :  { %5195 = vmatprep.subr.bf16.mxu1 %v7992_v15  ;;  %v9477_v15 = vpack.c.bf16 %v265_v11, %v265_v11  ;;  %v8116_v11 = vld [vmem:[#allocation4 + $0xb20] ss:$16 sps:$4 sm:$0xff]  }
  0xb9   :  { %5155 = vmatpush2.bf16.msra.mxu0 %v7987_v16  ;;  %v8053_v16 = vld [vmem:[#allocation4 + $0x860] ss:$16 sps:$4 sm:$0xff]  }
  0xba   :  { %5196 = vmatpush2.bf16.msra.mxu1 %v7990_v17  ;;  %5156 = vmatprep.subr.bf16.mxu0 %v7995_v18  ;;  %v8056_v17 = vld [vmem:[#allocation4 + $0xa60] ss:$16 sps:$4 sm:$0xff]   ;;  %v8061_v18 = vld [vmem:[#allocation4 + $0x844] ss:$16 sps:$4 sm:$0xff]  }
  0xbb   :  { %5197 = vmatprep.subr.bf16.mxu1 %v7998_v19  ;;  %v8064_v19 = vld [vmem:[#allocation4 + $0xa44] ss:$16 sps:$4 sm:$0xff]  }
  0xbd   :  { %5157 = vmatpush2.bf16.msra.mxu0 %v7993_v20  ;;  %v8059_v20 = vld [vmem:[#allocation4 + $0x840] ss:$16 sps:$4 sm:$0xff]  }
  0xbe   :  { %5198 = vmatpush2.bf16.msra.mxu1 %v7996_v21  ;;  %5158 = vmatprep.subr.bf16.mxu0 %v8001_v24  ;;  %v8062_v21 = vld [vmem:[#allocation4 + $0xa40] ss:$16 sps:$4 sm:$0xff]   ;;  %v8067_v24 = vld [vmem:[#allocation4 + $0x824] ss:$16 sps:$4 sm:$0xff]  }
  0xbf   :  { %5199 = vmatprep.subr.bf16.mxu1 %v8004_v25  ;;  %v8070_v25 = vld [vmem:[#allocation4 + $0xa24] ss:$16 sps:$4 sm:$0xff]  }
  0xc1   :  { %5159 = vmatpush2.bf16.msra.mxu0 %v7999_v26  ;;  %v8065_v26 = vld [vmem:[#allocation4 + $0x820] ss:$16 sps:$4 sm:$0xff]  }
  0xc2   :  { %5200 = vmatpush2.bf16.msra.mxu1 %v8002_v27  ;;  %5160 = vmatprep.subr.bf16.mxu0 %v8007_v28  ;;  %v8068_v27 = vld [vmem:[#allocation4 + $0xa20] ss:$16 sps:$4 sm:$0xff]   ;;  %v8073_v28 = vld [vmem:[#allocation4 + $0x804] ss:$16 sps:$4 sm:$0xff]  }
  0xc3   :  { %5201 = vmatprep.subr.bf16.mxu1 %v8010_v29  ;;  %v8076_v29 = vld [vmem:[#allocation4 + $0xa04] ss:$16 sps:$4 sm:$0xff]  }
  0xc5   :  { %5161 = vmatpush2.bf16.msra.mxu0 %v8005_v30  ;;  %v8071_v30 = vld [vmem:[#allocation4 + $0x800] ss:$16 sps:$4 sm:$0xff]  }
  0xc6   :  { %5202 = vmatpush2.bf16.msra.mxu1 %v8008_v31  ;;  %5162 = vmatprep.subr.bf16.mxu0 %v8013_v32  ;;  %v8074_v31 = vld [vmem:[#allocation4 + $0xa00] ss:$16 sps:$4 sm:$0xff]   ;;  %v8079_v32 = vld [vmem:[#allocation4 + $0x9e4] ss:$16 sps:$4 sm:$0xff]  }
  0xc7   :  { %5203 = vmatprep.subr.bf16.mxu1 %v8016_v33  ;;  %v8082_v33 = vld [vmem:[#allocation4 + $0xbe4] ss:$16 sps:$4 sm:$0xff]  }
  0xc9   :  { %5163 = vmatpush2.bf16.msra.mxu0 %v8011_v34  ;;  %v8077_v34 = vld [vmem:[#allocation4 + $0x9e0] ss:$16 sps:$4 sm:$0xff]  }
  0xca   :  { %5204 = vmatpush2.bf16.msra.mxu1 %v8014_v35  ;;  %5164 = vmatprep.subr.bf16.mxu0 %v8019_v36  ;;  %v8080_v35 = vld [vmem:[#allocation4 + $0xbe0] ss:$16 sps:$4 sm:$0xff]   ;;  %v8085_v36 = vld [vmem:[#allocation4 + $0x9c4] ss:$16 sps:$4 sm:$0xff]  }
  0xcb   :  { %5205 = vmatprep.subr.bf16.mxu1 %v8022_v37  ;;  %v8088_v37 = vld [vmem:[#allocation4 + $0xbc4] ss:$16 sps:$4 sm:$0xff]  }
  0xcd   :  { %5165 = vmatpush2.bf16.msra.mxu0 %v8017_v38  ;;  %v8083_v38 = vld [vmem:[#allocation4 + $0x9c0] ss:$16 sps:$4 sm:$0xff]  }
  0xce   :  { %5206 = vmatpush2.bf16.msra.mxu1 %v8020_v39  ;;  %5216 = vmatprep.subr.bf16.mxu0 %v8031_v42  ;;  %v8086_v39 = vld [vmem:[#allocation4 + $0xbc0] ss:$16 sps:$4 sm:$0xff]  }
  0xcf   :  { %5257 = vmatprep.subr.bf16.mxu1 %v8034_v43  ;;  %v8089_v42 = vld [vmem:[#allocation4 + $0x9a0] ss:$16 sps:$4 sm:$0xff]  }
  0xd0   :  { %5167 = vmatmul.mubr.bf16.vlgmr.msra.gmra.mxu0 %v9441_v44  ;;  %v8092_v43 = vld [vmem:[#allocation4 + $0xba0] ss:$16 sps:$4 sm:$0xff]  }
  0xd1   :  { %5208 = vmatmul.mubr.bf16.vlgmr.msra.gmra.mxu1 %v9443_v45  ;;  %5217 = vmatpush1.bf16.msra.mxu0 %v8029_v47  ;;  %v8097_v47 = vld [vmem:[#allocation4 + $0x984] ss:$16 sps:$4 sm:$0xff]  }
  0xd2   :  { %5258 = vmatpush1.bf16.msra.mxu1 %v8032_v48  ;;  %5218 = vmatprep.subr.bf16.mxu0 %v8037_v49  ;;  %v8100_v48 = vld [vmem:[#allocation4 + $0xb84] ss:$16 sps:$4 sm:$0xff]   ;;  %v8095_v49 = vld [vmem:[#allocation4 + $0x980] ss:$16 sps:$4 sm:$0xff]  }
  0xd3   :  { %5259 = vmatprep.subr.bf16.mxu1 %v8040_v50  ;;  %5248 = vmatprep.mubr.bf16.mxu0 %v9475_v14  ;;  %v8098_v50 = vld [vmem:[#allocation4 + $0xb80] ss:$16 sps:$4 sm:$0xff]  }
  0xd4   :  { %5289 = vmatprep.mubr.bf16.mxu1 %v9477_v15 }
  0xd5   :  { %5219 = vmatpush1.bf16.msra.mxu0 %v8035_v51  ;;  %v8103_v51 = vld [vmem:[#allocation4 + $0x964] ss:$16 sps:$4 sm:$0xff]  }
  0xd6   :  { %5260 = vmatpush1.bf16.msra.mxu1 %v8038_v52  ;;  %5220 = vmatprep.subr.bf16.mxu0 %v8043_v54  ;;  %v8106_v52 = vld [vmem:[#allocation4 + $0xb64] ss:$16 sps:$4 sm:$0xff]   ;;  %v8101_v54 = vld [vmem:[#allocation4 + $0x960] ss:$16 sps:$4 sm:$0xff]  }
  0xd7   :  { %5261 = vmatprep.subr.bf16.mxu1 %v8046_v55  ;;  %v8104_v55 = vld [vmem:[#allocation4 + $0xb60] ss:$16 sps:$4 sm:$0xff]  }
  0xd9   :  { %5221 = vmatpush1.bf16.msra.mxu0 %v8041_v56  ;;  %v8109_v56 = vld [vmem:[#allocation4 + $0x944] ss:$16 sps:$4 sm:$0xff]  }
  0xda   :  { %5262 = vmatpush1.bf16.msra.mxu1 %v8044_v57  ;;  %5222 = vmatprep.subr.bf16.mxu0 %v8049_v62  ;;  %v8112_v57 = vld [vmem:[#allocation4 + $0xb44] ss:$16 sps:$4 sm:$0xff]   ;;  %v8227_v62 = vld [vmem:[%s9743_s0 + $0x18] ss:$48 sps:$4 sm:$0xff]  }
  0xdb   :  { %5263 = vmatprep.subr.bf16.mxu1 %v8052_v0  ;;  %v8229_v0 = vld [vmem:[%s9743_s0 + $0x78] ss:$48 sps:$4 sm:$0xff]  }
  0xdd   :  { %5223 = vmatpush1.bf16.msra.mxu0 %v8047_v4  ;;  %v8231_v4 = vld [vmem:[%s9743_s0 + $0x1c] ss:$48 sps:$4 sm:$0xff]  }
  0xde   :  { %5264 = vmatpush1.bf16.msra.mxu1 %v8050_v5  ;;  %5224 = vmatprep.subr.bf16.mxu0 %v8055_v12  ;;  %v8232_v5 = vld [vmem:[%s9743_s0 + $0x7c] ss:$48 sps:$4 sm:$0xff]   ;;  %v8121_v12 = vld [vmem:[#allocation4 + $0x904] ss:$16 sps:$4 sm:$0xff]  }
  0xdf   :  { %5265 = vmatprep.subr.bf16.mxu1 %v8058_v13  ;;  %v8124_v13 = vld [vmem:[#allocation4 + $0xb04] ss:$16 sps:$4 sm:$0xff]  }
  0xe1   :  { %5225 = vmatpush1.bf16.msra.mxu0 %v8053_v16  ;;  %v9494_v16 = vrot.slane %v8227_v62, %v9373_v53  ;;  %v8173_v62 = vld [vmem:[#allocation4 + $0xc00] ss:$16 sps:$4 sm:$0xff]  }
  0xe2   :  { %5266 = vmatpush1.bf16.msra.mxu1 %v8056_v17  ;;  %5226 = vmatprep.subr.bf16.mxu0 %v8061_v18  ;;  %v9497_v17 = vrot.slane %v8229_v0, %v9373_v53  ;;  %v9500_v18 = vrot.slane %v8231_v4, %v9373_v53  ;;  %v8176_v0 = vld [vmem:[#allocation4 + $0xe00] ss:$16 sps:$4 sm:$0xff]   ;;  %v8181_v4 = vld [vmem:[#allocation4 + $0xde4] ss:$16 sps:$4 sm:$0xff]  }
  0xe3   :  { %5267 = vmatprep.subr.bf16.mxu1 %v8064_v19  ;;  %v9503_v19 = vrot.slane %v8232_v5, %v9373_v53  ;;  %v8184_v5 = vld [vmem:[#allocation4 + $0xfe4] ss:$16 sps:$4 sm:$0xff]  }
  0xe5   :  { %5227 = vmatpush1.bf16.msra.mxu0 %v8059_v20  ;;  %v8119_v20 = vld [vmem:[#allocation4 + $0x900] ss:$16 sps:$4 sm:$0xff]  }
  0xe6   :  { %5268 = vmatpush1.bf16.msra.mxu1 %v8062_v21  ;;  %5228 = vmatprep.subr.bf16.mxu0 %v8067_v24  ;;  %v262_v21 = vcombine.low %v9460_v63, %v9463_v1  ;;  %v264_v24 = vcombine.low %v9466_v2, %v9469_v3  ;;  %v8131_v63 = vld [vmem:[#allocation4 + $0xce0] ss:$16 sps:$4 sm:$0xff]   ;;  %v8139_v2 = vld [vmem:[#allocation4 + $0xcc4] ss:$16 sps:$4 sm:$0xff]  }
  0xe7   :  { %5269 = vmatprep.subr.bf16.mxu1 %v8070_v25  ;;  %v8122_v25 = vld [vmem:[#allocation4 + $0xb00] ss:$16 sps:$4 sm:$0xff]   ;;  %v8142_v3 = vld [vmem:[#allocation4 + $0xec4] ss:$16 sps:$4 sm:$0xff]  }
  0xe8   :  { %v8134_v1 = vld [vmem:[#allocation4 + $0xee0] ss:$16 sps:$4 sm:$0xff]  }
  0xe9   :  { %5229 = vmatpush1.bf16.msra.mxu0 %v8065_v26  ;;  %v8133_v26 = vld [vmem:[#allocation4 + $0xce4] ss:$16 sps:$4 sm:$0xff]  }
  0xea   :  { %5270 = vmatpush1.bf16.msra.mxu1 %v8068_v27  ;;  %5230 = vmatprep.subr.bf16.mxu0 %v8073_v28  ;;  %v8136_v27 = vld [vmem:[#allocation4 + $0xee4] ss:$16 sps:$4 sm:$0xff]   ;;  %v299_v28 = vcombine.high %v9494_v16, %v9497_v17 }
  0xeb   :  { %5271 = vmatprep.subr.bf16.mxu1 %v8076_v29  ;;  %v301_v29 = vcombine.high %v9500_v18, %v9503_v19 }
  0xed   :  { %5231 = vmatpush1.bf16.msra.mxu0 %v8071_v30  ;;  %v9513_v30 = vpack.c.bf16 %v262_v21, %v262_v21  ;;  %v8188_v21 = vld [vmem:[#allocation4 + $0xfc0] ss:$16 sps:$4 sm:$0xff]  }
  0xee   :  { %5272 = vmatpush1.bf16.msra.mxu1 %v8074_v31  ;;  %5232 = vmatprep.subr.bf16.mxu0 %v8079_v32  ;;  %v9515_v31 = vpack.c.bf16 %v264_v24, %v264_v24  ;;  %v9517_v32 = vpack.c.bf16 %v299_v28, %v299_v28  ;;  %v8193_v24 = vld [vmem:[#allocation4 + $0xda4] ss:$16 sps:$4 sm:$0xff]  }
  0xef   :  { %5273 = vmatprep.subr.bf16.mxu1 %v8082_v33  ;;  %v9519_v33 = vpack.c.bf16 %v301_v29, %v301_v29  ;;  %v8199_v28 = vld [vmem:[#allocation4 + $0xd84] ss:$16 sps:$4 sm:$0xff]  }
  0xf0   :  { %v8202_v29 = vld [vmem:[#allocation4 + $0xf84] ss:$16 sps:$4 sm:$0xff]  }
  0xf1   :  { %5233 = vmatpush2.bf16.msra.mxu0 %v8077_v34  ;;  %v8137_v34 = vld [vmem:[#allocation4 + $0xcc0] ss:$16 sps:$4 sm:$0xff]  }
  0xf2   :  { %5274 = vmatpush2.bf16.msra.mxu1 %v8080_v35  ;;  %5234 = vmatprep.subr.bf16.mxu0 %v8085_v36  ;;  %v8140_v35 = vld [vmem:[#allocation4 + $0xec0] ss:$16 sps:$4 sm:$0xff]   ;;  %v8145_v36 = vld [vmem:[#allocation4 + $0xca4] ss:$16 sps:$4 sm:$0xff]  }
  0xf3   :  { %5275 = vmatprep.subr.bf16.mxu1 %v8088_v37  ;;  %v8148_v37 = vld [vmem:[#allocation4 + $0xea4] ss:$16 sps:$4 sm:$0xff]  }
  0xf5   :  { %5235 = vmatpush2.bf16.msra.mxu0 %v8083_v38  ;;  %v8143_v38 = vld [vmem:[#allocation4 + $0xca0] ss:$16 sps:$4 sm:$0xff]  }
  0xf6   :  { %5276 = vmatpush2.bf16.msra.mxu1 %v8086_v39  ;;  %5236 = vmatprep.subr.bf16.mxu0 %v8091_v40  ;;  %v8146_v39 = vld [vmem:[#allocation4 + $0xea0] ss:$16 sps:$4 sm:$0xff]   ;;  %v8151_v40 = vld [vmem:[#allocation4 + $0xc84] ss:$16 sps:$4 sm:$0xff]  }
  0xf7   :  { %5277 = vmatprep.subr.bf16.mxu1 %v8094_v41  ;;  %v8154_v41 = vld [vmem:[#allocation4 + $0xe84] ss:$16 sps:$4 sm:$0xff]  }
  0xf9   :  { %5237 = vmatpush2.bf16.msra.mxu0 %v8089_v42  ;;  %v8149_v42 = vld [vmem:[#allocation4 + $0xc80] ss:$16 sps:$4 sm:$0xff]  }
  0xfa   :  { %5278 = vmatpush2.bf16.msra.mxu1 %v8092_v43  ;;  %5238 = vmatprep.subr.bf16.mxu0 %v8097_v47  ;;  %v8152_v43 = vld [vmem:[#allocation4 + $0xe80] ss:$16 sps:$4 sm:$0xff]   ;;  %v8157_v47 = vld [vmem:[#allocation4 + $0xc64] ss:$16 sps:$4 sm:$0xff]  }
  0xfb   :  { %5279 = vmatprep.subr.bf16.mxu1 %v8100_v48  ;;  %v8160_v48 = vld [vmem:[#allocation4 + $0xe64] ss:$16 sps:$4 sm:$0xff]  }
  0xfd   :  { %5239 = vmatpush2.bf16.msra.mxu0 %v8095_v49  ;;  %v8155_v49 = vld [vmem:[#allocation4 + $0xc60] ss:$16 sps:$4 sm:$0xff]  }
  0xfe   :  { %5280 = vmatpush2.bf16.msra.mxu1 %v8098_v50  ;;  %5240 = vmatprep.subr.bf16.mxu0 %v8103_v51  ;;  %v8158_v50 = vld [vmem:[#allocation4 + $0xe60] ss:$16 sps:$4 sm:$0xff]   ;;  %v8163_v51 = vld [vmem:[#allocation4 + $0xc44] ss:$16 sps:$4 sm:$0xff]  }
  0xff   :  { %5281 = vmatprep.subr.bf16.mxu1 %v8106_v52  ;;  %v8166_v52 = vld [vmem:[#allocation4 + $0xe44] ss:$16 sps:$4 sm:$0xff]  }
 0x101   :  { %5241 = vmatpush2.bf16.msra.mxu0 %v8101_v54  ;;  %v8161_v54 = vld [vmem:[#allocation4 + $0xc40] ss:$16 sps:$4 sm:$0xff]  }
 0x102   :  { %5282 = vmatpush2.bf16.msra.mxu1 %v8104_v55  ;;  %5242 = vmatprep.subr.bf16.mxu0 %v8109_v56  ;;  %v8164_v55 = vld [vmem:[#allocation4 + $0xe40] ss:$16 sps:$4 sm:$0xff]   ;;  %v8169_v56 = vld [vmem:[#allocation4 + $0xc24] ss:$16 sps:$4 sm:$0xff]  }
 0x103   :  { %5283 = vmatprep.subr.bf16.mxu1 %v8112_v57  ;;  %v8172_v57 = vld [vmem:[#allocation4 + $0xe24] ss:$16 sps:$4 sm:$0xff]  }
 0x105   :  { %5243 = vmatpush2.bf16.msra.mxu0 %v8107_v58  ;;  %v8167_v58 = vld [vmem:[#allocation4 + $0xc20] ss:$16 sps:$4 sm:$0xff]  }
 0x106   :  { %5284 = vmatpush2.bf16.msra.mxu1 %v8110_v59  ;;  %5244 = vmatprep.subr.bf16.mxu0 %v8115_v60  ;;  %v8170_v59 = vld [vmem:[#allocation4 + $0xe20] ss:$16 sps:$4 sm:$0xff]   ;;  %v8175_v60 = vld [vmem:[#allocation4 + $0xc04] ss:$16 sps:$4 sm:$0xff]  }
 0x107   :  { %5285 = vmatprep.subr.bf16.mxu1 %v8118_v61  ;;  %v8178_v61 = vld [vmem:[#allocation4 + $0xe04] ss:$16 sps:$4 sm:$0xff]  }
 0x109   :  { %5245 = vmatpush2.bf16.msra.mxu0 %v8113_v8  ;;  %v8179_v8 = vld [vmem:[#allocation4 + $0xde0] ss:$16 sps:$4 sm:$0xff]  }
 0x10a   :  { %5286 = vmatpush2.bf16.msra.mxu1 %v8116_v11  ;;  %5246 = vmatprep.subr.bf16.mxu0 %v8121_v12  ;;  %v8182_v11 = vld [vmem:[#allocation4 + $0xfe0] ss:$16 sps:$4 sm:$0xff]   ;;  %v8187_v12 = vld [vmem:[#allocation4 + $0xdc4] ss:$16 sps:$4 sm:$0xff]  }
 0x10b   :  { %5287 = vmatprep.subr.bf16.mxu1 %v8124_v13  ;;  %v8190_v13 = vld [vmem:[#allocation4 + $0xfc4] ss:$16 sps:$4 sm:$0xff]  }
 0x10d   :  { %5247 = vmatpush2.bf16.msra.mxu0 %v8119_v20  ;;  %v8185_v20 = vld [vmem:[#allocation4 + $0xdc0] ss:$16 sps:$4 sm:$0xff]  }
 0x10e   :  { %5288 = vmatpush2.bf16.msra.mxu1 %v8122_v25  ;;  %5298 = vmatprep.subr.bf16.mxu0 %v8133_v26  ;;  %v8196_v25 = vld [vmem:[#allocation4 + $0xfa4] ss:$16 sps:$4 sm:$0xff]   ;;  %v8191_v26 = vld [vmem:[#allocation4 + $0xda0] ss:$16 sps:$4 sm:$0xff]  }
 0x10f   :  { %5339 = vmatprep.subr.bf16.mxu1 %v8136_v27  ;;  %v8194_v27 = vld [vmem:[#allocation4 + $0xfa0] ss:$16 sps:$4 sm:$0xff]  }
 0x110   :  { %5249 = vmatmul.mubr.bf16.vlgmr.msra.gmra.mxu0 %v9513_v30 }
 0x111   :  { %5290 = vmatmul.mubr.bf16.vlgmr.msra.gmra.mxu1 %v9515_v31  ;;  %5299 = vmatpush1.bf16.msra.mxu0 %v8131_v63  ;;  %v8197_v63 = vld [vmem:[#allocation4 + $0xd80] ss:$16 sps:$4 sm:$0xff]  }
 0x112   :  { %5340 = vmatpush1.bf16.msra.mxu1 %v8134_v1  ;;  %5300 = vmatprep.subr.bf16.mxu0 %v8139_v2  ;;  %v8200_v1 = vld [vmem:[#allocation4 + $0xf80] ss:$16 sps:$4 sm:$0xff]   ;;  %v8205_v2 = vld [vmem:[#allocation4 + $0xd64] ss:$16 sps:$4 sm:$0xff]  }
 0x113   :  { %5341 = vmatprep.subr.bf16.mxu1 %v8142_v3  ;;  %5330 = vmatprep.mubr.bf16.mxu0 %v9517_v32  ;;  %v8208_v3 = vld [vmem:[#allocation4 + $0xf64] ss:$16 sps:$4 sm:$0xff]  }
 0x114   :  { %5371 = vmatprep.mubr.bf16.mxu1 %v9519_v33 }
 0x115   :  { %5301 = vmatpush1.bf16.msra.mxu0 %v8137_v34  ;;  %v8203_v34 = vld [vmem:[#allocation4 + $0xd60] ss:$16 sps:$4 sm:$0xff]  }
 0x116   :  { %5342 = vmatpush1.bf16.msra.mxu1 %v8140_v35  ;;  %5302 = vmatprep.subr.bf16.mxu0 %v8145_v36  ;;  %v8206_v35 = vld [vmem:[#allocation4 + $0xf60] ss:$16 sps:$4 sm:$0xff]   ;;  %v8211_v36 = vld [vmem:[#allocation4 + $0xd44] ss:$16 sps:$4 sm:$0xff]  }
 0x117   :  { %5343 = vmatprep.subr.bf16.mxu1 %v8148_v37  ;;  %v8214_v37 = vld [vmem:[#allocation4 + $0xf44] ss:$16 sps:$4 sm:$0xff]  }
 0x119   :  { %5303 = vmatpush1.bf16.msra.mxu0 %v8143_v38  ;;  %v8209_v38 = vld [vmem:[#allocation4 + $0xd40] ss:$16 sps:$4 sm:$0xff]  }
 0x11a   :  { %5344 = vmatpush1.bf16.msra.mxu1 %v8146_v39  ;;  %5304 = vmatprep.subr.bf16.mxu0 %v8151_v40  ;;  %v8212_v39 = vld [vmem:[#allocation4 + $0xf40] ss:$16 sps:$4 sm:$0xff]   ;;  %v8217_v40 = vld [vmem:[#allocation4 + $0xd24] ss:$16 sps:$4 sm:$0xff]  }
 0x11b   :  { %5345 = vmatprep.subr.bf16.mxu1 %v8154_v41  ;;  %v8220_v41 = vld [vmem:[#allocation4 + $0xf24] ss:$16 sps:$4 sm:$0xff]  }
 0x11d   :  { %5305 = vmatpush1.bf16.msra.mxu0 %v8149_v42  ;;  %v8329_v42 = vld [vmem:[%s9743_s0 + $0x20] ss:$48 sps:$4 sm:$0xff]  }
 0x11e   :  { %5346 = vmatpush1.bf16.msra.mxu1 %v8152_v43  ;;  %5306 = vmatprep.subr.bf16.mxu0 %v8157_v47  ;;  %v8331_v43 = vld [vmem:[%s9743_s0 + $0x80] ss:$48 sps:$4 sm:$0xff]   ;;  %v8333_v47 = vld [vmem:[%s9743_s0 + $0x24] ss:$48 sps:$4 sm:$0xff]  }
 0x11f   :  { %5347 = vmatprep.subr.bf16.mxu1 %v8160_v48  ;;  %v8334_v48 = vld [vmem:[%s9743_s0 + $0x84] ss:$48 sps:$4 sm:$0xff]  }
 0x121   :  { %5307 = vmatpush1.bf16.msra.mxu0 %v8155_v49  ;;  %v8215_v49 = vld [vmem:[#allocation4 + $0xd20] ss:$16 sps:$4 sm:$0xff]  }
 0x122   :  { %5348 = vmatpush1.bf16.msra.mxu1 %v8158_v50  ;;  %5308 = vmatprep.subr.bf16.mxu0 %v8163_v51  ;;  %v8218_v50 = vld [vmem:[#allocation4 + $0xf20] ss:$16 sps:$4 sm:$0xff]   ;;  %v8223_v51 = vld [vmem:[#allocation4 + $0xd04] ss:$16 sps:$4 sm:$0xff]  }
 0x123   :  { %5349 = vmatprep.subr.bf16.mxu1 %v8166_v52  ;;  %v8226_v52 = vld [vmem:[#allocation4 + $0xf04] ss:$16 sps:$4 sm:$0xff]  }
 0x125   :  { %5309 = vmatpush1.bf16.msra.mxu0 %v8161_v54  ;;  %v8221_v54 = vld [vmem:[#allocation4 + $0xd00] ss:$16 sps:$4 sm:$0xff]  }
 0x126   :  { %5350 = vmatpush1.bf16.msra.mxu1 %v8164_v55  ;;  %5310 = vmatprep.subr.bf16.mxu0 %v8169_v56  ;;  %v9538_v55 = vrot.slane %v8329_v42, %v9373_v53  ;;  %v9541_v56 = vrot.slane %v8331_v43, %v9373_v53  ;;  %v8248_v42 = vld [vmem:[#allocation4 + $0x12a0] ss:$16 sps:$4 sm:$0xff]  }
 0x127   :  { %5351 = vmatprep.subr.bf16.mxu1 %v8172_v57  ;;  %v9544_v57 = vrot.slane %v8333_v47, %v9373_v53 }
 0x129   :  { %5311 = vmatpush1.bf16.msra.mxu0 %v8167_v58  ;;  %v9547_v58 = vrot.slane %v8334_v48, %v9373_v53  ;;  %v8253_v48 = vld [vmem:[#allocation4 + $0x1084] ss:$16 sps:$4 sm:$0xff]  }
 0x12a   :  { %5352 = vmatpush1.bf16.msra.mxu1 %v8170_v59  ;;  %5312 = vmatprep.subr.bf16.mxu0 %v8175_v60  ;;  %v8224_v59 = vld [vmem:[#allocation4 + $0xf00] ss:$16 sps:$4 sm:$0xff]   ;;  %v298_v60 = vcombine.low %v9494_v16, %v9497_v17 }
 0x12b   :  { %5353 = vmatprep.subr.bf16.mxu1 %v8178_v61  ;;  %v300_v61 = vcombine.low %v9500_v18, %v9503_v19  ;;  %v337_v16 = vcombine.high %v9544_v57, %v9547_v58  ;;  %v8233_v19 = vld [vmem:[#allocation4 + $0x10e0] ss:$16 sps:$4 sm:$0xff]  }
 0x12c   :  { %v9559_v17 = vpack.c.bf16 %v298_v60, %v298_v60  ;;  %v8260_v60 = vld [vmem:[#allocation4 + $0x1260] ss:$16 sps:$4 sm:$0xff]  }
 0x12d   :  { %5313 = vmatpush1.bf16.msra.mxu0 %v8173_v62  ;;  %v1190_v62 = vld [vmem:[#allocation7] sm:$0xf]  ;;  %v9561_v18 = vpack.c.bf16 %v300_v61, %v300_v61  ;;  %v8265_v61 = vld [vmem:[#allocation4 + $0x1044] ss:$16 sps:$4 sm:$0xff]  }
 0x12e   :  { %5354 = vmatpush1.bf16.msra.mxu1 %v8176_v0  ;;  %5314 = vmatprep.subr.bf16.mxu0 %v8181_v4  ;;  %v1194_v0 = vsub.s32 0, %v9370_v46  ;;  %v8235_v4 = vld [vmem:[#allocation4 + $0x10e4] ss:$16 sps:$4 sm:$0xff]  }
 0x12f   :  { %5355 = vmatprep.subr.bf16.mxu1 %v8184_v5  ;;  %v8238_v5 = vld [vmem:[#allocation4 + $0x12e4] ss:$16 sps:$4 sm:$0xff]  }
 0x131   :  { %5315 = vmatpush2.bf16.msra.mxu0 %v8179_v8  ;;  %v1198_v8 = vsub.s32 1, %v9370_v46 }
 0x132   :  { %5356 = vmatpush2.bf16.msra.mxu1 %v8182_v11  ;;  %5316 = vmatprep.subr.bf16.mxu0 %v8187_v12  ;;  %v335_v11 = vcombine.high %v9538_v55, %v9541_v56  ;;  %v1195_v12 = vrot.slane %v1190_v62, %v1194_v0 }
 0x133   :  { %5357 = vmatprep.subr.bf16.mxu1 %v8190_v13  ;;  %v8236_v13 = vld [vmem:[#allocation4 + $0x12e0] ss:$16 sps:$4 sm:$0xff]  }
 0x135   :  { %5317 = vmatpush2.bf16.msra.mxu0 %v8185_v20  ;;  %v8241_v20 = vld [vmem:[#allocation4 + $0x10c4] ss:$16 sps:$4 sm:$0xff]  }
 0x136   :  { %5358 = vmatpush2.bf16.msra.mxu1 %v8188_v21  ;;  %5318 = vmatprep.subr.bf16.mxu0 %v8193_v24  ;;  %v8244_v21 = vld [vmem:[#allocation4 + $0x12c4] ss:$16 sps:$4 sm:$0xff]   ;;  %v1199_v24 = vrot.slane %v1190_v62, %v1198_v8 }
 0x137   :  { %5359 = vmatprep.subr.bf16.mxu1 %v8196_v25  ;;  %v9567_v25 = vpack.c.bf16 %v335_v11, %v335_v11  ;;  %v8268_v62 = vld [vmem:[#allocation4 + $0x1244] ss:$16 sps:$4 sm:$0xff]  }
 0x138   :  { %v8271_v11 = vld [vmem:[#allocation4 + $0x1024] ss:$16 sps:$4 sm:$0xff]  }
 0x139   :  { %5319 = vmatpush2.bf16.msra.mxu0 %v8191_v26  ;;  %v9569_v26 = vpack.c.bf16 %v337_v16, %v337_v16  ;;  %v8274_v16 = vld [vmem:[#allocation4 + $0x1224] ss:$16 sps:$4 sm:$0xff]  }
 0x13a   :  { %5360 = vmatpush2.bf16.msra.mxu1 %v8194_v27  ;;  %5320 = vmatprep.subr.bf16.mxu0 %v8199_v28 }
 0x13b   :  { %5361 = vmatprep.subr.bf16.mxu1 %v8202_v29  ;;  %v8239_v29 = vld [vmem:[#allocation4 + $0x10c0] ss:$16 sps:$4 sm:$0xff]  }
 0x13d   :  { %5321 = vmatpush2.bf16.msra.mxu0 %v8197_v63 }
 0x13e   :  { %5362 = vmatpush2.bf16.msra.mxu1 %v8200_v1  ;;  %5322 = vmatprep.subr.bf16.mxu0 %v8205_v2  ;;  %v8242_v1 = vld [vmem:[#allocation4 + $0x12c0] ss:$16 sps:$4 sm:$0xff]  }
 0x13f   :  { %5363 = vmatprep.subr.bf16.mxu1 %v8208_v3 }
 0x141   :  { %5323 = vmatpush2.bf16.msra.mxu0 %v8203_v34  ;;  %v8247_v34 = vld [vmem:[#allocation4 + $0x10a4] ss:$16 sps:$4 sm:$0xff]  }
 0x142   :  { %5364 = vmatpush2.bf16.msra.mxu1 %v8206_v35  ;;  %5324 = vmatprep.subr.bf16.mxu0 %v8211_v36  ;;  %v8250_v35 = vld [vmem:[#allocation4 + $0x12a4] ss:$16 sps:$4 sm:$0xff]  }
 0x143   :  { %5365 = vmatprep.subr.bf16.mxu1 %v8214_v37 }
 0x145   :  { %5325 = vmatpush2.bf16.msra.mxu0 %v8209_v38 }
 0x146   :  { %5366 = vmatpush2.bf16.msra.mxu1 %v8212_v39  ;;  %5326 = vmatprep.subr.bf16.mxu0 %v8217_v40  ;;  %v8245_v40 = vld [vmem:[#allocation4 + $0x10a0] ss:$16 sps:$4 sm:$0xff]  }
 0x147   :  { %5367 = vmatprep.subr.bf16.mxu1 %v8220_v41 }
 0x149   :  { %5327 = vmatpush2.bf16.msra.mxu0 %v8215_v49  ;;  %v8256_v49 = vld [vmem:[#allocation4 + $0x1284] ss:$16 sps:$4 sm:$0xff]  }
 0x14a   :  { %5368 = vmatpush2.bf16.msra.mxu1 %v8218_v50  ;;  %5328 = vmatprep.subr.bf16.mxu0 %v8223_v51  ;;  %v8251_v50 = vld [vmem:[#allocation4 + $0x1080] ss:$16 sps:$4 sm:$0xff]  }
 0x14b   :  { %5369 = vmatprep.subr.bf16.mxu1 %v8226_v52  ;;  %v8254_v51 = vld [vmem:[#allocation4 + $0x1280] ss:$16 sps:$4 sm:$0xff]   ;;  %v8259_v52 = vld [vmem:[#allocation4 + $0x1064] ss:$16 sps:$4 sm:$0xff]  }
 0x14d   :  { %5329 = vmatpush2.bf16.msra.mxu0 %v8221_v54  ;;  %v8262_v54 = vld [vmem:[#allocation4 + $0x1264] ss:$16 sps:$4 sm:$0xff]  }
 0x14e   :  { %5370 = vmatpush2.bf16.msra.mxu1 %v8224_v59  ;;  %5380 = vmatprep.subr.bf16.mxu0 %v8235_v4  ;;  %v8257_v59 = vld [vmem:[#allocation4 + $0x1060] ss:$16 sps:$4 sm:$0xff]  }
 0x14f   :  { %5421 = vmatprep.subr.bf16.mxu1 %v8238_v5  ;;  %v8263_v4 = vld [vmem:[#allocation4 + $0x1040] ss:$16 sps:$4 sm:$0xff]  }
 0x150   :  { %v5086_v27 = vpop.f32.mrf.mxu0  ;;  %5331 = vmatmul.mubr.bf16.vlgmr.msra.gmra.mxu0 %v9559_v17  ;;  %v8266_v5 = vld [vmem:[#allocation4 + $0x1240] ss:$16 sps:$4 sm:$0xff]  }
 0x151   :  { %v5127_v28 = vpop.f32.mrf.mxu1  ;;  %5372 = vmatmul.mubr.bf16.vlgmr.msra.gmra.mxu1 %v9561_v18  ;;  %v5087_v63 = vadd.f32 %v5086_v27, %v1195_v12  ;;  %5381 = vmatpush1.bf16.msra.mxu0 %v8233_v19  ;;  %v8269_v19 = vld [vmem:[#allocation4 + $0x1020] ss:$16 sps:$4 sm:$0xff]   ;;  %v8283_v27 = vld [vmem:[#allocation4 + $0x11e4] ss:$16 sps:$4 sm:$0xff]  }
 0x152   :  { %5422 = vmatpush1.bf16.msra.mxu1 %v8236_v13  ;;  %v5088_v2 = vpop.f32.mrf.mxu0  ;;  %5382 = vmatprep.subr.bf16.mxu0 %v8241_v20  ;;  %v8272_v12 = vld [vmem:[#allocation4 + $0x1220] ss:$16 sps:$4 sm:$0xff]   ;;  %v8277_v13 = vld [vmem:[#allocation4 + $0x1004] ss:$16 sps:$4 sm:$0xff]  }
 0x153   :  { %v5129_v3 = vpop.f32.mrf.mxu1  ;;  %5423 = vmatprep.subr.bf16.mxu1 %v8244_v21  ;;  %v9573_v36 = vadd.f32 %v5127_v28, %v5087_v63  ;;  %v5089_v37 = vadd.f32 %v5088_v2, %v1199_v24  ;;  %5412 = vmatprep.mubr.bf16.mxu0 %v9567_v25  ;;  %v8280_v20 = vld [vmem:[#allocation4 + $0x1204] ss:$16 sps:$4 sm:$0xff]   ;;  %v8275_v21 = vld [vmem:[#allocation4 + $0x1000] ss:$16 sps:$4 sm:$0xff]  }
 0x154   :  { %5453 = vmatprep.mubr.bf16.mxu1 %v9569_v26  ;;  %v5090_v38 = vpop.f32.mrf.mxu0  ;;  %v8278_v24 = vld [vmem:[#allocation4 + $0x1200] ss:$16 sps:$4 sm:$0xff]   ;;  %v8286_v28 = vld [vmem:[#allocation4 + $0x13e4] ss:$16 sps:$4 sm:$0xff]  }
 0x155   :  { %v5131_v39 = vpop.f32.mrf.mxu1  ;;  %v9577_v41 = vadd.f32 %v5129_v3, %v5089_v37  ;;  %5383 = vmatpush1.bf16.msra.mxu0 %v8239_v29  ;;  %v8281_v29 = vld [vmem:[#allocation4 + $0x11e0] ss:$16 sps:$4 sm:$0xff]   ;;  %v8292_v2 = vld [vmem:[#allocation4 + $0x13c4] ss:$16 sps:$4 sm:$0xff]  }
 0x156   :  { %5424 = vmatpush1.bf16.msra.mxu1 %v8242_v1  ;;  %v5091_v43 = vpop.f32.mrf.mxu0  ;;  %5384 = vmatprep.subr.bf16.mxu0 %v8247_v34  ;;  %v8284_v63 = vld [vmem:[#allocation4 + $0x13e0] ss:$16 sps:$4 sm:$0xff]   ;;  %v8289_v1 = vld [vmem:[#allocation4 + $0x11c4] ss:$16 sps:$4 sm:$0xff]  }
 0x157   :  { %v5132_v47 = vpop.f32.mrf.mxu1  ;;  %5425 = vmatprep.subr.bf16.mxu1 %v8250_v35  ;;  %v8287_v3 = vld [vmem:[#allocation4 + $0x11c0] ss:$16 sps:$4 sm:$0xff]   ;;  %v8295_v35 = vld [vmem:[#allocation4 + $0x11a4] ss:$16 sps:$4 sm:$0xff]  }
 0x158   :  { %v8290_v34 = vld [vmem:[#allocation4 + $0x13c0] ss:$16 sps:$4 sm:$0xff]   ;;  %v8298_v37 = vld [vmem:[#allocation4 + $0x13a4] ss:$16 sps:$4 sm:$0xff]  }
 0x159   :  { %5385 = vmatpush1.bf16.msra.mxu0 %v8245_v40  ;;  %v8293_v38 = vld [vmem:[#allocation4 + $0x11a0] ss:$16 sps:$4 sm:$0xff]   ;;  %v8301_v40 = vld [vmem:[#allocation4 + $0x1184] ss:$16 sps:$4 sm:$0xff]  }
 0x15a   :  { %5426 = vmatpush1.bf16.msra.mxu1 %v8248_v42  ;;  %5386 = vmatprep.subr.bf16.mxu0 %v8253_v48  ;;  %v8296_v39 = vld [vmem:[#allocation4 + $0x13a0] ss:$16 sps:$4 sm:$0xff]   ;;  %v8304_v42 = vld [vmem:[#allocation4 + $0x1384] ss:$16 sps:$4 sm:$0xff]  }
 0x15b   :  { %5427 = vmatprep.subr.bf16.mxu1 %v8256_v49  ;;  %v8299_v43 = vld [vmem:[#allocation4 + $0x1180] ss:$16 sps:$4 sm:$0xff]   ;;  %v8307_v48 = vld [vmem:[#allocation4 + $0x1164] ss:$16 sps:$4 sm:$0xff]  }
 0x15c   :  { %v8302_v47 = vld [vmem:[#allocation4 + $0x1380] ss:$16 sps:$4 sm:$0xff]   ;;  %v8310_v49 = vld [vmem:[#allocation4 + $0x1364] ss:$16 sps:$4 sm:$0xff]  }
 0x15d   :  { %5387 = vmatpush1.bf16.msra.mxu0 %v8251_v50  ;;  %v8305_v50 = vld [vmem:[#allocation4 + $0x1160] ss:$16 sps:$4 sm:$0xff]  }
 0x15e   :  { %5428 = vmatpush1.bf16.msra.mxu1 %v8254_v51  ;;  %5388 = vmatprep.subr.bf16.mxu0 %v8259_v52  ;;  %v8308_v51 = vld [vmem:[#allocation4 + $0x1360] ss:$16 sps:$4 sm:$0xff]   ;;  %v8313_v52 = vld [vmem:[#allocation4 + $0x1144] ss:$16 sps:$4 sm:$0xff]  }
 0x15f   :  { %5429 = vmatprep.subr.bf16.mxu1 %v8262_v54  ;;  %v8316_v54 = vld [vmem:[#allocation4 + $0x1344] ss:$16 sps:$4 sm:$0xff]  }
 0x161   :  { %5389 = vmatpush1.bf16.msra.mxu0 %v8257_v59  ;;  %v8311_v59 = vld [vmem:[#allocation4 + $0x1140] ss:$16 sps:$4 sm:$0xff]  }
 0x162   :  { %5430 = vmatpush1.bf16.msra.mxu1 %v8260_v60  ;;  %5390 = vmatprep.subr.bf16.mxu0 %v8265_v61  ;;  %v8314_v60 = vld [vmem:[#allocation4 + $0x1340] ss:$16 sps:$4 sm:$0xff]   ;;  %v8319_v61 = vld [vmem:[#allocation4 + $0x1124] ss:$16 sps:$4 sm:$0xff]  }
 0x163   :  { %5431 = vmatprep.subr.bf16.mxu1 %v8268_v62  ;;  %v8322_v62 = vld [vmem:[#allocation4 + $0x1324] ss:$16 sps:$4 sm:$0xff]  }
 0x165   :  { %5391 = vmatpush1.bf16.msra.mxu0 %v8263_v4  ;;  %v8431_v4 = vld [vmem:[%s9743_s0 + $0x28] ss:$48 sps:$4 sm:$0xff]  }
 0x166   :  { %5432 = vmatpush1.bf16.msra.mxu1 %v8266_v5  ;;  %5392 = vmatprep.subr.bf16.mxu0 %v8271_v11  ;;  %v8433_v5 = vld [vmem:[%s9743_s0 + $0x88] ss:$48 sps:$4 sm:$0xff]   ;;  %v8435_v11 = vld [vmem:[%s9743_s0 + $0x2c] ss:$48 sps:$4 sm:$0xff]  }
 0x167   :  { %5433 = vmatprep.subr.bf16.mxu1 %v8274_v16  ;;  %v8436_v16 = vld [vmem:[%s9743_s0 + $0x8c] ss:$48 sps:$4 sm:$0xff]  }
 0x169   :  { %5393 = vmatpush1.bf16.msra.mxu0 %v8269_v19  ;;  %v8317_v19 = vld [vmem:[#allocation4 + $0x1120] ss:$16 sps:$4 sm:$0xff]  }
 0x16a   :  { %5434 = vmatpush1.bf16.msra.mxu1 %v8272_v12  ;;  %5394 = vmatprep.subr.bf16.mxu0 %v8277_v13  ;;  %v8320_v12 = vld [vmem:[#allocation4 + $0x1320] ss:$16 sps:$4 sm:$0xff]   ;;  %v8325_v13 = vld [vmem:[#allocation4 + $0x1104] ss:$16 sps:$4 sm:$0xff]  }
 0x16b   :  { %5435 = vmatprep.subr.bf16.mxu1 %v8280_v20  ;;  %v8328_v20 = vld [vmem:[#allocation4 + $0x1304] ss:$16 sps:$4 sm:$0xff]  }
 0x16d   :  { %5395 = vmatpush1.bf16.msra.mxu0 %v8275_v21  ;;  %v9592_v21 = vrot.slane %v8431_v4, %v9373_v53 }
 0x16e   :  { %5436 = vmatpush1.bf16.msra.mxu1 %v8278_v24  ;;  %5396 = vmatprep.subr.bf16.mxu0 %v8283_v27  ;;  %v9595_v24 = vrot.slane %v8433_v5, %v9373_v53  ;;  %v9598_v27 = vrot.slane %v8435_v11, %v9373_v53 }
 0x16f   :  { %5437 = vmatprep.subr.bf16.mxu1 %v8286_v28  ;;  %v9601_v28 = vrot.slane %v8436_v16, %v9373_v53 }
 0x170   :  { %v371_v53 = vcombine.high %v9592_v21, %v9595_v24 }
 0x171   :  { %5397 = vmatpush2.bf16.msra.mxu0 %v8281_v29  ;;  %v334_v29 = vcombine.low %v9538_v55, %v9541_v56 }
 0x172   :  { %5438 = vmatpush2.bf16.msra.mxu1 %v8284_v63  ;;  %5398 = vmatprep.subr.bf16.mxu0 %v8289_v1  ;;  %v336_v63 = vcombine.low %v9544_v57, %v9547_v58  ;;  %v8323_v1 = vld [vmem:[#allocation4 + $0x1100] ss:$16 sps:$4 sm:$0xff]   ;;  %v8343_v57 = vld [vmem:[#allocation4 + $0x14c4] ss:$16 sps:$4 sm:$0xff]  }
 0x173   :  { %5439 = vmatprep.subr.bf16.mxu1 %v8292_v2  ;;  %v8326_v2 = vld [vmem:[#allocation4 + $0x1300] ss:$16 sps:$4 sm:$0xff]   ;;  %v9611_v55 = vpack.c.bf16 %v334_v29, %v334_v29  ;;  %v8346_v58 = vld [vmem:[#allocation4 + $0x16c4] ss:$16 sps:$4 sm:$0xff]  }
 0x174   :  { %v9613_v56 = vpack.c.bf16 %v336_v63, %v336_v63  ;;  %v8364_v29 = vld [vmem:[#allocation4 + $0x1664] ss:$16 sps:$4 sm:$0xff]   ;;  %v8359_v63 = vld [vmem:[#allocation4 + $0x1460] ss:$16 sps:$4 sm:$0xff]  }
 0x175   :  { %5399 = vmatpush2.bf16.msra.mxu0 %v8287_v3  ;;  %v8337_v3 = vld [vmem:[#allocation4 + $0x14e4] ss:$16 sps:$4 sm:$0xff]  }
 0x176   :  { %5440 = vmatpush2.bf16.msra.mxu1 %v8290_v34  ;;  %5400 = vmatprep.subr.bf16.mxu0 %v8295_v35  ;;  %v8340_v34 = vld [vmem:[#allocation4 + $0x16e4] ss:$16 sps:$4 sm:$0xff]   ;;  %v8335_v35 = vld [vmem:[#allocation4 + $0x14e0] ss:$16 sps:$4 sm:$0xff]  }
 0x177   :  { %5441 = vmatprep.subr.bf16.mxu1 %v8298_v37  ;;  %v8338_v37 = vld [vmem:[#allocation4 + $0x16e0] ss:$16 sps:$4 sm:$0xff]  }
 0x179   :  { %5401 = vmatpush2.bf16.msra.mxu0 %v8293_v38  ;;  %v373_v38 = vcombine.high %v9598_v27, %v9601_v28 }
 0x17a   :  { %5442 = vmatpush2.bf16.msra.mxu1 %v8296_v39  ;;  %5402 = vmatprep.subr.bf16.mxu0 %v8301_v40  ;;  %v8341_v39 = vld [vmem:[#allocation4 + $0x14c0] ss:$16 sps:$4 sm:$0xff]  }
 0x17b   :  { %5443 = vmatprep.subr.bf16.mxu1 %v8304_v42  ;;  %v8344_v40 = vld [vmem:[#allocation4 + $0x16c0] ss:$16 sps:$4 sm:$0xff]   ;;  %v9615_v42 = vpack.c.bf16 %v371_v53, %v371_v53  ;;  %v8376_v53 = vld [vmem:[#allocation4 + $0x1624] ss:$16 sps:$4 sm:$0xff]  }
 0x17d   :  { %5403 = vmatpush2.bf16.msra.mxu0 %v8299_v43  ;;  %v9617_v43 = vpack.c.bf16 %v373_v38, %v373_v38  ;;  %v8371_v38 = vld [vmem:[#allocation4 + $0x1420] ss:$16 sps:$4 sm:$0xff]  }
 0x17e   :  { %5444 = vmatpush2.bf16.msra.mxu1 %v8302_v47  ;;  %5404 = vmatprep.subr.bf16.mxu0 %v8307_v48 }
 0x17f   :  { %5445 = vmatprep.subr.bf16.mxu1 %v8310_v49 }
 0x181   :  { %5405 = vmatpush2.bf16.msra.mxu0 %v8305_v50 }
 0x182   :  { %5446 = vmatpush2.bf16.msra.mxu1 %v8308_v51  ;;  %5406 = vmatprep.subr.bf16.mxu0 %v8313_v52  ;;  %v8349_v52 = vld [vmem:[#allocation4 + $0x14a4] ss:$16 sps:$4 sm:$0xff]  }
 0x183   :  { %5447 = vmatprep.subr.bf16.mxu1 %v8316_v54  ;;  %v8352_v54 = vld [vmem:[#allocation4 + $0x16a4] ss:$16 sps:$4 sm:$0xff]  }
 0x185   :  { %5407 = vmatpush2.bf16.msra.mxu0 %v8311_v59 }
 0x186   :  { %5448 = vmatpush2.bf16.msra.mxu1 %v8314_v60  ;;  %5408 = vmatprep.subr.bf16.mxu0 %v8319_v61  ;;  %v8347_v61 = vld [vmem:[#allocation4 + $0x14a0] ss:$16 sps:$4 sm:$0xff]  }
 0x187   :  { %5449 = vmatprep.subr.bf16.mxu1 %v8322_v62  ;;  %v8350_v62 = vld [vmem:[#allocation4 + $0x16a0] ss:$16 sps:$4 sm:$0xff]  }
 0x189   :  { %5409 = vmatpush2.bf16.msra.mxu0 %v8317_v19  ;;  %v8355_v19 = vld [vmem:[#allocation4 + $0x1484] ss:$16 sps:$4 sm:$0xff]  }
 0x18a   :  { %5450 = vmatpush2.bf16.msra.mxu1 %v8320_v12  ;;  %5410 = vmatprep.subr.bf16.mxu0 %v8325_v13  ;;  %v8358_v12 = vld [vmem:[#allocation4 + $0x1684] ss:$16 sps:$4 sm:$0xff]   ;;  %v8356_v13 = vld [vmem:[#allocation4 + $0x1680] ss:$16 sps:$4 sm:$0xff]  }
 0x18b   :  { %5451 = vmatprep.subr.bf16.mxu1 %v8328_v20  ;;  %v8361_v20 = vld [vmem:[#allocation4 + $0x1464] ss:$16 sps:$4 sm:$0xff]  }
 0x18d   :  { %5411 = vmatpush2.bf16.msra.mxu0 %v8323_v1  ;;  %v8362_v1 = vld [vmem:[#allocation4 + $0x1660] ss:$16 sps:$4 sm:$0xff]  }
 0x18e   :  { %5452 = vmatpush2.bf16.msra.mxu1 %v8326_v2  ;;  %5462 = vmatprep.subr.bf16.mxu0 %v8337_v3  ;;  %v8367_v2 = vld [vmem:[#allocation4 + $0x1444] ss:$16 sps:$4 sm:$0xff]  }
 0x18f   :  { %5503 = vmatprep.subr.bf16.mxu1 %v8340_v34  ;;  %v8370_v3 = vld [vmem:[#allocation4 + $0x1644] ss:$16 sps:$4 sm:$0xff]   ;;  %v8365_v34 = vld [vmem:[#allocation4 + $0x1440] ss:$16 sps:$4 sm:$0xff]  }
 0x190   :  { %v5168_v47 = vpop.f32.mrf.mxu0  ;;  %5413 = vmatmul.mubr.bf16.vlgmr.msra.gmra.mxu0 %v9611_v55 }
 0x191   :  { %v5209_v48 = vpop.f32.mrf.mxu1  ;;  %5454 = vmatmul.mubr.bf16.vlgmr.msra.gmra.mxu1 %v9613_v56  ;;  %v5169_v49 = vadd.f32 %v5168_v47, %v9573_v36  ;;  %5463 = vmatpush1.bf16.msra.mxu0 %v8335_v35  ;;  %v8368_v35 = vld [vmem:[#allocation4 + $0x1640] ss:$16 sps:$4 sm:$0xff]  }
 0x192   :  { %5504 = vmatpush1.bf16.msra.mxu1 %v8338_v37  ;;  %v5170_v50 = vpop.f32.mrf.mxu0  ;;  %5464 = vmatprep.subr.bf16.mxu0 %v8343_v57  ;;  %v8373_v37 = vld [vmem:[#allocation4 + $0x1424] ss:$16 sps:$4 sm:$0xff]   ;;  %v8374_v57 = vld [vmem:[#allocation4 + $0x1620] ss:$16 sps:$4 sm:$0xff]  }
 0x193   :  { %v5211_v51 = vpop.f32.mrf.mxu1  ;;  %5505 = vmatprep.subr.bf16.mxu1 %v8346_v58  ;;  %v9622_v59 = vadd.f32 %v5209_v48, %v5169_v49  ;;  %v5171_v60 = vadd.f32 %v5170_v50, %v9577_v41  ;;  %5494 = vmatprep.mubr.bf16.mxu0 %v9615_v42  ;;  %v8353_v41 = vld [vmem:[#allocation4 + $0x1480] ss:$16 sps:$4 sm:$0xff]   ;;  %v8379_v58 = vld [vmem:[#allocation4 + $0x1404] ss:$16 sps:$4 sm:$0xff]  }
 0x194   :  { %5535 = vmatprep.mubr.bf16.mxu1 %v9617_v43  ;;  %v5172_v4 = vpop.f32.mrf.mxu0  ;;  %v8380_v47 = vld [vmem:[#allocation4 + $0x1600] ss:$16 sps:$4 sm:$0xff]   ;;  %v8385_v48 = vld [vmem:[#allocation4 + $0x15e4] ss:$16 sps:$4 sm:$0xff]  }
 0x195   :  { %v5213_v36 = vpop.f32.mrf.mxu1  ;;  %v9627_v5 = vadd.f32 %v5211_v51, %v5171_v60  ;;  %5465 = vmatpush1.bf16.msra.mxu0 %v8341_v39  ;;  %v8382_v39 = vld [vmem:[#allocation4 + $0x1604] ss:$16 sps:$4 sm:$0xff]   ;;  %v8383_v50 = vld [vmem:[#allocation4 + $0x15e0] ss:$16 sps:$4 sm:$0xff]  }
 0x196   :  { %5506 = vmatpush1.bf16.msra.mxu1 %v8344_v40  ;;  %v5173_v11 = vpop.f32.mrf.mxu0  ;;  %5466 = vmatprep.subr.bf16.mxu0 %v8349_v52  ;;  %v8377_v40 = vld [vmem:[#allocation4 + $0x1400] ss:$16 sps:$4 sm:$0xff]   ;;  %v8388_v49 = vld [vmem:[#allocation4 + $0x17e4] ss:$16 sps:$4 sm:$0xff]  }
 0x197   :  { %v5214_v16 = vpop.f32.mrf.mxu1  ;;  %5507 = vmatprep.subr.bf16.mxu1 %v8352_v54  ;;  %v8386_v51 = vld [vmem:[#allocation4 + $0x17e0] ss:$16 sps:$4 sm:$0xff]   ;;  %v8391_v52 = vld [vmem:[#allocation4 + $0x15c4] ss:$16 sps:$4 sm:$0xff]  }
 0x198   :  { %v8394_v54 = vld [vmem:[#allocation4 + $0x17c4] ss:$16 sps:$4 sm:$0xff]   ;;  %v8389_v60 = vld [vmem:[#allocation4 + $0x15c0] ss:$16 sps:$4 sm:$0xff]  }
 0x199   :  { %5467 = vmatpush1.bf16.msra.mxu0 %v8347_v61  ;;  %v8392_v61 = vld [vmem:[#allocation4 + $0x17c0] ss:$16 sps:$4 sm:$0xff]   ;;  %v8400_v4 = vld [vmem:[#allocation4 + $0x17a4] ss:$16 sps:$4 sm:$0xff]  }
 0x19a   :  { %5508 = vmatpush1.bf16.msra.mxu1 %v8350_v62  ;;  %5468 = vmatprep.subr.bf16.mxu0 %v8355_v19  ;;  %v8397_v62 = vld [vmem:[#allocation4 + $0x15a4] ss:$16 sps:$4 sm:$0xff]   ;;  %v8395_v36 = vld [vmem:[#allocation4 + $0x15a0] ss:$16 sps:$4 sm:$0xff]  }
 0x19b   :  { %5509 = vmatprep.subr.bf16.mxu1 %v8358_v12  ;;  %v8398_v11 = vld [vmem:[#allocation4 + $0x17a0] ss:$16 sps:$4 sm:$0xff]   ;;  %v8403_v16 = vld [vmem:[#allocation4 + $0x1584] ss:$16 sps:$4 sm:$0xff]  }
 0x19c   :  { %v8406_v19 = vld [vmem:[#allocation4 + $0x1784] ss:$16 sps:$4 sm:$0xff]   ;;  %v8401_v12 = vld [vmem:[#allocation4 + $0x1580] ss:$16 sps:$4 sm:$0xff]  }
 0x19d   :  { %5469 = vmatpush1.bf16.msra.mxu0 %v8353_v41  ;;  %v8404_v41 = vld [vmem:[#allocation4 + $0x1780] ss:$16 sps:$4 sm:$0xff]  }
 0x19e   :  { %5510 = vmatpush1.bf16.msra.mxu1 %v8356_v13  ;;  %5470 = vmatprep.subr.bf16.mxu0 %v8361_v20  ;;  %v8409_v13 = vld [vmem:[#allocation4 + $0x1564] ss:$16 sps:$4 sm:$0xff]  }
 0x19f   :  { %5511 = vmatprep.subr.bf16.mxu1 %v8364_v29  ;;  %v8412_v20 = vld [vmem:[#allocation4 + $0x1764] ss:$16 sps:$4 sm:$0xff]   ;;  %v8407_v29 = vld [vmem:[#allocation4 + $0x1560] ss:$16 sps:$4 sm:$0xff]  }
 0x1a1   :  { %5471 = vmatpush1.bf16.msra.mxu0 %v8359_v63  ;;  %v8410_v63 = vld [vmem:[#allocation4 + $0x1760] ss:$16 sps:$4 sm:$0xff]  }
 0x1a2   :  { %5512 = vmatpush1.bf16.msra.mxu1 %v8362_v1  ;;  %5472 = vmatprep.subr.bf16.mxu0 %v8367_v2  ;;  %v8415_v1 = vld [vmem:[#allocation4 + $0x1544] ss:$16 sps:$4 sm:$0xff]  }
 0x1a3   :  { %5513 = vmatprep.subr.bf16.mxu1 %v8370_v3  ;;  %v8418_v2 = vld [vmem:[#allocation4 + $0x1744] ss:$16 sps:$4 sm:$0xff]   ;;  %v8413_v3 = vld [vmem:[#allocation4 + $0x1540] ss:$16 sps:$4 sm:$0xff]  }
 0x1a5   :  { %5473 = vmatpush1.bf16.msra.mxu0 %v8365_v34  ;;  %v8416_v34 = vld [vmem:[#allocation4 + $0x1740] ss:$16 sps:$4 sm:$0xff]  }
 0x1a6   :  { %5514 = vmatpush1.bf16.msra.mxu1 %v8368_v35  ;;  %5474 = vmatprep.subr.bf16.mxu0 %v8373_v37  ;;  %v8421_v35 = vld [vmem:[#allocation4 + $0x1524] ss:$16 sps:$4 sm:$0xff]  }
 0x1a7   :  { %5515 = vmatprep.subr.bf16.mxu1 %v8376_v53  ;;  %v8424_v37 = vld [vmem:[#allocation4 + $0x1724] ss:$16 sps:$4 sm:$0xff]   ;;  %v8419_v53 = vld [vmem:[#allocation4 + $0x1520] ss:$16 sps:$4 sm:$0xff]  }
 0x1a9   :  { %5475 = vmatpush1.bf16.msra.mxu0 %v8371_v38  ;;  %v8422_v38 = vld [vmem:[#allocation4 + $0x1720] ss:$16 sps:$4 sm:$0xff]  }
 0x1aa   :  { %5516 = vmatpush1.bf16.msra.mxu1 %v8374_v57  ;;  %5476 = vmatprep.subr.bf16.mxu0 %v8379_v58  ;;  %v8427_v57 = vld [vmem:[#allocation4 + $0x1504] ss:$16 sps:$4 sm:$0xff]  }
 0x1ab   :  { %5517 = vmatprep.subr.bf16.mxu1 %v8382_v39  ;;  %v8430_v58 = vld [vmem:[#allocation4 + $0x1704] ss:$16 sps:$4 sm:$0xff]   ;;  %v370_v39 = vcombine.low %v9592_v21, %v9595_v24  ;;  %v8445_v21 = vld [vmem:[#allocation4 + $0xcc] ss:$16 sps:$4 sm:$0xff]  }
 0x1ac   :  { %v8448_v24 = vld [vmem:[#allocation4 + $0x2cc] ss:$16 sps:$4 sm:$0xff]  }
 0x1ad   :  { %5477 = vmatpush1.bf16.msra.mxu0 %v8377_v40  ;;  %v372_v40 = vcombine.low %v9598_v27, %v9601_v28  ;;  %v8443_v27 = vld [vmem:[#allocation4 + $0xc8] ss:$16 sps:$4 sm:$0xff]  }
 0x1ae   :  { %5518 = vmatpush1.bf16.msra.mxu1 %v8380_v47  ;;  %5478 = vmatprep.subr.bf16.mxu0 %v8385_v48  ;;  %v8425_v47 = vld [vmem:[#allocation4 + $0x1500] ss:$16 sps:$4 sm:$0xff]   ;;  %v8446_v28 = vld [vmem:[#allocation4 + $0x2c8] ss:$16 sps:$4 sm:$0xff]  }
 0x1af   :  { %5519 = vmatprep.subr.bf16.mxu1 %v8388_v49  ;;  %v8428_v48 = vld [vmem:[#allocation4 + $0x1700] ss:$16 sps:$4 sm:$0xff]   ;;  %v8439_v49 = vld [vmem:[#allocation4 + $0xec] ss:$16 sps:$4 sm:$0xff]  }
 0x1b1   :  { %5479 = vmatpush2.bf16.msra.mxu0 %v8383_v50  ;;  %v8442_v50 = vld [vmem:[#allocation4 + $0x2ec] ss:$16 sps:$4 sm:$0xff]  }
 0x1b2   :  { %5520 = vmatpush2.bf16.msra.mxu1 %v8386_v51  ;;  %5480 = vmatprep.subr.bf16.mxu0 %v8391_v52  ;;  %v8437_v51 = vld [vmem:[#allocation4 + $0xe8] ss:$16 sps:$4 sm:$0xff]  }
 0x1b3   :  { %5521 = vmatprep.subr.bf16.mxu1 %v8394_v54  ;;  %v8440_v52 = vld [vmem:[#allocation4 + $0x2e8] ss:$16 sps:$4 sm:$0xff]   ;;  %v9633_v54 = vpack.c.bf16 %v370_v39, %v370_v39 }
 0x1b4   :  { %v8470_v39 = vld [vmem:[#allocation4 + $0x248] ss:$16 sps:$4 sm:$0xff]  }
 0x1b5   :  { %5481 = vmatpush2.bf16.msra.mxu0 %v8389_v60  ;;  %v9635_v60 = vpack.c.bf16 %v372_v40, %v372_v40  ;;  %v8475_v40 = vld [vmem:[#allocation4 + $0x2c] ss:$16 sps:$4 sm:$0xff]  }
 0x1b6   :  { %5522 = vmatpush2.bf16.msra.mxu1 %v8392_v61  ;;  %5482 = vmatprep.subr.bf16.mxu0 %v8397_v62 }
 0x1b7   :  { %5523 = vmatprep.subr.bf16.mxu1 %v8400_v4 }
 0x1b9   :  { %5483 = vmatpush2.bf16.msra.mxu0 %v8395_v36 }
 0x1ba   :  { %5524 = vmatpush2.bf16.msra.mxu1 %v8398_v11  ;;  %5484 = vmatprep.subr.bf16.mxu0 %v8403_v16  ;;  %v8451_v16 = vld [vmem:[#allocation4 + $0xac] ss:$16 sps:$4 sm:$0xff]  }
 0x1bb   :  { %5525 = vmatprep.subr.bf16.mxu1 %v8406_v19  ;;  %v8454_v19 = vld [vmem:[#allocation4 + $0x2ac] ss:$16 sps:$4 sm:$0xff]  }
 0x1bd   :  { %5485 = vmatpush2.bf16.msra.mxu0 %v8401_v12 }
 0x1be   :  { %5526 = vmatpush2.bf16.msra.mxu1 %v8404_v41  ;;  %5486 = vmatprep.subr.bf16.mxu0 %v8409_v13  ;;  %v8449_v13 = vld [vmem:[#allocation4 + $0xa8] ss:$16 sps:$4 sm:$0xff]  }
 0x1bf   :  { %5527 = vmatprep.subr.bf16.mxu1 %v8412_v20  ;;  %v8452_v20 = vld [vmem:[#allocation4 + $0x2a8] ss:$16 sps:$4 sm:$0xff]  }
 0x1c1   :  { %5487 = vmatpush2.bf16.msra.mxu0 %v8407_v29 }
 0x1c2   :  { %5528 = vmatpush2.bf16.msra.mxu1 %v8410_v63  ;;  %5488 = vmatprep.subr.bf16.mxu0 %v8415_v1 }
 0x1c3   :  { %5529 = vmatprep.subr.bf16.mxu1 %v8418_v2 }
 0x1c5   :  { %5489 = vmatpush2.bf16.msra.mxu0 %v8413_v3  ;;  %v8457_v3 = vld [vmem:[#allocation4 + $0x8c] ss:$16 sps:$4 sm:$0xff]  }
 0x1c6   :  { %5530 = vmatpush2.bf16.msra.mxu1 %v8416_v34  ;;  %5490 = vmatprep.subr.bf16.mxu0 %v8421_v35  ;;  %v8460_v34 = vld [vmem:[#allocation4 + $0x28c] ss:$16 sps:$4 sm:$0xff]   ;;  %v8458_v35 = vld [vmem:[#allocation4 + $0x288] ss:$16 sps:$4 sm:$0xff]  }
 0x1c7   :  { %5531 = vmatprep.subr.bf16.mxu1 %v8424_v37  ;;  %v8461_v37 = vld [vmem:[#allocation4 + $0x68] ss:$16 sps:$4 sm:$0xff]  }
 0x1c9   :  { %5491 = vmatpush2.bf16.msra.mxu0 %v8419_v53  ;;  %v8464_v53 = vld [vmem:[#allocation4 + $0x268] ss:$16 sps:$4 sm:$0xff]  }
 0x1ca   :  { %5532 = vmatpush2.bf16.msra.mxu1 %v8422_v38  ;;  %5492 = vmatprep.subr.bf16.mxu0 %v8427_v57  ;;  %v8469_v38 = vld [vmem:[#allocation4 + $0x4c] ss:$16 sps:$4 sm:$0xff]  }
 0x1cb   :  { %5533 = vmatprep.subr.bf16.mxu1 %v8430_v58  ;;  %v8472_v57 = vld [vmem:[#allocation4 + $0x24c] ss:$16 sps:$4 sm:$0xff]   ;;  %v8467_v58 = vld [vmem:[#allocation4 + $0x48] ss:$16 sps:$4 sm:$0xff]  }
 0x1cd   :  { %5493 = vmatpush2.bf16.msra.mxu0 %v8425_v47  ;;  %v8478_v47 = vld [vmem:[#allocation4 + $0x22c] ss:$16 sps:$4 sm:$0xff]  }
 0x1ce   :  { %5534 = vmatpush2.bf16.msra.mxu1 %v8428_v48  ;;  %5544 = vmatprep.subr.bf16.mxu0 %v8439_v49  ;;  %v8473_v48 = vld [vmem:[#allocation4 + $0x28] ss:$16 sps:$4 sm:$0xff]  }
 0x1cf   :  { %5585 = vmatprep.subr.bf16.mxu1 %v8442_v50  ;;  %v8476_v49 = vld [vmem:[#allocation4 + $0x228] ss:$16 sps:$4 sm:$0xff]   ;;  %v8481_v50 = vld [vmem:[#allocation4 + $0xc] ss:$16 sps:$4 sm:$0xff]  }
 0x1d0   :  { %v5250_v61 = vpop.f32.mrf.mxu0  ;;  %5495 = vmatmul.mubr.bf16.vlgmr.msra.gmra.mxu0 %v9633_v54 }
 0x1d1   :  { %v5291_v62 = vpop.f32.mrf.mxu1  ;;  %5536 = vmatmul.mubr.bf16.vlgmr.msra.gmra.mxu1 %v9635_v60  ;;  %v5251_v4 = vadd.f32 %v5250_v61, %v9622_v59  ;;  %5545 = vmatpush1.bf16.msra.mxu0 %v8437_v51  ;;  %v8484_v51 = vld [vmem:[#allocation4 + $0x20c] ss:$16 sps:$4 sm:$0xff]   ;;  %v8488_v61 = vld [vmem:[#allocation4 + $0x3e8] ss:$16 sps:$4 sm:$0xff]  }
 0x1d2   :  { %5586 = vmatpush1.bf16.msra.mxu1 %v8440_v52  ;;  %v5252_v36 = vpop.f32.mrf.mxu0  ;;  %5546 = vmatprep.subr.bf16.mxu0 %v8445_v21  ;;  %v8479_v52 = vld [vmem:[#allocation4 + $0x8] ss:$16 sps:$4 sm:$0xff]  }
 0x1d3   :  { %v5293_v11 = vpop.f32.mrf.mxu1  ;;  %5587 = vmatprep.subr.bf16.mxu1 %v8448_v24  ;;  %v9640_v12 = vadd.f32 %v5291_v62, %v5251_v4  ;;  %v5253_v41 = vadd.f32 %v5252_v36, %v9627_v5  ;;  %5576 = vmatprep.mubr.bf16.mxu0 %v9391_v6  ;;  %v8455_v5 = vld [vmem:[#allocation4 + $0x88] ss:$16 sps:$4 sm:$0xff]   ;;  %v8463_v6 = vld [vmem:[#allocation4 + $0x6c] ss:$16 sps:$4 sm:$0xff]  }
 0x1d4   :  { %5617 = vmatprep.mubr.bf16.mxu1 %v9393_v9  ;;  %v5254_v29 = vpop.f32.mrf.mxu0  ;;  %v8466_v9 = vld [vmem:[#allocation4 + $0x26c] ss:$16 sps:$4 sm:$0xff]   ;;  %v8482_v21 = vld [vmem:[#allocation4 + $0x208] ss:$16 sps:$4 sm:$0xff]  }
 0x1d5   :  { %v5295_v59 = vpop.f32.mrf.mxu1  ;;  %v9645_v63 = vadd.f32 %v5293_v11, %v5253_v41  ;;  %5547 = vmatpush1.bf16.msra.mxu0 %v8443_v27  ;;  %v8487_v24 = vld [vmem:[#allocation4 + $0x1ec] ss:$16 sps:$4 sm:$0xff]   ;;  %v8491_v36 = vld [vmem:[#allocation4 + $0x1c8] ss:$16 sps:$4 sm:$0xff]  }
 0x1d6   :  { %5588 = vmatpush1.bf16.msra.mxu1 %v8446_v28  ;;  %v5255_v1 = vpop.f32.mrf.mxu0  ;;  %5548 = vmatprep.subr.bf16.mxu0 %v8451_v16  ;;  %v8490_v27 = vld [vmem:[#allocation4 + $0x3ec] ss:$16 sps:$4 sm:$0xff]   ;;  %v8485_v28 = vld [vmem:[#allocation4 + $0x1e8] ss:$16 sps:$4 sm:$0xff]  }
 0x1d7   :  { %v5296_v2 = vpop.f32.mrf.mxu1  ;;  %5589 = vmatprep.subr.bf16.mxu1 %v8454_v19  ;;  %v8493_v62 = vld [vmem:[#allocation4 + $0x1cc] ss:$16 sps:$4 sm:$0xff]   ;;  %v8494_v11 = vld [vmem:[#allocation4 + $0x3c8] ss:$16 sps:$4 sm:$0xff]  }
 0x1d8   :  { %v8496_v4 = vld [vmem:[#allocation4 + $0x3cc] ss:$16 sps:$4 sm:$0xff]   ;;  %v8497_v41 = vld [vmem:[#allocation4 + $0x1a8] ss:$16 sps:$4 sm:$0xff]  }
 0x1d9   :  { %5549 = vmatpush1.bf16.msra.mxu0 %v8449_v13  ;;  %v8499_v16 = vld [vmem:[#allocation4 + $0x1ac] ss:$16 sps:$4 sm:$0xff]   ;;  %v8500_v13 = vld [vmem:[#allocation4 + $0x3a8] ss:$16 sps:$4 sm:$0xff]  }
 0x1da   :  { %5590 = vmatpush1.bf16.msra.mxu1 %v8452_v20  ;;  %5550 = vmatprep.subr.bf16.mxu0 %v8457_v3  ;;  %v8502_v19 = vld [vmem:[#allocation4 + $0x3ac] ss:$16 sps:$4 sm:$0xff]   ;;  %v8503_v59 = vld [vmem:[#allocation4 + $0x188] ss:$16 sps:$4 sm:$0xff]  }
 0x1db   :  { %5591 = vmatprep.subr.bf16.mxu1 %v8460_v34  ;;  %v8505_v20 = vld [vmem:[#allocation4 + $0x18c] ss:$16 sps:$4 sm:$0xff]   ;;  %v8506_v1 = vld [vmem:[#allocation4 + $0x388] ss:$16 sps:$4 sm:$0xff]  }
 0x1dc   :  { %v8508_v29 = vld [vmem:[#allocation4 + $0x38c] ss:$16 sps:$4 sm:$0xff]   ;;  %v8509_v34 = vld [vmem:[#allocation4 + $0x168] ss:$16 sps:$4 sm:$0xff]  }
 0x1dd   :  { %5551 = vmatpush1.bf16.msra.mxu0 %v8455_v5  ;;  %v8511_v2 = vld [vmem:[#allocation4 + $0x16c] ss:$16 sps:$4 sm:$0xff]   ;;  %v8512_v5 = vld [vmem:[#allocation4 + $0x368] ss:$16 sps:$4 sm:$0xff]  }
 0x1de   :  { %5592 = vmatpush1.bf16.msra.mxu1 %v8458_v35  ;;  %5552 = vmatprep.subr.bf16.mxu0 %v8463_v6  ;;  %v8514_v3 = vld [vmem:[#allocation4 + $0x36c] ss:$16 sps:$4 sm:$0xff]  }
 0x1df   :  { %5593 = vmatprep.subr.bf16.mxu1 %v8466_v9  ;;  %v8517_v35 = vld [vmem:[#allocation4 + $0x14c] ss:$16 sps:$4 sm:$0xff]   ;;  %v8515_v9 = vld [vmem:[#allocation4 + $0x148] ss:$16 sps:$4 sm:$0xff]  }
 0x1e0   :  { %v8520_v6 = vld [vmem:[#allocation4 + $0x34c] ss:$16 sps:$4 sm:$0xff]  }
 0x1e1   :  { %5553 = vmatpush1.bf16.msra.mxu0 %v8461_v37  ;;  %v8518_v37 = vld [vmem:[#allocation4 + $0x348] ss:$16 sps:$4 sm:$0xff]  }
 0x1e2   :  { %5594 = vmatpush1.bf16.msra.mxu1 %v8464_v53  ;;  %5554 = vmatprep.subr.bf16.mxu0 %v8469_v38  ;;  %v8523_v53 = vld [vmem:[#allocation4 + $0x12c] ss:$16 sps:$4 sm:$0xff]  }
 0x1e3   :  { %5595 = vmatprep.subr.bf16.mxu1 %v8472_v57  ;;  %v8526_v38 = vld [vmem:[#allocation4 + $0x32c] ss:$16 sps:$4 sm:$0xff]   ;;  %v8521_v57 = vld [vmem:[#allocation4 + $0x128] ss:$16 sps:$4 sm:$0xff]  }
 0x1e5   :  { %5555 = vmatpush1.bf16.msra.mxu0 %v8467_v58  ;;  %v8524_v58 = vld [vmem:[#allocation4 + $0x328] ss:$16 sps:$4 sm:$0xff]  }
 0x1e6   :  { %5596 = vmatpush1.bf16.msra.mxu1 %v8470_v39  ;;  %5556 = vmatprep.subr.bf16.mxu0 %v8475_v40  ;;  %v8529_v39 = vld [vmem:[#allocation4 + $0x10c] ss:$16 sps:$4 sm:$0xff]  }
 0x1e7   :  { %5597 = vmatprep.subr.bf16.mxu1 %v8478_v47  ;;  %v8532_v40 = vld [vmem:[#allocation4 + $0x30c] ss:$16 sps:$4 sm:$0xff]   ;;  %v8527_v47 = vld [vmem:[#allocation4 + $0x108] ss:$16 sps:$4 sm:$0xff]  }
 0x1e9   :  { %5557 = vmatpush1.bf16.msra.mxu0 %v8473_v48  ;;  %v8530_v48 = vld [vmem:[#allocation4 + $0x308] ss:$16 sps:$4 sm:$0xff]  }
 0x1ea   :  { %5598 = vmatpush1.bf16.msra.mxu1 %v8476_v49  ;;  %5558 = vmatprep.subr.bf16.mxu0 %v8481_v50  ;;  %v8535_v49 = vld [vmem:[#allocation4 + $0x4ec] ss:$16 sps:$4 sm:$0xff]  }
 0x1eb   :  { %5599 = vmatprep.subr.bf16.mxu1 %v8484_v51  ;;  %v8538_v50 = vld [vmem:[#allocation4 + $0x6ec] ss:$16 sps:$4 sm:$0xff]   ;;  %v8533_v51 = vld [vmem:[#allocation4 + $0x4e8] ss:$16 sps:$4 sm:$0xff]  }
 0x1ed   :  { %5559 = vmatpush1.bf16.msra.mxu0 %v8479_v52  ;;  %v8536_v52 = vld [vmem:[#allocation4 + $0x6e8] ss:$16 sps:$4 sm:$0xff]  }
 0x1ee   :  { %5600 = vmatpush1.bf16.msra.mxu1 %v8482_v21  ;;  %5560 = vmatprep.subr.bf16.mxu0 %v8487_v24  ;;  %v8541_v21 = vld [vmem:[#allocation4 + $0x4cc] ss:$16 sps:$4 sm:$0xff]  }
 0x1ef   :  { %5601 = vmatprep.subr.bf16.mxu1 %v8490_v27  ;;  %v8544_v24 = vld [vmem:[#allocation4 + $0x6cc] ss:$16 sps:$4 sm:$0xff]   ;;  %v8539_v27 = vld [vmem:[#allocation4 + $0x4c8] ss:$16 sps:$4 sm:$0xff]  }
 0x1f1   :  { %5561 = vmatpush2.bf16.msra.mxu0 %v8485_v28  ;;  %v8542_v28 = vld [vmem:[#allocation4 + $0x6c8] ss:$16 sps:$4 sm:$0xff]  }
 0x1f2   :  { %5602 = vmatpush2.bf16.msra.mxu1 %v8488_v61  ;;  %5562 = vmatprep.subr.bf16.mxu0 %v8493_v62 }
 0x1f3   :  { %5603 = vmatprep.subr.bf16.mxu1 %v8496_v4 }
 0x1f5   :  { %5563 = vmatpush2.bf16.msra.mxu0 %v8491_v36 }
 0x1f6   :  { %5604 = vmatpush2.bf16.msra.mxu1 %v8494_v11  ;;  %5564 = vmatprep.subr.bf16.mxu0 %v8499_v16  ;;  %v8547_v16 = vld [vmem:[#allocation4 + $0x4ac] ss:$16 sps:$4 sm:$0xff]  }
 0x1f7   :  { %5605 = vmatprep.subr.bf16.mxu1 %v8502_v19  ;;  %v8550_v19 = vld [vmem:[#allocation4 + $0x6ac] ss:$16 sps:$4 sm:$0xff]  }
 0x1f9   :  { %5565 = vmatpush2.bf16.msra.mxu0 %v8497_v41 }
 0x1fa   :  { %5606 = vmatpush2.bf16.msra.mxu1 %v8500_v13  ;;  %5566 = vmatprep.subr.bf16.mxu0 %v8505_v20  ;;  %v8545_v20 = vld [vmem:[#allocation4 + $0x4a8] ss:$16 sps:$4 sm:$0xff]  }
 0x1fb   :  { %5607 = vmatprep.subr.bf16.mxu1 %v8508_v29  ;;  %v8548_v29 = vld [vmem:[#allocation4 + $0x6a8] ss:$16 sps:$4 sm:$0xff]  }
 0x1fd   :  { %5567 = vmatpush2.bf16.msra.mxu0 %v8503_v59 }
 0x1fe   :  { %5608 = vmatpush2.bf16.msra.mxu1 %v8506_v1  ;;  %5568 = vmatprep.subr.bf16.mxu0 %v8511_v2  ;;  %v8553_v2 = vld [vmem:[#allocation4 + $0x48c] ss:$16 sps:$4 sm:$0xff]  }
 0x1ff   :  { %5609 = vmatprep.subr.bf16.mxu1 %v8514_v3  ;;  %v8556_v3 = vld [vmem:[#allocation4 + $0x68c] ss:$16 sps:$4 sm:$0xff]  }
 0x201   :  { %5569 = vmatpush2.bf16.msra.mxu0 %v8509_v34  ;;  %v8554_v34 = vld [vmem:[#allocation4 + $0x688] ss:$16 sps:$4 sm:$0xff]  }
 0x202   :  { %5610 = vmatpush2.bf16.msra.mxu1 %v8512_v5  ;;  %5570 = vmatprep.subr.bf16.mxu0 %v8517_v35  ;;  %v8557_v5 = vld [vmem:[#allocation4 + $0x468] ss:$16 sps:$4 sm:$0xff]  }
 0x203   :  { %5611 = vmatprep.subr.bf16.mxu1 %v8520_v6  ;;  %v8560_v35 = vld [vmem:[#allocation4 + $0x668] ss:$16 sps:$4 sm:$0xff]   ;;  %v8565_v6 = vld [vmem:[#allocation4 + $0x44c] ss:$16 sps:$4 sm:$0xff]  }
 0x205   :  { %5571 = vmatpush2.bf16.msra.mxu0 %v8515_v9  ;;  %v8568_v9 = vld [vmem:[#allocation4 + $0x64c] ss:$16 sps:$4 sm:$0xff]  }
 0x206   :  { %5612 = vmatpush2.bf16.msra.mxu1 %v8518_v37  ;;  %5572 = vmatprep.subr.bf16.mxu0 %v8523_v53  ;;  %v8563_v37 = vld [vmem:[#allocation4 + $0x448] ss:$16 sps:$4 sm:$0xff]  }
 0x207   :  { %5613 = vmatprep.subr.bf16.mxu1 %v8526_v38  ;;  %v8566_v53 = vld [vmem:[#allocation4 + $0x648] ss:$16 sps:$4 sm:$0xff]   ;;  %v8571_v38 = vld [vmem:[#allocation4 + $0x42c] ss:$16 sps:$4 sm:$0xff]  }
 0x209   :  { %5573 = vmatpush2.bf16.msra.mxu0 %v8521_v57  ;;  %v8574_v57 = vld [vmem:[#allocation4 + $0x62c] ss:$16 sps:$4 sm:$0xff]  }
 0x20a   :  { %5614 = vmatpush2.bf16.msra.mxu1 %v8524_v58  ;;  %5574 = vmatprep.subr.bf16.mxu0 %v8529_v39  ;;  %v8569_v58 = vld [vmem:[#allocation4 + $0x428] ss:$16 sps:$4 sm:$0xff]  }
 0x20b   :  { %5615 = vmatprep.subr.bf16.mxu1 %v8532_v40  ;;  %v8572_v39 = vld [vmem:[#allocation4 + $0x628] ss:$16 sps:$4 sm:$0xff]   ;;  %v8577_v40 = vld [vmem:[#allocation4 + $0x40c] ss:$16 sps:$4 sm:$0xff]  }
 0x20d   :  { %5575 = vmatpush2.bf16.msra.mxu0 %v8527_v47  ;;  %v8580_v47 = vld [vmem:[#allocation4 + $0x60c] ss:$16 sps:$4 sm:$0xff]  }
 0x20e   :  { %5616 = vmatpush2.bf16.msra.mxu1 %v8530_v48  ;;  %5626 = vmatprep.subr.bf16.mxu0 %v8535_v49  ;;  %v8575_v48 = vld [vmem:[#allocation4 + $0x408] ss:$16 sps:$4 sm:$0xff]  }
 0x20f   :  { %5667 = vmatprep.subr.bf16.mxu1 %v8538_v50  ;;  %v8578_v49 = vld [vmem:[#allocation4 + $0x608] ss:$16 sps:$4 sm:$0xff]   ;;  %v8583_v50 = vld [vmem:[#allocation4 + $0x5ec] ss:$16 sps:$4 sm:$0xff]  }
 0x210   :  { %v5332_v61 = vpop.f32.mrf.mxu0  ;;  %5577 = vmatmul.mubr.bf16.vlgmr.msra.gmra.mxu0 %v9397_v22 }
 0x211   :  { %v5373_v62 = vpop.f32.mrf.mxu1  ;;  %5618 = vmatmul.mubr.bf16.vlgmr.msra.gmra.mxu1 %v9399_v23  ;;  %v5333_v4 = vadd.f32 %v5332_v61, %v9640_v12  ;;  %5627 = vmatpush1.bf16.msra.mxu0 %v8533_v51  ;;  %v8586_v51 = vld [vmem:[#allocation4 + $0x7ec] ss:$16 sps:$4 sm:$0xff]   ;;  %v8590_v61 = vld [vmem:[#allocation4 + $0x7c8] ss:$16 sps:$4 sm:$0xff]  }
 0x212   :  { %5668 = vmatpush1.bf16.msra.mxu1 %v8536_v52  ;;  %v5334_v36 = vpop.f32.mrf.mxu0  ;;  %5628 = vmatprep.subr.bf16.mxu0 %v8541_v21  ;;  %v8581_v52 = vld [vmem:[#allocation4 + $0x5e8] ss:$16 sps:$4 sm:$0xff]  }
 0x213   :  { %v5375_v11 = vpop.f32.mrf.mxu1  ;;  %5669 = vmatprep.subr.bf16.mxu1 %v8544_v24  ;;  %v9650_v41 = vadd.f32 %v5373_v62, %v5333_v4  ;;  %v5335_v13 = vadd.f32 %v5334_v36, %v9645_v63  ;;  %5658 = vmatprep.mubr.bf16.mxu0 %v9431_v7  ;;  %v8551_v63 = vld [vmem:[#allocation4 + $0x488] ss:$16 sps:$4 sm:$0xff]   ;;  %v8559_v7 = vld [vmem:[#allocation4 + $0x46c] ss:$16 sps:$4 sm:$0xff]  }
 0x214   :  { %5699 = vmatprep.mubr.bf16.mxu1 %v9433_v10  ;;  %v5336_v22 = vpop.f32.mrf.mxu0  ;;  %v8562_v10 = vld [vmem:[#allocation4 + $0x66c] ss:$16 sps:$4 sm:$0xff]   ;;  %v8584_v21 = vld [vmem:[#allocation4 + $0x7e8] ss:$16 sps:$4 sm:$0xff]  }
 0x215   :  { %v5377_v23 = vpop.f32.mrf.mxu1  ;;  %v9655_v12 = vadd.f32 %v5375_v11, %v5335_v13  ;;  %5629 = vmatpush1.bf16.msra.mxu0 %v8539_v27  ;;  %v8589_v24 = vld [vmem:[#allocation4 + $0x5cc] ss:$16 sps:$4 sm:$0xff]   ;;  %v8593_v36 = vld [vmem:[#allocation4 + $0x5a8] ss:$16 sps:$4 sm:$0xff]  }
 0x216   :  { %5670 = vmatpush1.bf16.msra.mxu1 %v8542_v28  ;;  %v5337_v59 = vpop.f32.mrf.mxu0  ;;  %5630 = vmatprep.subr.bf16.mxu0 %v8547_v16  ;;  %v8592_v27 = vld [vmem:[#allocation4 + $0x7cc] ss:$16 sps:$4 sm:$0xff]   ;;  %v8587_v28 = vld [vmem:[#allocation4 + $0x5c8] ss:$16 sps:$4 sm:$0xff]  }
 0x217   :  { %v5378_v1 = vpop.f32.mrf.mxu1  ;;  %5671 = vmatprep.subr.bf16.mxu1 %v8550_v19  ;;  %v8595_v62 = vld [vmem:[#allocation4 + $0x5ac] ss:$16 sps:$4 sm:$0xff]   ;;  %v8596_v11 = vld [vmem:[#allocation4 + $0x7a8] ss:$16 sps:$4 sm:$0xff]  }
 0x218   :  { %v8598_v4 = vld [vmem:[#allocation4 + $0x7ac] ss:$16 sps:$4 sm:$0xff]   ;;  %v8599_v13 = vld [vmem:[#allocation4 + $0x588] ss:$16 sps:$4 sm:$0xff]  }
 0x219   :  { %5631 = vmatpush1.bf16.msra.mxu0 %v8545_v20  ;;  %v8601_v16 = vld [vmem:[#allocation4 + $0x58c] ss:$16 sps:$4 sm:$0xff]   ;;  %v8602_v20 = vld [vmem:[#allocation4 + $0x788] ss:$16 sps:$4 sm:$0xff]  }
 0x21a   :  { %5672 = vmatpush1.bf16.msra.mxu1 %v8548_v29  ;;  %5632 = vmatprep.subr.bf16.mxu0 %v8553_v2  ;;  %v8604_v19 = vld [vmem:[#allocation4 + $0x78c] ss:$16 sps:$4 sm:$0xff]   ;;  %v8605_v23 = vld [vmem:[#allocation4 + $0x568] ss:$16 sps:$4 sm:$0xff]  }
 0x21b   :  { %5673 = vmatprep.subr.bf16.mxu1 %v8556_v3  ;;  %v8607_v29 = vld [vmem:[#allocation4 + $0x56c] ss:$16 sps:$4 sm:$0xff]   ;;  %v8608_v59 = vld [vmem:[#allocation4 + $0x768] ss:$16 sps:$4 sm:$0xff]  }
 0x21c   :  { %v8610_v22 = vld [vmem:[#allocation4 + $0x76c] ss:$16 sps:$4 sm:$0xff]   ;;  %v8611_v3 = vld [vmem:[#allocation4 + $0x548] ss:$16 sps:$4 sm:$0xff]  }
 0x21d   :  { %5633 = vmatpush1.bf16.msra.mxu0 %v8551_v63  ;;  %v8613_v1 = vld [vmem:[#allocation4 + $0x54c] ss:$16 sps:$4 sm:$0xff]   ;;  %v8614_v63 = vld [vmem:[#allocation4 + $0x748] ss:$16 sps:$4 sm:$0xff]  }
 0x21e   :  { %5674 = vmatpush1.bf16.msra.mxu1 %v8554_v34  ;;  %5634 = vmatprep.subr.bf16.mxu0 %v8559_v7  ;;  %v8616_v2 = vld [vmem:[#allocation4 + $0x74c] ss:$16 sps:$4 sm:$0xff]  }
 0x21f   :  { %5675 = vmatprep.subr.bf16.mxu1 %v8562_v10  ;;  %v8619_v34 = vld [vmem:[#allocation4 + $0x52c] ss:$16 sps:$4 sm:$0xff]   ;;  %v8617_v10 = vld [vmem:[#allocation4 + $0x528] ss:$16 sps:$4 sm:$0xff]  }
 0x220   :  { %v8622_v7 = vld [vmem:[#allocation4 + $0x72c] ss:$16 sps:$4 sm:$0xff]  }
 0x221   :  { %5635 = vmatpush1.bf16.msra.mxu0 %v8557_v5  ;;  %v8620_v5 = vld [vmem:[#allocation4 + $0x728] ss:$16 sps:$4 sm:$0xff]  }
 0x222   :  { %5676 = vmatpush1.bf16.msra.mxu1 %v8560_v35  ;;  %5636 = vmatprep.subr.bf16.mxu0 %v8565_v6  ;;  %v8625_v35 = vld [vmem:[#allocation4 + $0x50c] ss:$16 sps:$4 sm:$0xff]  }
 0x223   :  { %5677 = vmatprep.subr.bf16.mxu1 %v8568_v9  ;;  %v8628_v6 = vld [vmem:[#allocation4 + $0x70c] ss:$16 sps:$4 sm:$0xff]   ;;  %v8623_v9 = vld [vmem:[#allocation4 + $0x508] ss:$16 sps:$4 sm:$0xff]  }
 0x225   :  { %5637 = vmatpush1.bf16.msra.mxu0 %v8563_v37  ;;  %v8626_v37 = vld [vmem:[#allocation4 + $0x708] ss:$16 sps:$4 sm:$0xff]  }
 0x226   :  { %5678 = vmatpush1.bf16.msra.mxu1 %v8566_v53  ;;  %5638 = vmatprep.subr.bf16.mxu0 %v8571_v38  ;;  %v8631_v53 = vld [vmem:[#allocation4 + $0x8ec] ss:$16 sps:$4 sm:$0xff]  }
 0x227   :  { %5679 = vmatprep.subr.bf16.mxu1 %v8574_v57  ;;  %v8634_v38 = vld [vmem:[#allocation4 + $0xaec] ss:$16 sps:$4 sm:$0xff]   ;;  %v8629_v57 = vld [vmem:[#allocation4 + $0x8e8] ss:$16 sps:$4 sm:$0xff]  }
 0x229   :  { %5639 = vmatpush1.bf16.msra.mxu0 %v8569_v58  ;;  %v8632_v58 = vld [vmem:[#allocation4 + $0xae8] ss:$16 sps:$4 sm:$0xff]  }
 0x22a   :  { %5680 = vmatpush1.bf16.msra.mxu1 %v8572_v39  ;;  %5640 = vmatprep.subr.bf16.mxu0 %v8577_v40  ;;  %v8637_v39 = vld [vmem:[#allocation4 + $0x8cc] ss:$16 sps:$4 sm:$0xff]  }
 0x22b   :  { %5681 = vmatprep.subr.bf16.mxu1 %v8580_v47  ;;  %v8640_v40 = vld [vmem:[#allocation4 + $0xacc] ss:$16 sps:$4 sm:$0xff]   ;;  %v8635_v47 = vld [vmem:[#allocation4 + $0x8c8] ss:$16 sps:$4 sm:$0xff]  }
 0x22d   :  { %5641 = vmatpush1.bf16.msra.mxu0 %v8575_v48  ;;  %v8638_v48 = vld [vmem:[#allocation4 + $0xac8] ss:$16 sps:$4 sm:$0xff]  }
 0x22e   :  { %5682 = vmatpush1.bf16.msra.mxu1 %v8578_v49  ;;  %5642 = vmatprep.subr.bf16.mxu0 %v8583_v50 }
 0x22f   :  { %5683 = vmatprep.subr.bf16.mxu1 %v8586_v51 }
 0x231   :  { %5643 = vmatpush2.bf16.msra.mxu0 %v8581_v52 }
 0x232   :  { %5684 = vmatpush2.bf16.msra.mxu1 %v8584_v21  ;;  %5644 = vmatprep.subr.bf16.mxu0 %v8589_v24  ;;  %v8643_v24 = vld [vmem:[#allocation4 + $0x8ac] ss:$16 sps:$4 sm:$0xff]  }
 0x233   :  { %5685 = vmatprep.subr.bf16.mxu1 %v8592_v27  ;;  %v8646_v27 = vld [vmem:[#allocation4 + $0xaac] ss:$16 sps:$4 sm:$0xff]  }
 0x235   :  { %5645 = vmatpush2.bf16.msra.mxu0 %v8587_v28 }
 0x236   :  { %5686 = vmatpush2.bf16.msra.mxu1 %v8590_v61  ;;  %5646 = vmatprep.subr.bf16.mxu0 %v8595_v62  ;;  %v8641_v62 = vld [vmem:[#allocation4 + $0x8a8] ss:$16 sps:$4 sm:$0xff]  }
 0x237   :  { %5687 = vmatprep.subr.bf16.mxu1 %v8598_v4  ;;  %v8644_v4 = vld [vmem:[#allocation4 + $0xaa8] ss:$16 sps:$4 sm:$0xff]  }
 0x239   :  { %5647 = vmatpush2.bf16.msra.mxu0 %v8593_v36 }
 0x23a   :  { %5688 = vmatpush2.bf16.msra.mxu1 %v8596_v11  ;;  %5648 = vmatprep.subr.bf16.mxu0 %v8601_v16  ;;  %v8649_v16 = vld [vmem:[#allocation4 + $0x88c] ss:$16 sps:$4 sm:$0xff]  }
 0x23b   :  { %5689 = vmatprep.subr.bf16.mxu1 %v8604_v19  ;;  %v8652_v19 = vld [vmem:[#allocation4 + $0xa8c] ss:$16 sps:$4 sm:$0xff]  }
 0x23d   :  { %5649 = vmatpush2.bf16.msra.mxu0 %v8599_v13  ;;  %v8650_v13 = vld [vmem:[#allocation4 + $0xa88] ss:$16 sps:$4 sm:$0xff]  }
 0x23e   :  { %5690 = vmatpush2.bf16.msra.mxu1 %v8602_v20  ;;  %5650 = vmatprep.subr.bf16.mxu0 %v8607_v29  ;;  %v8653_v20 = vld [vmem:[#allocation4 + $0x868] ss:$16 sps:$4 sm:$0xff]  }
 0x23f   :  { %5691 = vmatprep.subr.bf16.mxu1 %v8610_v22  ;;  %v8656_v29 = vld [vmem:[#allocation4 + $0xa68] ss:$16 sps:$4 sm:$0xff]   ;;  %v8661_v22 = vld [vmem:[#allocation4 + $0x84c] ss:$16 sps:$4 sm:$0xff]  }
 0x241   :  { %5651 = vmatpush2.bf16.msra.mxu0 %v8605_v23  ;;  %v8664_v23 = vld [vmem:[#allocation4 + $0xa4c] ss:$16 sps:$4 sm:$0xff]  }
 0x242   :  { %5692 = vmatpush2.bf16.msra.mxu1 %v8608_v59  ;;  %5652 = vmatprep.subr.bf16.mxu0 %v8613_v1  ;;  %v8659_v59 = vld [vmem:[#allocation4 + $0x848] ss:$16 sps:$4 sm:$0xff]  }
 0x243   :  { %5693 = vmatprep.subr.bf16.mxu1 %v8616_v2  ;;  %v8662_v1 = vld [vmem:[#allocation4 + $0xa48] ss:$16 sps:$4 sm:$0xff]   ;;  %v8667_v2 = vld [vmem:[#allocation4 + $0x82c] ss:$16 sps:$4 sm:$0xff]  }
 0x245   :  { %5653 = vmatpush2.bf16.msra.mxu0 %v8611_v3  ;;  %v8670_v3 = vld [vmem:[#allocation4 + $0xa2c] ss:$16 sps:$4 sm:$0xff]  }
 0x246   :  { %5694 = vmatpush2.bf16.msra.mxu1 %v8614_v63  ;;  %5654 = vmatprep.subr.bf16.mxu0 %v8619_v34  ;;  %v8665_v63 = vld [vmem:[#allocation4 + $0x828] ss:$16 sps:$4 sm:$0xff]  }
 0x247   :  { %5695 = vmatprep.subr.bf16.mxu1 %v8622_v7  ;;  %v8668_v34 = vld [vmem:[#allocation4 + $0xa28] ss:$16 sps:$4 sm:$0xff]   ;;  %v8673_v7 = vld [vmem:[#allocation4 + $0x80c] ss:$16 sps:$4 sm:$0xff]  }
 0x249   :  { %5655 = vmatpush2.bf16.msra.mxu0 %v8617_v10  ;;  %v8676_v10 = vld [vmem:[#allocation4 + $0xa0c] ss:$16 sps:$4 sm:$0xff]  }
 0x24a   :  { %5696 = vmatpush2.bf16.msra.mxu1 %v8620_v5  ;;  %5656 = vmatprep.subr.bf16.mxu0 %v8625_v35  ;;  %v8671_v5 = vld [vmem:[#allocation4 + $0x808] ss:$16 sps:$4 sm:$0xff]  }
 0x24b   :  { %5697 = vmatprep.subr.bf16.mxu1 %v8628_v6  ;;  %v8674_v35 = vld [vmem:[#allocation4 + $0xa08] ss:$16 sps:$4 sm:$0xff]   ;;  %v8679_v6 = vld [vmem:[#allocation4 + $0x9ec] ss:$16 sps:$4 sm:$0xff]  }
 0x24d   :  { %5657 = vmatpush2.bf16.msra.mxu0 %v8623_v9  ;;  %v8682_v9 = vld [vmem:[#allocation4 + $0xbec] ss:$16 sps:$4 sm:$0xff]  }
 0x24e   :  { %5698 = vmatpush2.bf16.msra.mxu1 %v8626_v37  ;;  %5708 = vmatprep.subr.bf16.mxu0 %v8631_v53  ;;  %v8677_v37 = vld [vmem:[#allocation4 + $0x9e8] ss:$16 sps:$4 sm:$0xff]  }
 0x24f   :  { %5749 = vmatprep.subr.bf16.mxu1 %v8634_v38  ;;  %v8680_v53 = vld [vmem:[#allocation4 + $0xbe8] ss:$16 sps:$4 sm:$0xff]   ;;  %v8685_v38 = vld [vmem:[#allocation4 + $0x9cc] ss:$16 sps:$4 sm:$0xff]  }
 0x250   :  { %v5414_v49 = vpop.f32.mrf.mxu0  ;;  %5659 = vmatmul.mubr.bf16.vlgmr.msra.gmra.mxu0 %v9441_v44 }
 0x251   :  { %v5455_v50 = vpop.f32.mrf.mxu1  ;;  %5700 = vmatmul.mubr.bf16.vlgmr.msra.gmra.mxu1 %v9443_v45  ;;  %v5415_v51 = vadd.f32 %v5414_v49, %v9650_v41  ;;  %5709 = vmatpush1.bf16.msra.mxu0 %v8629_v57  ;;  %v8688_v57 = vld [vmem:[#allocation4 + $0xbcc] ss:$16 sps:$4 sm:$0xff]   ;;  %v8692_v49 = vld [vmem:[#allocation4 + $0xba8] ss:$16 sps:$4 sm:$0xff]  }
 0x252   :  { %5750 = vmatpush1.bf16.msra.mxu1 %v8632_v58  ;;  %v5416_v52 = vpop.f32.mrf.mxu0  ;;  %5710 = vmatprep.subr.bf16.mxu0 %v8637_v39  ;;  %v8683_v58 = vld [vmem:[#allocation4 + $0x9c8] ss:$16 sps:$4 sm:$0xff]  }
 0x253   :  { %v5457_v21 = vpop.f32.mrf.mxu1  ;;  %5751 = vmatprep.subr.bf16.mxu1 %v8640_v40  ;;  %v9660_v28 = vadd.f32 %v5455_v50, %v5415_v51  ;;  %v5417_v61 = vadd.f32 %v5416_v52, %v9655_v12  ;;  %5740 = vmatprep.mubr.bf16.mxu0 %v9475_v14  ;;  %v8647_v12 = vld [vmem:[#allocation4 + $0x888] ss:$16 sps:$4 sm:$0xff]   ;;  %v8655_v14 = vld [vmem:[#allocation4 + $0x86c] ss:$16 sps:$4 sm:$0xff]  }
 0x254   :  { %5781 = vmatprep.mubr.bf16.mxu1 %v9477_v15  ;;  %v5418_v44 = vpop.f32.mrf.mxu0  ;;  %v8658_v15 = vld [vmem:[#allocation4 + $0xa6c] ss:$16 sps:$4 sm:$0xff]   ;;  %v8686_v39 = vld [vmem:[#allocation4 + $0xbc8] ss:$16 sps:$4 sm:$0xff]  }
 0x255   :  { %v5459_v45 = vpop.f32.mrf.mxu1  ;;  %v9665_v41 = vadd.f32 %v5457_v21, %v5417_v61  ;;  %5711 = vmatpush1.bf16.msra.mxu0 %v8635_v47  ;;  %v8691_v40 = vld [vmem:[#allocation4 + $0x9ac] ss:$16 sps:$4 sm:$0xff]   ;;  %v8695_v52 = vld [vmem:[#allocation4 + $0x988] ss:$16 sps:$4 sm:$0xff]  }
 0x256   :  { %5752 = vmatpush1.bf16.msra.mxu1 %v8638_v48  ;;  %v5419_v36 = vpop.f32.mrf.mxu0  ;;  %5712 = vmatprep.subr.bf16.mxu0 %v8643_v24  ;;  %v8694_v47 = vld [vmem:[#allocation4 + $0xbac] ss:$16 sps:$4 sm:$0xff]   ;;  %v8689_v48 = vld [vmem:[#allocation4 + $0x9a8] ss:$16 sps:$4 sm:$0xff]  }
 0x257   :  { %v5460_v11 = vpop.f32.mrf.mxu1  ;;  %5753 = vmatprep.subr.bf16.mxu1 %v8646_v27  ;;  %v8697_v50 = vld [vmem:[#allocation4 + $0x98c] ss:$16 sps:$4 sm:$0xff]   ;;  %v8698_v21 = vld [vmem:[#allocation4 + $0xb88] ss:$16 sps:$4 sm:$0xff]  }
 0x258   :  { %v8700_v51 = vld [vmem:[#allocation4 + $0xb8c] ss:$16 sps:$4 sm:$0xff]   ;;  %v8701_v61 = vld [vmem:[#allocation4 + $0x968] ss:$16 sps:$4 sm:$0xff]  }
 0x259   :  { %5713 = vmatpush1.bf16.msra.mxu0 %v8641_v62  ;;  %v8703_v24 = vld [vmem:[#allocation4 + $0x96c] ss:$16 sps:$4 sm:$0xff]   ;;  %v8704_v62 = vld [vmem:[#allocation4 + $0xb68] ss:$16 sps:$4 sm:$0xff]  }
 0x25a   :  { %5754 = vmatpush1.bf16.msra.mxu1 %v8644_v4  ;;  %5714 = vmatprep.subr.bf16.mxu0 %v8649_v16  ;;  %v8706_v27 = vld [vmem:[#allocation4 + $0xb6c] ss:$16 sps:$4 sm:$0xff]   ;;  %v8707_v45 = vld [vmem:[#allocation4 + $0x948] ss:$16 sps:$4 sm:$0xff]  }
 0x25b   :  { %5755 = vmatprep.subr.bf16.mxu1 %v8652_v19  ;;  %v8709_v4 = vld [vmem:[#allocation4 + $0x94c] ss:$16 sps:$4 sm:$0xff]   ;;  %v8710_v36 = vld [vmem:[#allocation4 + $0xb48] ss:$16 sps:$4 sm:$0xff]  }
 0x25c   :  { %v8712_v44 = vld [vmem:[#allocation4 + $0xb4c] ss:$16 sps:$4 sm:$0xff]   ;;  %v8713_v19 = vld [vmem:[#allocation4 + $0x928] ss:$16 sps:$4 sm:$0xff]  }
 0x25d   :  { %5715 = vmatpush1.bf16.msra.mxu0 %v8647_v12  ;;  %v8715_v11 = vld [vmem:[#allocation4 + $0x92c] ss:$16 sps:$4 sm:$0xff]   ;;  %v8716_v12 = vld [vmem:[#allocation4 + $0xb28] ss:$16 sps:$4 sm:$0xff]  }
 0x25e   :  { %5756 = vmatpush1.bf16.msra.mxu1 %v8650_v13  ;;  %5716 = vmatprep.subr.bf16.mxu0 %v8655_v14  ;;  %v8718_v16 = vld [vmem:[#allocation4 + $0xb2c] ss:$16 sps:$4 sm:$0xff]  }
 0x25f   :  { %5757 = vmatprep.subr.bf16.mxu1 %v8658_v15  ;;  %v8721_v13 = vld [vmem:[#allocation4 + $0x90c] ss:$16 sps:$4 sm:$0xff]   ;;  %v8719_v15 = vld [vmem:[#allocation4 + $0x908] ss:$16 sps:$4 sm:$0xff]  }
 0x260   :  { %v8724_v14 = vld [vmem:[#allocation4 + $0xb0c] ss:$16 sps:$4 sm:$0xff]  }
 0x261   :  { %5717 = vmatpush1.bf16.msra.mxu0 %v8653_v20  ;;  %v8722_v20 = vld [vmem:[#allocation4 + $0xb08] ss:$16 sps:$4 sm:$0xff]  }
 0x262   :  { %5758 = vmatpush1.bf16.msra.mxu1 %v8656_v29  ;;  %5718 = vmatprep.subr.bf16.mxu0 %v8661_v22  ;;  %v8727_v29 = vld [vmem:[#allocation4 + $0xcec] ss:$16 sps:$4 sm:$0xff]  }
 0x263   :  { %5759 = vmatprep.subr.bf16.mxu1 %v8664_v23  ;;  %v8730_v22 = vld [vmem:[#allocation4 + $0xeec] ss:$16 sps:$4 sm:$0xff]   ;;  %v8725_v23 = vld [vmem:[#allocation4 + $0xce8] ss:$16 sps:$4 sm:$0xff]  }
 0x265   :  { %5719 = vmatpush1.bf16.msra.mxu0 %v8659_v59  ;;  %v8728_v59 = vld [vmem:[#allocation4 + $0xee8] ss:$16 sps:$4 sm:$0xff]  }
 0x266   :  { %5760 = vmatpush1.bf16.msra.mxu1 %v8662_v1  ;;  %5720 = vmatprep.subr.bf16.mxu0 %v8667_v2  ;;  %v8733_v1 = vld [vmem:[#allocation4 + $0xccc] ss:$16 sps:$4 sm:$0xff]  }
 0x267   :  { %5761 = vmatprep.subr.bf16.mxu1 %v8670_v3  ;;  %v8736_v2 = vld [vmem:[#allocation4 + $0xecc] ss:$16 sps:$4 sm:$0xff]  }
 0x269   :  { %5721 = vmatpush1.bf16.msra.mxu0 %v8665_v63 }
 0x26a   :  { %5762 = vmatpush1.bf16.msra.mxu1 %v8668_v34  ;;  %5722 = vmatprep.subr.bf16.mxu0 %v8673_v7  ;;  %v8731_v7 = vld [vmem:[#allocation4 + $0xcc8] ss:$16 sps:$4 sm:$0xff]  }
 0x26b   :  { %5763 = vmatprep.subr.bf16.mxu1 %v8676_v10  ;;  %v8734_v10 = vld [vmem:[#allocation4 + $0xec8] ss:$16 sps:$4 sm:$0xff]  }
 0x26d   :  { %5723 = vmatpush1.bf16.msra.mxu0 %v8671_v5 }
 0x26e   :  { %5764 = vmatpush1.bf16.msra.mxu1 %v8674_v35  ;;  %5724 = vmatprep.subr.bf16.mxu0 %v8679_v6  ;;  %v8739_v6 = vld [vmem:[#allocation4 + $0xcac] ss:$16 sps:$4 sm:$0xff]  }
 0x26f   :  { %5765 = vmatprep.subr.bf16.mxu1 %v8682_v9  ;;  %v8742_v9 = vld [vmem:[#allocation4 + $0xeac] ss:$16 sps:$4 sm:$0xff]  }
 0x271   :  { %5725 = vmatpush2.bf16.msra.mxu0 %v8677_v37 }
 0x272   :  { %5766 = vmatpush2.bf16.msra.mxu1 %v8680_v53  ;;  %5726 = vmatprep.subr.bf16.mxu0 %v8685_v38  ;;  %v8737_v38 = vld [vmem:[#allocation4 + $0xca8] ss:$16 sps:$4 sm:$0xff]  }
 0x273   :  { %5767 = vmatprep.subr.bf16.mxu1 %v8688_v57  ;;  %v8740_v57 = vld [vmem:[#allocation4 + $0xea8] ss:$16 sps:$4 sm:$0xff]  }
 0x275   :  { %5727 = vmatpush2.bf16.msra.mxu0 %v8683_v58 }
 0x276   :  { %5768 = vmatpush2.bf16.msra.mxu1 %v8686_v39  ;;  %5728 = vmatprep.subr.bf16.mxu0 %v8691_v40  ;;  %v8745_v40 = vld [vmem:[#allocation4 + $0xc8c] ss:$16 sps:$4 sm:$0xff]  }
 0x277   :  { %5769 = vmatprep.subr.bf16.mxu1 %v8694_v47  ;;  %v8748_v47 = vld [vmem:[#allocation4 + $0xe8c] ss:$16 sps:$4 sm:$0xff]  }
 0x279   :  { %5729 = vmatpush2.bf16.msra.mxu0 %v8689_v48  ;;  %v8754_v48 = vld [vmem:[#allocation4 + $0xe6c] ss:$16 sps:$4 sm:$0xff]  }
 0x27a   :  { %5770 = vmatpush2.bf16.msra.mxu1 %v8692_v49  ;;  %5730 = vmatprep.subr.bf16.mxu0 %v8697_v50  ;;  %v8749_v49 = vld [vmem:[#allocation4 + $0xc68] ss:$16 sps:$4 sm:$0xff]  }
 0x27b   :  { %5771 = vmatprep.subr.bf16.mxu1 %v8700_v51  ;;  %v8752_v50 = vld [vmem:[#allocation4 + $0xe68] ss:$16 sps:$4 sm:$0xff]   ;;  %v8757_v51 = vld [vmem:[#allocation4 + $0xc4c] ss:$16 sps:$4 sm:$0xff]  }
 0x27d   :  { %5731 = vmatpush2.bf16.msra.mxu0 %v8695_v52  ;;  %v8760_v52 = vld [vmem:[#allocation4 + $0xe4c] ss:$16 sps:$4 sm:$0xff]  }
 0x27e   :  { %5772 = vmatpush2.bf16.msra.mxu1 %v8698_v21  ;;  %5732 = vmatprep.subr.bf16.mxu0 %v8703_v24  ;;  %v8755_v21 = vld [vmem:[#allocation4 + $0xc48] ss:$16 sps:$4 sm:$0xff]  }
 0x27f   :  { %5773 = vmatprep.subr.bf16.mxu1 %v8706_v27  ;;  %v8758_v24 = vld [vmem:[#allocation4 + $0xe48] ss:$16 sps:$4 sm:$0xff]   ;;  %v8763_v27 = vld [vmem:[#allocation4 + $0xc2c] ss:$16 sps:$4 sm:$0xff]  }
 0x281   :  { %5733 = vmatpush2.bf16.msra.mxu0 %v8701_v61  ;;  %v8766_v61 = vld [vmem:[#allocation4 + $0xe2c] ss:$16 sps:$4 sm:$0xff]  }
 0x282   :  { %5774 = vmatpush2.bf16.msra.mxu1 %v8704_v62  ;;  %5734 = vmatprep.subr.bf16.mxu0 %v8709_v4  ;;  %v8761_v62 = vld [vmem:[#allocation4 + $0xc28] ss:$16 sps:$4 sm:$0xff]  }
 0x283   :  { %5775 = vmatprep.subr.bf16.mxu1 %v8712_v44  ;;  %v8764_v4 = vld [vmem:[#allocation4 + $0xe28] ss:$16 sps:$4 sm:$0xff]   ;;  %v8769_v44 = vld [vmem:[#allocation4 + $0xc0c] ss:$16 sps:$4 sm:$0xff]  }
 0x285   :  { %5735 = vmatpush2.bf16.msra.mxu0 %v8707_v45  ;;  %v8772_v45 = vld [vmem:[#allocation4 + $0xe0c] ss:$16 sps:$4 sm:$0xff]  }
 0x286   :  { %5776 = vmatpush2.bf16.msra.mxu1 %v8710_v36  ;;  %5736 = vmatprep.subr.bf16.mxu0 %v8715_v11  ;;  %v8767_v36 = vld [vmem:[#allocation4 + $0xc08] ss:$16 sps:$4 sm:$0xff]  }
 0x287   :  { %5777 = vmatprep.subr.bf16.mxu1 %v8718_v16  ;;  %v8770_v11 = vld [vmem:[#allocation4 + $0xe08] ss:$16 sps:$4 sm:$0xff]   ;;  %v8775_v16 = vld [vmem:[#allocation4 + $0xdec] ss:$16 sps:$4 sm:$0xff]  }
 0x289   :  { %5737 = vmatpush2.bf16.msra.mxu0 %v8713_v19  ;;  %v8778_v19 = vld [vmem:[#allocation4 + $0xfec] ss:$16 sps:$4 sm:$0xff]  }
 0x28a   :  { %5778 = vmatpush2.bf16.msra.mxu1 %v8716_v12  ;;  %5738 = vmatprep.subr.bf16.mxu0 %v8721_v13  ;;  %v8773_v12 = vld [vmem:[#allocation4 + $0xde8] ss:$16 sps:$4 sm:$0xff]  }
 0x28b   :  { %5779 = vmatprep.subr.bf16.mxu1 %v8724_v14  ;;  %v8776_v13 = vld [vmem:[#allocation4 + $0xfe8] ss:$16 sps:$4 sm:$0xff]   ;;  %v8781_v14 = vld [vmem:[#allocation4 + $0xdcc] ss:$16 sps:$4 sm:$0xff]  }
 0x28d   :  { %5739 = vmatpush2.bf16.msra.mxu0 %v8719_v15  ;;  %v8784_v15 = vld [vmem:[#allocation4 + $0xfcc] ss:$16 sps:$4 sm:$0xff]  }
 0x28e   :  { %5780 = vmatpush2.bf16.msra.mxu1 %v8722_v20  ;;  %5790 = vmatprep.subr.bf16.mxu0 %v8727_v29  ;;  %v8779_v20 = vld [vmem:[#allocation4 + $0xdc8] ss:$16 sps:$4 sm:$0xff]  }
 0x28f   :  { %5831 = vmatprep.subr.bf16.mxu1 %v8730_v22  ;;  %v8782_v29 = vld [vmem:[#allocation4 + $0xfc8] ss:$16 sps:$4 sm:$0xff]   ;;  %v8787_v22 = vld [vmem:[#allocation4 + $0xdac] ss:$16 sps:$4 sm:$0xff]  }
 0x290   :  { %v5496_v3 = vpop.f32.mrf.mxu0  ;;  %5741 = vmatmul.mubr.bf16.vlgmr.msra.gmra.mxu0 %v9513_v30 }
 0x291   :  { %v5537_v63 = vpop.f32.mrf.mxu1  ;;  %5782 = vmatmul.mubr.bf16.vlgmr.msra.gmra.mxu1 %v9515_v31  ;;  %v5497_v34 = vadd.f32 %v5496_v3, %v9660_v28  ;;  %5791 = vmatpush1.bf16.msra.mxu0 %v8725_v23  ;;  %v8790_v23 = vld [vmem:[#allocation4 + $0xfac] ss:$16 sps:$4 sm:$0xff]  }
 0x292   :  { %5832 = vmatpush1.bf16.msra.mxu1 %v8728_v59  ;;  %v5498_v5 = vpop.f32.mrf.mxu0  ;;  %5792 = vmatprep.subr.bf16.mxu0 %v8733_v1  ;;  %v8785_v59 = vld [vmem:[#allocation4 + $0xda8] ss:$16 sps:$4 sm:$0xff]   ;;  %v8796_v3 = vld [vmem:[#allocation4 + $0xf8c] ss:$16 sps:$4 sm:$0xff]  }
 0x293   :  { %v5539_v35 = vpop.f32.mrf.mxu1  ;;  %5833 = vmatprep.subr.bf16.mxu1 %v8736_v2  ;;  %v9670_v37 = vadd.f32 %v5537_v63, %v5497_v34  ;;  %v5499_v53 = vadd.f32 %v5498_v5, %v9665_v41  ;;  %5822 = vmatprep.mubr.bf16.mxu0 %v9517_v32  ;;  %v8743_v41 = vld [vmem:[#allocation4 + $0xc88] ss:$16 sps:$4 sm:$0xff]   ;;  %v8793_v2 = vld [vmem:[#allocation4 + $0xd8c] ss:$16 sps:$4 sm:$0xff]  }
 0x294   :  { %5863 = vmatprep.mubr.bf16.mxu1 %v9519_v33  ;;  %v5500_v30 = vpop.f32.mrf.mxu0  ;;  %v8746_v32 = vld [vmem:[#allocation4 + $0xe88] ss:$16 sps:$4 sm:$0xff]   ;;  %v8751_v33 = vld [vmem:[#allocation4 + $0xc6c] ss:$16 sps:$4 sm:$0xff]  }
 0x295   :  { %v5541_v31 = vpop.f32.mrf.mxu1  ;;  %v9675_v28 = vadd.f32 %v5539_v35, %v5499_v53  ;;  %5793 = vmatpush1.bf16.msra.mxu0 %v8731_v7  ;;  %v8788_v1 = vld [vmem:[#allocation4 + $0xfa8] ss:$16 sps:$4 sm:$0xff]   ;;  %v8799_v7 = vld [vmem:[#allocation4 + $0xd6c] ss:$16 sps:$4 sm:$0xff]  }
 0x296   :  { %5834 = vmatpush1.bf16.msra.mxu1 %v8734_v10  ;;  %v5501_v58 = vpop.f32.mrf.mxu0  ;;  %5794 = vmatprep.subr.bf16.mxu0 %v8739_v6  ;;  %v8791_v63 = vld [vmem:[#allocation4 + $0xd88] ss:$16 sps:$4 sm:$0xff]   ;;  %v8802_v10 = vld [vmem:[#allocation4 + $0xf6c] ss:$16 sps:$4 sm:$0xff]  }
 0x297   :  { %v5542_v39 = vpop.f32.mrf.mxu1  ;;  %5835 = vmatprep.subr.bf16.mxu1 %v8742_v9  ;;  %v8794_v34 = vld [vmem:[#allocation4 + $0xf88] ss:$16 sps:$4 sm:$0xff]   ;;  %v8805_v6 = vld [vmem:[#allocation4 + $0xd4c] ss:$16 sps:$4 sm:$0xff]  }
 0x298   :  { %v8797_v5 = vld [vmem:[#allocation4 + $0xd68] ss:$16 sps:$4 sm:$0xff]   ;;  %v8808_v9 = vld [vmem:[#allocation4 + $0xf4c] ss:$16 sps:$4 sm:$0xff]  }
 0x299   :  { %5795 = vmatpush1.bf16.msra.mxu0 %v8737_v38  ;;  %v8800_v35 = vld [vmem:[#allocation4 + $0xf68] ss:$16 sps:$4 sm:$0xff]   ;;  %v8811_v31 = vld [vmem:[#allocation4 + $0xd2c] ss:$16 sps:$4 sm:$0xff]  }
 0x29a   :  { %5836 = vmatpush1.bf16.msra.mxu1 %v8740_v57  ;;  %5796 = vmatprep.subr.bf16.mxu0 %v8745_v40  ;;  %v8803_v53 = vld [vmem:[#allocation4 + $0xd48] ss:$16 sps:$4 sm:$0xff]   ;;  %v8814_v38 = vld [vmem:[#allocation4 + $0xf2c] ss:$16 sps:$4 sm:$0xff]  }
 0x29b   :  { %5837 = vmatprep.subr.bf16.mxu1 %v8748_v47  ;;  %v8806_v30 = vld [vmem:[#allocation4 + $0xf48] ss:$16 sps:$4 sm:$0xff]   ;;  %v8817_v39 = vld [vmem:[#allocation4 + $0xd0c] ss:$16 sps:$4 sm:$0xff]  }
 0x29c   :  { %v8809_v57 = vld [vmem:[#allocation4 + $0xd28] ss:$16 sps:$4 sm:$0xff]   ;;  %v8820_v40 = vld [vmem:[#allocation4 + $0xf0c] ss:$16 sps:$4 sm:$0xff]  }
 0x29d   :  { %5797 = vmatpush1.bf16.msra.mxu0 %v8743_v41  ;;  %v8812_v58 = vld [vmem:[#allocation4 + $0xf28] ss:$16 sps:$4 sm:$0xff]  }
 0x29e   :  { %5838 = vmatpush1.bf16.msra.mxu1 %v8746_v32  ;;  %5798 = vmatprep.subr.bf16.mxu0 %v8751_v33  ;;  %v8815_v47 = vld [vmem:[#allocation4 + $0xd08] ss:$16 sps:$4 sm:$0xff]   ;;  %v1202_v32 = vsub.s32 2, %v9370_v46  ;;  %v8823_v33 = vld [vmem:[#allocation4 + $0x10ec] ss:$16 sps:$4 sm:$0xff]  }
 0x29f   :  { %5839 = vmatprep.subr.bf16.mxu1 %v8754_v48  ;;  %v8818_v41 = vld [vmem:[#allocation4 + $0xf08] ss:$16 sps:$4 sm:$0xff]   ;;  %v8826_v48 = vld [vmem:[#allocation4 + $0x12ec] ss:$16 sps:$4 sm:$0xff]  }
 0x2a1   :  { %5799 = vmatpush1.bf16.msra.mxu0 %v8749_v49  ;;  %v1206_v49 = vsub.s32 3, %v9370_v46  ;;  %v9131_v46 = vld [vmem:[%s9750_s7 + $0x8] sm:$0xff]  }
 0x2a2   :  { %5840 = vmatpush1.bf16.msra.mxu1 %v8752_v50  ;;  %5800 = vmatprep.subr.bf16.mxu0 %v8757_v51  ;;  %v9133_v50 = vld [vmem:[#allocation7] sm:$0xf] }
 0x2a3   :  { %5841 = vmatprep.subr.bf16.mxu1 %v8760_v52  ;;  %v1203_v51 = vrot.slane %v9133_v50, %v1202_v32  ;;  %v8821_v52 = vld [vmem:[#allocation4 + $0x10e8] ss:$16 sps:$4 sm:$0xff]   ;;  %v8877_v32 = vld [vmem:[#allocation4 + $0x11cc] ss:$16 sps:$4 sm:$0xff]  }
 0x2a5   :  { %5801 = vmatpush1.bf16.msra.mxu0 %v8755_v21  ;;  %v8824_v21 = vld [vmem:[#allocation4 + $0x12e8] ss:$16 sps:$4 sm:$0xff]  }
 0x2a6   :  { %5842 = vmatpush1.bf16.msra.mxu1 %v8758_v24  ;;  %5802 = vmatprep.subr.bf16.mxu0 %v8763_v27  ;;  %v8829_v24 = vld [vmem:[#allocation4 + $0x10cc] ss:$16 sps:$4 sm:$0xff]  }
 0x2a7   :  { %5843 = vmatprep.subr.bf16.mxu1 %v8766_v61  ;;  %v8832_v27 = vld [vmem:[#allocation4 + $0x12cc] ss:$16 sps:$4 sm:$0xff]   ;;  %v1207_v61 = vrot.slane %v9133_v50, %v1206_v49  ;;  %v8878_v49 = vld [vmem:[#allocation4 + $0x13c8] ss:$16 sps:$4 sm:$0xff]  }
 0x2a8   :  { %v8883_v50 = vld [vmem:[#allocation4 + $0x11ac] ss:$16 sps:$4 sm:$0xff]  }
 0x2a9   :  { %5803 = vmatpush1.bf16.msra.mxu0 %v8761_v62 }
 0x2aa   :  { %5844 = vmatpush1.bf16.msra.mxu1 %v8764_v4  ;;  %5804 = vmatprep.subr.bf16.mxu0 %v8769_v44 }
 0x2ab   :  { %5845 = vmatprep.subr.bf16.mxu1 %v8772_v45  ;;  %v8827_v45 = vld [vmem:[#allocation4 + $0x10c8] ss:$16 sps:$4 sm:$0xff]  }
 0x2ad   :  { %5805 = vmatpush1.bf16.msra.mxu0 %v8767_v36  ;;  %v8830_v36 = vld [vmem:[#allocation4 + $0x12c8] ss:$16 sps:$4 sm:$0xff]  }
 0x2ae   :  { %5846 = vmatpush1.bf16.msra.mxu1 %v8770_v11  ;;  %5806 = vmatprep.subr.bf16.mxu0 %v8775_v16 }
 0x2af   :  { %5847 = vmatprep.subr.bf16.mxu1 %v8778_v19  ;;  %v8835_v19 = vld [vmem:[#allocation4 + $0x10ac] ss:$16 sps:$4 sm:$0xff]  }
 0x2b1   :  { %5807 = vmatpush2.bf16.msra.mxu0 %v8773_v12  ;;  %v8838_v12 = vld [vmem:[#allocation4 + $0x12ac] ss:$16 sps:$4 sm:$0xff]  }
 0x2b2   :  { %5848 = vmatpush2.bf16.msra.mxu1 %v8776_v13  ;;  %5808 = vmatprep.subr.bf16.mxu0 %v8781_v14 }
 0x2b3   :  { %5849 = vmatprep.subr.bf16.mxu1 %v8784_v15 }
 0x2b5   :  { %5809 = vmatpush2.bf16.msra.mxu0 %v8779_v20  ;;  %v8833_v20 = vld [vmem:[#allocation4 + $0x10a8] ss:$16 sps:$4 sm:$0xff]  }
 0x2b6   :  { %5850 = vmatpush2.bf16.msra.mxu1 %v8782_v29  ;;  %5810 = vmatprep.subr.bf16.mxu0 %v8787_v22  ;;  %v8836_v29 = vld [vmem:[#allocation4 + $0x12a8] ss:$16 sps:$4 sm:$0xff]  }
 0x2b7   :  { %5851 = vmatprep.subr.bf16.mxu1 %v8790_v23 }
 0x2b9   :  { %5811 = vmatpush2.bf16.msra.mxu0 %v8785_v59  ;;  %v8841_v59 = vld [vmem:[#allocation4 + $0x108c] ss:$16 sps:$4 sm:$0xff]  }
 0x2ba   :  { %5852 = vmatpush2.bf16.msra.mxu1 %v8788_v1  ;;  %5812 = vmatprep.subr.bf16.mxu0 %v8793_v2  ;;  %v8844_v1 = vld [vmem:[#allocation4 + $0x128c] ss:$16 sps:$4 sm:$0xff]   ;;  %v8839_v2 = vld [vmem:[#allocation4 + $0x1088] ss:$16 sps:$4 sm:$0xff]  }
 0x2bb   :  { %5853 = vmatprep.subr.bf16.mxu1 %v8796_v3  ;;  %v8850_v3 = vld [vmem:[#allocation4 + $0x126c] ss:$16 sps:$4 sm:$0xff]  }
 0x2bd   :  { %5813 = vmatpush2.bf16.msra.mxu0 %v8791_v63  ;;  %v8845_v63 = vld [vmem:[#allocation4 + $0x1068] ss:$16 sps:$4 sm:$0xff]  }
 0x2be   :  { %5854 = vmatpush2.bf16.msra.mxu1 %v8794_v34  ;;  %5814 = vmatprep.subr.bf16.mxu0 %v8799_v7  ;;  %v8848_v34 = vld [vmem:[#allocation4 + $0x1268] ss:$16 sps:$4 sm:$0xff]   ;;  %v8853_v7 = vld [vmem:[#allocation4 + $0x104c] ss:$16 sps:$4 sm:$0xff]  }
 0x2bf   :  { %5855 = vmatprep.subr.bf16.mxu1 %v8802_v10  ;;  %v8856_v10 = vld [vmem:[#allocation4 + $0x124c] ss:$16 sps:$4 sm:$0xff]  }
 0x2c1   :  { %5815 = vmatpush2.bf16.msra.mxu0 %v8797_v5  ;;  %v8851_v5 = vld [vmem:[#allocation4 + $0x1048] ss:$16 sps:$4 sm:$0xff]  }
 0x2c2   :  { %5856 = vmatpush2.bf16.msra.mxu1 %v8800_v35  ;;  %5816 = vmatprep.subr.bf16.mxu0 %v8805_v6  ;;  %v8854_v35 = vld [vmem:[#allocation4 + $0x1248] ss:$16 sps:$4 sm:$0xff]   ;;  %v8859_v6 = vld [vmem:[#allocation4 + $0x102c] ss:$16 sps:$4 sm:$0xff]  }
 0x2c3   :  { %5857 = vmatprep.subr.bf16.mxu1 %v8808_v9  ;;  %v8862_v9 = vld [vmem:[#allocation4 + $0x122c] ss:$16 sps:$4 sm:$0xff]  }
 0x2c5   :  { %5817 = vmatpush2.bf16.msra.mxu0 %v8803_v53  ;;  %v8857_v53 = vld [vmem:[#allocation4 + $0x1028] ss:$16 sps:$4 sm:$0xff]  }
 0x2c6   :  { %5858 = vmatpush2.bf16.msra.mxu1 %v8806_v30  ;;  %5818 = vmatprep.subr.bf16.mxu0 %v8811_v31  ;;  %v8860_v30 = vld [vmem:[#allocation4 + $0x1228] ss:$16 sps:$4 sm:$0xff]   ;;  %v8865_v31 = vld [vmem:[#allocation4 + $0x100c] ss:$16 sps:$4 sm:$0xff]  }
 0x2c7   :  { %5859 = vmatprep.subr.bf16.mxu1 %v8814_v38  ;;  %v8868_v38 = vld [vmem:[#allocation4 + $0x120c] ss:$16 sps:$4 sm:$0xff]  }
 0x2c9   :  { %5819 = vmatpush2.bf16.msra.mxu0 %v8809_v57  ;;  %v8863_v57 = vld [vmem:[#allocation4 + $0x1008] ss:$16 sps:$4 sm:$0xff]  }
 0x2ca   :  { %5860 = vmatpush2.bf16.msra.mxu1 %v8812_v58  ;;  %5820 = vmatprep.subr.bf16.mxu0 %v8817_v39  ;;  %v8866_v58 = vld [vmem:[#allocation4 + $0x1208] ss:$16 sps:$4 sm:$0xff]   ;;  %v8871_v39 = vld [vmem:[#allocation4 + $0x11ec] ss:$16 sps:$4 sm:$0xff]  }
 0x2cb   :  { %5861 = vmatprep.subr.bf16.mxu1 %v8820_v40  ;;  %v8874_v40 = vld [vmem:[#allocation4 + $0x13ec] ss:$16 sps:$4 sm:$0xff]  }
 0x2cd   :  { %5821 = vmatpush2.bf16.msra.mxu0 %v8815_v47  ;;  %v8869_v47 = vld [vmem:[#allocation4 + $0x11e8] ss:$16 sps:$4 sm:$0xff]  }
 0x2ce   :  { %5862 = vmatpush2.bf16.msra.mxu1 %v8818_v41  ;;  %5872 = vmatprep.subr.bf16.mxu0 %v8823_v33  ;;  %v8872_v41 = vld [vmem:[#allocation4 + $0x13e8] ss:$16 sps:$4 sm:$0xff]   ;;  %v8880_v33 = vld [vmem:[#allocation4 + $0x13cc] ss:$16 sps:$4 sm:$0xff]  }
 0x2cf   :  { %5913 = vmatprep.subr.bf16.mxu1 %v8826_v48  ;;  %v8875_v48 = vld [vmem:[#allocation4 + $0x11c8] ss:$16 sps:$4 sm:$0xff]  }
 0x2d0   :  { %v5578_v62 = vpop.f32.mrf.mxu0  ;;  %5823 = vmatmul.mubr.bf16.vlgmr.msra.gmra.mxu0 %v9559_v17 }
 0x2d1   :  { %v5619_v4 = vpop.f32.mrf.mxu1  ;;  %5864 = vmatmul.mubr.bf16.vlgmr.msra.gmra.mxu1 %v9561_v18  ;;  %v5579_v44 = vadd.f32 %v5578_v62, %v1203_v51  ;;  %5873 = vmatpush1.bf16.msra.mxu0 %v8821_v52  ;;  %v8886_v51 = vld [vmem:[#allocation4 + $0x13ac] ss:$16 sps:$4 sm:$0xff]   ;;  %v8881_v52 = vld [vmem:[#allocation4 + $0x11a8] ss:$16 sps:$4 sm:$0xff]  }
 0x2d2   :  { %5914 = vmatpush1.bf16.msra.mxu1 %v8824_v21  ;;  %v5580_v11 = vpop.f32.mrf.mxu0  ;;  %5874 = vmatprep.subr.bf16.mxu0 %v8829_v24  ;;  %v8884_v21 = vld [vmem:[#allocation4 + $0x13a8] ss:$16 sps:$4 sm:$0xff]   ;;  %v8889_v24 = vld [vmem:[#allocation4 + $0x118c] ss:$16 sps:$4 sm:$0xff]  }
 0x2d3   :  { %v5621_v16 = vpop.f32.mrf.mxu1  ;;  %5915 = vmatprep.subr.bf16.mxu1 %v8832_v27  ;;  %v9681_v13 = vadd.f32 %v5619_v4, %v5579_v44  ;;  %v5581_v14 = vadd.f32 %v5580_v11, %v1207_v61  ;;  %5904 = vmatprep.mubr.bf16.mxu0 %v9567_v25  ;;  %v8842_v25 = vld [vmem:[#allocation4 + $0x1288] ss:$16 sps:$4 sm:$0xff]   ;;  %v8892_v27 = vld [vmem:[#allocation4 + $0x138c] ss:$16 sps:$4 sm:$0xff]  }
 0x2d4   :  { %5945 = vmatprep.mubr.bf16.mxu1 %v9569_v26  ;;  %v5582_v17 = vpop.f32.mrf.mxu0  ;;  %v8847_v26 = vld [vmem:[#allocation4 + $0x106c] ss:$16 sps:$4 sm:$0xff]   ;;  %v8887_v61 = vld [vmem:[#allocation4 + $0x1188] ss:$16 sps:$4 sm:$0xff]  }
 0x2d5   :  { %v5623_v18 = vpop.f32.mrf.mxu1  ;;  %v9685_v15 = vadd.f32 %v5621_v16, %v5581_v14  ;;  %5875 = vmatpush1.bf16.msra.mxu0 %v8827_v45  ;;  %v8890_v62 = vld [vmem:[#allocation4 + $0x1388] ss:$16 sps:$4 sm:$0xff]   ;;  %v8895_v4 = vld [vmem:[#allocation4 + $0x116c] ss:$16 sps:$4 sm:$0xff]  }
 0x2d6   :  { %5916 = vmatpush1.bf16.msra.mxu1 %v8830_v36  ;;  %v5583_v22 = vpop.f32.mrf.mxu0  ;;  %5876 = vmatprep.subr.bf16.mxu0 %v8835_v19  ;;  %v8898_v44 = vld [vmem:[#allocation4 + $0x136c] ss:$16 sps:$4 sm:$0xff]   ;;  %v8893_v45 = vld [vmem:[#allocation4 + $0x1168] ss:$16 sps:$4 sm:$0xff]  }
 0x2d7   :  { %v5624_v23 = vpop.f32.mrf.mxu1  ;;  %5917 = vmatprep.subr.bf16.mxu1 %v8838_v12  ;;  %v8896_v36 = vld [vmem:[#allocation4 + $0x1368] ss:$16 sps:$4 sm:$0xff]   ;;  %v8901_v11 = vld [vmem:[#allocation4 + $0x114c] ss:$16 sps:$4 sm:$0xff]  }
 0x2d8   :  { %v8904_v16 = vld [vmem:[#allocation4 + $0x134c] ss:$16 sps:$4 sm:$0xff]   ;;  %v8899_v19 = vld [vmem:[#allocation4 + $0x1148] ss:$16 sps:$4 sm:$0xff]  }
 0x2d9   :  { %5877 = vmatpush1.bf16.msra.mxu0 %v8833_v20  ;;  %v8902_v12 = vld [vmem:[#allocation4 + $0x1348] ss:$16 sps:$4 sm:$0xff]   ;;  %v8907_v14 = vld [vmem:[#allocation4 + $0x112c] ss:$16 sps:$4 sm:$0xff]  }
 0x2da   :  { %5918 = vmatpush1.bf16.msra.mxu1 %v8836_v29  ;;  %5878 = vmatprep.subr.bf16.mxu0 %v8841_v59  ;;  %v8910_v17 = vld [vmem:[#allocation4 + $0x132c] ss:$16 sps:$4 sm:$0xff]   ;;  %v8905_v18 = vld [vmem:[#allocation4 + $0x1128] ss:$16 sps:$4 sm:$0xff]  }
 0x2db   :  { %5919 = vmatprep.subr.bf16.mxu1 %v8844_v1  ;;  %v8908_v20 = vld [vmem:[#allocation4 + $0x1328] ss:$16 sps:$4 sm:$0xff]   ;;  %v8913_v29 = vld [vmem:[#allocation4 + $0x110c] ss:$16 sps:$4 sm:$0xff]  }
 0x2dc   :  { %v8916_v22 = vld [vmem:[#allocation4 + $0x130c] ss:$16 sps:$4 sm:$0xff]   ;;  %v8911_v23 = vld [vmem:[#allocation4 + $0x1108] ss:$16 sps:$4 sm:$0xff]  }
 0x2dd   :  { %5879 = vmatpush1.bf16.msra.mxu0 %v8839_v2  ;;  %v8914_v59 = vld [vmem:[#allocation4 + $0x1308] ss:$16 sps:$4 sm:$0xff]   ;;  %v8919_v1 = vld [vmem:[#allocation4 + $0x14ec] ss:$16 sps:$4 sm:$0xff]  }
 0x2de   :  { %5920 = vmatpush1.bf16.msra.mxu1 %v8842_v25  ;;  %5880 = vmatprep.subr.bf16.mxu0 %v8847_v26  ;;  %v8922_v2 = vld [vmem:[#allocation4 + $0x16ec] ss:$16 sps:$4 sm:$0xff]   ;;  %v8917_v25 = vld [vmem:[#allocation4 + $0x14e8] ss:$16 sps:$4 sm:$0xff]  }
 0x2df   :  { %5921 = vmatprep.subr.bf16.mxu1 %v8850_v3  ;;  %v8920_v26 = vld [vmem:[#allocation4 + $0x16e8] ss:$16 sps:$4 sm:$0xff]   ;;  %v8925_v3 = vld [vmem:[#allocation4 + $0x14cc] ss:$16 sps:$4 sm:$0xff]  }
 0x2e1   :  { %5881 = vmatpush1.bf16.msra.mxu0 %v8845_v63  ;;  %v8928_v63 = vld [vmem:[#allocation4 + $0x16cc] ss:$16 sps:$4 sm:$0xff]  }
 0x2e2   :  { %5922 = vmatpush1.bf16.msra.mxu1 %v8848_v34  ;;  %5882 = vmatprep.subr.bf16.mxu0 %v8853_v7 }
 0x2e3   :  { %5923 = vmatprep.subr.bf16.mxu1 %v8856_v10 }
 0x2e5   :  { %5883 = vmatpush1.bf16.msra.mxu0 %v8851_v5  ;;  %v8923_v5 = vld [vmem:[#allocation4 + $0x14c8] ss:$16 sps:$4 sm:$0xff]  }
 0x2e6   :  { %5924 = vmatpush1.bf16.msra.mxu1 %v8854_v35  ;;  %5884 = vmatprep.subr.bf16.mxu0 %v8859_v6  ;;  %v8926_v35 = vld [vmem:[#allocation4 + $0x16c8] ss:$16 sps:$4 sm:$0xff]  }
 0x2e7   :  { %5925 = vmatprep.subr.bf16.mxu1 %v8862_v9 }
 0x2e9   :  { %5885 = vmatpush1.bf16.msra.mxu0 %v8857_v53  ;;  %v8931_v53 = vld [vmem:[#allocation4 + $0x14ac] ss:$16 sps:$4 sm:$0xff]  }
 0x2ea   :  { %5926 = vmatpush1.bf16.msra.mxu1 %v8860_v30  ;;  %5886 = vmatprep.subr.bf16.mxu0 %v8865_v31  ;;  %v8934_v30 = vld [vmem:[#allocation4 + $0x16ac] ss:$16 sps:$4 sm:$0xff]  }
 0x2eb   :  { %5927 = vmatprep.subr.bf16.mxu1 %v8868_v38 }
 0x2ed   :  { %5887 = vmatpush1.bf16.msra.mxu0 %v8863_v57  ;;  %v8929_v57 = vld [vmem:[#allocation4 + $0x14a8] ss:$16 sps:$4 sm:$0xff]  }
 0x2ee   :  { %5928 = vmatpush1.bf16.msra.mxu1 %v8866_v58  ;;  %5888 = vmatprep.subr.bf16.mxu0 %v8871_v39  ;;  %v8932_v58 = vld [vmem:[#allocation4 + $0x16a8] ss:$16 sps:$4 sm:$0xff]  }
 0x2ef   :  { %5929 = vmatprep.subr.bf16.mxu1 %v8874_v40 }
 0x2f1   :  { %5889 = vmatpush2.bf16.msra.mxu0 %v8869_v47  ;;  %v8937_v47 = vld [vmem:[#allocation4 + $0x148c] ss:$16 sps:$4 sm:$0xff]  }
 0x2f2   :  { %5930 = vmatpush2.bf16.msra.mxu1 %v8872_v41  ;;  %5890 = vmatprep.subr.bf16.mxu0 %v8877_v32  ;;  %v8940_v41 = vld [vmem:[#allocation4 + $0x168c] ss:$16 sps:$4 sm:$0xff]  }
 0x2f3   :  { %5931 = vmatprep.subr.bf16.mxu1 %v8880_v33  ;;  %v8946_v32 = vld [vmem:[#allocation4 + $0x166c] ss:$16 sps:$4 sm:$0xff]   ;;  %v8941_v33 = vld [vmem:[#allocation4 + $0x1468] ss:$16 sps:$4 sm:$0xff]  }
 0x2f5   :  { %5891 = vmatpush2.bf16.msra.mxu0 %v8875_v48  ;;  %v8944_v48 = vld [vmem:[#allocation4 + $0x1668] ss:$16 sps:$4 sm:$0xff]  }
 0x2f6   :  { %5932 = vmatpush2.bf16.msra.mxu1 %v8878_v49  ;;  %5892 = vmatprep.subr.bf16.mxu0 %v8883_v50  ;;  %v8949_v49 = vld [vmem:[#allocation4 + $0x144c] ss:$16 sps:$4 sm:$0xff]  }
 0x2f7   :  { %5933 = vmatprep.subr.bf16.mxu1 %v8886_v51  ;;  %v8952_v50 = vld [vmem:[#allocation4 + $0x164c] ss:$16 sps:$4 sm:$0xff]   ;;  %v8947_v51 = vld [vmem:[#allocation4 + $0x1448] ss:$16 sps:$4 sm:$0xff]  }
 0x2f9   :  { %5893 = vmatpush2.bf16.msra.mxu0 %v8881_v52  ;;  %v8950_v52 = vld [vmem:[#allocation4 + $0x1648] ss:$16 sps:$4 sm:$0xff]  }
 0x2fa   :  { %5934 = vmatpush2.bf16.msra.mxu1 %v8884_v21  ;;  %5894 = vmatprep.subr.bf16.mxu0 %v8889_v24  ;;  %v8955_v21 = vld [vmem:[#allocation4 + $0x142c] ss:$16 sps:$4 sm:$0xff]  }
 0x2fb   :  { %5935 = vmatprep.subr.bf16.mxu1 %v8892_v27  ;;  %v8958_v24 = vld [vmem:[#allocation4 + $0x162c] ss:$16 sps:$4 sm:$0xff]   ;;  %v8953_v27 = vld [vmem:[#allocation4 + $0x1428] ss:$16 sps:$4 sm:$0xff]  }
 0x2fd   :  { %5895 = vmatpush2.bf16.msra.mxu0 %v8887_v61  ;;  %v8956_v61 = vld [vmem:[#allocation4 + $0x1628] ss:$16 sps:$4 sm:$0xff]  }
 0x2fe   :  { %5936 = vmatpush2.bf16.msra.mxu1 %v8890_v62  ;;  %5896 = vmatprep.subr.bf16.mxu0 %v8895_v4  ;;  %v8961_v62 = vld [vmem:[#allocation4 + $0x140c] ss:$16 sps:$4 sm:$0xff]  }
 0x2ff   :  { %5937 = vmatprep.subr.bf16.mxu1 %v8898_v44  ;;  %v8964_v4 = vld [vmem:[#allocation4 + $0x160c] ss:$16 sps:$4 sm:$0xff]   ;;  %v8959_v44 = vld [vmem:[#allocation4 + $0x1408] ss:$16 sps:$4 sm:$0xff]  }
 0x301   :  { %5897 = vmatpush2.bf16.msra.mxu0 %v8893_v45  ;;  %v8962_v45 = vld [vmem:[#allocation4 + $0x1608] ss:$16 sps:$4 sm:$0xff]  }
 0x302   :  { %5938 = vmatpush2.bf16.msra.mxu1 %v8896_v36  ;;  %5898 = vmatprep.subr.bf16.mxu0 %v8901_v11  ;;  %v8967_v36 = vld [vmem:[#allocation4 + $0x15ec] ss:$16 sps:$4 sm:$0xff]  }
 0x303   :  { %5939 = vmatprep.subr.bf16.mxu1 %v8904_v16  ;;  %v8970_v11 = vld [vmem:[#allocation4 + $0x17ec] ss:$16 sps:$4 sm:$0xff]   ;;  %v8965_v16 = vld [vmem:[#allocation4 + $0x15e8] ss:$16 sps:$4 sm:$0xff]  }
 0x305   :  { %5899 = vmatpush2.bf16.msra.mxu0 %v8899_v19  ;;  %v8968_v19 = vld [vmem:[#allocation4 + $0x17e8] ss:$16 sps:$4 sm:$0xff]  }
 0x306   :  { %5940 = vmatpush2.bf16.msra.mxu1 %v8902_v12  ;;  %5900 = vmatprep.subr.bf16.mxu0 %v8907_v14  ;;  %v8973_v12 = vld [vmem:[#allocation4 + $0x15cc] ss:$16 sps:$4 sm:$0xff]  }
 0x307   :  { %5941 = vmatprep.subr.bf16.mxu1 %v8910_v17  ;;  %v8976_v14 = vld [vmem:[#allocation4 + $0x17cc] ss:$16 sps:$4 sm:$0xff]   ;;  %v8971_v17 = vld [vmem:[#allocation4 + $0x15c8] ss:$16 sps:$4 sm:$0xff]  }
 0x309   :  { %5901 = vmatpush2.bf16.msra.mxu0 %v8905_v18  ;;  %v8974_v18 = vld [vmem:[#allocation4 + $0x17c8] ss:$16 sps:$4 sm:$0xff]  }
 0x30a   :  { %5942 = vmatpush2.bf16.msra.mxu1 %v8908_v20  ;;  %5902 = vmatprep.subr.bf16.mxu0 %v8913_v29  ;;  %v8979_v20 = vld [vmem:[#allocation4 + $0x15ac] ss:$16 sps:$4 sm:$0xff]  }
 0x30b   :  { %5943 = vmatprep.subr.bf16.mxu1 %v8916_v22  ;;  %v8982_v29 = vld [vmem:[#allocation4 + $0x17ac] ss:$16 sps:$4 sm:$0xff]   ;;  %v8977_v22 = vld [vmem:[#allocation4 + $0x15a8] ss:$16 sps:$4 sm:$0xff]  }
 0x30d   :  { %5903 = vmatpush2.bf16.msra.mxu0 %v8911_v23  ;;  %v8980_v23 = vld [vmem:[#allocation4 + $0x17a8] ss:$16 sps:$4 sm:$0xff]  }
 0x30e   :  { %5944 = vmatpush2.bf16.msra.mxu1 %v8914_v59  ;;  %5954 = vmatprep.subr.bf16.mxu0 %v8919_v1  ;;  %v8985_v59 = vld [vmem:[#allocation4 + $0x158c] ss:$16 sps:$4 sm:$0xff]  }
 0x30f   :  { %5995 = vmatprep.subr.bf16.mxu1 %v8922_v2  ;;  %v8988_v1 = vld [vmem:[#allocation4 + $0x178c] ss:$16 sps:$4 sm:$0xff]   ;;  %v8983_v2 = vld [vmem:[#allocation4 + $0x1588] ss:$16 sps:$4 sm:$0xff]  }
 0x310   :  { %v5660_v34 = vpop.f32.mrf.mxu0  ;;  %5905 = vmatmul.mubr.bf16.vlgmr.msra.gmra.mxu0 %v9611_v55 }
 0x311   :  { %v5701_v7 = vpop.f32.mrf.mxu1  ;;  %5946 = vmatmul.mubr.bf16.vlgmr.msra.gmra.mxu1 %v9613_v56  ;;  %v5661_v10 = vadd.f32 %v5660_v34, %v9681_v13  ;;  %5955 = vmatpush1.bf16.msra.mxu0 %v8917_v25  ;;  %v8986_v25 = vld [vmem:[#allocation4 + $0x1788] ss:$16 sps:$4 sm:$0xff]  }
 0x312   :  { %5996 = vmatpush1.bf16.msra.mxu1 %v8920_v26  ;;  %v5662_v6 = vpop.f32.mrf.mxu0  ;;  %5956 = vmatprep.subr.bf16.mxu0 %v8925_v3  ;;  %v8991_v26 = vld [vmem:[#allocation4 + $0x156c] ss:$16 sps:$4 sm:$0xff]   ;;  %v8992_v34 = vld [vmem:[#allocation4 + $0x1768] ss:$16 sps:$4 sm:$0xff]  }
 0x313   :  { %v5703_v9 = vpop.f32.mrf.mxu1  ;;  %5997 = vmatprep.subr.bf16.mxu1 %v8928_v63  ;;  %v9690_v31 = vadd.f32 %v5701_v7, %v5661_v10  ;;  %v5663_v38 = vadd.f32 %v5662_v6, %v9685_v15  ;;  %5986 = vmatprep.mubr.bf16.mxu0 %v9615_v42  ;;  %v8935_v15 = vld [vmem:[#allocation4 + $0x1488] ss:$16 sps:$4 sm:$0xff]   ;;  %v8994_v3 = vld [vmem:[#allocation4 + $0x176c] ss:$16 sps:$4 sm:$0xff]  }
 0x314   :  { %6027 = vmatprep.mubr.bf16.mxu1 %v9617_v43  ;;  %v5664_v55 = vpop.f32.mrf.mxu0  ;;  %v8938_v42 = vld [vmem:[#allocation4 + $0x1688] ss:$16 sps:$4 sm:$0xff]   ;;  %v8943_v43 = vld [vmem:[#allocation4 + $0x146c] ss:$16 sps:$4 sm:$0xff]  }
 0x315   :  { %v5705_v56 = vpop.f32.mrf.mxu1  ;;  %v9695_v13 = vadd.f32 %v5703_v9, %v5663_v38  ;;  %5957 = vmatpush1.bf16.msra.mxu0 %v8923_v5  ;;  %v8989_v63 = vld [vmem:[#allocation4 + $0x1568] ss:$16 sps:$4 sm:$0xff]   ;;  %v8997_v7 = vld [vmem:[#allocation4 + $0x154c] ss:$16 sps:$4 sm:$0xff]  }
 0x316   :  { %5998 = vmatpush1.bf16.msra.mxu1 %v8926_v35  ;;  %v5665_v39 = vpop.f32.mrf.mxu0  ;;  %5958 = vmatprep.subr.bf16.mxu0 %v8931_v53  ;;  %v9000_v10 = vld [vmem:[#allocation4 + $0x174c] ss:$16 sps:$4 sm:$0xff]   ;;  %v8995_v5 = vld [vmem:[#allocation4 + $0x1548] ss:$16 sps:$4 sm:$0xff]  }
 0x317   :  { %v5706_v40 = vpop.f32.mrf.mxu1  ;;  %5999 = vmatprep.subr.bf16.mxu1 %v8934_v30  ;;  %v8998_v35 = vld [vmem:[#allocation4 + $0x1748] ss:$16 sps:$4 sm:$0xff]   ;;  %v9003_v6 = vld [vmem:[#allocation4 + $0x152c] ss:$16 sps:$4 sm:$0xff]   ;;  %v6037_v39 = vmax.f32 %v9675_v28, 0.0 }
 0x318   :  { %v9006_v9 = vld [vmem:[#allocation4 + $0x172c] ss:$16 sps:$4 sm:$0xff]   ;;  %v9001_v53 = vld [vmem:[#allocation4 + $0x1528] ss:$16 sps:$4 sm:$0xff]  }
 0x319   :  { %5959 = vmatpush1.bf16.msra.mxu0 %v8929_v57  ;;  %v9004_v30 = vld [vmem:[#allocation4 + $0x1728] ss:$16 sps:$4 sm:$0xff]   ;;  %v9009_v38 = vld [vmem:[#allocation4 + $0x150c] ss:$16 sps:$4 sm:$0xff]  }
 0x31a   :  { %6000 = vmatpush1.bf16.msra.mxu1 %v8932_v58  ;;  %5960 = vmatprep.subr.bf16.mxu0 %v8937_v47  ;;  %v9012_v55 = vld [vmem:[#allocation4 + $0x170c] ss:$16 sps:$4 sm:$0xff]   ;;  %v9007_v56 = vld [vmem:[#allocation4 + $0x1508] ss:$16 sps:$4 sm:$0xff]  }
 0x31b   :  { %6001 = vmatprep.subr.bf16.mxu1 %v8940_v41  ;;  %v9010_v57 = vld [vmem:[#allocation4 + $0x1708] ss:$16 sps:$4 sm:$0xff]   ;;  %v9013_v40 = vld [vmem:[#allocation9 + $0x70] ss:$8 sps:$4 sm:$0xff]   ;;  %v7751_v41 = vpack.c.bf16 %v6037_v39, %v6037_v39 }
 0x31c   :  { %v9015_v58 = vld [vmem:[#allocation9 + $0x74] ss:$8 sps:$4 sm:$0xff]   ;;  %v9018_v47 = vld [vmem:[#allocation9 + $0x64] ss:$8 sps:$4 sm:$0xff]   ;;  %v9091_v39 = vld [vmem:[#allocation9 + $0x1d0] ss:$8 sps:$4 sm:$0xff]  }
 0x31d   :  { %5961 = vmatpush1.bf16.msra.mxu0 %v8935_v15  ;;  %v9021_v28 = vld [vmem:[#allocation9 + $0x54] ss:$8 sps:$4 sm:$0xff]  }
 0x31e   :  { %6002 = vmatpush1.bf16.msra.mxu1 %v8938_v42  ;;  %5962 = vmatprep.subr.bf16.mxu0 %v8943_v43 }
 0x31f   :  { %6003 = vmatprep.subr.bf16.mxu1 %v8946_v32  ;;  %v9016_v32 = vld [vmem:[#allocation9 + $0x60] ss:$8 sps:$4 sm:$0xff]  }
 0x321   :  { %5963 = vmatpush1.bf16.msra.mxu0 %v8941_v33 }
 0x322   :  { %6004 = vmatpush1.bf16.msra.mxu1 %v8944_v48  ;;  %5964 = vmatprep.subr.bf16.mxu0 %v8949_v49 }
 0x323   :  { %6005 = vmatprep.subr.bf16.mxu1 %v8952_v50 }
 0x325   :  { %5965 = vmatpush1.bf16.msra.mxu0 %v8947_v51 }
 0x326   :  { %6006 = vmatpush1.bf16.msra.mxu1 %v8950_v52  ;;  %5966 = vmatprep.subr.bf16.mxu0 %v8955_v21 }
 0x327   :  { %6007 = vmatprep.subr.bf16.mxu1 %v8958_v24 }
 0x329   :  { %5967 = vmatpush1.bf16.msra.mxu0 %v8953_v27  ;;  %v9061_v27 = vld [vmem:[#allocation9 + $0x170] ss:$8 sps:$4 sm:$0xff]  }
 0x32a   :  { %6008 = vmatpush1.bf16.msra.mxu1 %v8956_v61  ;;  %5968 = vmatprep.subr.bf16.mxu0 %v8961_v62  ;;  %v9063_v61 = vld [vmem:[#allocation9 + $0x174] ss:$8 sps:$4 sm:$0xff]   ;;  %v9066_v62 = vld [vmem:[#allocation9 + $0x164] ss:$8 sps:$4 sm:$0xff]  }
 0x32b   :  { %6009 = vmatprep.subr.bf16.mxu1 %v8964_v4  ;;  %v9022_v4 = vld [vmem:[#allocation9 + $0x40] ss:$8 sps:$4 sm:$0xff]  }
 0x32d   :  { %5969 = vmatpush1.bf16.msra.mxu0 %v8959_v44  ;;  %v9064_v44 = vld [vmem:[#allocation9 + $0x160] ss:$8 sps:$4 sm:$0xff]  }
 0x32e   :  { %6010 = vmatpush1.bf16.msra.mxu1 %v8962_v45  ;;  %5970 = vmatprep.subr.bf16.mxu0 %v8967_v36  ;;  %v9069_v45 = vld [vmem:[#allocation9 + $0x154] ss:$8 sps:$4 sm:$0xff]   ;;  %v9025_v36 = vld [vmem:[#allocation9 + $0x30] ss:$8 sps:$4 sm:$0xff]  }
 0x32f   :  { %6011 = vmatprep.subr.bf16.mxu1 %v8970_v11  ;;  %v9067_v11 = vld [vmem:[#allocation9 + $0x150] ss:$8 sps:$4 sm:$0xff]  }
 0x331   :  { %5971 = vmatpush2.bf16.msra.mxu0 %v8965_v16  ;;  %v9030_v16 = vld [vmem:[#allocation9 + $0x24] ss:$8 sps:$4 sm:$0xff]  }
 0x332   :  { %6012 = vmatpush2.bf16.msra.mxu1 %v8968_v19  ;;  %5972 = vmatprep.subr.bf16.mxu0 %v8973_v12  ;;  %v9072_v19 = vld [vmem:[#allocation9 + $0x144] ss:$8 sps:$4 sm:$0xff]   ;;  %v9028_v12 = vld [vmem:[#allocation9 + $0x20] ss:$8 sps:$4 sm:$0xff]  }
 0x333   :  { %6013 = vmatprep.subr.bf16.mxu1 %v8976_v14  ;;  %v9070_v14 = vld [vmem:[#allocation9 + $0x140] ss:$8 sps:$4 sm:$0xff]  }
 0x335   :  { %5973 = vmatpush2.bf16.msra.mxu0 %v8971_v17  ;;  %v9033_v17 = vld [vmem:[#allocation9 + $0x14] ss:$8 sps:$4 sm:$0xff]  }
 0x336   :  { %6014 = vmatpush2.bf16.msra.mxu1 %v8974_v18  ;;  %5974 = vmatprep.subr.bf16.mxu0 %v8979_v20  ;;  %v9075_v18 = vld [vmem:[#allocation9 + $0x134] ss:$8 sps:$4 sm:$0xff]   ;;  %v9031_v20 = vld [vmem:[#allocation9 + $0x10] ss:$8 sps:$4 sm:$0xff]  }
 0x337   :  { %6015 = vmatprep.subr.bf16.mxu1 %v8982_v29  ;;  %v9073_v29 = vld [vmem:[#allocation9 + $0x130] ss:$8 sps:$4 sm:$0xff]  }
 0x339   :  { %5975 = vmatpush2.bf16.msra.mxu0 %v8977_v22  ;;  %v9036_v22 = vld [vmem:[#allocation9 + $0x4] ss:$8 sps:$4 sm:$0xff]  }
 0x33a   :  { %6016 = vmatpush2.bf16.msra.mxu1 %v8980_v23  ;;  %5976 = vmatprep.subr.bf16.mxu0 %v8985_v59  ;;  %v9078_v23 = vld [vmem:[#allocation9 + $0x124] ss:$8 sps:$4 sm:$0xff]   ;;  %v9034_v59 = vld [vmem:[#allocation9] ss:$8 sps:$4 sm:$0xff]  }
 0x33b   :  { %6017 = vmatprep.subr.bf16.mxu1 %v8988_v1  ;;  %v9076_v1 = vld [vmem:[#allocation9 + $0x120] ss:$8 sps:$4 sm:$0xff]  }
 0x33d   :  { %5977 = vmatpush2.bf16.msra.mxu0 %v8983_v2  ;;  %v9039_v2 = vld [vmem:[#allocation9 + $0xf4] ss:$8 sps:$4 sm:$0xff]  }
 0x33e   :  { %6018 = vmatpush2.bf16.msra.mxu1 %v8986_v25  ;;  %5978 = vmatprep.subr.bf16.mxu0 %v8991_v26  ;;  %v9081_v25 = vld [vmem:[#allocation9 + $0x114] ss:$8 sps:$4 sm:$0xff]   ;;  %v9037_v26 = vld [vmem:[#allocation9 + $0xf0] ss:$8 sps:$4 sm:$0xff]  }
 0x33f   :  { %6019 = vmatprep.subr.bf16.mxu1 %v8994_v3  ;;  %v9079_v3 = vld [vmem:[#allocation9 + $0x110] ss:$8 sps:$4 sm:$0xff]  }
 0x341   :  { %5979 = vmatpush2.bf16.msra.mxu0 %v8989_v63  ;;  %v9042_v63 = vld [vmem:[#allocation9 + $0xe4] ss:$8 sps:$4 sm:$0xff]  }
 0x342   :  { %6020 = vmatpush2.bf16.msra.mxu1 %v8992_v34  ;;  %5980 = vmatprep.subr.bf16.mxu0 %v8997_v7  ;;  %v9084_v34 = vld [vmem:[#allocation9 + $0x104] ss:$8 sps:$4 sm:$0xff]   ;;  %v9040_v7 = vld [vmem:[#allocation9 + $0xe0] ss:$8 sps:$4 sm:$0xff]  }
 0x343   :  { %6021 = vmatprep.subr.bf16.mxu1 %v9000_v10  ;;  %v9082_v10 = vld [vmem:[#allocation9 + $0x100] ss:$8 sps:$4 sm:$0xff]  }
 0x345   :  { %5981 = vmatpush2.bf16.msra.mxu0 %v8995_v5  ;;  %v9045_v5 = vld [vmem:[#allocation9 + $0xd4] ss:$8 sps:$4 sm:$0xff]  }
 0x346   :  { %6022 = vmatpush2.bf16.msra.mxu1 %v8998_v35  ;;  %5982 = vmatprep.subr.bf16.mxu0 %v9003_v6  ;;  %v9087_v35 = vld [vmem:[#allocation9 + $0x1f4] ss:$8 sps:$4 sm:$0xff]   ;;  %v9043_v6 = vld [vmem:[#allocation9 + $0xd0] ss:$8 sps:$4 sm:$0xff]  }
 0x347   :  { %6023 = vmatprep.subr.bf16.mxu1 %v9006_v9  ;;  %v9085_v9 = vld [vmem:[#allocation9 + $0x1f0] ss:$8 sps:$4 sm:$0xff]  }
 0x349   :  { %5983 = vmatpush2.bf16.msra.mxu0 %v9001_v53  ;;  %v9048_v53 = vld [vmem:[#allocation9 + $0xc4] ss:$8 sps:$4 sm:$0xff]  }
 0x34a   :  { %6024 = vmatpush2.bf16.msra.mxu1 %v9004_v30  ;;  %5984 = vmatprep.subr.bf16.mxu0 %v9009_v38  ;;  %v9090_v30 = vld [vmem:[#allocation9 + $0x1e4] ss:$8 sps:$4 sm:$0xff]   ;;  %v9046_v38 = vld [vmem:[#allocation9 + $0xc0] ss:$8 sps:$4 sm:$0xff]  }
 0x34b   :  { %6025 = vmatprep.subr.bf16.mxu1 %v9012_v55  ;;  %v9088_v55 = vld [vmem:[#allocation9 + $0x1e0] ss:$8 sps:$4 sm:$0xff]  }
 0x34d   :  { %5985 = vmatpush2.bf16.msra.mxu0 %v9007_v56  ;;  %v9051_v56 = vld [vmem:[#allocation9 + $0xb4] ss:$8 sps:$4 sm:$0xff]  }
 0x34e   :  { %6026 = vmatpush2.bf16.msra.mxu1 %v9010_v57  ;;  %6470 = vmatprep.subr.bf16.mxu0 %v9015_v58  ;;  %v9093_v57 = vld [vmem:[#allocation9 + $0x1d4] ss:$8 sps:$4 sm:$0xff]   ;;  %v9049_v58 = vld [vmem:[#allocation9 + $0xb0] ss:$8 sps:$4 sm:$0xff]  }
 0x34f   :  { %6511 = vmatprep.subr.bf16.mxu1 %v9063_v61 }
 0x350   :  { %v5742_v15 = vpop.f32.mrf.mxu0  ;;  %5987 = vmatmul.mubr.bf16.vlgmr.msra.gmra.mxu0 %v9633_v54  ;;  %v9019_v54 = vld [vmem:[#allocation9 + $0x50] ss:$8 sps:$4 sm:$0xff]  }
 0x351   :  { %v5783_v42 = vpop.f32.mrf.mxu1  ;;  %6028 = vmatmul.mubr.bf16.vlgmr.msra.gmra.mxu1 %v9635_v60  ;;  %v5743_v43 = vadd.f32 %v5742_v15, %v9690_v31  ;;  %6471 = vmatpush1.bf16.msra.mxu0 %v9013_v40  ;;  %v9024_v31 = vld [vmem:[#allocation9 + $0x44] ss:$8 sps:$4 sm:$0xff]   ;;  %v9094_v15 = vld [vmem:[#allocation9 + $0x1c0] ss:$8 sps:$4 sm:$0xff]  }
 0x352   :  { %6502 = vmatprep.mubr.bf16.mxu0 %v7751_v41  ;;  %v5744_v33 = vpop.f32.mrf.mxu0  ;;  %6472 = vmatprep.subr.bf16.mxu0 %v9018_v47  ;;  %v9054_v40 = vld [vmem:[#allocation9 + $0xa4] ss:$8 sps:$4 sm:$0xff]   ;;  %v9052_v41 = vld [vmem:[#allocation9 + $0xa0] ss:$8 sps:$4 sm:$0xff]  }
 0x353   :  { %v5785_v48 = vpop.f32.mrf.mxu1  ;;  %v9701_v49 = vadd.f32 %v5783_v42, %v5743_v43  ;;  %v5745_v50 = vadd.f32 %v5744_v33, %v9695_v13  ;;  %6512 = vmatpush1.bf16.msra.mxu1 %v9061_v27  ;;  %v9027_v13 = vld [vmem:[#allocation9 + $0x34] ss:$8 sps:$4 sm:$0xff]   ;;  %v9096_v47 = vld [vmem:[#allocation9 + $0x1c4] ss:$8 sps:$4 sm:$0xff]   ;;  %v9097_v33 = vld [vmem:[#allocation9 + $0x1b0] ss:$8 sps:$4 sm:$0xff]  }
 0x354   :  { %v5746_v51 = vpop.f32.mrf.mxu0  ;;  %6513 = vmatprep.subr.bf16.mxu1 %v9066_v62  ;;  %v9057_v42 = vld [vmem:[#allocation9 + $0x94] ss:$8 sps:$4 sm:$0xff]  }
 0x355   :  { %v5787_v52 = vpop.f32.mrf.mxu1  ;;  %v9704_v21 = vadd.f32 %v5785_v48, %v5745_v50  ;;  %6473 = vmatpush1.bf16.msra.mxu0 %v9016_v32  ;;  %v9099_v43 = vld [vmem:[#allocation9 + $0x1b4] ss:$8 sps:$4 sm:$0xff]   ;;  %v9055_v32 = vld [vmem:[#allocation9 + $0x90] ss:$8 sps:$4 sm:$0xff]   ;;  %v9060_v48 = vld [vmem:[#allocation9 + $0x84] ss:$8 sps:$4 sm:$0xff]  }
 0x356   :  { %v5747_v60 = vpop.f32.mrf.mxu0  ;;  %6474 = vmatprep.subr.bf16.mxu0 %v9021_v28  ;;  %v9058_v28 = vld [vmem:[#allocation9 + $0x80] ss:$8 sps:$4 sm:$0xff]   ;;  %v6036_v50 = vmax.f32 %v9670_v37, 0.0  ;;  %v9102_v52 = vld [vmem:[#allocation9 + $0x1a4] ss:$8 sps:$4 sm:$0xff]  }
 0x357   :  { %v5788_v24 = vpop.f32.mrf.mxu1  ;;  %6514 = vmatpush1.bf16.msra.mxu1 %v9064_v44  ;;  %v9105_v62 = vld [vmem:[#allocation9 + $0x194] ss:$8 sps:$4 sm:$0xff]  }
 0x358   :  { %6515 = vmatprep.subr.bf16.mxu1 %v9069_v45  ;;  %v7750_v51 = vpack.c.bf16 %v6036_v50, %v6036_v50 }
 0x359   :  { %6475 = vmatpush1.bf16.msra.mxu0 %v9019_v54  ;;  %v9100_v54 = vld [vmem:[#allocation9 + $0x1a0] ss:$8 sps:$4 sm:$0xff]  }
 0x35a   :  { %6476 = vmatprep.subr.bf16.mxu0 %v9024_v31 }
 0x35b   :  { %6516 = vmatpush1.bf16.msra.mxu1 %v9067_v11 }
 0x35c   :  { %6517 = vmatprep.subr.bf16.mxu1 %v9072_v19  ;;  %v9108_v19 = vld [vmem:[#allocation9 + $0x184] ss:$8 sps:$4 sm:$0xff]  }
 0x35d   :  { %6477 = vmatpush1.bf16.msra.mxu0 %v9022_v4 }
 0x35e   :  { %6478 = vmatprep.subr.bf16.mxu0 %v9027_v13  ;;  %v9103_v13 = vld [vmem:[#allocation9 + $0x190] ss:$8 sps:$4 sm:$0xff]  }
 0x35f   :  { %6518 = vmatpush1.bf16.msra.mxu1 %v9070_v14 }
 0x360   :  { %6519 = vmatprep.subr.bf16.mxu1 %v9075_v18 }
 0x361   :  { %6479 = vmatpush1.bf16.msra.mxu0 %v9025_v36 }
 0x362   :  { %6480 = vmatprep.subr.bf16.mxu0 %v9030_v16 }
 0x363   :  { %6520 = vmatpush1.bf16.msra.mxu1 %v9073_v29 }
 0x364   :  { %6521 = vmatprep.subr.bf16.mxu1 %v9078_v23 }
 0x365   :  { %6481 = vmatpush1.bf16.msra.mxu0 %v9028_v12  ;;  %v9106_v12 = vld [vmem:[#allocation9 + $0x180] ss:$8 sps:$4 sm:$0xff]  }
 0x366   :  { %6482 = vmatprep.subr.bf16.mxu0 %v9033_v17 }
 0x367   :  { %6522 = vmatpush1.bf16.msra.mxu1 %v9076_v1  ;;  %v9109_v1 = vld [vmem:[#allocation12 + $0x78] sm:$0xff]  }
 0x368   :  { %6523 = vmatprep.subr.bf16.mxu1 %v9081_v25  ;;  %v9111_v25 = vld [vmem:[#allocation12 + $0x70] sm:$0xff]  }
 0x369   :  { %6483 = vmatpush1.bf16.msra.mxu0 %v9031_v20 }
 0x36a   :  { %6484 = vmatprep.subr.bf16.mxu0 %v9036_v22 }
 0x36b   :  { %6524 = vmatpush1.bf16.msra.mxu1 %v9079_v3  ;;  %v9113_v3 = vld [vmem:[#allocation12 + $0x68] sm:$0xff]  }
 0x36c   :  { %6525 = vmatprep.subr.bf16.mxu1 %v9084_v34  ;;  %v9115_v34 = vld [vmem:[#allocation12 + $0x60] sm:$0xff]  }
 0x36d   :  { %6485 = vmatpush1.bf16.msra.mxu0 %v9034_v59 }
 0x36e   :  { %6486 = vmatprep.subr.bf16.mxu0 %v9039_v2  ;;  %v9110_v2 = vld [vmem:[#allocation12 + $0x38] sm:$0xff]  }
 0x36f   :  { %6526 = vmatpush1.bf16.msra.mxu1 %v9082_v10  ;;  %v9117_v10 = vld [vmem:[#allocation12 + $0x58] sm:$0xff]  }
 0x370   :  { %6527 = vmatprep.subr.bf16.mxu1 %v9087_v35  ;;  %v9119_v35 = vld [vmem:[#allocation12 + $0x50] sm:$0xff]  }
 0x371   :  { %6487 = vmatpush2.bf16.msra.mxu0 %v9037_v26  ;;  %v9112_v26 = vld [vmem:[#allocation12 + $0x30] sm:$0xff]  }
 0x372   :  { %6488 = vmatprep.subr.bf16.mxu0 %v9042_v63  ;;  %v9114_v63 = vld [vmem:[#allocation12 + $0x28] sm:$0xff]  }
 0x373   :  { %6528 = vmatpush2.bf16.msra.mxu1 %v9085_v9 }
 0x374   :  { %6529 = vmatprep.subr.bf16.mxu1 %v9090_v30 }
 0x375   :  { %6489 = vmatpush2.bf16.msra.mxu0 %v9040_v7  ;;  %v9116_v7 = vld [vmem:[#allocation12 + $0x20] sm:$0xff]  }
 0x376   :  { %6490 = vmatprep.subr.bf16.mxu0 %v9045_v5  ;;  %v9118_v5 = vld [vmem:[#allocation12 + $0x18] sm:$0xff]  }
 0x377   :  { %6530 = vmatpush2.bf16.msra.mxu1 %v9088_v55 }
 0x378   :  { %6531 = vmatprep.subr.bf16.mxu1 %v9093_v57 }
 0x379   :  { %6491 = vmatpush2.bf16.msra.mxu0 %v9043_v6  ;;  %v9120_v6 = vld [vmem:[#allocation12 + $0x10] sm:$0xff]  }
 0x37a   :  { %6492 = vmatprep.subr.bf16.mxu0 %v9048_v53 }
 0x37b   :  { %6532 = vmatpush2.bf16.msra.mxu1 %v9091_v39 }
 0x37c   :  { %6533 = vmatprep.subr.bf16.mxu1 %v9096_v47 }
 0x37d   :  { %6493 = vmatpush2.bf16.msra.mxu0 %v9046_v38 }
 0x37e   :  { %6494 = vmatprep.subr.bf16.mxu0 %v9051_v56 }
 0x37f   :  { %6534 = vmatpush2.bf16.msra.mxu1 %v9094_v15 }
 0x380   :  { %6535 = vmatprep.subr.bf16.mxu1 %v9099_v43 }
 0x381   :  { %6495 = vmatpush2.bf16.msra.mxu0 %v9049_v58 }
 0x382   :  { %6496 = vmatprep.subr.bf16.mxu0 %v9054_v40 }
 0x383   :  { %6536 = vmatpush2.bf16.msra.mxu1 %v9097_v33 }
 0x384   :  { %6537 = vmatprep.subr.bf16.mxu1 %v9102_v52 }
 0x385   :  { %6497 = vmatpush2.bf16.msra.mxu0 %v9052_v41 }
 0x386   :  { %6498 = vmatprep.subr.bf16.mxu0 %v9057_v42 }
 0x387   :  { %6538 = vmatpush2.bf16.msra.mxu1 %v9100_v54  ;;  %v9121_v54 = vld [vmem:[#allocation12 + $0x48] sm:$0xff]  }
 0x388   :  { %6539 = vmatprep.subr.bf16.mxu1 %v9105_v62  ;;  %v9126_v62 = vld [vmem:[%s9750_s7 + $0x30] sm:$0xff]  }
 0x389   :  { %6499 = vmatpush2.bf16.msra.mxu0 %v9055_v32 }
 0x38a   :  { %6500 = vmatprep.subr.bf16.mxu0 %v9060_v48 }
 0x38b   :  { %6540 = vmatpush2.bf16.msra.mxu1 %v9103_v13  ;;  %v9129_v13 = vld [vmem:[%s9750_s7 + $0x18] sm:$0xff]  }
 0x38c   :  { %6541 = vmatprep.subr.bf16.mxu1 %v9108_v19 }
 0x38d   :  { %6501 = vmatpush2.bf16.msra.mxu0 %v9058_v28 }
 0x38e   :  { %7756 = vmatprep.subr.bf16.mxu0 %v9109_v1 }
 0x38f   :  { %6542 = vmatpush2.bf16.msra.mxu1 %v9106_v12 }
 0x390   :  { %v5824_v60 = vpop.f32.mrf.mxu0  ;;  %6503 = vmatmul.mubr.bf16.vlgmr.msra.gmra.mxu0 %v7750_v51 }
 0x391   :  { %v5865_v24 = vpop.f32.mrf.mxu1  ;;  %v5825_v31 = vadd.f32 %v5824_v60, %v9701_v49  ;;  %7757 = vmatpush3.bf16.msra.mxu0 %v9110_v2  ;;  %v9122_v60 = vld [vmem:[#allocation12 + $0x8] sm:$0xff]  }
 0x392   :  { %v5826_v27 = vpop.f32.mrf.mxu0  ;;  %7758 = vmatprep.subr.bf16.mxu0 %v9111_v25 }
 0x393   :  { %v5867_v61 = vpop.f32.mrf.mxu1  ;;  %v5866_v4 = vadd.f32 %v5865_v24, %v5825_v31  ;;  %v5827_v44 = vadd.f32 %v5826_v27, %v9704_v21  ;;  %v9123_v24 = vld [vmem:[#allocation12 + $0x40] sm:$0xff]   ;;  %v9125_v27 = vld [vmem:[%s9750_s7 + $0x38] sm:$0xff]  }
 0x394   :  { %v5828_v37 = vpop.f32.mrf.mxu0  ;;  %v9124_v31 = vld [vmem:[#allocation12] sm:$0xff]  }
 0x395   :  { %v5869_v45 = vpop.f32.mrf.mxu1  ;;  %v5868_v36 = vadd.f32 %v5867_v61, %v5827_v44  ;;  %7759 = vmatpush3.bf16.msra.mxu0 %v9112_v26  ;;  %v9297_v61 = vmov 0.0   ;;  %v9128_v44 = vld [vmem:[%s9750_s7 + $0x20] sm:$0xff]  }
 0x396   :  { %v5829_v11 = vpop.f32.mrf.mxu0  ;;  %7760 = vmatprep.subr.bf16.mxu0 %v9113_v3  ;;  %7787 = vmatprep.subr.bf16.mxu1 %v9297_v61  ;;  %v6124_v37 = vld [vmem:[#allocation10] sm:$0x3] }
 0x397   :  { %v5870_v16 = vpop.f32.mrf.mxu1  ;;  %v6129_v45 = vrot.slane %v6124_v37, %v1194_v0  ;;  %v9130_v0 = vld [vmem:[%s9750_s7 + $0x10] sm:$0xff]  }
 0x399   :  { %7761 = vmatpush3.bf16.msra.mxu0 %v9114_v63 }
 0x39a   :  { %7762 = vmatprep.subr.bf16.mxu0 %v9115_v34 }
 0x39d   :  { %7763 = vmatpush3.bf16.msra.mxu0 %v9116_v7  ;;  %v7738_v7 = vld [vmem:[%s9751_s8] ss:$0 sm:$0xff] }
 0x39e   :  { %7764 = vmatprep.subr.bf16.mxu0 %v9117_v10 }
 0x3a1   :  { %7765 = vmatpush3.bf16.msra.mxu0 %v9118_v5 }
 0x3a2   :  { %7766 = vmatprep.subr.bf16.mxu0 %v9119_v35 }
 0x3a5   :  { %7767 = vmatpush3.bf16.msra.mxu0 %v9120_v6 }
 0x3a6   :  { %7768 = vmatprep.subr.bf16.mxu0 %v9121_v54 }
 0x3a9   :  { %7769 = vmatpush3.bf16.msra.mxu0 %v9122_v60 }
 0x3aa   :  { %7770 = vmatprep.subr.bf16.mxu0 %v9123_v24 }
 0x3ad   :  { %7771 = vmatpush3.bf16.msra.mxu0 %v9124_v31 }
 0x3d0   :  { %v5906_v49 = vpop.f32.mrf.mxu0 }
 0x3d1   :  { %v5947_v14 = vpop.f32.mrf.mxu1  ;;  %v5907_v17 = vadd.f32 %v5906_v49, %v5866_v4  ;;  %v9127_v4 = vld [vmem:[%s9750_s7 + $0x28] sm:$0xff]  }
 0x3d2   :  { %v5908_v18 = vpop.f32.mrf.mxu0 }
 0x3d3   :  { %v5949_v20 = vpop.f32.mrf.mxu1  ;;  %v5948_v29 = vadd.f32 %v5947_v14, %v5907_v17  ;;  %v5909_v9 = vadd.f32 %v5908_v18, %v5868_v36  ;;  %v6133_v36 = vrot.slane %v6124_v37, %v1198_v8  ;;  %v9132_v8 = vld [vmem:[%s9750_s7] sm:$0xff]  }
 0x3d4   :  { %v5910_v22 = vpop.f32.mrf.mxu0 }
 0x3d5   :  { %v5951_v21 = vpop.f32.mrf.mxu1  ;;  %v5950_v38 = vadd.f32 %v5949_v20, %v5909_v9 }
 0x3d6   :  { %v5911_v23 = vpop.f32.mrf.mxu0 }
 0x3d7   :  { %v5952_v59 = vpop.f32.mrf.mxu1 }
 0x3d8   :  { %v7719_v59 = vld [vmem:[#allocation13] ss:$0 sm:$0xff] }
 0x410   :  { %v5988_v53 = vpop.f32.mrf.mxu0 }
 0x411   :  { %v6029_v30 = vpop.f32.mrf.mxu1  ;;  %v5989_v55 = vadd.f32 %v5988_v53, %v5948_v29 }
 0x412   :  { %v5990_v56 = vpop.f32.mrf.mxu0 }
 0x413   :  { %v6031_v57 = vpop.f32.mrf.mxu1  ;;  %v6030_v58 = vadd.f32 %v6029_v30, %v5989_v55  ;;  %v5991_v39 = vadd.f32 %v5990_v56, %v5950_v38 }
 0x414   :  { %v5992_v40 = vpop.f32.mrf.mxu0 }
 0x415   :  { %v6033_v47 = vpop.f32.mrf.mxu1  ;;  %v6032_v41 = vadd.f32 %v6031_v57, %v5991_v39  ;;  %v6038_v15 = vmax.f32 %v6030_v58, 0.0 }
 0x416   :  { %v5993_v42 = vpop.f32.mrf.mxu0 }
 0x417   :  { %v6034_v43 = vpop.f32.mrf.mxu1  ;;  %v6039_v32 = vmax.f32 %v6032_v41, 0.0  ;;  %v7752_v48 = vpack.c.bf16 %v6038_v15, %v6038_v15 }
 0x419   :  { %v7753_v33 = vpack.c.bf16 %v6039_v32, %v6039_v32 }
 0x41b   :  { %6543 = vmatprep.mubr.bf16.mxu1 %v7753_v33 }
 0x41c   :  { %6544 = vmatmul.mubr.bf16.vlgmr.msra.gmra.mxu1 %v7752_v48 }
 0x41d   :  { %7788 = vmatpush3.bf16.msra.mxu1 %v9125_v27  ;;  %7803 = vmatprep.mubr.msk.bf16.mxu1 %vm9298_vm0, %v9297_v61 }
 0x41e   :  { %7789 = vmatprep.subr.bf16.mxu1 %v9297_v61 }
 0x421   :  { %7790 = vmatpush3.bf16.msra.mxu1 %v9126_v62 }
 0x422   :  { %7791 = vmatprep.subr.bf16.mxu1 %v9297_v61 }
 0x425   :  { %7792 = vmatpush3.bf16.msra.mxu1 %v9127_v4 }
 0x426   :  { %7793 = vmatprep.subr.bf16.mxu1 %v9297_v61 }
 0x429   :  { %7794 = vmatpush3.bf16.msra.mxu1 %v9128_v44 }
 0x42a   :  { %7795 = vmatprep.subr.bf16.mxu1 %v9297_v61 }
 0x42d   :  { %7796 = vmatpush3.bf16.msra.mxu1 %v9129_v13 }
 0x42e   :  { %7797 = vmatprep.subr.bf16.mxu1 %v9297_v61 }
 0x431   :  { %7798 = vmatpush3.bf16.msra.mxu1 %v9130_v0 }
 0x432   :  { %7799 = vmatprep.subr.bf16.mxu1 %v9297_v61 }
 0x435   :  { %7800 = vmatpush3.bf16.msra.mxu1 %v9131_v46 }
 0x436   :  { %7801 = vmatprep.subr.bf16.mxu1 %v9297_v61 }
 0x439   :  { %7802 = vmatpush3.bf16.msra.mxu1 %v9132_v8 }
 0x450   :  { %v6504_v28 = vpop.f32.mrf.mxu0 }
 0x451   :  { %v6505_v11 = vadd.f32 %v6504_v28, %v6129_v45 }
 0x452   :  { %v6506_v50 = vpop.f32.mrf.mxu0 }
 0x453   :  { %v6507_v19 = vadd.f32 %v6506_v50, %v6133_v36 }
 0x454   :  { %v6508_v51 = vpop.f32.mrf.mxu0 }
 0x456   :  { %v6509_v52 = vpop.f32.mrf.mxu0 }
 0x4dc   :  { %v6545_v16 = vpop.f32.mrf.mxu1 }
 0x4dd   :  { %v6546_v12 = vadd.f32 %v6545_v16, %v6505_v11 }
 0x4de   :  { %v6547_v49 = vpop.f32.mrf.mxu1 }
 0x4df   :  { %v6548_v14 = vadd.f32 %v6547_v49, %v6507_v19  ;;  %v6552_v17 = vmax.f32 %v6546_v12, 0.0 }
 0x4e0   :  { %v6549_v18 = vpop.f32.mrf.mxu1 }
 0x4e1   :  { %v6553_v20 = vmax.f32 %v6548_v14, 0.0  ;;  %v7754_v21 = vpack.c.bf16 %v6552_v17, %v6552_v17 }
 0x4e2   :  { %v6550_v29 = vpop.f32.mrf.mxu1 }
 0x4e3   :  { %v7755_v22 = vpack.c.bf16 %v6553_v20, %v6553_v20 }
 0x4e5   :  { %6738 = vmatprep.mubr.bf16.mxu0 %v7755_v22 }
 0x4e6   :  { %6739 = vmatmul.mubr.bf16.vlgmr.msra.gmra.mxu0 %v7754_v21 }
 0x5a6   :  { %v7772_v23 = vpop.f32.mrf.mxu0 }
 0x5a8   :  { %v7773_v1 = vpop.f32.mrf.mxu0 }
 0x5a9   :  { %v7774_v2 = vadd.f32 %v7773_v1, %v7772_v23 }
 0x5aa   :  { %v7775_v25 = vpop.f32.mrf.mxu0 }
 0x5ab   :  { %v6741_v26 = vadd.f32 %v7774_v2, %v7719_v59 }
 0x5ac   :  { %v7776_v3 = vpop.f32.mrf.mxu0 }
 0x5ad   :  { %v6746_v63 = vmax.f32 %v6741_v26, 0.0 }
 0x5af   :  { %v6747_v34 = vpack.c.bf16 %v6746_v63, %v6746_v63 }
 0x5b1   :  { %7804 = vmatmul.mubr.bf16.vlgmr.msra.gmra.mxu1 %v6747_v34 }
 0x671   :  { %v6853_v10 = vpop.f32.mrf.mxu1 }
 0x672   :  { %v6854_v5 = vadd.f32 %v7738_v7, %v6853_v10 }
 0x673   :  { %v7805_v35 = vpop.f32.mrf.mxu1 }
 0x674   :  { %6859 = vst [vmem:[#allocation15] sm:$0xff] %v6854_v5 }
 0x675   :  { %v6856_v6 = vpop.f32.mrf.mxu1 }
 0x677   :  { %v7806_v9 = vpop.f32.mrf.mxu1 }
 0x678   :  { %6864 = vsyncadd [#allocation6], 96  ;;  %s9299_s7 = smov [#allocation15]  }
 0x679   :  { %s6865_s28 = sshll.u32 %s9299_s7, 4  ;;  %s6866_s28 = int_to_ptr.vmem [resolvable:$true] %s6865_s28 }
 0x67a   :  { %s9254_s29 = scalar_lea.vmem %s6866_s28, 32  ;;  %s9258_s30 = scalar_lea.vmem %s6866_s28, 128 }
 0x67b   :  { %p9255_p2 = scmp.ne.s32.totalorder %s6866_s28, %s9254_s29  ;;  %p9259_p3 = scmp.lt.s32.totalorder %s6866_s28, %s6866_s28 }
 0x67c   :  { %p9260_p4 = scmp.lt.s32.totalorder %s9258_s30, %s9254_s29 }
 0x67e   :  { %p9261_p5 = por %p9260_p4, %p9259_p3 }
 0x680   :  { %p9262_p6 = pnand %p9261_p5, %p9255_p2 }
 0x682   :  { %9265 = shalt.err (!%p9262_p6)
}
 0x683   :  { %s9300_s10 = smov 32   ;;  %s9301_s8 = smov 2  }
 0x684   :  { %6871 = dma.vmem_to_hbm [thread:$0]  %s6866_s28, 32, %s9752_s9, [#allocation6], %s9300_s10, %s9300_s10, %s9301_s8  }
 0x685   :  { %9282 = dma.done.wait [#allocation6], 128  }
 0x686   :  { %9283 = vsyncadd [#allocation6], 4294967168 }
 0x687   :  { %6875 = vsyncpa [#allocation5], 1 }
 0x688   :  { %6876 = vsyncpa [#allocation8], 1 }
 0x689   :  { %6877 = vsyncpa [#allocation11], 1 }
 0x68a   :  { %6878 = vsyncpa [#allocation14], 1 }
 0x68b   :  { %6879 = vsyncpa [#allocation6], 1 }

// kernel: resnet18fc_forward.1
= control target key start
LH: loop header
LB: loop body
LE: loop exit
PB: predicated region body
PF: predicated region fallthrough
CT: control target
= control target key end

     0   :  { %14 = vsyncpa [#allocation5], 0  ;;  %s9743_s0 = inlined_call_operand.vmem [shape: f32[2,3072], index: 0, kind: input, shape index: {}]   ;;  %s9744_s1 = inlined_call_operand.hbm [shape: bf16[3072,512], index: 1, kind: input, shape index: {}]   ;;  %s9745_s2 = inlined_call_operand.hbm [shape: f32[1,512], index: 2, kind: input, shape index: {}]   ;;  %s9746_s3 = inlined_call_operand.hbm [shape: bf16[512,256], index: 3, kind: input, shape index: {}]   ;;  %s9747_s4 = inlined_call_operand.hbm [shape: f32[1,256], index: 4, kind: input, shape index: {}]   ;;  %s9748_s5 = inlined_call_operand.hbm [shape: bf16[256,128], index: 5, kind: input, shape index: {}]   ;;  %s9749_s6 = inlined_call_operand.hbm [shape: f32[1,128], index: 6, kind: input, shape index: {}]   ;;  %s9750_s7 = inlined_call_operand.vmem [shape: bf16[128,128], index: 7, kind: input, shape index: {}]   ;;  %s9751_s8 = inlined_call_operand.vmem [shape: f32[1,128], index: 8, kind: input, shape index: {}]   ;;  %s9752_s9 = inlined_call_operand.hbm [shape: f32[2,128], index: 9, kind: output, shape index: {}]  }
   0x1   :  { %15 = vsyncpa [#allocation8], 0 }
   0x2   :  { %16 = vsyncpa [#allocation11], 0 }
   0x3   :  { %17 = vsyncpa [#allocation14], 0 }
   0x4   :  { %18 = vsyncpa [#allocation6], 0  ;;  %s9284_s30 = smov [#allocation7]   ;;  %s9285_s11 = smov [#allocation10]  }
   0x5   :  { %s39_s10 = sshll.u32 %s9284_s30, 4  ;;  %s61_s12 = sshll.u32 %s9285_s11, 4  ;;  %s40_s10 = int_to_ptr.vmem [resolvable:$true] %s39_s10  ;;  %s62_s12 = int_to_ptr.vmem [resolvable:$true] %s61_s12 }
   0x6   :  { %s9142_s13 = scalar_lea.vmem %s40_s10, 64  ;;  %p9147_p1 = scmp.lt.s32.totalorder %s40_s10, %s40_s10 }
   0x7   :  { %p9143_p0 = scmp.ne.s32.totalorder %s40_s10, %s9142_s13  ;;  %p9148_p2 = scmp.lt.s32.totalorder %s9142_s13, %s9142_s13 }
   0x9   :  { %p9149_p3 = por %p9148_p2, %p9147_p1 }
   0xb   :  { %p9150_p4 = pnand %p9149_p3, %p9143_p0 }
   0xd   :  { %9153 = shalt.err (!%p9150_p4)
}
   0xe   :  { %42 = dma.hbm_to_vmem [thread:$0]  %s9745_s2, 64, %s40_s10, [#allocation8]  }
   0xf   :  { %s9162_s16 = scalar_lea.vmem %s62_s12, 32  ;;  %p9167_p6 = scmp.lt.s32.totalorder %s62_s12, %s62_s12 }
  0x10   :  { %p9163_p5 = scmp.ne.s32.totalorder %s62_s12, %s9162_s16  ;;  %p9168_p7 = scmp.lt.s32.totalorder %s9162_s16, %s9162_s16 }
  0x12   :  { %p9169_p8 = por %p9168_p7, %p9167_p6 }
  0x14   :  { %p9170_p9 = pnand %p9169_p8, %p9163_p5 }
  0x16   :  { %9173 = shalt.err (!%p9170_p9)
}
  0x17   :  { %64 = dma.hbm_to_vmem [thread:$0]  %s9747_s4, 32, %s62_s12, [#allocation11]  }
  0x18   :  { %s9286_s19 = smov [#allocation4]  }
  0x19   :  { %s26_s20 = sshll.u32 %s9286_s19, 4  ;;  %s27_s20 = int_to_ptr.vmem [resolvable:$true] %s26_s20 }
  0x1a   :  { %s9182_s21 = scalar_lea.vmem %s27_s20, 98304  ;;  %p9187_p11 = scmp.lt.s32.totalorder %s27_s20, %s27_s20 }
  0x1b   :  { %p9183_p10 = scmp.ne.s32.totalorder %s27_s20, %s9182_s21  ;;  %p9188_p12 = scmp.lt.s32.totalorder %s9182_s21, %s9182_s21 }
  0x1d   :  { %p9189_p13 = por %p9188_p12, %p9187_p11 }
  0x1f   :  { %p9190_p0 = pnand %p9189_p13, %p9183_p10 }
  0x21   :  { %9193 = shalt.err (!%p9190_p0)
}
  0x22   :  { %s9287_s2 = smov 256   ;;  %s9288_s22 = smov 16  }
  0x23   :  { %32 = dma.hbm_to_vmem [thread:$0]  %s9744_s1, 98304, %s27_s20, [#allocation5], %s9287_s2, %s9287_s2, %s9288_s22  }
  0x24   :  { %s9289_s25 = smov [#allocation9]  }
  0x25   :  { %s48_s26 = sshll.u32 %s9289_s25, 4  ;;  %s49_s26 = int_to_ptr.vmem [resolvable:$true] %s48_s26 }
  0x26   :  { %s9202_s4 = scalar_lea.vmem %s49_s26, 8192  ;;  %p9207_p2 = scmp.lt.s32.totalorder %s49_s26, %s49_s26 }
  0x27   :  { %p9203_p1 = scmp.ne.s32.totalorder %s49_s26, %s9202_s4  ;;  %p9208_p3 = scmp.lt.s32.totalorder %s9202_s4, %s9202_s4 }
  0x29   :  { %p9209_p4 = por %p9208_p3, %p9207_p2 }
  0x2b   :  { %p9210_p5 = pnand %p9209_p4, %p9203_p1 }
  0x2d   :  { %9213 = shalt.err (!%p9210_p5)
}
  0x2e   :  { %s9290_s27 = smov 128   ;;  %s9291_s28 = smov 8  }
  0x2f   :  { %54 = dma.hbm_to_vmem [thread:$0]  %s9746_s3, 8192, %s49_s26, [#allocation8], %s9290_s27, %s9290_s27, %s9291_s28  }
  0x30   :  { %s9292_s10 = smov [#allocation12]  }
  0x31   :  { %s70_s11 = sshll.u32 %s9292_s10, 4  ;;  %s71_s11 = int_to_ptr.vmem [resolvable:$true] %s70_s11 }
  0x32   :  { %s9222_s1 = scalar_lea.vmem %s71_s11, 2048  ;;  %p9227_p7 = scmp.lt.s32.totalorder %s71_s11, %s71_s11 }
  0x33   :  { %p9223_p6 = scmp.ne.s32.totalorder %s71_s11, %s9222_s1  ;;  %p9228_p8 = scmp.lt.s32.totalorder %s9222_s1, %s9222_s1 }
  0x35   :  { %p9229_p9 = por %p9228_p8, %p9227_p7 }
  0x37   :  { %p9230_p10 = pnand %p9229_p9, %p9223_p6 }
  0x39   :  { %9233 = shalt.err (!%p9230_p10)
}
  0x3a   :  { %s9293_s12 = smov 64   ;;  %s9294_s13 = smov 4  }
  0x3b   :  { %76 = dma.hbm_to_vmem [thread:$0]  %s9748_s5, 2048, %s71_s11, [#allocation11], %s9293_s12, %s9293_s12, %s9294_s13  }
  0x3c   :  { %s9295_s16 = smov [#allocation13]  }
  0x3d   :  { %s83_s17 = sshll.u32 %s9295_s16, 4  ;;  %s84_s17 = int_to_ptr.vmem [resolvable:$true] %s83_s17 }
  0x3e   :  { %s9242_s3 = scalar_lea.vmem %s84_s17, 16  ;;  %s9246_s18 = scalar_lea.vmem %s84_s17, 32 }
  0x3f   :  { %p9243_p11 = scmp.ne.s32.totalorder %s84_s17, %s9242_s3  ;;  %p9247_p12 = scmp.lt.s32.totalorder %s84_s17, %s84_s17 }
  0x40   :  { %p9248_p13 = scmp.lt.s32.totalorder %s9246_s18, %s9242_s3 }
  0x42   :  { %p9249_p0 = por %p9248_p13, %p9247_p12 }
  0x44   :  { %p9250_p1 = pnand %p9249_p0, %p9243_p11 }
  0x46   :  { %9253 = shalt.err (!%p9250_p1)
}
  0x47   :  { %86 = dma.hbm_to_vmem [thread:$0]  %s9749_s6, 16, %s84_s17, [#allocation14]  }
  0x48   :  { %9274 = dma.done.wait [#allocation5], 98304  }
  0x49   :  { %9275 = vsyncadd [#allocation5], 4294868992 }
  0x4a   :  { %9276 = dma.done.wait [#allocation8], 8256  }
  0x4b   :  { %9277 = vsyncadd [#allocation8], 4294959040 }
  0x4c   :  { %9278 = dma.done.wait [#allocation11], 2080  }
  0x4d   :  { %9279 = vsyncadd [#allocation11], 4294965216 }
  0x4e   :  { %9280 = dma.done.wait [#allocation14], 16  }
  0x4f   :  { %9281 = vsyncadd [#allocation14], 4294967280  ;;  %v7825_v0 = vld [vmem:[#allocation4 + $0xe4] ss:$16 sps:$4 sm:$0xff]   ;;  %v7829_v2 = vld [vmem:[#allocation4 + $0xe0] ss:$16 sps:$4 sm:$0xff]   ;;  %v165_v40 = vlaneseq }
  0x50   :  { %v7827_v1 = vld [vmem:[#allocation4 + $0x2e4] ss:$16 sps:$4 sm:$0xff]   ;;  %5052 = vmatprep.subr.bf16.mxu0 %v7825_v0  ;;  %v7830_v3 = vld [vmem:[#allocation4 + $0x2e0] ss:$16 sps:$4 sm:$0xff]   ;;  %v9296_v38 = vmov 1983009808  }
  0x51   :  { %5093 = vmatprep.subr.bf16.mxu1 %v7827_v1  ;;  %v7831_v4 = vld [vmem:[#allocation4 + $0xc4] ss:$16 sps:$4 sm:$0xff]   ;;  %5053 = vmatpush1.bf16.msra.mxu0 %v7829_v2  ;;  %v7835_v6 = vld [vmem:[#allocation4 + $0xc0] ss:$16 sps:$4 sm:$0xff]   ;;  %v163_v39 = vunpack.c.l.s4 %v9296_v38  ;;  %v9370_v46 = vshrl.u32 %v165_v40, 7  ;;  %vm9298_vm0 = vmmov 0  }
  0x52   :  { %5094 = vmatpush1.bf16.msra.mxu1 %v7830_v3  ;;  %v7833_v5 = vld [vmem:[#allocation4 + $0x2c4] ss:$16 sps:$4 sm:$0xff]   ;;  %5054 = vmatprep.subr.bf16.mxu0 %v7831_v4  ;;  %v7836_v7 = vld [vmem:[#allocation4 + $0x2c0] ss:$16 sps:$4 sm:$0xff]  }
  0x53   :  { %5095 = vmatprep.subr.bf16.mxu1 %v7833_v5  ;;  %v7837_v8 = vld [vmem:[#allocation4 + $0xa4] ss:$16 sps:$4 sm:$0xff]   ;;  %v7841_v10 = vld [vmem:[#allocation4 + $0xa0] ss:$16 sps:$4 sm:$0xff]   ;;  %v164_v45 = vunpack.c.0.s8 %v163_v39 }
  0x54   :  { %v7839_v9 = vld [vmem:[#allocation4 + $0x2a4] ss:$16 sps:$4 sm:$0xff]   ;;  %v7842_v11 = vld [vmem:[#allocation4 + $0x2a0] ss:$16 sps:$4 sm:$0xff]  }
  0x55   :  { %5055 = vmatpush1.bf16.msra.mxu0 %v7835_v6  ;;  %v7843_v12 = vld [vmem:[#allocation4 + $0x84] ss:$16 sps:$4 sm:$0xff]   ;;  %v7847_v14 = vld [vmem:[#allocation4 + $0x80] ss:$16 sps:$4 sm:$0xff]   ;;  %v9373_v53 = vsub.s32 %v164_v45, %v9370_v46 }
  0x56   :  { %5096 = vmatpush1.bf16.msra.mxu1 %v7836_v7  ;;  %5056 = vmatprep.subr.bf16.mxu0 %v7837_v8  ;;  %v7845_v13 = vld [vmem:[#allocation4 + $0x284] ss:$16 sps:$4 sm:$0xff]   ;;  %v7848_v15 = vld [vmem:[#allocation4 + $0x280] ss:$16 sps:$4 sm:$0xff]  }
  0x57   :  { %5097 = vmatprep.subr.bf16.mxu1 %v7839_v9  ;;  %v7849_v16 = vld [vmem:[#allocation4 + $0x64] ss:$16 sps:$4 sm:$0xff]   ;;  %v7853_v18 = vld [vmem:[#allocation4 + $0x60] ss:$16 sps:$4 sm:$0xff]  }
  0x58   :  { %v7851_v17 = vld [vmem:[#allocation4 + $0x264] ss:$16 sps:$4 sm:$0xff]   ;;  %v7854_v19 = vld [vmem:[#allocation4 + $0x260] ss:$16 sps:$4 sm:$0xff]  }
  0x59   :  { %5057 = vmatpush1.bf16.msra.mxu0 %v7841_v10  ;;  %v7855_v20 = vld [vmem:[#allocation4 + $0x44] ss:$16 sps:$4 sm:$0xff]   ;;  %v7859_v22 = vld [vmem:[#allocation4 + $0x40] ss:$16 sps:$4 sm:$0xff]  }
  0x5a   :  { %5098 = vmatpush1.bf16.msra.mxu1 %v7842_v11  ;;  %5058 = vmatprep.subr.bf16.mxu0 %v7843_v12  ;;  %v7857_v21 = vld [vmem:[#allocation4 + $0x244] ss:$16 sps:$4 sm:$0xff]   ;;  %v7860_v23 = vld [vmem:[#allocation4 + $0x240] ss:$16 sps:$4 sm:$0xff]  }
  0x5b   :  { %5099 = vmatprep.subr.bf16.mxu1 %v7845_v13  ;;  %v7861_v24 = vld [vmem:[#allocation4 + $0x24] ss:$16 sps:$4 sm:$0xff]   ;;  %v7865_v26 = vld [vmem:[#allocation4 + $0x20] ss:$16 sps:$4 sm:$0xff]  }
  0x5c   :  { %v7863_v25 = vld [vmem:[#allocation4 + $0x224] ss:$16 sps:$4 sm:$0xff]   ;;  %v7866_v27 = vld [vmem:[#allocation4 + $0x220] ss:$16 sps:$4 sm:$0xff]  }
  0x5d   :  { %5059 = vmatpush1.bf16.msra.mxu0 %v7847_v14  ;;  %v7867_v28 = vld [vmem:[#allocation4 + $0x4] ss:$16 sps:$4 sm:$0xff]   ;;  %v7871_v30 = vld [vmem:[#allocation4] ss:$16 sps:$4 sm:$0xff]  }
  0x5e   :  { %5100 = vmatpush1.bf16.msra.mxu1 %v7848_v15  ;;  %5060 = vmatprep.subr.bf16.mxu0 %v7849_v16  ;;  %v7869_v29 = vld [vmem:[#allocation4 + $0x204] ss:$16 sps:$4 sm:$0xff]   ;;  %v7872_v31 = vld [vmem:[#allocation4 + $0x200] ss:$16 sps:$4 sm:$0xff]  }
  0x5f   :  { %5101 = vmatprep.subr.bf16.mxu1 %v7851_v17  ;;  %v7873_v32 = vld [vmem:[#allocation4 + $0x1e4] ss:$16 sps:$4 sm:$0xff]   ;;  %v7877_v34 = vld [vmem:[#allocation4 + $0x1e0] ss:$16 sps:$4 sm:$0xff]  }
  0x60   :  { %v7875_v33 = vld [vmem:[#allocation4 + $0x3e4] ss:$16 sps:$4 sm:$0xff]   ;;  %v7878_v35 = vld [vmem:[#allocation4 + $0x3e0] ss:$16 sps:$4 sm:$0xff]  }
  0x61   :  { %5061 = vmatpush1.bf16.msra.mxu0 %v7853_v18  ;;  %v7879_v36 = vld [vmem:[#allocation4 + $0x1c4] ss:$16 sps:$4 sm:$0xff]   ;;  %v7883_v41 = vld [vmem:[#allocation4 + $0x1c0] ss:$16 sps:$4 sm:$0xff]  }
  0x62   :  { %5102 = vmatpush1.bf16.msra.mxu1 %v7854_v19  ;;  %5062 = vmatprep.subr.bf16.mxu0 %v7855_v20  ;;  %v7881_v37 = vld [vmem:[#allocation4 + $0x3c4] ss:$16 sps:$4 sm:$0xff]   ;;  %v7884_v42 = vld [vmem:[#allocation4 + $0x3c0] ss:$16 sps:$4 sm:$0xff]  }
  0x63   :  { %5103 = vmatprep.subr.bf16.mxu1 %v7857_v21  ;;  %v7885_v43 = vld [vmem:[#allocation4 + $0x1a4] ss:$16 sps:$4 sm:$0xff]   ;;  %v7889_v47 = vld [vmem:[#allocation4 + $0x1a0] ss:$16 sps:$4 sm:$0xff]  }
  0x64   :  { %v7887_v44 = vld [vmem:[#allocation4 + $0x3a4] ss:$16 sps:$4 sm:$0xff]   ;;  %v7890_v48 = vld [vmem:[#allocation4 + $0x3a0] ss:$16 sps:$4 sm:$0xff]  }
  0x65   :  { %5063 = vmatpush1.bf16.msra.mxu0 %v7859_v22  ;;  %v7891_v49 = vld [vmem:[#allocation4 + $0x184] ss:$16 sps:$4 sm:$0xff]   ;;  %v7895_v51 = vld [vmem:[#allocation4 + $0x180] ss:$16 sps:$4 sm:$0xff]  }
  0x66   :  { %5104 = vmatpush1.bf16.msra.mxu1 %v7860_v23  ;;  %5064 = vmatprep.subr.bf16.mxu0 %v7861_v24  ;;  %v7893_v50 = vld [vmem:[#allocation4 + $0x384] ss:$16 sps:$4 sm:$0xff]   ;;  %v7896_v52 = vld [vmem:[#allocation4 + $0x380] ss:$16 sps:$4 sm:$0xff]  }
  0x67   :  { %5105 = vmatprep.subr.bf16.mxu1 %v7863_v25  ;;  %v7897_v54 = vld [vmem:[#allocation4 + $0x164] ss:$16 sps:$4 sm:$0xff]   ;;  %v7921_v56 = vld [vmem:[%s9743_s0] ss:$48 sps:$4 sm:$0xff]  }
  0x68   :  { %v7899_v55 = vld [vmem:[#allocation4 + $0x364] ss:$16 sps:$4 sm:$0xff]   ;;  %v7923_v57 = vld [vmem:[%s9743_s0 + $0x60] ss:$48 sps:$4 sm:$0xff]   ;;  %v168_v60 = vrot.slane %v7921_v56, %v9373_v53  ;;  %v8027_v56 = vld [vmem:[%s9743_s0 + $0xc] ss:$48 sps:$4 sm:$0xff]  }
  0x69   :  { %5065 = vmatpush1.bf16.msra.mxu0 %v7865_v26  ;;  %v7925_v58 = vld [vmem:[%s9743_s0 + $0x4] ss:$48 sps:$4 sm:$0xff]   ;;  %v182_v61 = vrot.slane %v7923_v57, %v9373_v53  ;;  %v7901_v63 = vld [vmem:[#allocation4 + $0x160] ss:$16 sps:$4 sm:$0xff]   ;;  %v8028_v57 = vld [vmem:[%s9743_s0 + $0x6c] ss:$48 sps:$4 sm:$0xff]  }
  0x6a   :  { %5106 = vmatpush1.bf16.msra.mxu1 %v7866_v27  ;;  %5066 = vmatprep.subr.bf16.mxu0 %v7867_v28  ;;  %v7926_v59 = vld [vmem:[%s9743_s0 + $0x64] ss:$48 sps:$4 sm:$0xff]   ;;  %v175_v62 = vrot.slane %v7925_v58, %v9373_v53  ;;  %v7902_v0 = vld [vmem:[#allocation4 + $0x360] ss:$16 sps:$4 sm:$0xff]  }
  0x6b   :  { %5107 = vmatprep.subr.bf16.mxu1 %v7869_v29  ;;  %v189_v1 = vrot.slane %v7926_v59, %v9373_v53  ;;  %v7903_v2 = vld [vmem:[#allocation4 + $0x144] ss:$16 sps:$4 sm:$0xff]   ;;  %v191_v3 = vcombine.high %v168_v60, %v182_v61  ;;  %v7907_v7 = vld [vmem:[#allocation4 + $0x140] ss:$16 sps:$4 sm:$0xff]   ;;  %v190_v18 = vcombine.low %v168_v60, %v182_v61 }
  0x6c   :  { %v7905_v4 = vld [vmem:[#allocation4 + $0x344] ss:$16 sps:$4 sm:$0xff]   ;;  %v7908_v8 = vld [vmem:[#allocation4 + $0x340] ss:$16 sps:$4 sm:$0xff]  }
  0x6d   :  { %5067 = vmatpush1.bf16.msra.mxu0 %v7871_v30  ;;  %v193_v5 = vcombine.high %v175_v62, %v189_v1  ;;  %v9391_v6 = vpack.c.bf16 %v191_v3, %v191_v3  ;;  %v7909_v10 = vld [vmem:[#allocation4 + $0x124] ss:$16 sps:$4 sm:$0xff]   ;;  %v7913_v12 = vld [vmem:[#allocation4 + $0x120] ss:$16 sps:$4 sm:$0xff]   ;;  %v192_v19 = vcombine.low %v175_v62, %v189_v1  ;;  %v9397_v22 = vpack.c.bf16 %v190_v18, %v190_v18 }
  0x6e   :  { %5108 = vmatpush1.bf16.msra.mxu1 %v7872_v31  ;;  %5068 = vmatprep.subr.bf16.mxu0 %v7873_v32  ;;  %v7911_v11 = vld [vmem:[#allocation4 + $0x324] ss:$16 sps:$4 sm:$0xff]   ;;  %v7914_v13 = vld [vmem:[#allocation4 + $0x320] ss:$16 sps:$4 sm:$0xff]  }
  0x6f   :  { %5109 = vmatprep.subr.bf16.mxu1 %v7875_v33  ;;  %v9393_v9 = vpack.c.bf16 %v193_v5, %v193_v5  ;;  %5084 = vmatprep.mubr.bf16.mxu0 %v9391_v6  ;;  %v7915_v14 = vld [vmem:[#allocation4 + $0x104] ss:$16 sps:$4 sm:$0xff]   ;;  %v7919_v16 = vld [vmem:[#allocation4 + $0x100] ss:$16 sps:$4 sm:$0xff]   ;;  %v9399_v23 = vpack.c.bf16 %v192_v19, %v192_v19 }
  0x70   :  { %v7917_v15 = vld [vmem:[#allocation4 + $0x304] ss:$16 sps:$4 sm:$0xff]   ;;  %v7920_v17 = vld [vmem:[#allocation4 + $0x300] ss:$16 sps:$4 sm:$0xff]  }
  0x71   :  { %5069 = vmatpush2.bf16.msra.mxu0 %v7877_v34  ;;  %5125 = vmatprep.mubr.bf16.mxu1 %v9393_v9  ;;  %v7929_v20 = vld [vmem:[#allocation4 + $0x4e4] ss:$16 sps:$4 sm:$0xff]   ;;  %v7927_v24 = vld [vmem:[#allocation4 + $0x4e0] ss:$16 sps:$4 sm:$0xff]  }
  0x72   :  { %5110 = vmatpush2.bf16.msra.mxu1 %v7878_v35  ;;  %5070 = vmatprep.subr.bf16.mxu0 %v7879_v36  ;;  %v7932_v21 = vld [vmem:[#allocation4 + $0x6e4] ss:$16 sps:$4 sm:$0xff]   ;;  %v7930_v25 = vld [vmem:[#allocation4 + $0x6e0] ss:$16 sps:$4 sm:$0xff]  }
  0x73   :  { %5111 = vmatprep.subr.bf16.mxu1 %v7881_v37  ;;  %v7935_v26 = vld [vmem:[#allocation4 + $0x4c4] ss:$16 sps:$4 sm:$0xff]   ;;  %v7933_v28 = vld [vmem:[#allocation4 + $0x4c0] ss:$16 sps:$4 sm:$0xff]  }
  0x74   :  { %v7938_v27 = vld [vmem:[#allocation4 + $0x6c4] ss:$16 sps:$4 sm:$0xff]   ;;  %v7936_v29 = vld [vmem:[#allocation4 + $0x6c0] ss:$16 sps:$4 sm:$0xff]  }
  0x75   :  { %5071 = vmatpush2.bf16.msra.mxu0 %v7883_v41  ;;  %v7941_v30 = vld [vmem:[#allocation4 + $0x4a4] ss:$16 sps:$4 sm:$0xff]   ;;  %v7939_v32 = vld [vmem:[#allocation4 + $0x4a0] ss:$16 sps:$4 sm:$0xff]  }
  0x76   :  { %5112 = vmatpush2.bf16.msra.mxu1 %v7884_v42  ;;  %5072 = vmatprep.subr.bf16.mxu0 %v7885_v43  ;;  %v7944_v31 = vld [vmem:[#allocation4 + $0x6a4] ss:$16 sps:$4 sm:$0xff]   ;;  %v7942_v33 = vld [vmem:[#allocation4 + $0x6a0] ss:$16 sps:$4 sm:$0xff]  }
  0x77   :  { %5113 = vmatprep.subr.bf16.mxu1 %v7887_v44  ;;  %v7947_v34 = vld [vmem:[#allocation4 + $0x484] ss:$16 sps:$4 sm:$0xff]   ;;  %v7945_v36 = vld [vmem:[#allocation4 + $0x480] ss:$16 sps:$4 sm:$0xff]  }
  0x78   :  { %v7950_v35 = vld [vmem:[#allocation4 + $0x684] ss:$16 sps:$4 sm:$0xff]   ;;  %v7948_v37 = vld [vmem:[#allocation4 + $0x680] ss:$16 sps:$4 sm:$0xff]  }
  0x79   :  { %5073 = vmatpush2.bf16.msra.mxu0 %v7889_v47  ;;  %v7953_v38 = vld [vmem:[#allocation4 + $0x464] ss:$16 sps:$4 sm:$0xff]   ;;  %v7951_v40 = vld [vmem:[#allocation4 + $0x460] ss:$16 sps:$4 sm:$0xff]  }
  0x7a   :  { %5114 = vmatpush2.bf16.msra.mxu1 %v7890_v48  ;;  %5074 = vmatprep.subr.bf16.mxu0 %v7891_v49  ;;  %v7956_v39 = vld [vmem:[#allocation4 + $0x664] ss:$16 sps:$4 sm:$0xff]   ;;  %v7954_v41 = vld [vmem:[#allocation4 + $0x660] ss:$16 sps:$4 sm:$0xff]  }
  0x7b   :  { %5115 = vmatprep.subr.bf16.mxu1 %v7893_v50  ;;  %v7959_v42 = vld [vmem:[#allocation4 + $0x444] ss:$16 sps:$4 sm:$0xff]   ;;  %v7957_v44 = vld [vmem:[#allocation4 + $0x440] ss:$16 sps:$4 sm:$0xff]  }
  0x7c   :  { %v7962_v43 = vld [vmem:[#allocation4 + $0x644] ss:$16 sps:$4 sm:$0xff]   ;;  %v7960_v45 = vld [vmem:[#allocation4 + $0x640] ss:$16 sps:$4 sm:$0xff]  }
  0x7d   :  { %5075 = vmatpush2.bf16.msra.mxu0 %v7895_v51  ;;  %v7965_v47 = vld [vmem:[#allocation4 + $0x424] ss:$16 sps:$4 sm:$0xff]   ;;  %v7963_v49 = vld [vmem:[#allocation4 + $0x420] ss:$16 sps:$4 sm:$0xff]  }
  0x7e   :  { %5116 = vmatpush2.bf16.msra.mxu1 %v7896_v52  ;;  %5076 = vmatprep.subr.bf16.mxu0 %v7897_v54  ;;  %v7968_v48 = vld [vmem:[#allocation4 + $0x624] ss:$16 sps:$4 sm:$0xff]   ;;  %v7966_v50 = vld [vmem:[#allocation4 + $0x620] ss:$16 sps:$4 sm:$0xff]   ;;  %v8023_v54 = vld [vmem:[%s9743_s0 + $0x8] ss:$48 sps:$4 sm:$0xff]  }
  0x7f   :  { %5117 = vmatprep.subr.bf16.mxu1 %v7899_v55  ;;  %v7971_v51 = vld [vmem:[#allocation4 + $0x404] ss:$16 sps:$4 sm:$0xff]   ;;  %v8025_v55 = vld [vmem:[%s9743_s0 + $0x68] ss:$48 sps:$4 sm:$0xff]   ;;  %v7969_v58 = vld [vmem:[#allocation4 + $0x400] ss:$16 sps:$4 sm:$0xff]   ;;  %v9416_v60 = vrot.slane %v8023_v54, %v9373_v53 }
  0x80   :  { %v7974_v52 = vld [vmem:[#allocation4 + $0x604] ss:$16 sps:$4 sm:$0xff]   ;;  %v7972_v59 = vld [vmem:[#allocation4 + $0x600] ss:$16 sps:$4 sm:$0xff]   ;;  %v9419_v61 = vrot.slane %v8025_v55, %v9373_v53 }
  0x81   :  { %5077 = vmatpush2.bf16.msra.mxu0 %v7901_v63  ;;  %v7977_v62 = vld [vmem:[#allocation4 + $0x5e4] ss:$16 sps:$4 sm:$0xff]   ;;  %v9422_v63 = vrot.slane %v8027_v56, %v9373_v53  ;;  %v7978_v5 = vld [vmem:[#allocation4 + $0x7e0] ss:$16 sps:$4 sm:$0xff]  }
  0x82   :  { %5118 = vmatpush2.bf16.msra.mxu1 %v7902_v0  ;;  %5078 = vmatprep.subr.bf16.mxu0 %v7903_v2  ;;  %v9425_v0 = vrot.slane %v8028_v57, %v9373_v53  ;;  %v7980_v1 = vld [vmem:[#allocation4 + $0x7e4] ss:$16 sps:$4 sm:$0xff]   ;;  %v227_v2 = vcombine.high %v9416_v60, %v9419_v61  ;;  %v8041_v56 = vld [vmem:[#allocation4 + $0x8a0] ss:$16 sps:$4 sm:$0xff]  }
  0x83   :  { %5119 = vmatprep.subr.bf16.mxu1 %v7905_v4  ;;  %v7975_v4 = vld [vmem:[#allocation4 + $0x5e0] ss:$16 sps:$4 sm:$0xff]   ;;  %v7995_v18 = vld [vmem:[#allocation4 + $0x584] ss:$16 sps:$4 sm:$0xff]  }
  0x84   :  { %v229_v3 = vcombine.high %v9422_v63, %v9425_v0  ;;  %v7998_v19 = vld [vmem:[#allocation4 + $0x784] ss:$16 sps:$4 sm:$0xff]   ;;  %v8044_v57 = vld [vmem:[#allocation4 + $0xaa0] ss:$16 sps:$4 sm:$0xff]  }
  0x85   :  { %5079 = vmatpush2.bf16.msra.mxu0 %v7907_v7  ;;  %v9431_v7 = vpack.c.bf16 %v227_v2, %v227_v2  ;;  %v8043_v54 = vld [vmem:[#allocation4 + $0x8a4] ss:$16 sps:$4 sm:$0xff]  }
  0x86   :  { %5120 = vmatpush2.bf16.msra.mxu1 %v7908_v8  ;;  %5080 = vmatprep.subr.bf16.mxu0 %v7909_v10  ;;  %v7983_v8 = vld [vmem:[#allocation4 + $0x5c4] ss:$16 sps:$4 sm:$0xff]   ;;  %v9433_v10 = vpack.c.bf16 %v229_v3, %v229_v3 }
  0x87   :  { %5121 = vmatprep.subr.bf16.mxu1 %v7911_v11  ;;  %v7986_v11 = vld [vmem:[#allocation4 + $0x7c4] ss:$16 sps:$4 sm:$0xff]  }
  0x88   :  { %v8046_v55 = vld [vmem:[#allocation4 + $0xaa4] ss:$16 sps:$4 sm:$0xff]  }
  0x89   :  { %5081 = vmatpush2.bf16.msra.mxu0 %v7913_v12  ;;  %v7981_v12 = vld [vmem:[#allocation4 + $0x5c0] ss:$16 sps:$4 sm:$0xff]  }
  0x8a   :  { %5122 = vmatpush2.bf16.msra.mxu1 %v7914_v13  ;;  %5082 = vmatprep.subr.bf16.mxu0 %v7915_v14  ;;  %v7984_v13 = vld [vmem:[#allocation4 + $0x7c0] ss:$16 sps:$4 sm:$0xff]   ;;  %v7989_v14 = vld [vmem:[#allocation4 + $0x5a4] ss:$16 sps:$4 sm:$0xff]  }
  0x8b   :  { %5123 = vmatprep.subr.bf16.mxu1 %v7917_v15  ;;  %v7992_v15 = vld [vmem:[#allocation4 + $0x7a4] ss:$16 sps:$4 sm:$0xff]  }
  0x8d   :  { %5083 = vmatpush2.bf16.msra.mxu0 %v7919_v16  ;;  %v7987_v16 = vld [vmem:[#allocation4 + $0x5a0] ss:$16 sps:$4 sm:$0xff]  }
  0x8e   :  { %5124 = vmatpush2.bf16.msra.mxu1 %v7920_v17  ;;  %5134 = vmatprep.subr.bf16.mxu0 %v7929_v20  ;;  %v7990_v17 = vld [vmem:[#allocation4 + $0x7a0] ss:$16 sps:$4 sm:$0xff]  }
  0x8f   :  { %5175 = vmatprep.subr.bf16.mxu1 %v7932_v21  ;;  %v7993_v20 = vld [vmem:[#allocation4 + $0x580] ss:$16 sps:$4 sm:$0xff]  }
  0x90   :  { %5085 = vmatmul.mubr.bf16.vlgmr.msra.gmra.mxu0 %v9397_v22  ;;  %v7996_v21 = vld [vmem:[#allocation4 + $0x780] ss:$16 sps:$4 sm:$0xff]  }
  0x91   :  { %5126 = vmatmul.mubr.bf16.vlgmr.msra.gmra.mxu1 %v9399_v23  ;;  %5135 = vmatpush1.bf16.msra.mxu0 %v7927_v24  ;;  %v8001_v24 = vld [vmem:[#allocation4 + $0x564] ss:$16 sps:$4 sm:$0xff]  }
  0x92   :  { %5176 = vmatpush1.bf16.msra.mxu1 %v7930_v25  ;;  %5136 = vmatprep.subr.bf16.mxu0 %v7935_v26  ;;  %v8004_v25 = vld [vmem:[#allocation4 + $0x764] ss:$16 sps:$4 sm:$0xff]   ;;  %v7999_v26 = vld [vmem:[#allocation4 + $0x560] ss:$16 sps:$4 sm:$0xff]  }
  0x93   :  { %5177 = vmatprep.subr.bf16.mxu1 %v7938_v27  ;;  %5166 = vmatprep.mubr.bf16.mxu0 %v9431_v7  ;;  %v8002_v27 = vld [vmem:[#allocation4 + $0x760] ss:$16 sps:$4 sm:$0xff]  }
  0x94   :  { %5207 = vmatprep.mubr.bf16.mxu1 %v9433_v10 }
  0x95   :  { %5137 = vmatpush1.bf16.msra.mxu0 %v7933_v28  ;;  %v8007_v28 = vld [vmem:[#allocation4 + $0x544] ss:$16 sps:$4 sm:$0xff]  }
  0x96   :  { %5178 = vmatpush1.bf16.msra.mxu1 %v7936_v29  ;;  %5138 = vmatprep.subr.bf16.mxu0 %v7941_v30  ;;  %v8010_v29 = vld [vmem:[#allocation4 + $0x744] ss:$16 sps:$4 sm:$0xff]   ;;  %v8005_v30 = vld [vmem:[#allocation4 + $0x540] ss:$16 sps:$4 sm:$0xff]  }
  0x97   :  { %5179 = vmatprep.subr.bf16.mxu1 %v7944_v31  ;;  %v8008_v31 = vld [vmem:[#allocation4 + $0x740] ss:$16 sps:$4 sm:$0xff]  }
  0x99   :  { %5139 = vmatpush1.bf16.msra.mxu0 %v7939_v32  ;;  %v8013_v32 = vld [vmem:[#allocation4 + $0x524] ss:$16 sps:$4 sm:$0xff]  }
  0x9a   :  { %5180 = vmatpush1.bf16.msra.mxu1 %v7942_v33  ;;  %5140 = vmatprep.subr.bf16.mxu0 %v7947_v34  ;;  %v8016_v33 = vld [vmem:[#allocation4 + $0x724] ss:$16 sps:$4 sm:$0xff]   ;;  %v8011_v34 = vld [vmem:[#allocation4 + $0x520] ss:$16 sps:$4 sm:$0xff]  }
  0x9b   :  { %5181 = vmatprep.subr.bf16.mxu1 %v7950_v35  ;;  %v8014_v35 = vld [vmem:[#allocation4 + $0x720] ss:$16 sps:$4 sm:$0xff]  }
  0x9d   :  { %5141 = vmatpush1.bf16.msra.mxu0 %v7945_v36  ;;  %v8019_v36 = vld [vmem:[#allocation4 + $0x504] ss:$16 sps:$4 sm:$0xff]  }
  0x9e   :  { %5182 = vmatpush1.bf16.msra.mxu1 %v7948_v37  ;;  %5142 = vmatprep.subr.bf16.mxu0 %v7953_v38  ;;  %v8022_v37 = vld [vmem:[#allocation4 + $0x704] ss:$16 sps:$4 sm:$0xff]   ;;  %v8017_v38 = vld [vmem:[#allocation4 + $0x500] ss:$16 sps:$4 sm:$0xff]  }
  0x9f   :  { %5183 = vmatprep.subr.bf16.mxu1 %v7956_v39  ;;  %v8020_v39 = vld [vmem:[#allocation4 + $0x700] ss:$16 sps:$4 sm:$0xff]  }
  0xa1   :  { %5143 = vmatpush1.bf16.msra.mxu0 %v7951_v40  ;;  %v226_v40 = vcombine.low %v9416_v60, %v9419_v61  ;;  %v8129_v60 = vld [vmem:[%s9743_s0 + $0x14] ss:$48 sps:$4 sm:$0xff]  }
  0xa2   :  { %5184 = vmatpush1.bf16.msra.mxu1 %v7954_v41  ;;  %5144 = vmatprep.subr.bf16.mxu0 %v7959_v42  ;;  %v228_v41 = vcombine.low %v9422_v63, %v9425_v0  ;;  %v8031_v42 = vld [vmem:[#allocation4 + $0x8e4] ss:$16 sps:$4 sm:$0xff]   ;;  %v9466_v2 = vrot.slane %v8129_v60, %v9373_v53 }
  0xa3   :  { %5185 = vmatprep.subr.bf16.mxu1 %v7962_v43  ;;  %v8034_v43 = vld [vmem:[#allocation4 + $0xae4] ss:$16 sps:$4 sm:$0xff]  }
  0xa4   :  { %v8130_v61 = vld [vmem:[%s9743_s0 + $0x74] ss:$48 sps:$4 sm:$0xff]  }
  0xa5   :  { %5145 = vmatpush1.bf16.msra.mxu0 %v7957_v44  ;;  %v9441_v44 = vpack.c.bf16 %v226_v40, %v226_v40  ;;  %v8052_v0 = vld [vmem:[#allocation4 + $0xa84] ss:$16 sps:$4 sm:$0xff]   ;;  %v9469_v3 = vrot.slane %v8130_v61, %v9373_v53 }
  0xa6   :  { %5186 = vmatpush1.bf16.msra.mxu1 %v7960_v45  ;;  %5146 = vmatprep.subr.bf16.mxu0 %v7965_v47  ;;  %v9443_v45 = vpack.c.bf16 %v228_v41, %v228_v41  ;;  %v8029_v47 = vld [vmem:[#allocation4 + $0x8e0] ss:$16 sps:$4 sm:$0xff]   ;;  %v8091_v40 = vld [vmem:[#allocation4 + $0x9a4] ss:$16 sps:$4 sm:$0xff]  }
  0xa7   :  { %5187 = vmatprep.subr.bf16.mxu1 %v7968_v48  ;;  %v8032_v48 = vld [vmem:[#allocation4 + $0xae0] ss:$16 sps:$4 sm:$0xff]   ;;  %v8094_v41 = vld [vmem:[#allocation4 + $0xba4] ss:$16 sps:$4 sm:$0xff]  }
  0xa8   :  { %v8115_v60 = vld [vmem:[#allocation4 + $0x924] ss:$16 sps:$4 sm:$0xff]  }
  0xa9   :  { %5147 = vmatpush1.bf16.msra.mxu0 %v7963_v49  ;;  %v8037_v49 = vld [vmem:[#allocation4 + $0x8c4] ss:$16 sps:$4 sm:$0xff]  }
  0xaa   :  { %5188 = vmatpush1.bf16.msra.mxu1 %v7966_v50  ;;  %5148 = vmatprep.subr.bf16.mxu0 %v7971_v51  ;;  %v8040_v50 = vld [vmem:[#allocation4 + $0xac4] ss:$16 sps:$4 sm:$0xff]   ;;  %v8035_v51 = vld [vmem:[#allocation4 + $0x8c0] ss:$16 sps:$4 sm:$0xff]  }
  0xab   :  { %5189 = vmatprep.subr.bf16.mxu1 %v7974_v52  ;;  %v8038_v52 = vld [vmem:[#allocation4 + $0xac0] ss:$16 sps:$4 sm:$0xff]   ;;  %v8118_v61 = vld [vmem:[#allocation4 + $0xb24] ss:$16 sps:$4 sm:$0xff]  }
  0xad   :  { %5149 = vmatpush1.bf16.msra.mxu0 %v7969_v58  ;;  %v8125_v58 = vld [vmem:[%s9743_s0 + $0x10] ss:$48 sps:$4 sm:$0xff]  }
  0xae   :  { %5190 = vmatpush1.bf16.msra.mxu1 %v7972_v59  ;;  %5150 = vmatprep.subr.bf16.mxu0 %v7977_v62  ;;  %v8127_v59 = vld [vmem:[%s9743_s0 + $0x70] ss:$48 sps:$4 sm:$0xff]   ;;  %v8049_v62 = vld [vmem:[#allocation4 + $0x884] ss:$16 sps:$4 sm:$0xff]   ;;  %v9460_v63 = vrot.slane %v8125_v58, %v9373_v53 }
  0xaf   :  { %5191 = vmatprep.subr.bf16.mxu1 %v7980_v1  ;;  %v9463_v1 = vrot.slane %v8127_v59, %v9373_v53  ;;  %v8107_v58 = vld [vmem:[#allocation4 + $0x940] ss:$16 sps:$4 sm:$0xff]  }
  0xb0   :  { %v8110_v59 = vld [vmem:[#allocation4 + $0xb40] ss:$16 sps:$4 sm:$0xff]  }
  0xb1   :  { %5151 = vmatpush2.bf16.msra.mxu0 %v7975_v4  ;;  %v8047_v4 = vld [vmem:[#allocation4 + $0x880] ss:$16 sps:$4 sm:$0xff]  }
  0xb2   :  { %5192 = vmatpush2.bf16.msra.mxu1 %v7978_v5  ;;  %5152 = vmatprep.subr.bf16.mxu0 %v7983_v8  ;;  %v8050_v5 = vld [vmem:[#allocation4 + $0xa80] ss:$16 sps:$4 sm:$0xff]   ;;  %v263_v8 = vcombine.high %v9460_v63, %v9463_v1 }
  0xb3   :  { %5193 = vmatprep.subr.bf16.mxu1 %v7986_v11  ;;  %v265_v11 = vcombine.high %v9466_v2, %v9469_v3 }
  0xb5   :  { %5153 = vmatpush2.bf16.msra.mxu0 %v7981_v12  ;;  %v8055_v12 = vld [vmem:[#allocation4 + $0x864] ss:$16 sps:$4 sm:$0xff]  }
  0xb6   :  { %5194 = vmatpush2.bf16.msra.mxu1 %v7984_v13  ;;  %5154 = vmatprep.subr.bf16.mxu0 %v7989_v14  ;;  %v8058_v13 = vld [vmem:[#allocation4 + $0xa64] ss:$16 sps:$4 sm:$0xff]   ;;  %v9475_v14 = vpack.c.bf16 %v263_v8, %v263_v8  ;;  %v8113_v8 = vld [vmem:[#allocation4 + $0x920] ss:$16 sps:$4 sm:$0xff]  }
  0xb7   :  { %5195 = vmatprep.subr.bf16.mxu1 %v7992_v15  ;;  %v9477_v15 = vpack.c.bf16 %v265_v11, %v265_v11  ;;  %v8116_v11 = vld [vmem:[#allocation4 + $0xb20] ss:$16 sps:$4 sm:$0xff]  }
  0xb9   :  { %5155 = vmatpush2.bf16.msra.mxu0 %v7987_v16  ;;  %v8053_v16 = vld [vmem:[#allocation4 + $0x860] ss:$16 sps:$4 sm:$0xff]  }
  0xba   :  { %5196 = vmatpush2.bf16.msra.mxu1 %v7990_v17  ;;  %5156 = vmatprep.subr.bf16.mxu0 %v7995_v18  ;;  %v8056_v17 = vld [vmem:[#allocation4 + $0xa60] ss:$16 sps:$4 sm:$0xff]   ;;  %v8061_v18 = vld [vmem:[#allocation4 + $0x844] ss:$16 sps:$4 sm:$0xff]  }
  0xbb   :  { %5197 = vmatprep.subr.bf16.mxu1 %v7998_v19  ;;  %v8064_v19 = vld [vmem:[#allocation4 + $0xa44] ss:$16 sps:$4 sm:$0xff]  }
  0xbd   :  { %5157 = vmatpush2.bf16.msra.mxu0 %v7993_v20  ;;  %v8059_v20 = vld [vmem:[#allocation4 + $0x840] ss:$16 sps:$4 sm:$0xff]  }
  0xbe   :  { %5198 = vmatpush2.bf16.msra.mxu1 %v7996_v21  ;;  %5158 = vmatprep.subr.bf16.mxu0 %v8001_v24  ;;  %v8062_v21 = vld [vmem:[#allocation4 + $0xa40] ss:$16 sps:$4 sm:$0xff]   ;;  %v8067_v24 = vld [vmem:[#allocation4 + $0x824] ss:$16 sps:$4 sm:$0xff]  }
  0xbf   :  { %5199 = vmatprep.subr.bf16.mxu1 %v8004_v25  ;;  %v8070_v25 = vld [vmem:[#allocation4 + $0xa24] ss:$16 sps:$4 sm:$0xff]  }
  0xc1   :  { %5159 = vmatpush2.bf16.msra.mxu0 %v7999_v26  ;;  %v8065_v26 = vld [vmem:[#allocation4 + $0x820] ss:$16 sps:$4 sm:$0xff]  }
  0xc2   :  { %5200 = vmatpush2.bf16.msra.mxu1 %v8002_v27  ;;  %5160 = vmatprep.subr.bf16.mxu0 %v8007_v28  ;;  %v8068_v27 = vld [vmem:[#allocation4 + $0xa20] ss:$16 sps:$4 sm:$0xff]   ;;  %v8073_v28 = vld [vmem:[#allocation4 + $0x804] ss:$16 sps:$4 sm:$0xff]  }
  0xc3   :  { %5201 = vmatprep.subr.bf16.mxu1 %v8010_v29  ;;  %v8076_v29 = vld [vmem:[#allocation4 + $0xa04] ss:$16 sps:$4 sm:$0xff]  }
  0xc5   :  { %5161 = vmatpush2.bf16.msra.mxu0 %v8005_v30  ;;  %v8071_v30 = vld [vmem:[#allocation4 + $0x800] ss:$16 sps:$4 sm:$0xff]  }
  0xc6   :  { %5202 = vmatpush2.bf16.msra.mxu1 %v8008_v31  ;;  %5162 = vmatprep.subr.bf16.mxu0 %v8013_v32  ;;  %v8074_v31 = vld [vmem:[#allocation4 + $0xa00] ss:$16 sps:$4 sm:$0xff]   ;;  %v8079_v32 = vld [vmem:[#allocation4 + $0x9e4] ss:$16 sps:$4 sm:$0xff]  }
  0xc7   :  { %5203 = vmatprep.subr.bf16.mxu1 %v8016_v33  ;;  %v8082_v33 = vld [vmem:[#allocation4 + $0xbe4] ss:$16 sps:$4 sm:$0xff]  }
  0xc9   :  { %5163 = vmatpush2.bf16.msra.mxu0 %v8011_v34  ;;  %v8077_v34 = vld [vmem:[#allocation4 + $0x9e0] ss:$16 sps:$4 sm:$0xff]  }
  0xca   :  { %5204 = vmatpush2.bf16.msra.mxu1 %v8014_v35  ;;  %5164 = vmatprep.subr.bf16.mxu0 %v8019_v36  ;;  %v8080_v35 = vld [vmem:[#allocation4 + $0xbe0] ss:$16 sps:$4 sm:$0xff]   ;;  %v8085_v36 = vld [vmem:[#allocation4 + $0x9c4] ss:$16 sps:$4 sm:$0xff]  }
  0xcb   :  { %5205 = vmatprep.subr.bf16.mxu1 %v8022_v37  ;;  %v8088_v37 = vld [vmem:[#allocation4 + $0xbc4] ss:$16 sps:$4 sm:$0xff]  }
  0xcd   :  { %5165 = vmatpush2.bf16.msra.mxu0 %v8017_v38  ;;  %v8083_v38 = vld [vmem:[#allocation4 + $0x9c0] ss:$16 sps:$4 sm:$0xff]  }
  0xce   :  { %5206 = vmatpush2.bf16.msra.mxu1 %v8020_v39  ;;  %5216 = vmatprep.subr.bf16.mxu0 %v8031_v42  ;;  %v8086_v39 = vld [vmem:[#allocation4 + $0xbc0] ss:$16 sps:$4 sm:$0xff]  }
  0xcf   :  { %5257 = vmatprep.subr.bf16.mxu1 %v8034_v43  ;;  %v8089_v42 = vld [vmem:[#allocation4 + $0x9a0] ss:$16 sps:$4 sm:$0xff]  }
  0xd0   :  { %5167 = vmatmul.mubr.bf16.vlgmr.msra.gmra.mxu0 %v9441_v44  ;;  %v8092_v43 = vld [vmem:[#allocation4 + $0xba0] ss:$16 sps:$4 sm:$0xff]  }
  0xd1   :  { %5208 = vmatmul.mubr.bf16.vlgmr.msra.gmra.mxu1 %v9443_v45  ;;  %5217 = vmatpush1.bf16.msra.mxu0 %v8029_v47  ;;  %v8097_v47 = vld [vmem:[#allocation4 + $0x984] ss:$16 sps:$4 sm:$0xff]  }
  0xd2   :  { %5258 = vmatpush1.bf16.msra.mxu1 %v8032_v48  ;;  %5218 = vmatprep.subr.bf16.mxu0 %v8037_v49  ;;  %v8100_v48 = vld [vmem:[#allocation4 + $0xb84] ss:$16 sps:$4 sm:$0xff]   ;;  %v8095_v49 = vld [vmem:[#allocation4 + $0x980] ss:$16 sps:$4 sm:$0xff]  }
  0xd3   :  { %5259 = vmatprep.subr.bf16.mxu1 %v8040_v50  ;;  %5248 = vmatprep.mubr.bf16.mxu0 %v9475_v14  ;;  %v8098_v50 = vld [vmem:[#allocation4 + $0xb80] ss:$16 sps:$4 sm:$0xff]  }
  0xd4   :  { %5289 = vmatprep.mubr.bf16.mxu1 %v9477_v15 }
  0xd5   :  { %5219 = vmatpush1.bf16.msra.mxu0 %v8035_v51  ;;  %v8103_v51 = vld [vmem:[#allocation4 + $0x964] ss:$16 sps:$4 sm:$0xff]  }
  0xd6   :  { %5260 = vmatpush1.bf16.msra.mxu1 %v8038_v52  ;;  %5220 = vmatprep.subr.bf16.mxu0 %v8043_v54  ;;  %v8106_v52 = vld [vmem:[#allocation4 + $0xb64] ss:$16 sps:$4 sm:$0xff]   ;;  %v8101_v54 = vld [vmem:[#allocation4 + $0x960] ss:$16 sps:$4 sm:$0xff]  }
  0xd7   :  { %5261 = vmatprep.subr.bf16.mxu1 %v8046_v55  ;;  %v8104_v55 = vld [vmem:[#allocation4 + $0xb60] ss:$16 sps:$4 sm:$0xff]  }
  0xd9   :  { %5221 = vmatpush1.bf16.msra.mxu0 %v8041_v56  ;;  %v8109_v56 = vld [vmem:[#allocation4 + $0x944] ss:$16 sps:$4 sm:$0xff]  }
  0xda   :  { %5262 = vmatpush1.bf16.msra.mxu1 %v8044_v57  ;;  %5222 = vmatprep.subr.bf16.mxu0 %v8049_v62  ;;  %v8112_v57 = vld [vmem:[#allocation4 + $0xb44] ss:$16 sps:$4 sm:$0xff]   ;;  %v8227_v62 = vld [vmem:[%s9743_s0 + $0x18] ss:$48 sps:$4 sm:$0xff]  }
  0xdb   :  { %5263 = vmatprep.subr.bf16.mxu1 %v8052_v0  ;;  %v8229_v0 = vld [vmem:[%s9743_s0 + $0x78] ss:$48 sps:$4 sm:$0xff]  }
  0xdd   :  { %5223 = vmatpush1.bf16.msra.mxu0 %v8047_v4  ;;  %v8231_v4 = vld [vmem:[%s9743_s0 + $0x1c] ss:$48 sps:$4 sm:$0xff]  }
  0xde   :  { %5264 = vmatpush1.bf16.msra.mxu1 %v8050_v5  ;;  %5224 = vmatprep.subr.bf16.mxu0 %v8055_v12  ;;  %v8232_v5 = vld [vmem:[%s9743_s0 + $0x7c] ss:$48 sps:$4 sm:$0xff]   ;;  %v8121_v12 = vld [vmem:[#allocation4 + $0x904] ss:$16 sps:$4 sm:$0xff]  }
  0xdf   :  { %5265 = vmatprep.subr.bf16.mxu1 %v8058_v13  ;;  %v8124_v13 = vld [vmem:[#allocation4 + $0xb04] ss:$16 sps:$4 sm:$0xff]  }
  0xe1   :  { %5225 = vmatpush1.bf16.msra.mxu0 %v8053_v16  ;;  %v9494_v16 = vrot.slane %v8227_v62, %v9373_v53  ;;  %v8173_v62 = vld [vmem:[#allocation4 + $0xc00] ss:$16 sps:$4 sm:$0xff]  }
  0xe2   :  { %5266 = vmatpush1.bf16.msra.mxu1 %v8056_v17  ;;  %5226 = vmatprep.subr.bf16.mxu0 %v8061_v18  ;;  %v9497_v17 = vrot.slane %v8229_v0, %v9373_v53  ;;  %v9500_v18 = vrot.slane %v8231_v4, %v9373_v53  ;;  %v8176_v0 = vld [vmem:[#allocation4 + $0xe00] ss:$16 sps:$4 sm:$0xff]   ;;  %v8181_v4 = vld [vmem:[#allocation4 + $0xde4] ss:$16 sps:$4 sm:$0xff]  }
  0xe3   :  { %5267 = vmatprep.subr.bf16.mxu1 %v8064_v19  ;;  %v9503_v19 = vrot.slane %v8232_v5, %v9373_v53  ;;  %v8184_v5 = vld [vmem:[#allocation4 + $0xfe4] ss:$16 sps:$4 sm:$0xff]  }
  0xe5   :  { %5227 = vmatpush1.bf16.msra.mxu0 %v8059_v20  ;;  %v8119_v20 = vld [vmem:[#allocation4 + $0x900] ss:$16 sps:$4 sm:$0xff]  }
  0xe6   :  { %5268 = vmatpush1.bf16.msra.mxu1 %v8062_v21  ;;  %5228 = vmatprep.subr.bf16.mxu0 %v8067_v24  ;;  %v262_v21 = vcombine.low %v9460_v63, %v9463_v1  ;;  %v264_v24 = vcombine.low %v9466_v2, %v9469_v3  ;;  %v8131_v63 = vld [vmem:[#allocation4 + $0xce0] ss:$16 sps:$4 sm:$0xff]   ;;  %v8139_v2 = vld [vmem:[#allocation4 + $0xcc4] ss:$16 sps:$4 sm:$0xff]  }
  0xe7   :  { %5269 = vmatprep.subr.bf16.mxu1 %v8070_v25  ;;  %v8122_v25 = vld [vmem:[#allocation4 + $0xb00] ss:$16 sps:$4 sm:$0xff]   ;;  %v8142_v3 = vld [vmem:[#allocation4 + $0xec4] ss:$16 sps:$4 sm:$0xff]  }
  0xe8   :  { %v8134_v1 = vld [vmem:[#allocation4 + $0xee0] ss:$16 sps:$4 sm:$0xff]  }
  0xe9   :  { %5229 = vmatpush1.bf16.msra.mxu0 %v8065_v26  ;;  %v8133_v26 = vld [vmem:[#allocation4 + $0xce4] ss:$16 sps:$4 sm:$0xff]  }
  0xea   :  { %5270 = vmatpush1.bf16.msra.mxu1 %v8068_v27  ;;  %5230 = vmatprep.subr.bf16.mxu0 %v8073_v28  ;;  %v8136_v27 = vld [vmem:[#allocation4 + $0xee4] ss:$16 sps:$4 sm:$0xff]   ;;  %v299_v28 = vcombine.high %v9494_v16, %v9497_v17 }
  0xeb   :  { %5271 = vmatprep.subr.bf16.mxu1 %v8076_v29  ;;  %v301_v29 = vcombine.high %v9500_v18, %v9503_v19 }
  0xed   :  { %5231 = vmatpush1.bf16.msra.mxu0 %v8071_v30  ;;  %v9513_v30 = vpack.c.bf16 %v262_v21, %v262_v21  ;;  %v8188_v21 = vld [vmem:[#allocation4 + $0xfc0] ss:$16 sps:$4 sm:$0xff]  }
  0xee   :  { %5272 = vmatpush1.bf16.msra.mxu1 %v8074_v31  ;;  %5232 = vmatprep.subr.bf16.mxu0 %v8079_v32  ;;  %v9515_v31 = vpack.c.bf16 %v264_v24, %v264_v24  ;;  %v9517_v32 = vpack.c.bf16 %v299_v28, %v299_v28  ;;  %v8193_v24 = vld [vmem:[#allocation4 + $0xda4] ss:$16 sps:$4 sm:$0xff]  }
  0xef   :  { %5273 = vmatprep.subr.bf16.mxu1 %v8082_v33  ;;  %v9519_v33 = vpack.c.bf16 %v301_v29, %v301_v29  ;;  %v8199_v28 = vld [vmem:[#allocation4 + $0xd84] ss:$16 sps:$4 sm:$0xff]  }
  0xf0   :  { %v8202_v29 = vld [vmem:[#allocation4 + $0xf84] ss:$16 sps:$4 sm:$0xff]  }
  0xf1   :  { %5233 = vmatpush2.bf16.msra.mxu0 %v8077_v34  ;;  %v8137_v34 = vld [vmem:[#allocation4 + $0xcc0] ss:$16 sps:$4 sm:$0xff]  }
  0xf2   :  { %5274 = vmatpush2.bf16.msra.mxu1 %v8080_v35  ;;  %5234 = vmatprep.subr.bf16.mxu0 %v8085_v36  ;;  %v8140_v35 = vld [vmem:[#allocation4 + $0xec0] ss:$16 sps:$4 sm:$0xff]   ;;  %v8145_v36 = vld [vmem:[#allocation4 + $0xca4] ss:$16 sps:$4 sm:$0xff]  }
  0xf3   :  { %5275 = vmatprep.subr.bf16.mxu1 %v8088_v37  ;;  %v8148_v37 = vld [vmem:[#allocation4 + $0xea4] ss:$16 sps:$4 sm:$0xff]  }
  0xf5   :  { %5235 = vmatpush2.bf16.msra.mxu0 %v8083_v38  ;;  %v8143_v38 = vld [vmem:[#allocation4 + $0xca0] ss:$16 sps:$4 sm:$0xff]  }
  0xf6   :  { %5276 = vmatpush2.bf16.msra.mxu1 %v8086_v39  ;;  %5236 = vmatprep.subr.bf16.mxu0 %v8091_v40  ;;  %v8146_v39 = vld [vmem:[#allocation4 + $0xea0] ss:$16 sps:$4 sm:$0xff]   ;;  %v8151_v40 = vld [vmem:[#allocation4 + $0xc84] ss:$16 sps:$4 sm:$0xff]  }
  0xf7   :  { %5277 = vmatprep.subr.bf16.mxu1 %v8094_v41  ;;  %v8154_v41 = vld [vmem:[#allocation4 + $0xe84] ss:$16 sps:$4 sm:$0xff]  }
  0xf9   :  { %5237 = vmatpush2.bf16.msra.mxu0 %v8089_v42  ;;  %v8149_v42 = vld [vmem:[#allocation4 + $0xc80] ss:$16 sps:$4 sm:$0xff]  }
  0xfa   :  { %5278 = vmatpush2.bf16.msra.mxu1 %v8092_v43  ;;  %5238 = vmatprep.subr.bf16.mxu0 %v8097_v47  ;;  %v8152_v43 = vld [vmem:[#allocation4 + $0xe80] ss:$16 sps:$4 sm:$0xff]   ;;  %v8157_v47 = vld [vmem:[#allocation4 + $0xc64] ss:$16 sps:$4 sm:$0xff]  }
  0xfb   :  { %5279 = vmatprep.subr.bf16.mxu1 %v8100_v48  ;;  %v8160_v48 = vld [vmem:[#allocation4 + $0xe64] ss:$16 sps:$4 sm:$0xff]  }
  0xfd   :  { %5239 = vmatpush2.bf16.msra.mxu0 %v8095_v49  ;;  %v8155_v49 = vld [vmem:[#allocation4 + $0xc60] ss:$16 sps:$4 sm:$0xff]  }
  0xfe   :  { %5280 = vmatpush2.bf16.msra.mxu1 %v8098_v50  ;;  %5240 = vmatprep.subr.bf16.mxu0 %v8103_v51  ;;  %v8158_v50 = vld [vmem:[#allocation4 + $0xe60] ss:$16 sps:$4 sm:$0xff]   ;;  %v8163_v51 = vld [vmem:[#allocation4 + $0xc44] ss:$16 sps:$4 sm:$0xff]  }
  0xff   :  { %5281 = vmatprep.subr.bf16.mxu1 %v8106_v52  ;;  %v8166_v52 = vld [vmem:[#allocation4 + $0xe44] ss:$16 sps:$4 sm:$0xff]  }
 0x101   :  { %5241 = vmatpush2.bf16.msra.mxu0 %v8101_v54  ;;  %v8161_v54 = vld [vmem:[#allocation4 + $0xc40] ss:$16 sps:$4 sm:$0xff]  }
 0x102   :  { %5282 = vmatpush2.bf16.msra.mxu1 %v8104_v55  ;;  %5242 = vmatprep.subr.bf16.mxu0 %v8109_v56  ;;  %v8164_v55 = vld [vmem:[#allocation4 + $0xe40] ss:$16 sps:$4 sm:$0xff]   ;;  %v8169_v56 = vld [vmem:[#allocation4 + $0xc24] ss:$16 sps:$4 sm:$0xff]  }
 0x103   :  { %5283 = vmatprep.subr.bf16.mxu1 %v8112_v57  ;;  %v8172_v57 = vld [vmem:[#allocation4 + $0xe24] ss:$16 sps:$4 sm:$0xff]  }
 0x105   :  { %5243 = vmatpush2.bf16.msra.mxu0 %v8107_v58  ;;  %v8167_v58 = vld [vmem:[#allocation4 + $0xc20] ss:$16 sps:$4 sm:$0xff]  }
 0x106   :  { %5284 = vmatpush2.bf16.msra.mxu1 %v8110_v59  ;;  %5244 = vmatprep.subr.bf16.mxu0 %v8115_v60  ;;  %v8170_v59 = vld [vmem:[#allocation4 + $0xe20] ss:$16 sps:$4 sm:$0xff]   ;;  %v8175_v60 = vld [vmem:[#allocation4 + $0xc04] ss:$16 sps:$4 sm:$0xff]  }
 0x107   :  { %5285 = vmatprep.subr.bf16.mxu1 %v8118_v61  ;;  %v8178_v61 = vld [vmem:[#allocation4 + $0xe04] ss:$16 sps:$4 sm:$0xff]  }
 0x109   :  { %5245 = vmatpush2.bf16.msra.mxu0 %v8113_v8  ;;  %v8179_v8 = vld [vmem:[#allocation4 + $0xde0] ss:$16 sps:$4 sm:$0xff]  }
 0x10a   :  { %5286 = vmatpush2.bf16.msra.mxu1 %v8116_v11  ;;  %5246 = vmatprep.subr.bf16.mxu0 %v8121_v12  ;;  %v8182_v11 = vld [vmem:[#allocation4 + $0xfe0] ss:$16 sps:$4 sm:$0xff]   ;;  %v8187_v12 = vld [vmem:[#allocation4 + $0xdc4] ss:$16 sps:$4 sm:$0xff]  }
 0x10b   :  { %5287 = vmatprep.subr.bf16.mxu1 %v8124_v13  ;;  %v8190_v13 = vld [vmem:[#allocation4 + $0xfc4] ss:$16 sps:$4 sm:$0xff]  }
 0x10d   :  { %5247 = vmatpush2.bf16.msra.mxu0 %v8119_v20  ;;  %v8185_v20 = vld [vmem:[#allocation4 + $0xdc0] ss:$16 sps:$4 sm:$0xff]  }
 0x10e   :  { %5288 = vmatpush2.bf16.msra.mxu1 %v8122_v25  ;;  %5298 = vmatprep.subr.bf16.mxu0 %v8133_v26  ;;  %v8196_v25 = vld [vmem:[#allocation4 + $0xfa4] ss:$16 sps:$4 sm:$0xff]   ;;  %v8191_v26 = vld [vmem:[#allocation4 + $0xda0] ss:$16 sps:$4 sm:$0xff]  }
 0x10f   :  { %5339 = vmatprep.subr.bf16.mxu1 %v8136_v27  ;;  %v8194_v27 = vld [vmem:[#allocation4 + $0xfa0] ss:$16 sps:$4 sm:$0xff]  }
 0x110   :  { %5249 = vmatmul.mubr.bf16.vlgmr.msra.gmra.mxu0 %v9513_v30 }
 0x111   :  { %5290 = vmatmul.mubr.bf16.vlgmr.msra.gmra.mxu1 %v9515_v31  ;;  %5299 = vmatpush1.bf16.msra.mxu0 %v8131_v63  ;;  %v8197_v63 = vld [vmem:[#allocation4 + $0xd80] ss:$16 sps:$4 sm:$0xff]  }
 0x112   :  { %5340 = vmatpush1.bf16.msra.mxu1 %v8134_v1  ;;  %5300 = vmatprep.subr.bf16.mxu0 %v8139_v2  ;;  %v8200_v1 = vld [vmem:[#allocation4 + $0xf80] ss:$16 sps:$4 sm:$0xff]   ;;  %v8205_v2 = vld [vmem:[#allocation4 + $0xd64] ss:$16 sps:$4 sm:$0xff]  }
 0x113   :  { %5341 = vmatprep.subr.bf16.mxu1 %v8142_v3  ;;  %5330 = vmatprep.mubr.bf16.mxu0 %v9517_v32  ;;  %v8208_v3 = vld [vmem:[#allocation4 + $0xf64] ss:$16 sps:$4 sm:$0xff]  }
 0x114   :  { %5371 = vmatprep.mubr.bf16.mxu1 %v9519_v33 }
 0x115   :  { %5301 = vmatpush1.bf16.msra.mxu0 %v8137_v34  ;;  %v8203_v34 = vld [vmem:[#allocation4 + $0xd60] ss:$16 sps:$4 sm:$0xff]  }
 0x116   :  { %5342 = vmatpush1.bf16.msra.mxu1 %v8140_v35  ;;  %5302 = vmatprep.subr.bf16.mxu0 %v8145_v36  ;;  %v8206_v35 = vld [vmem:[#allocation4 + $0xf60] ss:$16 sps:$4 sm:$0xff]   ;;  %v8211_v36 = vld [vmem:[#allocation4 + $0xd44] ss:$16 sps:$4 sm:$0xff]  }
 0x117   :  { %5343 = vmatprep.subr.bf16.mxu1 %v8148_v37  ;;  %v8214_v37 = vld [vmem:[#allocation4 + $0xf44] ss:$16 sps:$4 sm:$0xff]  }
 0x119   :  { %5303 = vmatpush1.bf16.msra.mxu0 %v8143_v38  ;;  %v8209_v38 = vld [vmem:[#allocation4 + $0xd40] ss:$16 sps:$4 sm:$0xff]  }
 0x11a   :  { %5344 = vmatpush1.bf16.msra.mxu1 %v8146_v39  ;;  %5304 = vmatprep.subr.bf16.mxu0 %v8151_v40  ;;  %v8212_v39 = vld [vmem:[#allocation4 + $0xf40] ss:$16 sps:$4 sm:$0xff]   ;;  %v8217_v40 = vld [vmem:[#allocation4 + $0xd24] ss:$16 sps:$4 sm:$0xff]  }
 0x11b   :  { %5345 = vmatprep.subr.bf16.mxu1 %v8154_v41  ;;  %v8220_v41 = vld [vmem:[#allocation4 + $0xf24] ss:$16 sps:$4 sm:$0xff]  }
 0x11d   :  { %5305 = vmatpush1.bf16.msra.mxu0 %v8149_v42  ;;  %v8329_v42 = vld [vmem:[%s9743_s0 + $0x20] ss:$48 sps:$4 sm:$0xff]  }
 0x11e   :  { %5346 = vmatpush1.bf16.msra.mxu1 %v8152_v43  ;;  %5306 = vmatprep.subr.bf16.mxu0 %v8157_v47  ;;  %v8331_v43 = vld [vmem:[%s9743_s0 + $0x80] ss:$48 sps:$4 sm:$0xff]   ;;  %v8333_v47 = vld [vmem:[%s9743_s0 + $0x24] ss:$48 sps:$4 sm:$0xff]  }
 0x11f   :  { %5347 = vmatprep.subr.bf16.mxu1 %v8160_v48  ;;  %v8334_v48 = vld [vmem:[%s9743_s0 + $0x84] ss:$48 sps:$4 sm:$0xff]  }
 0x121   :  { %5307 = vmatpush1.bf16.msra.mxu0 %v8155_v49  ;;  %v8215_v49 = vld [vmem:[#allocation4 + $0xd20] ss:$16 sps:$4 sm:$0xff]  }
 0x122   :  { %5348 = vmatpush1.bf16.msra.mxu1 %v8158_v50  ;;  %5308 = vmatprep.subr.bf16.mxu0 %v8163_v51  ;;  %v8218_v50 = vld [vmem:[#allocation4 + $0xf20] ss:$16 sps:$4 sm:$0xff]   ;;  %v8223_v51 = vld [vmem:[#allocation4 + $0xd04] ss:$16 sps:$4 sm:$0xff]  }
 0x123   :  { %5349 = vmatprep.subr.bf16.mxu1 %v8166_v52  ;;  %v8226_v52 = vld [vmem:[#allocation4 + $0xf04] ss:$16 sps:$4 sm:$0xff]  }
 0x125   :  { %5309 = vmatpush1.bf16.msra.mxu0 %v8161_v54  ;;  %v8221_v54 = vld [vmem:[#allocation4 + $0xd00] ss:$16 sps:$4 sm:$0xff]  }
 0x126   :  { %5350 = vmatpush1.bf16.msra.mxu1 %v8164_v55  ;;  %5310 = vmatprep.subr.bf16.mxu0 %v8169_v56  ;;  %v9538_v55 = vrot.slane %v8329_v42, %v9373_v53  ;;  %v9541_v56 = vrot.slane %v8331_v43, %v9373_v53  ;;  %v8248_v42 = vld [vmem:[#allocation4 + $0x12a0] ss:$16 sps:$4 sm:$0xff]  }
 0x127   :  { %5351 = vmatprep.subr.bf16.mxu1 %v8172_v57  ;;  %v9544_v57 = vrot.slane %v8333_v47, %v9373_v53 }
 0x129   :  { %5311 = vmatpush1.bf16.msra.mxu0 %v8167_v58  ;;  %v9547_v58 = vrot.slane %v8334_v48, %v9373_v53  ;;  %v8253_v48 = vld [vmem:[#allocation4 + $0x1084] ss:$16 sps:$4 sm:$0xff]  }
 0x12a   :  { %5352 = vmatpush1.bf16.msra.mxu1 %v8170_v59  ;;  %5312 = vmatprep.subr.bf16.mxu0 %v8175_v60  ;;  %v8224_v59 = vld [vmem:[#allocation4 + $0xf00] ss:$16 sps:$4 sm:$0xff]   ;;  %v298_v60 = vcombine.low %v9494_v16, %v9497_v17 }
 0x12b   :  { %5353 = vmatprep.subr.bf16.mxu1 %v8178_v61  ;;  %v300_v61 = vcombine.low %v9500_v18, %v9503_v19  ;;  %v337_v16 = vcombine.high %v9544_v57, %v9547_v58  ;;  %v8233_v19 = vld [vmem:[#allocation4 + $0x10e0] ss:$16 sps:$4 sm:$0xff]  }
 0x12c   :  { %v9559_v17 = vpack.c.bf16 %v298_v60, %v298_v60  ;;  %v8260_v60 = vld [vmem:[#allocation4 + $0x1260] ss:$16 sps:$4 sm:$0xff]  }
 0x12d   :  { %5313 = vmatpush1.bf16.msra.mxu0 %v8173_v62  ;;  %v1190_v62 = vld [vmem:[#allocation7] sm:$0xf]  ;;  %v9561_v18 = vpack.c.bf16 %v300_v61, %v300_v61  ;;  %v8265_v61 = vld [vmem:[#allocation4 + $0x1044] ss:$16 sps:$4 sm:$0xff]  }
 0x12e   :  { %5354 = vmatpush1.bf16.msra.mxu1 %v8176_v0  ;;  %5314 = vmatprep.subr.bf16.mxu0 %v8181_v4  ;;  %v1194_v0 = vsub.s32 0, %v9370_v46  ;;  %v8235_v4 = vld [vmem:[#allocation4 + $0x10e4] ss:$16 sps:$4 sm:$0xff]  }
 0x12f   :  { %5355 = vmatprep.subr.bf16.mxu1 %v8184_v5  ;;  %v8238_v5 = vld [vmem:[#allocation4 + $0x12e4] ss:$16 sps:$4 sm:$0xff]  }
 0x131   :  { %5315 = vmatpush2.bf16.msra.mxu0 %v8179_v8  ;;  %v1198_v8 = vsub.s32 1, %v9370_v46 }
 0x132   :  { %5356 = vmatpush2.bf16.msra.mxu1 %v8182_v11  ;;  %5316 = vmatprep.subr.bf16.mxu0 %v8187_v12  ;;  %v335_v11 = vcombine.high %v9538_v55, %v9541_v56  ;;  %v1195_v12 = vrot.slane %v1190_v62, %v1194_v0 }
 0x133   :  { %5357 = vmatprep.subr.bf16.mxu1 %v8190_v13  ;;  %v8236_v13 = vld [vmem:[#allocation4 + $0x12e0] ss:$16 sps:$4 sm:$0xff]  }
 0x135   :  { %5317 = vmatpush2.bf16.msra.mxu0 %v8185_v20  ;;  %v8241_v20 = vld [vmem:[#allocation4 + $0x10c4] ss:$16 sps:$4 sm:$0xff]  }
 0x136   :  { %5358 = vmatpush2.bf16.msra.mxu1 %v8188_v21  ;;  %5318 = vmatprep.subr.bf16.mxu0 %v8193_v24  ;;  %v8244_v21 = vld [vmem:[#allocation4 + $0x12c4] ss:$16 sps:$4 sm:$0xff]   ;;  %v1199_v24 = vrot.slane %v1190_v62, %v1198_v8 }
 0x137   :  { %5359 = vmatprep.subr.bf16.mxu1 %v8196_v25  ;;  %v9567_v25 = vpack.c.bf16 %v335_v11, %v335_v11  ;;  %v8268_v62 = vld [vmem:[#allocation4 + $0x1244] ss:$16 sps:$4 sm:$0xff]  }
 0x138   :  { %v8271_v11 = vld [vmem:[#allocation4 + $0x1024] ss:$16 sps:$4 sm:$0xff]  }
 0x139   :  { %5319 = vmatpush2.bf16.msra.mxu0 %v8191_v26  ;;  %v9569_v26 = vpack.c.bf16 %v337_v16, %v337_v16  ;;  %v8274_v16 = vld [vmem:[#allocation4 + $0x1224] ss:$16 sps:$4 sm:$0xff]  }
 0x13a   :  { %5360 = vmatpush2.bf16.msra.mxu1 %v8194_v27  ;;  %5320 = vmatprep.subr.bf16.mxu0 %v8199_v28 }
 0x13b   :  { %5361 = vmatprep.subr.bf16.mxu1 %v8202_v29  ;;  %v8239_v29 = vld [vmem:[#allocation4 + $0x10c0] ss:$16 sps:$4 sm:$0xff]  }
 0x13d   :  { %5321 = vmatpush2.bf16.msra.mxu0 %v8197_v63 }
 0x13e   :  { %5362 = vmatpush2.bf16.msra.mxu1 %v8200_v1  ;;  %5322 = vmatprep.subr.bf16.mxu0 %v8205_v2  ;;  %v8242_v1 = vld [vmem:[#allocation4 + $0x12c0] ss:$16 sps:$4 sm:$0xff]  }
 0x13f   :  { %5363 = vmatprep.subr.bf16.mxu1 %v8208_v3 }
 0x141   :  { %5323 = vmatpush2.bf16.msra.mxu0 %v8203_v34  ;;  %v8247_v34 = vld [vmem:[#allocation4 + $0x10a4] ss:$16 sps:$4 sm:$0xff]  }
 0x142   :  { %5364 = vmatpush2.bf16.msra.mxu1 %v8206_v35  ;;  %5324 = vmatprep.subr.bf16.mxu0 %v8211_v36  ;;  %v8250_v35 = vld [vmem:[#allocation4 + $0x12a4] ss:$16 sps:$4 sm:$0xff]  }
 0x143   :  { %5365 = vmatprep.subr.bf16.mxu1 %v8214_v37 }
 0x145   :  { %5325 = vmatpush2.bf16.msra.mxu0 %v8209_v38 }
 0x146   :  { %5366 = vmatpush2.bf16.msra.mxu1 %v8212_v39  ;;  %5326 = vmatprep.subr.bf16.mxu0 %v8217_v40  ;;  %v8245_v40 = vld [vmem:[#allocation4 + $0x10a0] ss:$16 sps:$4 sm:$0xff]  }
 0x147   :  { %5367 = vmatprep.subr.bf16.mxu1 %v8220_v41 }
 0x149   :  { %5327 = vmatpush2.bf16.msra.mxu0 %v8215_v49  ;;  %v8256_v49 = vld [vmem:[#allocation4 + $0x1284] ss:$16 sps:$4 sm:$0xff]  }
 0x14a   :  { %5368 = vmatpush2.bf16.msra.mxu1 %v8218_v50  ;;  %5328 = vmatprep.subr.bf16.mxu0 %v8223_v51  ;;  %v8251_v50 = vld [vmem:[#allocation4 + $0x1080] ss:$16 sps:$4 sm:$0xff]  }
 0x14b   :  { %5369 = vmatprep.subr.bf16.mxu1 %v8226_v52  ;;  %v8254_v51 = vld [vmem:[#allocation4 + $0x1280] ss:$16 sps:$4 sm:$0xff]   ;;  %v8259_v52 = vld [vmem:[#allocation4 + $0x1064] ss:$16 sps:$4 sm:$0xff]  }
 0x14d   :  { %5329 = vmatpush2.bf16.msra.mxu0 %v8221_v54  ;;  %v8262_v54 = vld [vmem:[#allocation4 + $0x1264] ss:$16 sps:$4 sm:$0xff]  }
 0x14e   :  { %5370 = vmatpush2.bf16.msra.mxu1 %v8224_v59  ;;  %5380 = vmatprep.subr.bf16.mxu0 %v8235_v4  ;;  %v8257_v59 = vld [vmem:[#allocation4 + $0x1060] ss:$16 sps:$4 sm:$0xff]  }
 0x14f   :  { %5421 = vmatprep.subr.bf16.mxu1 %v8238_v5  ;;  %v8263_v4 = vld [vmem:[#allocation4 + $0x1040] ss:$16 sps:$4 sm:$0xff]  }
 0x150   :  { %v5086_v27 = vpop.f32.mrf.mxu0  ;;  %5331 = vmatmul.mubr.bf16.vlgmr.msra.gmra.mxu0 %v9559_v17  ;;  %v8266_v5 = vld [vmem:[#allocation4 + $0x1240] ss:$16 sps:$4 sm:$0xff]  }
 0x151   :  { %v5127_v28 = vpop.f32.mrf.mxu1  ;;  %5372 = vmatmul.mubr.bf16.vlgmr.msra.gmra.mxu1 %v9561_v18  ;;  %v5087_v63 = vadd.f32 %v5086_v27, %v1195_v12  ;;  %5381 = vmatpush1.bf16.msra.mxu0 %v8233_v19  ;;  %v8269_v19 = vld [vmem:[#allocation4 + $0x1020] ss:$16 sps:$4 sm:$0xff]   ;;  %v8283_v27 = vld [vmem:[#allocation4 + $0x11e4] ss:$16 sps:$4 sm:$0xff]  }
 0x152   :  { %5422 = vmatpush1.bf16.msra.mxu1 %v8236_v13  ;;  %v5088_v2 = vpop.f32.mrf.mxu0  ;;  %5382 = vmatprep.subr.bf16.mxu0 %v8241_v20  ;;  %v8272_v12 = vld [vmem:[#allocation4 + $0x1220] ss:$16 sps:$4 sm:$0xff]   ;;  %v8277_v13 = vld [vmem:[#allocation4 + $0x1004] ss:$16 sps:$4 sm:$0xff]  }
 0x153   :  { %v5129_v3 = vpop.f32.mrf.mxu1  ;;  %5423 = vmatprep.subr.bf16.mxu1 %v8244_v21  ;;  %v9573_v36 = vadd.f32 %v5127_v28, %v5087_v63  ;;  %v5089_v37 = vadd.f32 %v5088_v2, %v1199_v24  ;;  %5412 = vmatprep.mubr.bf16.mxu0 %v9567_v25  ;;  %v8280_v20 = vld [vmem:[#allocation4 + $0x1204] ss:$16 sps:$4 sm:$0xff]   ;;  %v8275_v21 = vld [vmem:[#allocation4 + $0x1000] ss:$16 sps:$4 sm:$0xff]  }
 0x154   :  { %5453 = vmatprep.mubr.bf16.mxu1 %v9569_v26  ;;  %v5090_v38 = vpop.f32.mrf.mxu0  ;;  %v8278_v24 = vld [vmem:[#allocation4 + $0x1200] ss:$16 sps:$4 sm:$0xff]   ;;  %v8286_v28 = vld [vmem:[#allocation4 + $0x13e4] ss:$16 sps:$4 sm:$0xff]  }
 0x155   :  { %v5131_v39 = vpop.f32.mrf.mxu1  ;;  %v9577_v41 = vadd.f32 %v5129_v3, %v5089_v37  ;;  %5383 = vmatpush1.bf16.msra.mxu0 %v8239_v29  ;;  %v8281_v29 = vld [vmem:[#allocation4 + $0x11e0] ss:$16 sps:$4 sm:$0xff]   ;;  %v8292_v2 = vld [vmem:[#allocation4 + $0x13c4] ss:$16 sps:$4 sm:$0xff]  }
 0x156   :  { %5424 = vmatpush1.bf16.msra.mxu1 %v8242_v1  ;;  %v5091_v43 = vpop.f32.mrf.mxu0  ;;  %5384 = vmatprep.subr.bf16.mxu0 %v8247_v34  ;;  %v8284_v63 = vld [vmem:[#allocation4 + $0x13e0] ss:$16 sps:$4 sm:$0xff]   ;;  %v8289_v1 = vld [vmem:[#allocation4 + $0x11c4] ss:$16 sps:$4 sm:$0xff]  }
 0x157   :  { %v5132_v47 = vpop.f32.mrf.mxu1  ;;  %5425 = vmatprep.subr.bf16.mxu1 %v8250_v35  ;;  %v8287_v3 = vld [vmem:[#allocation4 + $0x11c0] ss:$16 sps:$4 sm:$0xff]   ;;  %v8295_v35 = vld [vmem:[#allocation4 + $0x11a4] ss:$16 sps:$4 sm:$0xff]  }
 0x158   :  { %v8290_v34 = vld [vmem:[#allocation4 + $0x13c0] ss:$16 sps:$4 sm:$0xff]   ;;  %v8298_v37 = vld [vmem:[#allocation4 + $0x13a4] ss:$16 sps:$4 sm:$0xff]  }
 0x159   :  { %5385 = vmatpush1.bf16.msra.mxu0 %v8245_v40  ;;  %v8293_v38 = vld [vmem:[#allocation4 + $0x11a0] ss:$16 sps:$4 sm:$0xff]   ;;  %v8301_v40 = vld [vmem:[#allocation4 + $0x1184] ss:$16 sps:$4 sm:$0xff]  }
 0x15a   :  { %5426 = vmatpush1.bf16.msra.mxu1 %v8248_v42  ;;  %5386 = vmatprep.subr.bf16.mxu0 %v8253_v48  ;;  %v8296_v39 = vld [vmem:[#allocation4 + $0x13a0] ss:$16 sps:$4 sm:$0xff]   ;;  %v8304_v42 = vld [vmem:[#allocation4 + $0x1384] ss:$16 sps:$4 sm:$0xff]  }
 0x15b   :  { %5427 = vmatprep.subr.bf16.mxu1 %v8256_v49  ;;  %v8299_v43 = vld [vmem:[#allocation4 + $0x1180] ss:$16 sps:$4 sm:$0xff]   ;;  %v8307_v48 = vld [vmem:[#allocation4 + $0x1164] ss:$16 sps:$4 sm:$0xff]  }
 0x15c   :  { %v8302_v47 = vld [vmem:[#allocation4 + $0x1380] ss:$16 sps:$4 sm:$0xff]   ;;  %v8310_v49 = vld [vmem:[#allocation4 + $0x1364] ss:$16 sps:$4 sm:$0xff]  }
 0x15d   :  { %5387 = vmatpush1.bf16.msra.mxu0 %v8251_v50  ;;  %v8305_v50 = vld [vmem:[#allocation4 + $0x1160] ss:$16 sps:$4 sm:$0xff]  }
 0x15e   :  { %5428 = vmatpush1.bf16.msra.mxu1 %v8254_v51  ;;  %5388 = vmatprep.subr.bf16.mxu0 %v8259_v52  ;;  %v8308_v51 = vld [vmem:[#allocation4 + $0x1360] ss:$16 sps:$4 sm:$0xff]   ;;  %v8313_v52 = vld [vmem:[#allocation4 + $0x1144] ss:$16 sps:$4 sm:$0xff]  }
 0x15f   :  { %5429 = vmatprep.subr.bf16.mxu1 %v8262_v54  ;;  %v8316_v54 = vld [vmem:[#allocation4 + $0x1344] ss:$16 sps:$4 sm:$0xff]  }
 0x161   :  { %5389 = vmatpush1.bf16.msra.mxu0 %v8257_v59  ;;  %v8311_v59 = vld [vmem:[#allocation4 + $0x1140] ss:$16 sps:$4 sm:$0xff]  }
 0x162   :  { %5430 = vmatpush1.bf16.msra.mxu1 %v8260_v60  ;;  %5390 = vmatprep.subr.bf16.mxu0 %v8265_v61  ;;  %v8314_v60 = vld [vmem:[#allocation4 + $0x1340] ss:$16 sps:$4 sm:$0xff]   ;;  %v8319_v61 = vld [vmem:[#allocation4 + $0x1124] ss:$16 sps:$4 sm:$0xff]  }
 0x163   :  { %5431 = vmatprep.subr.bf16.mxu1 %v8268_v62  ;;  %v8322_v62 = vld [vmem:[#allocation4 + $0x1324] ss:$16 sps:$4 sm:$0xff]  }
 0x165   :  { %5391 = vmatpush1.bf16.msra.mxu0 %v8263_v4  ;;  %v8431_v4 = vld [vmem:[%s9743_s0 + $0x28] ss:$48 sps:$4 sm:$0xff]  }
 0x166   :  { %5432 = vmatpush1.bf16.msra.mxu1 %v8266_v5  ;;  %5392 = vmatprep.subr.bf16.mxu0 %v8271_v11  ;;  %v8433_v5 = vld [vmem:[%s9743_s0 + $0x88] ss:$48 sps:$4 sm:$0xff]   ;;  %v8435_v11 = vld [vmem:[%s9743_s0 + $0x2c] ss:$48 sps:$4 sm:$0xff]  }
 0x167   :  { %5433 = vmatprep.subr.bf16.mxu1 %v8274_v16  ;;  %v8436_v16 = vld [vmem:[%s9743_s0 + $0x8c] ss:$48 sps:$4 sm:$0xff]  }
 0x169   :  { %5393 = vmatpush1.bf16.msra.mxu0 %v8269_v19  ;;  %v8317_v19 = vld [vmem:[#allocation4 + $0x1120] ss:$16 sps:$4 sm:$0xff]  }
 0x16a   :  { %5434 = vmatpush1.bf16.msra.mxu1 %v8272_v12  ;;  %5394 = vmatprep.subr.bf16.mxu0 %v8277_v13  ;;  %v8320_v12 = vld [vmem:[#allocation4 + $0x1320] ss:$16 sps:$4 sm:$0xff]   ;;  %v8325_v13 = vld [vmem:[#allocation4 + $0x1104] ss:$16 sps:$4 sm:$0xff]  }
 0x16b   :  { %5435 = vmatprep.subr.bf16.mxu1 %v8280_v20  ;;  %v8328_v20 = vld [vmem:[#allocation4 + $0x1304] ss:$16 sps:$4 sm:$0xff]  }
 0x16d   :  { %5395 = vmatpush1.bf16.msra.mxu0 %v8275_v21  ;;  %v9592_v21 = vrot.slane %v8431_v4, %v9373_v53 }
 0x16e   :  { %5436 = vmatpush1.bf16.msra.mxu1 %v8278_v24  ;;  %5396 = vmatprep.subr.bf16.mxu0 %v8283_v27  ;;  %v9595_v24 = vrot.slane %v8433_v5, %v9373_v53  ;;  %v9598_v27 = vrot.slane %v8435_v11, %v9373_v53 }
 0x16f   :  { %5437 = vmatprep.subr.bf16.mxu1 %v8286_v28  ;;  %v9601_v28 = vrot.slane %v8436_v16, %v9373_v53 }
 0x170   :  { %v371_v53 = vcombine.high %v9592_v21, %v9595_v24 }
 0x171   :  { %5397 = vmatpush2.bf16.msra.mxu0 %v8281_v29  ;;  %v334_v29 = vcombine.low %v9538_v55, %v9541_v56 }
 0x172   :  { %5438 = vmatpush2.bf16.msra.mxu1 %v8284_v63  ;;  %5398 = vmatprep.subr.bf16.mxu0 %v8289_v1  ;;  %v336_v63 = vcombine.low %v9544_v57, %v9547_v58  ;;  %v8323_v1 = vld [vmem:[#allocation4 + $0x1100] ss:$16 sps:$4 sm:$0xff]   ;;  %v8343_v57 = vld [vmem:[#allocation4 + $0x14c4] ss:$16 sps:$4 sm:$0xff]  }
 0x173   :  { %5439 = vmatprep.subr.bf16.mxu1 %v8292_v2  ;;  %v8326_v2 = vld [vmem:[#allocation4 + $0x1300] ss:$16 sps:$4 sm:$0xff]   ;;  %v9611_v55 = vpack.c.bf16 %v334_v29, %v334_v29  ;;  %v8346_v58 = vld [vmem:[#allocation4 + $0x16c4] ss:$16 sps:$4 sm:$0xff]  }
 0x174   :  { %v9613_v56 = vpack.c.bf16 %v336_v63, %v336_v63  ;;  %v8364_v29 = vld [vmem:[#allocation4 + $0x1664] ss:$16 sps:$4 sm:$0xff]   ;;  %v8359_v63 = vld [vmem:[#allocation4 + $0x1460] ss:$16 sps:$4 sm:$0xff]  }
 0x175   :  { %5399 = vmatpush2.bf16.msra.mxu0 %v8287_v3  ;;  %v8337_v3 = vld [vmem:[#allocation4 + $0x14e4] ss:$16 sps:$4 sm:$0xff]  }
 0x176   :  { %5440 = vmatpush2.bf16.msra.mxu1 %v8290_v34  ;;  %5400 = vmatprep.subr.bf16.mxu0 %v8295_v35  ;;  %v8340_v34 = vld [vmem:[#allocation4 + $0x16e4] ss:$16 sps:$4 sm:$0xff]   ;;  %v8335_v35 = vld [vmem:[#allocation4 + $0x14e0] ss:$16 sps:$4 sm:$0xff]  }
 0x177   :  { %5441 = vmatprep.subr.bf16.mxu1 %v8298_v37  ;;  %v8338_v37 = vld [vmem:[#allocation4 + $0x16e0] ss:$16 sps:$4 sm:$0xff]  }
 0x179   :  { %5401 = vmatpush2.bf16.msra.mxu0 %v8293_v38  ;;  %v373_v38 = vcombine.high %v9598_v27, %v9601_v28 }
 0x17a   :  { %5442 = vmatpush2.bf16.msra.mxu1 %v8296_v39  ;;  %5402 = vmatprep.subr.bf16.mxu0 %v8301_v40  ;;  %v8341_v39 = vld [vmem:[#allocation4 + $0x14c0] ss:$16 sps:$4 sm:$0xff]  }
 0x17b   :  { %5443 = vmatprep.subr.bf16.mxu1 %v8304_v42  ;;  %v8344_v40 = vld [vmem:[#allocation4 + $0x16c0] ss:$16 sps:$4 sm:$0xff]   ;;  %v9615_v42 = vpack.c.bf16 %v371_v53, %v371_v53  ;;  %v8376_v53 = vld [vmem:[#allocation4 + $0x1624] ss:$16 sps:$4 sm:$0xff]  }
 0x17d   :  { %5403 = vmatpush2.bf16.msra.mxu0 %v8299_v43  ;;  %v9617_v43 = vpack.c.bf16 %v373_v38, %v373_v38  ;;  %v8371_v38 = vld [vmem:[#allocation4 + $0x1420] ss:$16 sps:$4 sm:$0xff]  }
 0x17e   :  { %5444 = vmatpush2.bf16.msra.mxu1 %v8302_v47  ;;  %5404 = vmatprep.subr.bf16.mxu0 %v8307_v48 }
 0x17f   :  { %5445 = vmatprep.subr.bf16.mxu1 %v8310_v49 }
 0x181   :  { %5405 = vmatpush2.bf16.msra.mxu0 %v8305_v50 }
 0x182   :  { %5446 = vmatpush2.bf16.msra.mxu1 %v8308_v51  ;;  %5406 = vmatprep.subr.bf16.mxu0 %v8313_v52  ;;  %v8349_v52 = vld [vmem:[#allocation4 + $0x14a4] ss:$16 sps:$4 sm:$0xff]  }
 0x183   :  { %5447 = vmatprep.subr.bf16.mxu1 %v8316_v54  ;;  %v8352_v54 = vld [vmem:[#allocation4 + $0x16a4] ss:$16 sps:$4 sm:$0xff]  }
 0x185   :  { %5407 = vmatpush2.bf16.msra.mxu0 %v8311_v59 }
 0x186   :  { %5448 = vmatpush2.bf16.msra.mxu1 %v8314_v60  ;;  %5408 = vmatprep.subr.bf16.mxu0 %v8319_v61  ;;  %v8347_v61 = vld [vmem:[#allocation4 + $0x14a0] ss:$16 sps:$4 sm:$0xff]  }
 0x187   :  { %5449 = vmatprep.subr.bf16.mxu1 %v8322_v62  ;;  %v8350_v62 = vld [vmem:[#allocation4 + $0x16a0] ss:$16 sps:$4 sm:$0xff]  }
 0x189   :  { %5409 = vmatpush2.bf16.msra.mxu0 %v8317_v19  ;;  %v8355_v19 = vld [vmem:[#allocation4 + $0x1484] ss:$16 sps:$4 sm:$0xff]  }
 0x18a   :  { %5450 = vmatpush2.bf16.msra.mxu1 %v8320_v12  ;;  %5410 = vmatprep.subr.bf16.mxu0 %v8325_v13  ;;  %v8358_v12 = vld [vmem:[#allocation4 + $0x1684] ss:$16 sps:$4 sm:$0xff]   ;;  %v8356_v13 = vld [vmem:[#allocation4 + $0x1680] ss:$16 sps:$4 sm:$0xff]  }
 0x18b   :  { %5451 = vmatprep.subr.bf16.mxu1 %v8328_v20  ;;  %v8361_v20 = vld [vmem:[#allocation4 + $0x1464] ss:$16 sps:$4 sm:$0xff]  }
 0x18d   :  { %5411 = vmatpush2.bf16.msra.mxu0 %v8323_v1  ;;  %v8362_v1 = vld [vmem:[#allocation4 + $0x1660] ss:$16 sps:$4 sm:$0xff]  }
 0x18e   :  { %5452 = vmatpush2.bf16.msra.mxu1 %v8326_v2  ;;  %5462 = vmatprep.subr.bf16.mxu0 %v8337_v3  ;;  %v8367_v2 = vld [vmem:[#allocation4 + $0x1444] ss:$16 sps:$4 sm:$0xff]  }
 0x18f   :  { %5503 = vmatprep.subr.bf16.mxu1 %v8340_v34  ;;  %v8370_v3 = vld [vmem:[#allocation4 + $0x1644] ss:$16 sps:$4 sm:$0xff]   ;;  %v8365_v34 = vld [vmem:[#allocation4 + $0x1440] ss:$16 sps:$4 sm:$0xff]  }
 0x190   :  { %v5168_v47 = vpop.f32.mrf.mxu0  ;;  %5413 = vmatmul.mubr.bf16.vlgmr.msra.gmra.mxu0 %v9611_v55 }
 0x191   :  { %v5209_v48 = vpop.f32.mrf.mxu1  ;;  %5454 = vmatmul.mubr.bf16.vlgmr.msra.gmra.mxu1 %v9613_v56  ;;  %v5169_v49 = vadd.f32 %v5168_v47, %v9573_v36  ;;  %5463 = vmatpush1.bf16.msra.mxu0 %v8335_v35  ;;  %v8368_v35 = vld [vmem:[#allocation4 + $0x1640] ss:$16 sps:$4 sm:$0xff]  }
 0x192   :  { %5504 = vmatpush1.bf16.msra.mxu1 %v8338_v37  ;;  %v5170_v50 = vpop.f32.mrf.mxu0  ;;  %5464 = vmatprep.subr.bf16.mxu0 %v8343_v57  ;;  %v8373_v37 = vld [vmem:[#allocation4 + $0x1424] ss:$16 sps:$4 sm:$0xff]   ;;  %v8374_v57 = vld [vmem:[#allocation4 + $0x1620] ss:$16 sps:$4 sm:$0xff]  }
 0x193   :  { %v5211_v51 = vpop.f32.mrf.mxu1  ;;  %5505 = vmatprep.subr.bf16.mxu1 %v8346_v58  ;;  %v9622_v59 = vadd.f32 %v5209_v48, %v5169_v49  ;;  %v5171_v60 = vadd.f32 %v5170_v50, %v9577_v41  ;;  %5494 = vmatprep.mubr.bf16.mxu0 %v9615_v42  ;;  %v8353_v41 = vld [vmem:[#allocation4 + $0x1480] ss:$16 sps:$4 sm:$0xff]   ;;  %v8379_v58 = vld [vmem:[#allocation4 + $0x1404] ss:$16 sps:$4 sm:$0xff]  }
 0x194   :  { %5535 = vmatprep.mubr.bf16.mxu1 %v9617_v43  ;;  %v5172_v4 = vpop.f32.mrf.mxu0  ;;  %v8380_v47 = vld [vmem:[#allocation4 + $0x1600] ss:$16 sps:$4 sm:$0xff]   ;;  %v8385_v48 = vld [vmem:[#allocation4 + $0x15e4] ss:$16 sps:$4 sm:$0xff]  }
 0x195   :  { %v5213_v36 = vpop.f32.mrf.mxu1  ;;  %v9627_v5 = vadd.f32 %v5211_v51, %v5171_v60  ;;  %5465 = vmatpush1.bf16.msra.mxu0 %v8341_v39  ;;  %v8382_v39 = vld [vmem:[#allocation4 + $0x1604] ss:$16 sps:$4 sm:$0xff]   ;;  %v8383_v50 = vld [vmem:[#allocation4 + $0x15e0] ss:$16 sps:$4 sm:$0xff]  }
 0x196   :  { %5506 = vmatpush1.bf16.msra.mxu1 %v8344_v40  ;;  %v5173_v11 = vpop.f32.mrf.mxu0  ;;  %5466 = vmatprep.subr.bf16.mxu0 %v8349_v52  ;;  %v8377_v40 = vld [vmem:[#allocation4 + $0x1400] ss:$16 sps:$4 sm:$0xff]   ;;  %v8388_v49 = vld [vmem:[#allocation4 + $0x17e4] ss:$16 sps:$4 sm:$0xff]  }
 0x197   :  { %v5214_v16 = vpop.f32.mrf.mxu1  ;;  %5507 = vmatprep.subr.bf16.mxu1 %v8352_v54  ;;  %v8386_v51 = vld [vmem:[#allocation4 + $0x17e0] ss:$16 sps:$4 sm:$0xff]   ;;  %v8391_v52 = vld [vmem:[#allocation4 + $0x15c4] ss:$16 sps:$4 sm:$0xff]  }
 0x198   :  { %v8394_v54 = vld [vmem:[#allocation4 + $0x17c4] ss:$16 sps:$4 sm:$0xff]   ;;  %v8389_v60 = vld [vmem:[#allocation4 + $0x15c0] ss:$16 sps:$4 sm:$0xff]  }
 0x199   :  { %5467 = vmatpush1.bf16.msra.mxu0 %v8347_v61  ;;  %v8392_v61 = vld [vmem:[#allocation4 + $0x17c0] ss:$16 sps:$4 sm:$0xff]   ;;  %v8400_v4 = vld [vmem:[#allocation4 + $0x17a4] ss:$16 sps:$4 sm:$0xff]  }
 0x19a   :  { %5508 = vmatpush1.bf16.msra.mxu1 %v8350_v62  ;;  %5468 = vmatprep.subr.bf16.mxu0 %v8355_v19  ;;  %v8397_v62 = vld [vmem:[#allocation4 + $0x15a4] ss:$16 sps:$4 sm:$0xff]   ;;  %v8395_v36 = vld [vmem:[#allocation4 + $0x15a0] ss:$16 sps:$4 sm:$0xff]  }
 0x19b   :  { %5509 = vmatprep.subr.bf16.mxu1 %v8358_v12  ;;  %v8398_v11 = vld [vmem:[#allocation4 + $0x17a0] ss:$16 sps:$4 sm:$0xff]   ;;  %v8403_v16 = vld [vmem:[#allocation4 + $0x1584] ss:$16 sps:$4 sm:$0xff]  }
 0x19c   :  { %v8406_v19 = vld [vmem:[#allocation4 + $0x1784] ss:$16 sps:$4 sm:$0xff]   ;;  %v8401_v12 = vld [vmem:[#allocation4 + $0x1580] ss:$16 sps:$4 sm:$0xff]  }
 0x19d   :  { %5469 = vmatpush1.bf16.msra.mxu0 %v8353_v41  ;;  %v8404_v41 = vld [vmem:[#allocation4 + $0x1780] ss:$16 sps:$4 sm:$0xff]  }
 0x19e   :  { %5510 = vmatpush1.bf16.msra.mxu1 %v8356_v13  ;;  %5470 = vmatprep.subr.bf16.mxu0 %v8361_v20  ;;  %v8409_v13 = vld [vmem:[#allocation4 + $0x1564] ss:$16 sps:$4 sm:$0xff]  }
 0x19f   :  { %5511 = vmatprep.subr.bf16.mxu1 %v8364_v29  ;;  %v8412_v20 = vld [vmem:[#allocation4 + $0x1764] ss:$16 sps:$4 sm:$0xff]   ;;  %v8407_v29 = vld [vmem:[#allocation4 + $0x1560] ss:$16 sps:$4 sm:$0xff]  }
 0x1a1   :  { %5471 = vmatpush1.bf16.msra.mxu0 %v8359_v63  ;;  %v8410_v63 = vld [vmem:[#allocation4 + $0x1760] ss:$16 sps:$4 sm:$0xff]  }
 0x1a2   :  { %5512 = vmatpush1.bf16.msra.mxu1 %v8362_v1  ;;  %5472 = vmatprep.subr.bf16.mxu0 %v8367_v2  ;;  %v8415_v1 = vld [vmem:[#allocation4 + $0x1544] ss:$16 sps:$4 sm:$0xff]  }
 0x1a3   :  { %5513 = vmatprep.subr.bf16.mxu1 %v8370_v3  ;;  %v8418_v2 = vld [vmem:[#allocation4 + $0x1744] ss:$16 sps:$4 sm:$0xff]   ;;  %v8413_v3 = vld [vmem:[#allocation4 + $0x1540] ss:$16 sps:$4 sm:$0xff]  }
 0x1a5   :  { %5473 = vmatpush1.bf16.msra.mxu0 %v8365_v34  ;;  %v8416_v34 = vld [vmem:[#allocation4 + $0x1740] ss:$16 sps:$4 sm:$0xff]  }
 0x1a6   :  { %5514 = vmatpush1.bf16.msra.mxu1 %v8368_v35  ;;  %5474 = vmatprep.subr.bf16.mxu0 %v8373_v37  ;;  %v8421_v35 = vld [vmem:[#allocation4 + $0x1524] ss:$16 sps:$4 sm:$0xff]  }
 0x1a7   :  { %5515 = vmatprep.subr.bf16.mxu1 %v8376_v53  ;;  %v8424_v37 = vld [vmem:[#allocation4 + $0x1724] ss:$16 sps:$4 sm:$0xff]   ;;  %v8419_v53 = vld [vmem:[#allocation4 + $0x1520] ss:$16 sps:$4 sm:$0xff]  }
 0x1a9   :  { %5475 = vmatpush1.bf16.msra.mxu0 %v8371_v38  ;;  %v8422_v38 = vld [vmem:[#allocation4 + $0x1720] ss:$16 sps:$4 sm:$0xff]  }
 0x1aa   :  { %5516 = vmatpush1.bf16.msra.mxu1 %v8374_v57  ;;  %5476 = vmatprep.subr.bf16.mxu0 %v8379_v58  ;;  %v8427_v57 = vld [vmem:[#allocation4 + $0x1504] ss:$16 sps:$4 sm:$0xff]  }
 0x1ab   :  { %5517 = vmatprep.subr.bf16.mxu1 %v8382_v39  ;;  %v8430_v58 = vld [vmem:[#allocation4 + $0x1704] ss:$16 sps:$4 sm:$0xff]   ;;  %v370_v39 = vcombine.low %v9592_v21, %v9595_v24  ;;  %v8445_v21 = vld [vmem:[#allocation4 + $0xcc] ss:$16 sps:$4 sm:$0xff]  }
 0x1ac   :  { %v8448_v24 = vld [vmem:[#allocation4 + $0x2cc] ss:$16 sps:$4 sm:$0xff]  }
 0x1ad   :  { %5477 = vmatpush1.bf16.msra.mxu0 %v8377_v40  ;;  %v372_v40 = vcombine.low %v9598_v27, %v9601_v28  ;;  %v8443_v27 = vld [vmem:[#allocation4 + $0xc8] ss:$16 sps:$4 sm:$0xff]  }
 0x1ae   :  { %5518 = vmatpush1.bf16.msra.mxu1 %v8380_v47  ;;  %5478 = vmatprep.subr.bf16.mxu0 %v8385_v48  ;;  %v8425_v47 = vld [vmem:[#allocation4 + $0x1500] ss:$16 sps:$4 sm:$0xff]   ;;  %v8446_v28 = vld [vmem:[#allocation4 + $0x2c8] ss:$16 sps:$4 sm:$0xff]  }
 0x1af   :  { %5519 = vmatprep.subr.bf16.mxu1 %v8388_v49  ;;  %v8428_v48 = vld [vmem:[#allocation4 + $0x1700] ss:$16 sps:$4 sm:$0xff]   ;;  %v8439_v49 = vld [vmem:[#allocation4 + $0xec] ss:$16 sps:$4 sm:$0xff]  }
 0x1b1   :  { %5479 = vmatpush2.bf16.msra.mxu0 %v8383_v50  ;;  %v8442_v50 = vld [vmem:[#allocation4 + $0x2ec] ss:$16 sps:$4 sm:$0xff]  }
 0x1b2   :  { %5520 = vmatpush2.bf16.msra.mxu1 %v8386_v51  ;;  %5480 = vmatprep.subr.bf16.mxu0 %v8391_v52  ;;  %v8437_v51 = vld [vmem:[#allocation4 + $0xe8] ss:$16 sps:$4 sm:$0xff]  }
 0x1b3   :  { %5521 = vmatprep.subr.bf16.mxu1 %v8394_v54  ;;  %v8440_v52 = vld [vmem:[#allocation4 + $0x2e8] ss:$16 sps:$4 sm:$0xff]   ;;  %v9633_v54 = vpack.c.bf16 %v370_v39, %v370_v39 }
 0x1b4   :  { %v8470_v39 = vld [vmem:[#allocation4 + $0x248] ss:$16 sps:$4 sm:$0xff]  }
 0x1b5   :  { %5481 = vmatpush2.bf16.msra.mxu0 %v8389_v60  ;;  %v9635_v60 = vpack.c.bf16 %v372_v40, %v372_v40  ;;  %v8475_v40 = vld [vmem:[#allocation4 + $0x2c] ss:$16 sps:$4 sm:$0xff]  }
 0x1b6   :  { %5522 = vmatpush2.bf16.msra.mxu1 %v8392_v61  ;;  %5482 = vmatprep.subr.bf16.mxu0 %v8397_v62 }
 0x1b7   :  { %5523 = vmatprep.subr.bf16.mxu1 %v8400_v4 }
 0x1b9   :  { %5483 = vmatpush2.bf16.msra.mxu0 %v8395_v36 }
 0x1ba   :  { %5524 = vmatpush2.bf16.msra.mxu1 %v8398_v11  ;;  %5484 = vmatprep.subr.bf16.mxu0 %v8403_v16  ;;  %v8451_v16 = vld [vmem:[#allocation4 + $0xac] ss:$16 sps:$4 sm:$0xff]  }
 0x1bb   :  { %5525 = vmatprep.subr.bf16.mxu1 %v8406_v19  ;;  %v8454_v19 = vld [vmem:[#allocation4 + $0x2ac] ss:$16 sps:$4 sm:$0xff]  }
 0x1bd   :  { %5485 = vmatpush2.bf16.msra.mxu0 %v8401_v12 }
 0x1be   :  { %5526 = vmatpush2.bf16.msra.mxu1 %v8404_v41  ;;  %5486 = vmatprep.subr.bf16.mxu0 %v8409_v13  ;;  %v8449_v13 = vld [vmem:[#allocation4 + $0xa8] ss:$16 sps:$4 sm:$0xff]  }
 0x1bf   :  { %5527 = vmatprep.subr.bf16.mxu1 %v8412_v20  ;;  %v8452_v20 = vld [vmem:[#allocation4 + $0x2a8] ss:$16 sps:$4 sm:$0xff]  }
 0x1c1   :  { %5487 = vmatpush2.bf16.msra.mxu0 %v8407_v29 }
 0x1c2   :  { %5528 = vmatpush2.bf16.msra.mxu1 %v8410_v63  ;;  %5488 = vmatprep.subr.bf16.mxu0 %v8415_v1 }
 0x1c3   :  { %5529 = vmatprep.subr.bf16.mxu1 %v8418_v2 }
 0x1c5   :  { %5489 = vmatpush2.bf16.msra.mxu0 %v8413_v3  ;;  %v8457_v3 = vld [vmem:[#allocation4 + $0x8c] ss:$16 sps:$4 sm:$0xff]  }
 0x1c6   :  { %5530 = vmatpush2.bf16.msra.mxu1 %v8416_v34  ;;  %5490 = vmatprep.subr.bf16.mxu0 %v8421_v35  ;;  %v8460_v34 = vld [vmem:[#allocation4 + $0x28c] ss:$16 sps:$4 sm:$0xff]   ;;  %v8458_v35 = vld [vmem:[#allocation4 + $0x288] ss:$16 sps:$4 sm:$0xff]  }
 0x1c7   :  { %5531 = vmatprep.subr.bf16.mxu1 %v8424_v37  ;;  %v8461_v37 = vld [vmem:[#allocation4 + $0x68] ss:$16 sps:$4 sm:$0xff]  }
 0x1c9   :  { %5491 = vmatpush2.bf16.msra.mxu0 %v8419_v53  ;;  %v8464_v53 = vld [vmem:[#allocation4 + $0x268] ss:$16 sps:$4 sm:$0xff]  }
 0x1ca   :  { %5532 = vmatpush2.bf16.msra.mxu1 %v8422_v38  ;;  %5492 = vmatprep.subr.bf16.mxu0 %v8427_v57  ;;  %v8469_v38 = vld [vmem:[#allocation4 + $0x4c] ss:$16 sps:$4 sm:$0xff]  }
 0x1cb   :  { %5533 = vmatprep.subr.bf16.mxu1 %v8430_v58  ;;  %v8472_v57 = vld [vmem:[#allocation4 + $0x24c] ss:$16 sps:$4 sm:$0xff]   ;;  %v8467_v58 = vld [vmem:[#allocation4 + $0x48] ss:$16 sps:$4 sm:$0xff]  }
 0x1cd   :  { %5493 = vmatpush2.bf16.msra.mxu0 %v8425_v47  ;;  %v8478_v47 = vld [vmem:[#allocation4 + $0x22c] ss:$16 sps:$4 sm:$0xff]  }
 0x1ce   :  { %5534 = vmatpush2.bf16.msra.mxu1 %v8428_v48  ;;  %5544 = vmatprep.subr.bf16.mxu0 %v8439_v49  ;;  %v8473_v48 = vld [vmem:[#allocation4 + $0x28] ss:$16 sps:$4 sm:$0xff]  }
 0x1cf   :  { %5585 = vmatprep.subr.bf16.mxu1 %v8442_v50  ;;  %v8476_v49 = vld [vmem:[#allocation4 + $0x228] ss:$16 sps:$4 sm:$0xff]   ;;  %v8481_v50 = vld [vmem:[#allocation4 + $0xc] ss:$16 sps:$4 sm:$0xff]  }
 0x1d0   :  { %v5250_v61 = vpop.f32.mrf.mxu0  ;;  %5495 = vmatmul.mubr.bf16.vlgmr.msra.gmra.mxu0 %v9633_v54 }
 0x1d1   :  { %v5291_v62 = vpop.f32.mrf.mxu1  ;;  %5536 = vmatmul.mubr.bf16.vlgmr.msra.gmra.mxu1 %v9635_v60  ;;  %v5251_v4 = vadd.f32 %v5250_v61, %v9622_v59  ;;  %5545 = vmatpush1.bf16.msra.mxu0 %v8437_v51  ;;  %v8484_v51 = vld [vmem:[#allocation4 + $0x20c] ss:$16 sps:$4 sm:$0xff]   ;;  %v8488_v61 = vld [vmem:[#allocation4 + $0x3e8] ss:$16 sps:$4 sm:$0xff]  }
 0x1d2   :  { %5586 = vmatpush1.bf16.msra.mxu1 %v8440_v52  ;;  %v5252_v36 = vpop.f32.mrf.mxu0  ;;  %5546 = vmatprep.subr.bf16.mxu0 %v8445_v21  ;;  %v8479_v52 = vld [vmem:[#allocation4 + $0x8] ss:$16 sps:$4 sm:$0xff]  }
 0x1d3   :  { %v5293_v11 = vpop.f32.mrf.mxu1  ;;  %5587 = vmatprep.subr.bf16.mxu1 %v8448_v24  ;;  %v9640_v12 = vadd.f32 %v5291_v62, %v5251_v4  ;;  %v5253_v41 = vadd.f32 %v5252_v36, %v9627_v5  ;;  %5576 = vmatprep.mubr.bf16.mxu0 %v9391_v6  ;;  %v8455_v5 = vld [vmem:[#allocation4 + $0x88] ss:$16 sps:$4 sm:$0xff]   ;;  %v8463_v6 = vld [vmem:[#allocation4 + $0x6c] ss:$16 sps:$4 sm:$0xff]  }
 0x1d4   :  { %5617 = vmatprep.mubr.bf16.mxu1 %v9393_v9  ;;  %v5254_v29 = vpop.f32.mrf.mxu0  ;;  %v8466_v9 = vld [vmem:[#allocation4 + $0x26c] ss:$16 sps:$4 sm:$0xff]   ;;  %v8482_v21 = vld [vmem:[#allocation4 + $0x208] ss:$16 sps:$4 sm:$0xff]  }
 0x1d5   :  { %v5295_v59 = vpop.f32.mrf.mxu1  ;;  %v9645_v63 = vadd.f32 %v5293_v11, %v5253_v41  ;;  %5547 = vmatpush1.bf16.msra.mxu0 %v8443_v27  ;;  %v8487_v24 = vld [vmem:[#allocation4 + $0x1ec] ss:$16 sps:$4 sm:$0xff]   ;;  %v8491_v36 = vld [vmem:[#allocation4 + $0x1c8] ss:$16 sps:$4 sm:$0xff]  }
 0x1d6   :  { %5588 = vmatpush1.bf16.msra.mxu1 %v8446_v28  ;;  %v5255_v1 = vpop.f32.mrf.mxu0  ;;  %5548 = vmatprep.subr.bf16.mxu0 %v8451_v16  ;;  %v8490_v27 = vld [vmem:[#allocation4 + $0x3ec] ss:$16 sps:$4 sm:$0xff]   ;;  %v8485_v28 = vld [vmem:[#allocation4 + $0x1e8] ss:$16 sps:$4 sm:$0xff]  }
 0x1d7   :  { %v5296_v2 = vpop.f32.mrf.mxu1  ;;  %5589 = vmatprep.subr.bf16.mxu1 %v8454_v19  ;;  %v8493_v62 = vld [vmem:[#allocation4 + $0x1cc] ss:$16 sps:$4 sm:$0xff]   ;;  %v8494_v11 = vld [vmem:[#allocation4 + $0x3c8] ss:$16 sps:$4 sm:$0xff]  }
 0x1d8   :  { %v8496_v4 = vld [vmem:[#allocation4 + $0x3cc] ss:$16 sps:$4 sm:$0xff]   ;;  %v8497_v41 = vld [vmem:[#allocation4 + $0x1a8] ss:$16 sps:$4 sm:$0xff]  }
 0x1d9   :  { %5549 = vmatpush1.bf16.msra.mxu0 %v8449_v13  ;;  %v8499_v16 = vld [vmem:[#allocation4 + $0x1ac] ss:$16 sps:$4 sm:$0xff]   ;;  %v8500_v13 = vld [vmem:[#allocation4 + $0x3a8] ss:$16 sps:$4 sm:$0xff]  }
 0x1da   :  { %5590 = vmatpush1.bf16.msra.mxu1 %v8452_v20  ;;  %5550 = vmatprep.subr.bf16.mxu0 %v8457_v3  ;;  %v8502_v19 = vld [vmem:[#allocation4 + $0x3ac] ss:$16 sps:$4 sm:$0xff]   ;;  %v8503_v59 = vld [vmem:[#allocation4 + $0x188] ss:$16 sps:$4 sm:$0xff]  }
 0x1db   :  { %5591 = vmatprep.subr.bf16.mxu1 %v8460_v34  ;;  %v8505_v20 = vld [vmem:[#allocation4 + $0x18c] ss:$16 sps:$4 sm:$0xff]   ;;  %v8506_v1 = vld [vmem:[#allocation4 + $0x388] ss:$16 sps:$4 sm:$0xff]  }
 0x1dc   :  { %v8508_v29 = vld [vmem:[#allocation4 + $0x38c] ss:$16 sps:$4 sm:$0xff]   ;;  %v8509_v34 = vld [vmem:[#allocation4 + $0x168] ss:$16 sps:$4 sm:$0xff]  }
 0x1dd   :  { %5551 = vmatpush1.bf16.msra.mxu0 %v8455_v5  ;;  %v8511_v2 = vld [vmem:[#allocation4 + $0x16c] ss:$16 sps:$4 sm:$0xff]   ;;  %v8512_v5 = vld [vmem:[#allocation4 + $0x368] ss:$16 sps:$4 sm:$0xff]  }
 0x1de   :  { %5592 = vmatpush1.bf16.msra.mxu1 %v8458_v35  ;;  %5552 = vmatprep.subr.bf16.mxu0 %v8463_v6  ;;  %v8514_v3 = vld [vmem:[#allocation4 + $0x36c] ss:$16 sps:$4 sm:$0xff]  }
 0x1df   :  { %5593 = vmatprep.subr.bf16.mxu1 %v8466_v9  ;;  %v8517_v35 = vld [vmem:[#allocation4 + $0x14c] ss:$16 sps:$4 sm:$0xff]   ;;  %v8515_v9 = vld [vmem:[#allocation4 + $0x148] ss:$16 sps:$4 sm:$0xff]  }
 0x1e0   :  { %v8520_v6 = vld [vmem:[#allocation4 + $0x34c] ss:$16 sps:$4 sm:$0xff]  }
 0x1e1   :  { %5553 = vmatpush1.bf16.msra.mxu0 %v8461_v37  ;;  %v8518_v37 = vld [vmem:[#allocation4 + $0x348] ss:$16 sps:$4 sm:$0xff]  }
 0x1e2   :  { %5594 = vmatpush1.bf16.msra.mxu1 %v8464_v53  ;;  %5554 = vmatprep.subr.bf16.mxu0 %v8469_v38  ;;  %v8523_v53 = vld [vmem:[#allocation4 + $0x12c] ss:$16 sps:$4 sm:$0xff]  }
 0x1e3   :  { %5595 = vmatprep.subr.bf16.mxu1 %v8472_v57  ;;  %v8526_v38 = vld [vmem:[#allocation4 + $0x32c] ss:$16 sps:$4 sm:$0xff]   ;;  %v8521_v57 = vld [vmem:[#allocation4 + $0x128] ss:$16 sps:$4 sm:$0xff]  }
 0x1e5   :  { %5555 = vmatpush1.bf16.msra.mxu0 %v8467_v58  ;;  %v8524_v58 = vld [vmem:[#allocation4 + $0x328] ss:$16 sps:$4 sm:$0xff]  }
 0x1e6   :  { %5596 = vmatpush1.bf16.msra.mxu1 %v8470_v39  ;;  %5556 = vmatprep.subr.bf16.mxu0 %v8475_v40  ;;  %v8529_v39 = vld [vmem:[#allocation4 + $0x10c] ss:$16 sps:$4 sm:$0xff]  }
 0x1e7   :  { %5597 = vmatprep.subr.bf16.mxu1 %v8478_v47  ;;  %v8532_v40 = vld [vmem:[#allocation4 + $0x30c] ss:$16 sps:$4 sm:$0xff]   ;;  %v8527_v47 = vld [vmem:[#allocation4 + $0x108] ss:$16 sps:$4 sm:$0xff]  }
 0x1e9   :  { %5557 = vmatpush1.bf16.msra.mxu0 %v8473_v48  ;;  %v8530_v48 = vld [vmem:[#allocation4 + $0x308] ss:$16 sps:$4 sm:$0xff]  }
 0x1ea   :  { %5598 = vmatpush1.bf16.msra.mxu1 %v8476_v49  ;;  %5558 = vmatprep.subr.bf16.mxu0 %v8481_v50  ;;  %v8535_v49 = vld [vmem:[#allocation4 + $0x4ec] ss:$16 sps:$4 sm:$0xff]  }
 0x1eb   :  { %5599 = vmatprep.subr.bf16.mxu1 %v8484_v51  ;;  %v8538_v50 = vld [vmem:[#allocation4 + $0x6ec] ss:$16 sps:$4 sm:$0xff]   ;;  %v8533_v51 = vld [vmem:[#allocation4 + $0x4e8] ss:$16 sps:$4 sm:$0xff]  }
 0x1ed   :  { %5559 = vmatpush1.bf16.msra.mxu0 %v8479_v52  ;;  %v8536_v52 = vld [vmem:[#allocation4 + $0x6e8] ss:$16 sps:$4 sm:$0xff]  }
 0x1ee   :  { %5600 = vmatpush1.bf16.msra.mxu1 %v8482_v21  ;;  %5560 = vmatprep.subr.bf16.mxu0 %v8487_v24  ;;  %v8541_v21 = vld [vmem:[#allocation4 + $0x4cc] ss:$16 sps:$4 sm:$0xff]  }
 0x1ef   :  { %5601 = vmatprep.subr.bf16.mxu1 %v8490_v27  ;;  %v8544_v24 = vld [vmem:[#allocation4 + $0x6cc] ss:$16 sps:$4 sm:$0xff]   ;;  %v8539_v27 = vld [vmem:[#allocation4 + $0x4c8] ss:$16 sps:$4 sm:$0xff]  }
 0x1f1   :  { %5561 = vmatpush2.bf16.msra.mxu0 %v8485_v28  ;;  %v8542_v28 = vld [vmem:[#allocation4 + $0x6c8] ss:$16 sps:$4 sm:$0xff]  }
 0x1f2   :  { %5602 = vmatpush2.bf16.msra.mxu1 %v8488_v61  ;;  %5562 = vmatprep.subr.bf16.mxu0 %v8493_v62 }
 0x1f3   :  { %5603 = vmatprep.subr.bf16.mxu1 %v8496_v4 }
 0x1f5   :  { %5563 = vmatpush2.bf16.msra.mxu0 %v8491_v36 }
 0x1f6   :  { %5604 = vmatpush2.bf16.msra.mxu1 %v8494_v11  ;;  %5564 = vmatprep.subr.bf16.mxu0 %v8499_v16  ;;  %v8547_v16 = vld [vmem:[#allocation4 + $0x4ac] ss:$16 sps:$4 sm:$0xff]  }
 0x1f7   :  { %5605 = vmatprep.subr.bf16.mxu1 %v8502_v19  ;;  %v8550_v19 = vld [vmem:[#allocation4 + $0x6ac] ss:$16 sps:$4 sm:$0xff]  }
 0x1f9   :  { %5565 = vmatpush2.bf16.msra.mxu0 %v8497_v41 }
 0x1fa   :  { %5606 = vmatpush2.bf16.msra.mxu1 %v8500_v13  ;;  %5566 = vmatprep.subr.bf16.mxu0 %v8505_v20  ;;  %v8545_v20 = vld [vmem:[#allocation4 + $0x4a8] ss:$16 sps:$4 sm:$0xff]  }
 0x1fb   :  { %5607 = vmatprep.subr.bf16.mxu1 %v8508_v29  ;;  %v8548_v29 = vld [vmem:[#allocation4 + $0x6a8] ss:$16 sps:$4 sm:$0xff]  }
 0x1fd   :  { %5567 = vmatpush2.bf16.msra.mxu0 %v8503_v59 }
 0x1fe   :  { %5608 = vmatpush2.bf16.msra.mxu1 %v8506_v1  ;;  %5568 = vmatprep.subr.bf16.mxu0 %v8511_v2  ;;  %v8553_v2 = vld [vmem:[#allocation4 + $0x48c] ss:$16 sps:$4 sm:$0xff]  }
 0x1ff   :  { %5609 = vmatprep.subr.bf16.mxu1 %v8514_v3  ;;  %v8556_v3 = vld [vmem:[#allocation4 + $0x68c] ss:$16 sps:$4 sm:$0xff]  }
 0x201   :  { %5569 = vmatpush2.bf16.msra.mxu0 %v8509_v34  ;;  %v8554_v34 = vld [vmem:[#allocation4 + $0x688] ss:$16 sps:$4 sm:$0xff]  }
 0x202   :  { %5610 = vmatpush2.bf16.msra.mxu1 %v8512_v5  ;;  %5570 = vmatprep.subr.bf16.mxu0 %v8517_v35  ;;  %v8557_v5 = vld [vmem:[#allocation4 + $0x468] ss:$16 sps:$4 sm:$0xff]  }
 0x203   :  { %5611 = vmatprep.subr.bf16.mxu1 %v8520_v6  ;;  %v8560_v35 = vld [vmem:[#allocation4 + $0x668] ss:$16 sps:$4 sm:$0xff]   ;;  %v8565_v6 = vld [vmem:[#allocation4 + $0x44c] ss:$16 sps:$4 sm:$0xff]  }
 0x205   :  { %5571 = vmatpush2.bf16.msra.mxu0 %v8515_v9  ;;  %v8568_v9 = vld [vmem:[#allocation4 + $0x64c] ss:$16 sps:$4 sm:$0xff]  }
 0x206   :  { %5612 = vmatpush2.bf16.msra.mxu1 %v8518_v37  ;;  %5572 = vmatprep.subr.bf16.mxu0 %v8523_v53  ;;  %v8563_v37 = vld [vmem:[#allocation4 + $0x448] ss:$16 sps:$4 sm:$0xff]  }
 0x207   :  { %5613 = vmatprep.subr.bf16.mxu1 %v8526_v38  ;;  %v8566_v53 = vld [vmem:[#allocation4 + $0x648] ss:$16 sps:$4 sm:$0xff]   ;;  %v8571_v38 = vld [vmem:[#allocation4 + $0x42c] ss:$16 sps:$4 sm:$0xff]  }
 0x209   :  { %5573 = vmatpush2.bf16.msra.mxu0 %v8521_v57  ;;  %v8574_v57 = vld [vmem:[#allocation4 + $0x62c] ss:$16 sps:$4 sm:$0xff]  }
 0x20a   :  { %5614 = vmatpush2.bf16.msra.mxu1 %v8524_v58  ;;  %5574 = vmatprep.subr.bf16.mxu0 %v8529_v39  ;;  %v8569_v58 = vld [vmem:[#allocation4 + $0x428] ss:$16 sps:$4 sm:$0xff]  }
 0x20b   :  { %5615 = vmatprep.subr.bf16.mxu1 %v8532_v40  ;;  %v8572_v39 = vld [vmem:[#allocation4 + $0x628] ss:$16 sps:$4 sm:$0xff]   ;;  %v8577_v40 = vld [vmem:[#allocation4 + $0x40c] ss:$16 sps:$4 sm:$0xff]  }
 0x20d   :  { %5575 = vmatpush2.bf16.msra.mxu0 %v8527_v47  ;;  %v8580_v47 = vld [vmem:[#allocation4 + $0x60c] ss:$16 sps:$4 sm:$0xff]  }
 0x20e   :  { %5616 = vmatpush2.bf16.msra.mxu1 %v8530_v48  ;;  %5626 = vmatprep.subr.bf16.mxu0 %v8535_v49  ;;  %v8575_v48 = vld [vmem:[#allocation4 + $0x408] ss:$16 sps:$4 sm:$0xff]  }
 0x20f   :  { %5667 = vmatprep.subr.bf16.mxu1 %v8538_v50  ;;  %v8578_v49 = vld [vmem:[#allocation4 + $0x608] ss:$16 sps:$4 sm:$0xff]   ;;  %v8583_v50 = vld [vmem:[#allocation4 + $0x5ec] ss:$16 sps:$4 sm:$0xff]  }
 0x210   :  { %v5332_v61 = vpop.f32.mrf.mxu0  ;;  %5577 = vmatmul.mubr.bf16.vlgmr.msra.gmra.mxu0 %v9397_v22 }
 0x211   :  { %v5373_v62 = vpop.f32.mrf.mxu1  ;;  %5618 = vmatmul.mubr.bf16.vlgmr.msra.gmra.mxu1 %v9399_v23  ;;  %v5333_v4 = vadd.f32 %v5332_v61, %v9640_v12  ;;  %5627 = vmatpush1.bf16.msra.mxu0 %v8533_v51  ;;  %v8586_v51 = vld [vmem:[#allocation4 + $0x7ec] ss:$16 sps:$4 sm:$0xff]   ;;  %v8590_v61 = vld [vmem:[#allocation4 + $0x7c8] ss:$16 sps:$4 sm:$0xff]  }
 0x212   :  { %5668 = vmatpush1.bf16.msra.mxu1 %v8536_v52  ;;  %v5334_v36 = vpop.f32.mrf.mxu0  ;;  %5628 = vmatprep.subr.bf16.mxu0 %v8541_v21  ;;  %v8581_v52 = vld [vmem:[#allocation4 + $0x5e8] ss:$16 sps:$4 sm:$0xff]  }
 0x213   :  { %v5375_v11 = vpop.f32.mrf.mxu1  ;;  %5669 = vmatprep.subr.bf16.mxu1 %v8544_v24  ;;  %v9650_v41 = vadd.f32 %v5373_v62, %v5333_v4  ;;  %v5335_v13 = vadd.f32 %v5334_v36, %v9645_v63  ;;  %5658 = vmatprep.mubr.bf16.mxu0 %v9431_v7  ;;  %v8551_v63 = vld [vmem:[#allocation4 + $0x488] ss:$16 sps:$4 sm:$0xff]   ;;  %v8559_v7 = vld [vmem:[#allocation4 + $0x46c] ss:$16 sps:$4 sm:$0xff]  }
 0x214   :  { %5699 = vmatprep.mubr.bf16.mxu1 %v9433_v10  ;;  %v5336_v22 = vpop.f32.mrf.mxu0  ;;  %v8562_v10 = vld [vmem:[#allocation4 + $0x66c] ss:$16 sps:$4 sm:$0xff]   ;;  %v8584_v21 = vld [vmem:[#allocation4 + $0x7e8] ss:$16 sps:$4 sm:$0xff]  }
 0x215   :  { %v5377_v23 = vpop.f32.mrf.mxu1  ;;  %v9655_v12 = vadd.f32 %v5375_v11, %v5335_v13  ;;  %5629 = vmatpush1.bf16.msra.mxu0 %v8539_v27  ;;  %v8589_v24 = vld [vmem:[#allocation4 + $0x5cc] ss:$16 sps:$4 sm:$0xff]   ;;  %v8593_v36 = vld [vmem:[#allocation4 + $0x5a8] ss:$16 sps:$4 sm:$0xff]  }
 0x216   :  { %5670 = vmatpush1.bf16.msra.mxu1 %v8542_v28  ;;  %v5337_v59 = vpop.f32.mrf.mxu0  ;;  %5630 = vmatprep.subr.bf16.mxu0 %v8547_v16  ;;  %v8592_v27 = vld [vmem:[#allocation4 + $0x7cc] ss:$16 sps:$4 sm:$0xff]   ;;  %v8587_v28 = vld [vmem:[#allocation4 + $0x5c8] ss:$16 sps:$4 sm:$0xff]  }
 0x217   :  { %v5378_v1 = vpop.f32.mrf.mxu1  ;;  %5671 = vmatprep.subr.bf16.mxu1 %v8550_v19  ;;  %v8595_v62 = vld [vmem:[#allocation4 + $0x5ac] ss:$16 sps:$4 sm:$0xff]   ;;  %v8596_v11 = vld [vmem:[#allocation4 + $0x7a8] ss:$16 sps:$4 sm:$0xff]  }
 0x218   :  { %v8598_v4 = vld [vmem:[#allocation4 + $0x7ac] ss:$16 sps:$4 sm:$0xff]   ;;  %v8599_v13 = vld [vmem:[#allocation4 + $0x588] ss:$16 sps:$4 sm:$0xff]  }
 0x219   :  { %5631 = vmatpush1.bf16.msra.mxu0 %v8545_v20  ;;  %v8601_v16 = vld [vmem:[#allocation4 + $0x58c] ss:$16 sps:$4 sm:$0xff]   ;;  %v8602_v20 = vld [vmem:[#allocation4 + $0x788] ss:$16 sps:$4 sm:$0xff]  }
 0x21a   :  { %5672 = vmatpush1.bf16.msra.mxu1 %v8548_v29  ;;  %5632 = vmatprep.subr.bf16.mxu0 %v8553_v2  ;;  %v8604_v19 = vld [vmem:[#allocation4 + $0x78c] ss:$16 sps:$4 sm:$0xff]   ;;  %v8605_v23 = vld [vmem:[#allocation4 + $0x568] ss:$16 sps:$4 sm:$0xff]  }
 0x21b   :  { %5673 = vmatprep.subr.bf16.mxu1 %v8556_v3  ;;  %v8607_v29 = vld [vmem:[#allocation4 + $0x56c] ss:$16 sps:$4 sm:$0xff]   ;;  %v8608_v59 = vld [vmem:[#allocation4 + $0x768] ss:$16 sps:$4 sm:$0xff]  }
 0x21c   :  { %v8610_v22 = vld [vmem:[#allocation4 + $0x76c] ss:$16 sps:$4 sm:$0xff]   ;;  %v8611_v3 = vld [vmem:[#allocation4 + $0x548] ss:$16 sps:$4 sm:$0xff]  }
 0x21d   :  { %5633 = vmatpush1.bf16.msra.mxu0 %v8551_v63  ;;  %v8613_v1 = vld [vmem:[#allocation4 + $0x54c] ss:$16 sps:$4 sm:$0xff]   ;;  %v8614_v63 = vld [vmem:[#allocation4 + $0x748] ss:$16 sps:$4 sm:$0xff]  }
 0x21e   :  { %5674 = vmatpush1.bf16.msra.mxu1 %v8554_v34  ;;  %5634 = vmatprep.subr.bf16.mxu0 %v8559_v7  ;;  %v8616_v2 = vld [vmem:[#allocation4 + $0x74c] ss:$16 sps:$4 sm:$0xff]  }
 0x21f   :  { %5675 = vmatprep.subr.bf16.mxu1 %v8562_v10  ;;  %v8619_v34 = vld [vmem:[#allocation4 + $0x52c] ss:$16 sps:$4 sm:$0xff]   ;;  %v8617_v10 = vld [vmem:[#allocation4 + $0x528] ss:$16 sps:$4 sm:$0xff]  }
 0x220   :  { %v8622_v7 = vld [vmem:[#allocation4 + $0x72c] ss:$16 sps:$4 sm:$0xff]  }
 0x221   :  { %5635 = vmatpush1.bf16.msra.mxu0 %v8557_v5  ;;  %v8620_v5 = vld [vmem:[#allocation4 + $0x728] ss:$16 sps:$4 sm:$0xff]  }
 0x222   :  { %5676 = vmatpush1.bf16.msra.mxu1 %v8560_v35  ;;  %5636 = vmatprep.subr.bf16.mxu0 %v8565_v6  ;;  %v8625_v35 = vld [vmem:[#allocation4 + $0x50c] ss:$16 sps:$4 sm:$0xff]  }
 0x223   :  { %5677 = vmatprep.subr.bf16.mxu1 %v8568_v9  ;;  %v8628_v6 = vld [vmem:[#allocation4 + $0x70c] ss:$16 sps:$4 sm:$0xff]   ;;  %v8623_v9 = vld [vmem:[#allocation4 + $0x508] ss:$16 sps:$4 sm:$0xff]  }
 0x225   :  { %5637 = vmatpush1.bf16.msra.mxu0 %v8563_v37  ;;  %v8626_v37 = vld [vmem:[#allocation4 + $0x708] ss:$16 sps:$4 sm:$0xff]  }
 0x226   :  { %5678 = vmatpush1.bf16.msra.mxu1 %v8566_v53  ;;  %5638 = vmatprep.subr.bf16.mxu0 %v8571_v38  ;;  %v8631_v53 = vld [vmem:[#allocation4 + $0x8ec] ss:$16 sps:$4 sm:$0xff]  }
 0x227   :  { %5679 = vmatprep.subr.bf16.mxu1 %v8574_v57  ;;  %v8634_v38 = vld [vmem:[#allocation4 + $0xaec] ss:$16 sps:$4 sm:$0xff]   ;;  %v8629_v57 = vld [vmem:[#allocation4 + $0x8e8] ss:$16 sps:$4 sm:$0xff]  }
 0x229   :  { %5639 = vmatpush1.bf16.msra.mxu0 %v8569_v58  ;;  %v8632_v58 = vld [vmem:[#allocation4 + $0xae8] ss:$16 sps:$4 sm:$0xff]  }
 0x22a   :  { %5680 = vmatpush1.bf16.msra.mxu1 %v8572_v39  ;;  %5640 = vmatprep.subr.bf16.mxu0 %v8577_v40  ;;  %v8637_v39 = vld [vmem:[#allocation4 + $0x8cc] ss:$16 sps:$4 sm:$0xff]  }
 0x22b   :  { %5681 = vmatprep.subr.bf16.mxu1 %v8580_v47  ;;  %v8640_v40 = vld [vmem:[#allocation4 + $0xacc] ss:$16 sps:$4 sm:$0xff]   ;;  %v8635_v47 = vld [vmem:[#allocation4 + $0x8c8] ss:$16 sps:$4 sm:$0xff]  }
 0x22d   :  { %5641 = vmatpush1.bf16.msra.mxu0 %v8575_v48  ;;  %v8638_v48 = vld [vmem:[#allocation4 + $0xac8] ss:$16 sps:$4 sm:$0xff]  }
 0x22e   :  { %5682 = vmatpush1.bf16.msra.mxu1 %v8578_v49  ;;  %5642 = vmatprep.subr.bf16.mxu0 %v8583_v50 }
 0x22f   :  { %5683 = vmatprep.subr.bf16.mxu1 %v8586_v51 }
 0x231   :  { %5643 = vmatpush2.bf16.msra.mxu0 %v8581_v52 }
 0x232   :  { %5684 = vmatpush2.bf16.msra.mxu1 %v8584_v21  ;;  %5644 = vmatprep.subr.bf16.mxu0 %v8589_v24  ;;  %v8643_v24 = vld [vmem:[#allocation4 + $0x8ac] ss:$16 sps:$4 sm:$0xff]  }
 0x233   :  { %5685 = vmatprep.subr.bf16.mxu1 %v8592_v27  ;;  %v8646_v27 = vld [vmem:[#allocation4 + $0xaac] ss:$16 sps:$4 sm:$0xff]  }
 0x235   :  { %5645 = vmatpush2.bf16.msra.mxu0 %v8587_v28 }
 0x236   :  { %5686 = vmatpush2.bf16.msra.mxu1 %v8590_v61  ;;  %5646 = vmatprep.subr.bf16.mxu0 %v8595_v62  ;;  %v8641_v62 = vld [vmem:[#allocation4 + $0x8a8] ss:$16 sps:$4 sm:$0xff]  }
 0x237   :  { %5687 = vmatprep.subr.bf16.mxu1 %v8598_v4  ;;  %v8644_v4 = vld [vmem:[#allocation4 + $0xaa8] ss:$16 sps:$4 sm:$0xff]  }
 0x239   :  { %5647 = vmatpush2.bf16.msra.mxu0 %v8593_v36 }
 0x23a   :  { %5688 = vmatpush2.bf16.msra.mxu1 %v8596_v11  ;;  %5648 = vmatprep.subr.bf16.mxu0 %v8601_v16  ;;  %v8649_v16 = vld [vmem:[#allocation4 + $0x88c] ss:$16 sps:$4 sm:$0xff]  }
 0x23b   :  { %5689 = vmatprep.subr.bf16.mxu1 %v8604_v19  ;;  %v8652_v19 = vld [vmem:[#allocation4 + $0xa8c] ss:$16 sps:$4 sm:$0xff]  }
 0x23d   :  { %5649 = vmatpush2.bf16.msra.mxu0 %v8599_v13  ;;  %v8650_v13 = vld [vmem:[#allocation4 + $0xa88] ss:$16 sps:$4 sm:$0xff]  }
 0x23e   :  { %5690 = vmatpush2.bf16.msra.mxu1 %v8602_v20  ;;  %5650 = vmatprep.subr.bf16.mxu0 %v8607_v29  ;;  %v8653_v20 = vld [vmem:[#allocation4 + $0x868] ss:$16 sps:$4 sm:$0xff]  }
 0x23f   :  { %5691 = vmatprep.subr.bf16.mxu1 %v8610_v22  ;;  %v8656_v29 = vld [vmem:[#allocation4 + $0xa68] ss:$16 sps:$4 sm:$0xff]   ;;  %v8661_v22 = vld [vmem:[#allocation4 + $0x84c] ss:$16 sps:$4 sm:$0xff]  }
 0x241   :  { %5651 = vmatpush2.bf16.msra.mxu0 %v8605_v23  ;;  %v8664_v23 = vld [vmem:[#allocation4 + $0xa4c] ss:$16 sps:$4 sm:$0xff]  }
 0x242   :  { %5692 = vmatpush2.bf16.msra.mxu1 %v8608_v59  ;;  %5652 = vmatprep.subr.bf16.mxu0 %v8613_v1  ;;  %v8659_v59 = vld [vmem:[#allocation4 + $0x848] ss:$16 sps:$4 sm:$0xff]  }
 0x243   :  { %5693 = vmatprep.subr.bf16.mxu1 %v8616_v2  ;;  %v8662_v1 = vld [vmem:[#allocation4 + $0xa48] ss:$16 sps:$4 sm:$0xff]   ;;  %v8667_v2 = vld [vmem:[#allocation4 + $0x82c] ss:$16 sps:$4 sm:$0xff]  }
 0x245   :  { %5653 = vmatpush2.bf16.msra.mxu0 %v8611_v3  ;;  %v8670_v3 = vld [vmem:[#allocation4 + $0xa2c] ss:$16 sps:$4 sm:$0xff]  }
 0x246   :  { %5694 = vmatpush2.bf16.msra.mxu1 %v8614_v63  ;;  %5654 = vmatprep.subr.bf16.mxu0 %v8619_v34  ;;  %v8665_v63 = vld [vmem:[#allocation4 + $0x828] ss:$16 sps:$4 sm:$0xff]  }
 0x247   :  { %5695 = vmatprep.subr.bf16.mxu1 %v8622_v7  ;;  %v8668_v34 = vld [vmem:[#allocation4 + $0xa28] ss:$16 sps:$4 sm:$0xff]   ;;  %v8673_v7 = vld [vmem:[#allocation4 + $0x80c] ss:$16 sps:$4 sm:$0xff]  }
 0x249   :  { %5655 = vmatpush2.bf16.msra.mxu0 %v8617_v10  ;;  %v8676_v10 = vld [vmem:[#allocation4 + $0xa0c] ss:$16 sps:$4 sm:$0xff]  }
 0x24a   :  { %5696 = vmatpush2.bf16.msra.mxu1 %v8620_v5  ;;  %5656 = vmatprep.subr.bf16.mxu0 %v8625_v35  ;;  %v8671_v5 = vld [vmem:[#allocation4 + $0x808] ss:$16 sps:$4 sm:$0xff]  }
 0x24b   :  { %5697 = vmatprep.subr.bf16.mxu1 %v8628_v6  ;;  %v8674_v35 = vld [vmem:[#allocation4 + $0xa08] ss:$16 sps:$4 sm:$0xff]   ;;  %v8679_v6 = vld [vmem:[#allocation4 + $0x9ec] ss:$16 sps:$4 sm:$0xff]  }
 0x24d   :  { %5657 = vmatpush2.bf16.msra.mxu0 %v8623_v9  ;;  %v8682_v9 = vld [vmem:[#allocation4 + $0xbec] ss:$16 sps:$4 sm:$0xff]  }
 0x24e   :  { %5698 = vmatpush2.bf16.msra.mxu1 %v8626_v37  ;;  %5708 = vmatprep.subr.bf16.mxu0 %v8631_v53  ;;  %v8677_v37 = vld [vmem:[#allocation4 + $0x9e8] ss:$16 sps:$4 sm:$0xff]  }
 0x24f   :  { %5749 = vmatprep.subr.bf16.mxu1 %v8634_v38  ;;  %v8680_v53 = vld [vmem:[#allocation4 + $0xbe8] ss:$16 sps:$4 sm:$0xff]   ;;  %v8685_v38 = vld [vmem:[#allocation4 + $0x9cc] ss:$16 sps:$4 sm:$0xff]  }
 0x250   :  { %v5414_v49 = vpop.f32.mrf.mxu0  ;;  %5659 = vmatmul.mubr.bf16.vlgmr.msra.gmra.mxu0 %v9441_v44 }
 0x251   :  { %v5455_v50 = vpop.f32.mrf.mxu1  ;;  %5700 = vmatmul.mubr.bf16.vlgmr.msra.gmra.mxu1 %v9443_v45  ;;  %v5415_v51 = vadd.f32 %v5414_v49, %v9650_v41  ;;  %5709 = vmatpush1.bf16.msra.mxu0 %v8629_v57  ;;  %v8688_v57 = vld [vmem:[#allocation4 + $0xbcc] ss:$16 sps:$4 sm:$0xff]   ;;  %v8692_v49 = vld [vmem:[#allocation4 + $0xba8] ss:$16 sps:$4 sm:$0xff]  }
 0x252   :  { %5750 = vmatpush1.bf16.msra.mxu1 %v8632_v58  ;;  %v5416_v52 = vpop.f32.mrf.mxu0  ;;  %5710 = vmatprep.subr.bf16.mxu0 %v8637_v39  ;;  %v8683_v58 = vld [vmem:[#allocation4 + $0x9c8] ss:$16 sps:$4 sm:$0xff]  }
 0x253   :  { %v5457_v21 = vpop.f32.mrf.mxu1  ;;  %5751 = vmatprep.subr.bf16.mxu1 %v8640_v40  ;;  %v9660_v28 = vadd.f32 %v5455_v50, %v5415_v51  ;;  %v5417_v61 = vadd.f32 %v5416_v52, %v9655_v12  ;;  %5740 = vmatprep.mubr.bf16.mxu0 %v9475_v14  ;;  %v8647_v12 = vld [vmem:[#allocation4 + $0x888] ss:$16 sps:$4 sm:$0xff]   ;;  %v8655_v14 = vld [vmem:[#allocation4 + $0x86c] ss:$16 sps:$4 sm:$0xff]  }
 0x254   :  { %5781 = vmatprep.mubr.bf16.mxu1 %v9477_v15  ;;  %v5418_v44 = vpop.f32.mrf.mxu0  ;;  %v8658_v15 = vld [vmem:[#allocation4 + $0xa6c] ss:$16 sps:$4 sm:$0xff]   ;;  %v8686_v39 = vld [vmem:[#allocation4 + $0xbc8] ss:$16 sps:$4 sm:$0xff]  }
 0x255   :  { %v5459_v45 = vpop.f32.mrf.mxu1  ;;  %v9665_v41 = vadd.f32 %v5457_v21, %v5417_v61  ;;  %5711 = vmatpush1.bf16.msra.mxu0 %v8635_v47  ;;  %v8691_v40 = vld [vmem:[#allocation4 + $0x9ac] ss:$16 sps:$4 sm:$0xff]   ;;  %v8695_v52 = vld [vmem:[#allocation4 + $0x988] ss:$16 sps:$4 sm:$0xff]  }
 0x256   :  { %5752 = vmatpush1.bf16.msra.mxu1 %v8638_v48  ;;  %v5419_v36 = vpop.f32.mrf.mxu0  ;;  %5712 = vmatprep.subr.bf16.mxu0 %v8643_v24  ;;  %v8694_v47 = vld [vmem:[#allocation4 + $0xbac] ss:$16 sps:$4 sm:$0xff]   ;;  %v8689_v48 = vld [vmem:[#allocation4 + $0x9a8] ss:$16 sps:$4 sm:$0xff]  }
 0x257   :  { %v5460_v11 = vpop.f32.mrf.mxu1  ;;  %5753 = vmatprep.subr.bf16.mxu1 %v8646_v27  ;;  %v8697_v50 = vld [vmem:[#allocation4 + $0x98c] ss:$16 sps:$4 sm:$0xff]   ;;  %v8698_v21 = vld [vmem:[#allocation4 + $0xb88] ss:$16 sps:$4 sm:$0xff]  }
 0x258   :  { %v8700_v51 = vld [vmem:[#allocation4 + $0xb8c] ss:$16 sps:$4 sm:$0xff]   ;;  %v8701_v61 = vld [vmem:[#allocation4 + $0x968] ss:$16 sps:$4 sm:$0xff]  }
 0x259   :  { %5713 = vmatpush1.bf16.msra.mxu0 %v8641_v62  ;;  %v8703_v24 = vld [vmem:[#allocation4 + $0x96c] ss:$16 sps:$4 sm:$0xff]   ;;  %v8704_v62 = vld [vmem:[#allocation4 + $0xb68] ss:$16 sps:$4 sm:$0xff]  }
 0x25a   :  { %5754 = vmatpush1.bf16.msra.mxu1 %v8644_v4  ;;  %5714 = vmatprep.subr.bf16.mxu0 %v8649_v16  ;;  %v8706_v27 = vld [vmem:[#allocation4 + $0xb6c] ss:$16 sps:$4 sm:$0xff]   ;;  %v8707_v45 = vld [vmem:[#allocation4 + $0x948] ss:$16 sps:$4 sm:$0xff]  }
 0x25b   :  { %5755 = vmatprep.subr.bf16.mxu1 %v8652_v19  ;;  %v8709_v4 = vld [vmem:[#allocation4 + $0x94c] ss:$16 sps:$4 sm:$0xff]   ;;  %v8710_v36 = vld [vmem:[#allocation4 + $0xb48] ss:$16 sps:$4 sm:$0xff]  }
 0x25c   :  { %v8712_v44 = vld [vmem:[#allocation4 + $0xb4c] ss:$16 sps:$4 sm:$0xff]   ;;  %v8713_v19 = vld [vmem:[#allocation4 + $0x928] ss:$16 sps:$4 sm:$0xff]  }
 0x25d   :  { %5715 = vmatpush1.bf16.msra.mxu0 %v8647_v12  ;;  %v8715_v11 = vld [vmem:[#allocation4 + $0x92c] ss:$16 sps:$4 sm:$0xff]   ;;  %v8716_v12 = vld [vmem:[#allocation4 + $0xb28] ss:$16 sps:$4 sm:$0xff]  }
 0x25e   :  { %5756 = vmatpush1.bf16.msra.mxu1 %v8650_v13  ;;  %5716 = vmatprep.subr.bf16.mxu0 %v8655_v14  ;;  %v8718_v16 = vld [vmem:[#allocation4 + $0xb2c] ss:$16 sps:$4 sm:$0xff]  }
 0x25f   :  { %5757 = vmatprep.subr.bf16.mxu1 %v8658_v15  ;;  %v8721_v13 = vld [vmem:[#allocation4 + $0x90c] ss:$16 sps:$4 sm:$0xff]   ;;  %v8719_v15 = vld [vmem:[#allocation4 + $0x908] ss:$16 sps:$4 sm:$0xff]  }
 0x260   :  { %v8724_v14 = vld [vmem:[#allocation4 + $0xb0c] ss:$16 sps:$4 sm:$0xff]  }
 0x261   :  { %5717 = vmatpush1.bf16.msra.mxu0 %v8653_v20  ;;  %v8722_v20 = vld [vmem:[#allocation4 + $0xb08] ss:$16 sps:$4 sm:$0xff]  }
 0x262   :  { %5758 = vmatpush1.bf16.msra.mxu1 %v8656_v29  ;;  %5718 = vmatprep.subr.bf16.mxu0 %v8661_v22  ;;  %v8727_v29 = vld [vmem:[#allocation4 + $0xcec] ss:$16 sps:$4 sm:$0xff]  }
 0x263   :  { %5759 = vmatprep.subr.bf16.mxu1 %v8664_v23  ;;  %v8730_v22 = vld [vmem:[#allocation4 + $0xeec] ss:$16 sps:$4 sm:$0xff]   ;;  %v8725_v23 = vld [vmem:[#allocation4 + $0xce8] ss:$16 sps:$4 sm:$0xff]  }
 0x265   :  { %5719 = vmatpush1.bf16.msra.mxu0 %v8659_v59  ;;  %v8728_v59 = vld [vmem:[#allocation4 + $0xee8] ss:$16 sps:$4 sm:$0xff]  }
 0x266   :  { %5760 = vmatpush1.bf16.msra.mxu1 %v8662_v1  ;;  %5720 = vmatprep.subr.bf16.mxu0 %v8667_v2  ;;  %v8733_v1 = vld [vmem:[#allocation4 + $0xccc] ss:$16 sps:$4 sm:$0xff]  }
 0x267   :  { %5761 = vmatprep.subr.bf16.mxu1 %v8670_v3  ;;  %v8736_v2 = vld [vmem:[#allocation4 + $0xecc] ss:$16 sps:$4 sm:$0xff]  }
 0x269   :  { %5721 = vmatpush1.bf16.msra.mxu0 %v8665_v63 }
 0x26a   :  { %5762 = vmatpush1.bf16.msra.mxu1 %v8668_v34  ;;  %5722 = vmatprep.subr.bf16.mxu0 %v8673_v7  ;;  %v8731_v7 = vld [vmem:[#allocation4 + $0xcc8] ss:$16 sps:$4 sm:$0xff]  }
 0x26b   :  { %5763 = vmatprep.subr.bf16.mxu1 %v8676_v10  ;;  %v8734_v10 = vld [vmem:[#allocation4 + $0xec8] ss:$16 sps:$4 sm:$0xff]  }
 0x26d   :  { %5723 = vmatpush1.bf16.msra.mxu0 %v8671_v5 }
 0x26e   :  { %5764 = vmatpush1.bf16.msra.mxu1 %v8674_v35  ;;  %5724 = vmatprep.subr.bf16.mxu0 %v8679_v6  ;;  %v8739_v6 = vld [vmem:[#allocation4 + $0xcac] ss:$16 sps:$4 sm:$0xff]  }
 0x26f   :  { %5765 = vmatprep.subr.bf16.mxu1 %v8682_v9  ;;  %v8742_v9 = vld [vmem:[#allocation4 + $0xeac] ss:$16 sps:$4 sm:$0xff]  }
 0x271   :  { %5725 = vmatpush2.bf16.msra.mxu0 %v8677_v37 }
 0x272   :  { %5766 = vmatpush2.bf16.msra.mxu1 %v8680_v53  ;;  %5726 = vmatprep.subr.bf16.mxu0 %v8685_v38  ;;  %v8737_v38 = vld [vmem:[#allocation4 + $0xca8] ss:$16 sps:$4 sm:$0xff]  }
 0x273   :  { %5767 = vmatprep.subr.bf16.mxu1 %v8688_v57  ;;  %v8740_v57 = vld [vmem:[#allocation4 + $0xea8] ss:$16 sps:$4 sm:$0xff]  }
 0x275   :  { %5727 = vmatpush2.bf16.msra.mxu0 %v8683_v58 }
 0x276   :  { %5768 = vmatpush2.bf16.msra.mxu1 %v8686_v39  ;;  %5728 = vmatprep.subr.bf16.mxu0 %v8691_v40  ;;  %v8745_v40 = vld [vmem:[#allocation4 + $0xc8c] ss:$16 sps:$4 sm:$0xff]  }
 0x277   :  { %5769 = vmatprep.subr.bf16.mxu1 %v8694_v47  ;;  %v8748_v47 = vld [vmem:[#allocation4 + $0xe8c] ss:$16 sps:$4 sm:$0xff]  }
 0x279   :  { %5729 = vmatpush2.bf16.msra.mxu0 %v8689_v48  ;;  %v8754_v48 = vld [vmem:[#allocation4 + $0xe6c] ss:$16 sps:$4 sm:$0xff]  }
 0x27a   :  { %5770 = vmatpush2.bf16.msra.mxu1 %v8692_v49  ;;  %5730 = vmatprep.subr.bf16.mxu0 %v8697_v50  ;;  %v8749_v49 = vld [vmem:[#allocation4 + $0xc68] ss:$16 sps:$4 sm:$0xff]  }
 0x27b   :  { %5771 = vmatprep.subr.bf16.mxu1 %v8700_v51  ;;  %v8752_v50 = vld [vmem:[#allocation4 + $0xe68] ss:$16 sps:$4 sm:$0xff]   ;;  %v8757_v51 = vld [vmem:[#allocation4 + $0xc4c] ss:$16 sps:$4 sm:$0xff]  }
 0x27d   :  { %5731 = vmatpush2.bf16.msra.mxu0 %v8695_v52  ;;  %v8760_v52 = vld [vmem:[#allocation4 + $0xe4c] ss:$16 sps:$4 sm:$0xff]  }
 0x27e   :  { %5772 = vmatpush2.bf16.msra.mxu1 %v8698_v21  ;;  %5732 = vmatprep.subr.bf16.mxu0 %v8703_v24  ;;  %v8755_v21 = vld [vmem:[#allocation4 + $0xc48] ss:$16 sps:$4 sm:$0xff]  }
 0x27f   :  { %5773 = vmatprep.subr.bf16.mxu1 %v8706_v27  ;;  %v8758_v24 = vld [vmem:[#allocation4 + $0xe48] ss:$16 sps:$4 sm:$0xff]   ;;  %v8763_v27 = vld [vmem:[#allocation4 + $0xc2c] ss:$16 sps:$4 sm:$0xff]  }
 0x281   :  { %5733 = vmatpush2.bf16.msra.mxu0 %v8701_v61  ;;  %v8766_v61 = vld [vmem:[#allocation4 + $0xe2c] ss:$16 sps:$4 sm:$0xff]  }
 0x282   :  { %5774 = vmatpush2.bf16.msra.mxu1 %v8704_v62  ;;  %5734 = vmatprep.subr.bf16.mxu0 %v8709_v4  ;;  %v8761_v62 = vld [vmem:[#allocation4 + $0xc28] ss:$16 sps:$4 sm:$0xff]  }
 0x283   :  { %5775 = vmatprep.subr.bf16.mxu1 %v8712_v44  ;;  %v8764_v4 = vld [vmem:[#allocation4 + $0xe28] ss:$16 sps:$4 sm:$0xff]   ;;  %v8769_v44 = vld [vmem:[#allocation4 + $0xc0c] ss:$16 sps:$4 sm:$0xff]  }
 0x285   :  { %5735 = vmatpush2.bf16.msra.mxu0 %v8707_v45  ;;  %v8772_v45 = vld [vmem:[#allocation4 + $0xe0c] ss:$16 sps:$4 sm:$0xff]  }
 0x286   :  { %5776 = vmatpush2.bf16.msra.mxu1 %v8710_v36  ;;  %5736 = vmatprep.subr.bf16.mxu0 %v8715_v11  ;;  %v8767_v36 = vld [vmem:[#allocation4 + $0xc08] ss:$16 sps:$4 sm:$0xff]  }
 0x287   :  { %5777 = vmatprep.subr.bf16.mxu1 %v8718_v16  ;;  %v8770_v11 = vld [vmem:[#allocation4 + $0xe08] ss:$16 sps:$4 sm:$0xff]   ;;  %v8775_v16 = vld [vmem:[#allocation4 + $0xdec] ss:$16 sps:$4 sm:$0xff]  }
 0x289   :  { %5737 = vmatpush2.bf16.msra.mxu0 %v8713_v19  ;;  %v8778_v19 = vld [vmem:[#allocation4 + $0xfec] ss:$16 sps:$4 sm:$0xff]  }
 0x28a   :  { %5778 = vmatpush2.bf16.msra.mxu1 %v8716_v12  ;;  %5738 = vmatprep.subr.bf16.mxu0 %v8721_v13  ;;  %v8773_v12 = vld [vmem:[#allocation4 + $0xde8] ss:$16 sps:$4 sm:$0xff]  }
 0x28b   :  { %5779 = vmatprep.subr.bf16.mxu1 %v8724_v14  ;;  %v8776_v13 = vld [vmem:[#allocation4 + $0xfe8] ss:$16 sps:$4 sm:$0xff]   ;;  %v8781_v14 = vld [vmem:[#allocation4 + $0xdcc] ss:$16 sps:$4 sm:$0xff]  }
 0x28d   :  { %5739 = vmatpush2.bf16.msra.mxu0 %v8719_v15  ;;  %v8784_v15 = vld [vmem:[#allocation4 + $0xfcc] ss:$16 sps:$4 sm:$0xff]  }
 0x28e   :  { %5780 = vmatpush2.bf16.msra.mxu1 %v8722_v20  ;;  %5790 = vmatprep.subr.bf16.mxu0 %v8727_v29  ;;  %v8779_v20 = vld [vmem:[#allocation4 + $0xdc8] ss:$16 sps:$4 sm:$0xff]  }
 0x28f   :  { %5831 = vmatprep.subr.bf16.mxu1 %v8730_v22  ;;  %v8782_v29 = vld [vmem:[#allocation4 + $0xfc8] ss:$16 sps:$4 sm:$0xff]   ;;  %v8787_v22 = vld [vmem:[#allocation4 + $0xdac] ss:$16 sps:$4 sm:$0xff]  }
 0x290   :  { %v5496_v3 = vpop.f32.mrf.mxu0  ;;  %5741 = vmatmul.mubr.bf16.vlgmr.msra.gmra.mxu0 %v9513_v30 }
 0x291   :  { %v5537_v63 = vpop.f32.mrf.mxu1  ;;  %5782 = vmatmul.mubr.bf16.vlgmr.msra.gmra.mxu1 %v9515_v31  ;;  %v5497_v34 = vadd.f32 %v5496_v3, %v9660_v28  ;;  %5791 = vmatpush1.bf16.msra.mxu0 %v8725_v23  ;;  %v8790_v23 = vld [vmem:[#allocation4 + $0xfac] ss:$16 sps:$4 sm:$0xff]  }
 0x292   :  { %5832 = vmatpush1.bf16.msra.mxu1 %v8728_v59  ;;  %v5498_v5 = vpop.f32.mrf.mxu0  ;;  %5792 = vmatprep.subr.bf16.mxu0 %v8733_v1  ;;  %v8785_v59 = vld [vmem:[#allocation4 + $0xda8] ss:$16 sps:$4 sm:$0xff]   ;;  %v8796_v3 = vld [vmem:[#allocation4 + $0xf8c] ss:$16 sps:$4 sm:$0xff]  }
 0x293   :  { %v5539_v35 = vpop.f32.mrf.mxu1  ;;  %5833 = vmatprep.subr.bf16.mxu1 %v8736_v2  ;;  %v9670_v37 = vadd.f32 %v5537_v63, %v5497_v34  ;;  %v5499_v53 = vadd.f32 %v5498_v5, %v9665_v41  ;;  %5822 = vmatprep.mubr.bf16.mxu0 %v9517_v32  ;;  %v8743_v41 = vld [vmem:[#allocation4 + $0xc88] ss:$16 sps:$4 sm:$0xff]   ;;  %v8793_v2 = vld [vmem:[#allocation4 + $0xd8c] ss:$16 sps:$4 sm:$0xff]  }
 0x294   :  { %5863 = vmatprep.mubr.bf16.mxu1 %v9519_v33  ;;  %v5500_v30 = vpop.f32.mrf.mxu0  ;;  %v8746_v32 = vld [vmem:[#allocation4 + $0xe88] ss:$16 sps:$4 sm:$0xff]   ;;  %v8751_v33 = vld [vmem:[#allocation4 + $0xc6c] ss:$16 sps:$4 sm:$0xff]  }
 0x295   :  { %v5541_v31 = vpop.f32.mrf.mxu1  ;;  %v9675_v28 = vadd.f32 %v5539_v35, %v5499_v53  ;;  %5793 = vmatpush1.bf16.msra.mxu0 %v8731_v7  ;;  %v8788_v1 = vld [vmem:[#allocation4 + $0xfa8] ss:$16 sps:$4 sm:$0xff]   ;;  %v8799_v7 = vld [vmem:[#allocation4 + $0xd6c] ss:$16 sps:$4 sm:$0xff]  }
 0x296   :  { %5834 = vmatpush1.bf16.msra.mxu1 %v8734_v10  ;;  %v5501_v58 = vpop.f32.mrf.mxu0  ;;  %5794 = vmatprep.subr.bf16.mxu0 %v8739_v6  ;;  %v8791_v63 = vld [vmem:[#allocation4 + $0xd88] ss:$16 sps:$4 sm:$0xff]   ;;  %v8802_v10 = vld [vmem:[#allocation4 + $0xf6c] ss:$16 sps:$4 sm:$0xff]  }
 0x297   :  { %v5542_v39 = vpop.f32.mrf.mxu1  ;;  %5835 = vmatprep.subr.bf16.mxu1 %v8742_v9  ;;  %v8794_v34 = vld [vmem:[#allocation4 + $0xf88] ss:$16 sps:$4 sm:$0xff]   ;;  %v8805_v6 = vld [vmem:[#allocation4 + $0xd4c] ss:$16 sps:$4 sm:$0xff]  }
 0x298   :  { %v8797_v5 = vld [vmem:[#allocation4 + $0xd68] ss:$16 sps:$4 sm:$0xff]   ;;  %v8808_v9 = vld [vmem:[#allocation4 + $0xf4c] ss:$16 sps:$4 sm:$0xff]  }
 0x299   :  { %5795 = vmatpush1.bf16.msra.mxu0 %v8737_v38  ;;  %v8800_v35 = vld [vmem:[#allocation4 + $0xf68] ss:$16 sps:$4 sm:$0xff]   ;;  %v8811_v31 = vld [vmem:[#allocation4 + $0xd2c] ss:$16 sps:$4 sm:$0xff]  }
 0x29a   :  { %5836 = vmatpush1.bf16.msra.mxu1 %v8740_v57  ;;  %5796 = vmatprep.subr.bf16.mxu0 %v8745_v40  ;;  %v8803_v53 = vld [vmem:[#allocation4 + $0xd48] ss:$16 sps:$4 sm:$0xff]   ;;  %v8814_v38 = vld [vmem:[#allocation4 + $0xf2c] ss:$16 sps:$4 sm:$0xff]  }
 0x29b   :  { %5837 = vmatprep.subr.bf16.mxu1 %v8748_v47  ;;  %v8806_v30 = vld [vmem:[#allocation4 + $0xf48] ss:$16 sps:$4 sm:$0xff]   ;;  %v8817_v39 = vld [vmem:[#allocation4 + $0xd0c] ss:$16 sps:$4 sm:$0xff]  }
 0x29c   :  { %v8809_v57 = vld [vmem:[#allocation4 + $0xd28] ss:$16 sps:$4 sm:$0xff]   ;;  %v8820_v40 = vld [vmem:[#allocation4 + $0xf0c] ss:$16 sps:$4 sm:$0xff]  }
 0x29d   :  { %5797 = vmatpush1.bf16.msra.mxu0 %v8743_v41  ;;  %v8812_v58 = vld [vmem:[#allocation4 + $0xf28] ss:$16 sps:$4 sm:$0xff]  }
 0x29e   :  { %5838 = vmatpush1.bf16.msra.mxu1 %v8746_v32  ;;  %5798 = vmatprep.subr.bf16.mxu0 %v8751_v33  ;;  %v8815_v47 = vld [vmem:[#allocation4 + $0xd08] ss:$16 sps:$4 sm:$0xff]   ;;  %v1202_v32 = vsub.s32 2, %v9370_v46  ;;  %v8823_v33 = vld [vmem:[#allocation4 + $0x10ec] ss:$16 sps:$4 sm:$0xff]  }
 0x29f   :  { %5839 = vmatprep.subr.bf16.mxu1 %v8754_v48  ;;  %v8818_v41 = vld [vmem:[#allocation4 + $0xf08] ss:$16 sps:$4 sm:$0xff]   ;;  %v8826_v48 = vld [vmem:[#allocation4 + $0x12ec] ss:$16 sps:$4 sm:$0xff]  }
 0x2a1   :  { %5799 = vmatpush1.bf16.msra.mxu0 %v8749_v49  ;;  %v1206_v49 = vsub.s32 3, %v9370_v46  ;;  %v9131_v46 = vld [vmem:[%s9750_s7 + $0x8] sm:$0xff]  }
 0x2a2   :  { %5840 = vmatpush1.bf16.msra.mxu1 %v8752_v50  ;;  %5800 = vmatprep.subr.bf16.mxu0 %v8757_v51  ;;  %v9133_v50 = vld [vmem:[#allocation7] sm:$0xf] }
 0x2a3   :  { %5841 = vmatprep.subr.bf16.mxu1 %v8760_v52  ;;  %v1203_v51 = vrot.slane %v9133_v50, %v1202_v32  ;;  %v8821_v52 = vld [vmem:[#allocation4 + $0x10e8] ss:$16 sps:$4 sm:$0xff]   ;;  %v8877_v32 = vld [vmem:[#allocation4 + $0x11cc] ss:$16 sps:$4 sm:$0xff]  }
 0x2a5   :  { %5801 = vmatpush1.bf16.msra.mxu0 %v8755_v21  ;;  %v8824_v21 = vld [vmem:[#allocation4 + $0x12e8] ss:$16 sps:$4 sm:$0xff]  }
 0x2a6   :  { %5842 = vmatpush1.bf16.msra.mxu1 %v8758_v24  ;;  %5802 = vmatprep.subr.bf16.mxu0 %v8763_v27  ;;  %v8829_v24 = vld [vmem:[#allocation4 + $0x10cc] ss:$16 sps:$4 sm:$0xff]  }
 0x2a7   :  { %5843 = vmatprep.subr.bf16.mxu1 %v8766_v61  ;;  %v8832_v27 = vld [vmem:[#allocation4 + $0x12cc] ss:$16 sps:$4 sm:$0xff]   ;;  %v1207_v61 = vrot.slane %v9133_v50, %v1206_v49  ;;  %v8878_v49 = vld [vmem:[#allocation4 + $0x13c8] ss:$16 sps:$4 sm:$0xff]  }
 0x2a8   :  { %v8883_v50 = vld [vmem:[#allocation4 + $0x11ac] ss:$16 sps:$4 sm:$0xff]  }
 0x2a9   :  { %5803 = vmatpush1.bf16.msra.mxu0 %v8761_v62 }
 0x2aa   :  { %5844 = vmatpush1.bf16.msra.mxu1 %v8764_v4  ;;  %5804 = vmatprep.subr.bf16.mxu0 %v8769_v44 }
 0x2ab   :  { %5845 = vmatprep.subr.bf16.mxu1 %v8772_v45  ;;  %v8827_v45 = vld [vmem:[#allocation4 + $0x10c8] ss:$16 sps:$4 sm:$0xff]  }
 0x2ad   :  { %5805 = vmatpush1.bf16.msra.mxu0 %v8767_v36  ;;  %v8830_v36 = vld [vmem:[#allocation4 + $0x12c8] ss:$16 sps:$4 sm:$0xff]  }
 0x2ae   :  { %5846 = vmatpush1.bf16.msra.mxu1 %v8770_v11  ;;  %5806 = vmatprep.subr.bf16.mxu0 %v8775_v16 }
 0x2af   :  { %5847 = vmatprep.subr.bf16.mxu1 %v8778_v19  ;;  %v8835_v19 = vld [vmem:[#allocation4 + $0x10ac] ss:$16 sps:$4 sm:$0xff]  }
 0x2b1   :  { %5807 = vmatpush2.bf16.msra.mxu0 %v8773_v12  ;;  %v8838_v12 = vld [vmem:[#allocation4 + $0x12ac] ss:$16 sps:$4 sm:$0xff]  }
 0x2b2   :  { %5848 = vmatpush2.bf16.msra.mxu1 %v8776_v13  ;;  %5808 = vmatprep.subr.bf16.mxu0 %v8781_v14 }
 0x2b3   :  { %5849 = vmatprep.subr.bf16.mxu1 %v8784_v15 }
 0x2b5   :  { %5809 = vmatpush2.bf16.msra.mxu0 %v8779_v20  ;;  %v8833_v20 = vld [vmem:[#allocation4 + $0x10a8] ss:$16 sps:$4 sm:$0xff]  }
 0x2b6   :  { %5850 = vmatpush2.bf16.msra.mxu1 %v8782_v29  ;;  %5810 = vmatprep.subr.bf16.mxu0 %v8787_v22  ;;  %v8836_v29 = vld [vmem:[#allocation4 + $0x12a8] ss:$16 sps:$4 sm:$0xff]  }
 0x2b7   :  { %5851 = vmatprep.subr.bf16.mxu1 %v8790_v23 }
 0x2b9   :  { %5811 = vmatpush2.bf16.msra.mxu0 %v8785_v59  ;;  %v8841_v59 = vld [vmem:[#allocation4 + $0x108c] ss:$16 sps:$4 sm:$0xff]  }
 0x2ba   :  { %5852 = vmatpush2.bf16.msra.mxu1 %v8788_v1  ;;  %5812 = vmatprep.subr.bf16.mxu0 %v8793_v2  ;;  %v8844_v1 = vld [vmem:[#allocation4 + $0x128c] ss:$16 sps:$4 sm:$0xff]   ;;  %v8839_v2 = vld [vmem:[#allocation4 + $0x1088] ss:$16 sps:$4 sm:$0xff]  }
 0x2bb   :  { %5853 = vmatprep.subr.bf16.mxu1 %v8796_v3  ;;  %v8850_v3 = vld [vmem:[#allocation4 + $0x126c] ss:$16 sps:$4 sm:$0xff]  }
 0x2bd   :  { %5813 = vmatpush2.bf16.msra.mxu0 %v8791_v63  ;;  %v8845_v63 = vld [vmem:[#allocation4 + $0x1068] ss:$16 sps:$4 sm:$0xff]  }
 0x2be   :  { %5854 = vmatpush2.bf16.msra.mxu1 %v8794_v34  ;;  %5814 = vmatprep.subr.bf16.mxu0 %v8799_v7  ;;  %v8848_v34 = vld [vmem:[#allocation4 + $0x1268] ss:$16 sps:$4 sm:$0xff]   ;;  %v8853_v7 = vld [vmem:[#allocation4 + $0x104c] ss:$16 sps:$4 sm:$0xff]  }
 0x2bf   :  { %5855 = vmatprep.subr.bf16.mxu1 %v8802_v10  ;;  %v8856_v10 = vld [vmem:[#allocation4 + $0x124c] ss:$16 sps:$4 sm:$0xff]  }
 0x2c1   :  { %5815 = vmatpush2.bf16.msra.mxu0 %v8797_v5  ;;  %v8851_v5 = vld [vmem:[#allocation4 + $0x1048] ss:$16 sps:$4 sm:$0xff]  }
 0x2c2   :  { %5856 = vmatpush2.bf16.msra.mxu1 %v8800_v35  ;;  %5816 = vmatprep.subr.bf16.mxu0 %v8805_v6  ;;  %v8854_v35 = vld [vmem:[#allocation4 + $0x1248] ss:$16 sps:$4 sm:$0xff]   ;;  %v8859_v6 = vld [vmem:[#allocation4 + $0x102c] ss:$16 sps:$4 sm:$0xff]  }
 0x2c3   :  { %5857 = vmatprep.subr.bf16.mxu1 %v8808_v9  ;;  %v8862_v9 = vld [vmem:[#allocation4 + $0x122c] ss:$16 sps:$4 sm:$0xff]  }
 0x2c5   :  { %5817 = vmatpush2.bf16.msra.mxu0 %v8803_v53  ;;  %v8857_v53 = vld [vmem:[#allocation4 + $0x1028] ss:$16 sps:$4 sm:$0xff]  }
 0x2c6   :  { %5858 = vmatpush2.bf16.msra.mxu1 %v8806_v30  ;;  %5818 = vmatprep.subr.bf16.mxu0 %v8811_v31  ;;  %v8860_v30 = vld [vmem:[#allocation4 + $0x1228] ss:$16 sps:$4 sm:$0xff]   ;;  %v8865_v31 = vld [vmem:[#allocation4 + $0x100c] ss:$16 sps:$4 sm:$0xff]  }
 0x2c7   :  { %5859 = vmatprep.subr.bf16.mxu1 %v8814_v38  ;;  %v8868_v38 = vld [vmem:[#allocation4 + $0x120c] ss:$16 sps:$4 sm:$0xff]  }
 0x2c9   :  { %5819 = vmatpush2.bf16.msra.mxu0 %v8809_v57  ;;  %v8863_v57 = vld [vmem:[#allocation4 + $0x1008] ss:$16 sps:$4 sm:$0xff]  }
 0x2ca   :  { %5860 = vmatpush2.bf16.msra.mxu1 %v8812_v58  ;;  %5820 = vmatprep.subr.bf16.mxu0 %v8817_v39  ;;  %v8866_v58 = vld [vmem:[#allocation4 + $0x1208] ss:$16 sps:$4 sm:$0xff]   ;;  %v8871_v39 = vld [vmem:[#allocation4 + $0x11ec] ss:$16 sps:$4 sm:$0xff]  }
 0x2cb   :  { %5861 = vmatprep.subr.bf16.mxu1 %v8820_v40  ;;  %v8874_v40 = vld [vmem:[#allocation4 + $0x13ec] ss:$16 sps:$4 sm:$0xff]  }
 0x2cd   :  { %5821 = vmatpush2.bf16.msra.mxu0 %v8815_v47  ;;  %v8869_v47 = vld [vmem:[#allocation4 + $0x11e8] ss:$16 sps:$4 sm:$0xff]  }
 0x2ce   :  { %5862 = vmatpush2.bf16.msra.mxu1 %v8818_v41  ;;  %5872 = vmatprep.subr.bf16.mxu0 %v8823_v33  ;;  %v8872_v41 = vld [vmem:[#allocation4 + $0x13e8] ss:$16 sps:$4 sm:$0xff]   ;;  %v8880_v33 = vld [vmem:[#allocation4 + $0x13cc] ss:$16 sps:$4 sm:$0xff]  }
 0x2cf   :  { %5913 = vmatprep.subr.bf16.mxu1 %v8826_v48  ;;  %v8875_v48 = vld [vmem:[#allocation4 + $0x11c8] ss:$16 sps:$4 sm:$0xff]  }
 0x2d0   :  { %v5578_v62 = vpop.f32.mrf.mxu0  ;;  %5823 = vmatmul.mubr.bf16.vlgmr.msra.gmra.mxu0 %v9559_v17 }
 0x2d1   :  { %v5619_v4 = vpop.f32.mrf.mxu1  ;;  %5864 = vmatmul.mubr.bf16.vlgmr.msra.gmra.mxu1 %v9561_v18  ;;  %v5579_v44 = vadd.f32 %v5578_v62, %v1203_v51  ;;  %5873 = vmatpush1.bf16.msra.mxu0 %v8821_v52  ;;  %v8886_v51 = vld [vmem:[#allocation4 + $0x13ac] ss:$16 sps:$4 sm:$0xff]   ;;  %v8881_v52 = vld [vmem:[#allocation4 + $0x11a8] ss:$16 sps:$4 sm:$0xff]  }
 0x2d2   :  { %5914 = vmatpush1.bf16.msra.mxu1 %v8824_v21  ;;  %v5580_v11 = vpop.f32.mrf.mxu0  ;;  %5874 = vmatprep.subr.bf16.mxu0 %v8829_v24  ;;  %v8884_v21 = vld [vmem:[#allocation4 + $0x13a8] ss:$16 sps:$4 sm:$0xff]   ;;  %v8889_v24 = vld [vmem:[#allocation4 + $0x118c] ss:$16 sps:$4 sm:$0xff]  }
 0x2d3   :  { %v5621_v16 = vpop.f32.mrf.mxu1  ;;  %5915 = vmatprep.subr.bf16.mxu1 %v8832_v27  ;;  %v9681_v13 = vadd.f32 %v5619_v4, %v5579_v44  ;;  %v5581_v14 = vadd.f32 %v5580_v11, %v1207_v61  ;;  %5904 = vmatprep.mubr.bf16.mxu0 %v9567_v25  ;;  %v8842_v25 = vld [vmem:[#allocation4 + $0x1288] ss:$16 sps:$4 sm:$0xff]   ;;  %v8892_v27 = vld [vmem:[#allocation4 + $0x138c] ss:$16 sps:$4 sm:$0xff]  }
 0x2d4   :  { %5945 = vmatprep.mubr.bf16.mxu1 %v9569_v26  ;;  %v5582_v17 = vpop.f32.mrf.mxu0  ;;  %v8847_v26 = vld [vmem:[#allocation4 + $0x106c] ss:$16 sps:$4 sm:$0xff]   ;;  %v8887_v61 = vld [vmem:[#allocation4 + $0x1188] ss:$16 sps:$4 sm:$0xff]  }
 0x2d5   :  { %v5623_v18 = vpop.f32.mrf.mxu1  ;;  %v9685_v15 = vadd.f32 %v5621_v16, %v5581_v14  ;;  %5875 = vmatpush1.bf16.msra.mxu0 %v8827_v45  ;;  %v8890_v62 = vld [vmem:[#allocation4 + $0x1388] ss:$16 sps:$4 sm:$0xff]   ;;  %v8895_v4 = vld [vmem:[#allocation4 + $0x116c] ss:$16 sps:$4 sm:$0xff]  }
 0x2d6   :  { %5916 = vmatpush1.bf16.msra.mxu1 %v8830_v36  ;;  %v5583_v22 = vpop.f32.mrf.mxu0  ;;  %5876 = vmatprep.subr.bf16.mxu0 %v8835_v19  ;;  %v8898_v44 = vld [vmem:[#allocation4 + $0x136c] ss:$16 sps:$4 sm:$0xff]   ;;  %v8893_v45 = vld [vmem:[#allocation4 + $0x1168] ss:$16 sps:$4 sm:$0xff]  }
 0x2d7   :  { %v5624_v23 = vpop.f32.mrf.mxu1  ;;  %5917 = vmatprep.subr.bf16.mxu1 %v8838_v12  ;;  %v8896_v36 = vld [vmem:[#allocation4 + $0x1368] ss:$16 sps:$4 sm:$0xff]   ;;  %v8901_v11 = vld [vmem:[#allocation4 + $0x114c] ss:$16 sps:$4 sm:$0xff]  }
 0x2d8   :  { %v8904_v16 = vld [vmem:[#allocation4 + $0x134c] ss:$16 sps:$4 sm:$0xff]   ;;  %v8899_v19 = vld [vmem:[#allocation4 + $0x1148] ss:$16 sps:$4 sm:$0xff]  }
 0x2d9   :  { %5877 = vmatpush1.bf16.msra.mxu0 %v8833_v20  ;;  %v8902_v12 = vld [vmem:[#allocation4 + $0x1348] ss:$16 sps:$4 sm:$0xff]   ;;  %v8907_v14 = vld [vmem:[#allocation4 + $0x112c] ss:$16 sps:$4 sm:$0xff]  }
 0x2da   :  { %5918 = vmatpush1.bf16.msra.mxu1 %v8836_v29  ;;  %5878 = vmatprep.subr.bf16.mxu0 %v8841_v59  ;;  %v8910_v17 = vld [vmem:[#allocation4 + $0x132c] ss:$16 sps:$4 sm:$0xff]   ;;  %v8905_v18 = vld [vmem:[#allocation4 + $0x1128] ss:$16 sps:$4 sm:$0xff]  }
 0x2db   :  { %5919 = vmatprep.subr.bf16.mxu1 %v8844_v1  ;;  %v8908_v20 = vld [vmem:[#allocation4 + $0x1328] ss:$16 sps:$4 sm:$0xff]   ;;  %v8913_v29 = vld [vmem:[#allocation4 + $0x110c] ss:$16 sps:$4 sm:$0xff]  }
 0x2dc   :  { %v8916_v22 = vld [vmem:[#allocation4 + $0x130c] ss:$16 sps:$4 sm:$0xff]   ;;  %v8911_v23 = vld [vmem:[#allocation4 + $0x1108] ss:$16 sps:$4 sm:$0xff]  }
 0x2dd   :  { %5879 = vmatpush1.bf16.msra.mxu0 %v8839_v2  ;;  %v8914_v59 = vld [vmem:[#allocation4 + $0x1308] ss:$16 sps:$4 sm:$0xff]   ;;  %v8919_v1 = vld [vmem:[#allocation4 + $0x14ec] ss:$16 sps:$4 sm:$0xff]  }
 0x2de   :  { %5920 = vmatpush1.bf16.msra.mxu1 %v8842_v25  ;;  %5880 = vmatprep.subr.bf16.mxu0 %v8847_v26  ;;  %v8922_v2 = vld [vmem:[#allocation4 + $0x16ec] ss:$16 sps:$4 sm:$0xff]   ;;  %v8917_v25 = vld [vmem:[#allocation4 + $0x14e8] ss:$16 sps:$4 sm:$0xff]  }
 0x2df   :  { %5921 = vmatprep.subr.bf16.mxu1 %v8850_v3  ;;  %v8920_v26 = vld [vmem:[#allocation4 + $0x16e8] ss:$16 sps:$4 sm:$0xff]   ;;  %v8925_v3 = vld [vmem:[#allocation4 + $0x14cc] ss:$16 sps:$4 sm:$0xff]  }
 0x2e1   :  { %5881 = vmatpush1.bf16.msra.mxu0 %v8845_v63  ;;  %v8928_v63 = vld [vmem:[#allocation4 + $0x16cc] ss:$16 sps:$4 sm:$0xff]  }
 0x2e2   :  { %5922 = vmatpush1.bf16.msra.mxu1 %v8848_v34  ;;  %5882 = vmatprep.subr.bf16.mxu0 %v8853_v7 }
 0x2e3   :  { %5923 = vmatprep.subr.bf16.mxu1 %v8856_v10 }
 0x2e5   :  { %5883 = vmatpush1.bf16.msra.mxu0 %v8851_v5  ;;  %v8923_v5 = vld [vmem:[#allocation4 + $0x14c8] ss:$16 sps:$4 sm:$0xff]  }
 0x2e6   :  { %5924 = vmatpush1.bf16.msra.mxu1 %v8854_v35  ;;  %5884 = vmatprep.subr.bf16.mxu0 %v8859_v6  ;;  %v8926_v35 = vld [vmem:[#allocation4 + $0x16c8] ss:$16 sps:$4 sm:$0xff]  }
 0x2e7   :  { %5925 = vmatprep.subr.bf16.mxu1 %v8862_v9 }
 0x2e9   :  { %5885 = vmatpush1.bf16.msra.mxu0 %v8857_v53  ;;  %v8931_v53 = vld [vmem:[#allocation4 + $0x14ac] ss:$16 sps:$4 sm:$0xff]  }
 0x2ea   :  { %5926 = vmatpush1.bf16.msra.mxu1 %v8860_v30  ;;  %5886 = vmatprep.subr.bf16.mxu0 %v8865_v31  ;;  %v8934_v30 = vld [vmem:[#allocation4 + $0x16ac] ss:$16 sps:$4 sm:$0xff]  }
 0x2eb   :  { %5927 = vmatprep.subr.bf16.mxu1 %v8868_v38 }
 0x2ed   :  { %5887 = vmatpush1.bf16.msra.mxu0 %v8863_v57  ;;  %v8929_v57 = vld [vmem:[#allocation4 + $0x14a8] ss:$16 sps:$4 sm:$0xff]  }
 0x2ee   :  { %5928 = vmatpush1.bf16.msra.mxu1 %v8866_v58  ;;  %5888 = vmatprep.subr.bf16.mxu0 %v8871_v39  ;;  %v8932_v58 = vld [vmem:[#allocation4 + $0x16a8] ss:$16 sps:$4 sm:$0xff]  }
 0x2ef   :  { %5929 = vmatprep.subr.bf16.mxu1 %v8874_v40 }
 0x2f1   :  { %5889 = vmatpush2.bf16.msra.mxu0 %v8869_v47  ;;  %v8937_v47 = vld [vmem:[#allocation4 + $0x148c] ss:$16 sps:$4 sm:$0xff]  }
 0x2f2   :  { %5930 = vmatpush2.bf16.msra.mxu1 %v8872_v41  ;;  %5890 = vmatprep.subr.bf16.mxu0 %v8877_v32  ;;  %v8940_v41 = vld [vmem:[#allocation4 + $0x168c] ss:$16 sps:$4 sm:$0xff]  }
 0x2f3   :  { %5931 = vmatprep.subr.bf16.mxu1 %v8880_v33  ;;  %v8946_v32 = vld [vmem:[#allocation4 + $0x166c] ss:$16 sps:$4 sm:$0xff]   ;;  %v8941_v33 = vld [vmem:[#allocation4 + $0x1468] ss:$16 sps:$4 sm:$0xff]  }
 0x2f5   :  { %5891 = vmatpush2.bf16.msra.mxu0 %v8875_v48  ;;  %v8944_v48 = vld [vmem:[#allocation4 + $0x1668] ss:$16 sps:$4 sm:$0xff]  }
 0x2f6   :  { %5932 = vmatpush2.bf16.msra.mxu1 %v8878_v49  ;;  %5892 = vmatprep.subr.bf16.mxu0 %v8883_v50  ;;  %v8949_v49 = vld [vmem:[#allocation4 + $0x144c] ss:$16 sps:$4 sm:$0xff]  }
 0x2f7   :  { %5933 = vmatprep.subr.bf16.mxu1 %v8886_v51  ;;  %v8952_v50 = vld [vmem:[#allocation4 + $0x164c] ss:$16 sps:$4 sm:$0xff]   ;;  %v8947_v51 = vld [vmem:[#allocation4 + $0x1448] ss:$16 sps:$4 sm:$0xff]  }
 0x2f9   :  { %5893 = vmatpush2.bf16.msra.mxu0 %v8881_v52  ;;  %v8950_v52 = vld [vmem:[#allocation4 + $0x1648] ss:$16 sps:$4 sm:$0xff]  }
 0x2fa   :  { %5934 = vmatpush2.bf16.msra.mxu1 %v8884_v21  ;;  %5894 = vmatprep.subr.bf16.mxu0 %v8889_v24  ;;  %v8955_v21 = vld [vmem:[#allocation4 + $0x142c] ss:$16 sps:$4 sm:$0xff]  }
 0x2fb   :  { %5935 = vmatprep.subr.bf16.mxu1 %v8892_v27  ;;  %v8958_v24 = vld [vmem:[#allocation4 + $0x162c] ss:$16 sps:$4 sm:$0xff]   ;;  %v8953_v27 = vld [vmem:[#allocation4 + $0x1428] ss:$16 sps:$4 sm:$0xff]  }
 0x2fd   :  { %5895 = vmatpush2.bf16.msra.mxu0 %v8887_v61  ;;  %v8956_v61 = vld [vmem:[#allocation4 + $0x1628] ss:$16 sps:$4 sm:$0xff]  }
 0x2fe   :  { %5936 = vmatpush2.bf16.msra.mxu1 %v8890_v62  ;;  %5896 = vmatprep.subr.bf16.mxu0 %v8895_v4  ;;  %v8961_v62 = vld [vmem:[#allocation4 + $0x140c] ss:$16 sps:$4 sm:$0xff]  }
 0x2ff   :  { %5937 = vmatprep.subr.bf16.mxu1 %v8898_v44  ;;  %v8964_v4 = vld [vmem:[#allocation4 + $0x160c] ss:$16 sps:$4 sm:$0xff]   ;;  %v8959_v44 = vld [vmem:[#allocation4 + $0x1408] ss:$16 sps:$4 sm:$0xff]  }
 0x301   :  { %5897 = vmatpush2.bf16.msra.mxu0 %v8893_v45  ;;  %v8962_v45 = vld [vmem:[#allocation4 + $0x1608] ss:$16 sps:$4 sm:$0xff]  }
 0x302   :  { %5938 = vmatpush2.bf16.msra.mxu1 %v8896_v36  ;;  %5898 = vmatprep.subr.bf16.mxu0 %v8901_v11  ;;  %v8967_v36 = vld [vmem:[#allocation4 + $0x15ec] ss:$16 sps:$4 sm:$0xff]  }
 0x303   :  { %5939 = vmatprep.subr.bf16.mxu1 %v8904_v16  ;;  %v8970_v11 = vld [vmem:[#allocation4 + $0x17ec] ss:$16 sps:$4 sm:$0xff]   ;;  %v8965_v16 = vld [vmem:[#allocation4 + $0x15e8] ss:$16 sps:$4 sm:$0xff]  }
 0x305   :  { %5899 = vmatpush2.bf16.msra.mxu0 %v8899_v19  ;;  %v8968_v19 = vld [vmem:[#allocation4 + $0x17e8] ss:$16 sps:$4 sm:$0xff]  }
 0x306   :  { %5940 = vmatpush2.bf16.msra.mxu1 %v8902_v12  ;;  %5900 = vmatprep.subr.bf16.mxu0 %v8907_v14  ;;  %v8973_v12 = vld [vmem:[#allocation4 + $0x15cc] ss:$16 sps:$4 sm:$0xff]  }
 0x307   :  { %5941 = vmatprep.subr.bf16.mxu1 %v8910_v17  ;;  %v8976_v14 = vld [vmem:[#allocation4 + $0x17cc] ss:$16 sps:$4 sm:$0xff]   ;;  %v8971_v17 = vld [vmem:[#allocation4 + $0x15c8] ss:$16 sps:$4 sm:$0xff]  }
 0x309   :  { %5901 = vmatpush2.bf16.msra.mxu0 %v8905_v18  ;;  %v8974_v18 = vld [vmem:[#allocation4 + $0x17c8] ss:$16 sps:$4 sm:$0xff]  }
 0x30a   :  { %5942 = vmatpush2.bf16.msra.mxu1 %v8908_v20  ;;  %5902 = vmatprep.subr.bf16.mxu0 %v8913_v29  ;;  %v8979_v20 = vld [vmem:[#allocation4 + $0x15ac] ss:$16 sps:$4 sm:$0xff]  }
 0x30b   :  { %5943 = vmatprep.subr.bf16.mxu1 %v8916_v22  ;;  %v8982_v29 = vld [vmem:[#allocation4 + $0x17ac] ss:$16 sps:$4 sm:$0xff]   ;;  %v8977_v22 = vld [vmem:[#allocation4 + $0x15a8] ss:$16 sps:$4 sm:$0xff]  }
 0x30d   :  { %5903 = vmatpush2.bf16.msra.mxu0 %v8911_v23  ;;  %v8980_v23 = vld [vmem:[#allocation4 + $0x17a8] ss:$16 sps:$4 sm:$0xff]  }
 0x30e   :  { %5944 = vmatpush2.bf16.msra.mxu1 %v8914_v59  ;;  %5954 = vmatprep.subr.bf16.mxu0 %v8919_v1  ;;  %v8985_v59 = vld [vmem:[#allocation4 + $0x158c] ss:$16 sps:$4 sm:$0xff]  }
 0x30f   :  { %5995 = vmatprep.subr.bf16.mxu1 %v8922_v2  ;;  %v8988_v1 = vld [vmem:[#allocation4 + $0x178c] ss:$16 sps:$4 sm:$0xff]   ;;  %v8983_v2 = vld [vmem:[#allocation4 + $0x1588] ss:$16 sps:$4 sm:$0xff]  }
 0x310   :  { %v5660_v34 = vpop.f32.mrf.mxu0  ;;  %5905 = vmatmul.mubr.bf16.vlgmr.msra.gmra.mxu0 %v9611_v55 }
 0x311   :  { %v5701_v7 = vpop.f32.mrf.mxu1  ;;  %5946 = vmatmul.mubr.bf16.vlgmr.msra.gmra.mxu1 %v9613_v56  ;;  %v5661_v10 = vadd.f32 %v5660_v34, %v9681_v13  ;;  %5955 = vmatpush1.bf16.msra.mxu0 %v8917_v25  ;;  %v8986_v25 = vld [vmem:[#allocation4 + $0x1788] ss:$16 sps:$4 sm:$0xff]  }
 0x312   :  { %5996 = vmatpush1.bf16.msra.mxu1 %v8920_v26  ;;  %v5662_v6 = vpop.f32.mrf.mxu0  ;;  %5956 = vmatprep.subr.bf16.mxu0 %v8925_v3  ;;  %v8991_v26 = vld [vmem:[#allocation4 + $0x156c] ss:$16 sps:$4 sm:$0xff]   ;;  %v8992_v34 = vld [vmem:[#allocation4 + $0x1768] ss:$16 sps:$4 sm:$0xff]  }
 0x313   :  { %v5703_v9 = vpop.f32.mrf.mxu1  ;;  %5997 = vmatprep.subr.bf16.mxu1 %v8928_v63  ;;  %v9690_v31 = vadd.f32 %v5701_v7, %v5661_v10  ;;  %v5663_v38 = vadd.f32 %v5662_v6, %v9685_v15  ;;  %5986 = vmatprep.mubr.bf16.mxu0 %v9615_v42  ;;  %v8935_v15 = vld [vmem:[#allocation4 + $0x1488] ss:$16 sps:$4 sm:$0xff]   ;;  %v8994_v3 = vld [vmem:[#allocation4 + $0x176c] ss:$16 sps:$4 sm:$0xff]  }
 0x314   :  { %6027 = vmatprep.mubr.bf16.mxu1 %v9617_v43  ;;  %v5664_v55 = vpop.f32.mrf.mxu0  ;;  %v8938_v42 = vld [vmem:[#allocation4 + $0x1688] ss:$16 sps:$4 sm:$0xff]   ;;  %v8943_v43 = vld [vmem:[#allocation4 + $0x146c] ss:$16 sps:$4 sm:$0xff]  }
 0x315   :  { %v5705_v56 = vpop.f32.mrf.mxu1  ;;  %v9695_v13 = vadd.f32 %v5703_v9, %v5663_v38  ;;  %5957 = vmatpush1.bf16.msra.mxu0 %v8923_v5  ;;  %v8989_v63 = vld [vmem:[#allocation4 + $0x1568] ss:$16 sps:$4 sm:$0xff]   ;;  %v8997_v7 = vld [vmem:[#allocation4 + $0x154c] ss:$16 sps:$4 sm:$0xff]  }
 0x316   :  { %5998 = vmatpush1.bf16.msra.mxu1 %v8926_v35  ;;  %v5665_v39 = vpop.f32.mrf.mxu0  ;;  %5958 = vmatprep.subr.bf16.mxu0 %v8931_v53  ;;  %v9000_v10 = vld [vmem:[#allocation4 + $0x174c] ss:$16 sps:$4 sm:$0xff]   ;;  %v8995_v5 = vld [vmem:[#allocation4 + $0x1548] ss:$16 sps:$4 sm:$0xff]  }
 0x317   :  { %v5706_v40 = vpop.f32.mrf.mxu1  ;;  %5999 = vmatprep.subr.bf16.mxu1 %v8934_v30  ;;  %v8998_v35 = vld [vmem:[#allocation4 + $0x1748] ss:$16 sps:$4 sm:$0xff]   ;;  %v9003_v6 = vld [vmem:[#allocation4 + $0x152c] ss:$16 sps:$4 sm:$0xff]   ;;  %v6037_v39 = vmax.f32 %v9675_v28, 0.0 }
 0x318   :  { %v9006_v9 = vld [vmem:[#allocation4 + $0x172c] ss:$16 sps:$4 sm:$0xff]   ;;  %v9001_v53 = vld [vmem:[#allocation4 + $0x1528] ss:$16 sps:$4 sm:$0xff]  }
 0x319   :  { %5959 = vmatpush1.bf16.msra.mxu0 %v8929_v57  ;;  %v9004_v30 = vld [vmem:[#allocation4 + $0x1728] ss:$16 sps:$4 sm:$0xff]   ;;  %v9009_v38 = vld [vmem:[#allocation4 + $0x150c] ss:$16 sps:$4 sm:$0xff]  }
 0x31a   :  { %6000 = vmatpush1.bf16.msra.mxu1 %v8932_v58  ;;  %5960 = vmatprep.subr.bf16.mxu0 %v8937_v47  ;;  %v9012_v55 = vld [vmem:[#allocation4 + $0x170c] ss:$16 sps:$4 sm:$0xff]   ;;  %v9007_v56 = vld [vmem:[#allocation4 + $0x1508] ss:$16 sps:$4 sm:$0xff]  }
 0x31b   :  { %6001 = vmatprep.subr.bf16.mxu1 %v8940_v41  ;;  %v9010_v57 = vld [vmem:[#allocation4 + $0x1708] ss:$16 sps:$4 sm:$0xff]   ;;  %v9013_v40 = vld [vmem:[#allocation9 + $0x70] ss:$8 sps:$4 sm:$0xff]   ;;  %v7751_v41 = vpack.c.bf16 %v6037_v39, %v6037_v39 }
 0x31c   :  { %v9015_v58 = vld [vmem:[#allocation9 + $0x74] ss:$8 sps:$4 sm:$0xff]   ;;  %v9018_v47 = vld [vmem:[#allocation9 + $0x64] ss:$8 sps:$4 sm:$0xff]   ;;  %v9091_v39 = vld [vmem:[#allocation9 + $0x1d0] ss:$8 sps:$4 sm:$0xff]  }
 0x31d   :  { %5961 = vmatpush1.bf16.msra.mxu0 %v8935_v15  ;;  %v9021_v28 = vld [vmem:[#allocation9 + $0x54] ss:$8 sps:$4 sm:$0xff]  }
 0x31e   :  { %6002 = vmatpush1.bf16.msra.mxu1 %v8938_v42  ;;  %5962 = vmatprep.subr.bf16.mxu0 %v8943_v43 }
 0x31f   :  { %6003 = vmatprep.subr.bf16.mxu1 %v8946_v32  ;;  %v9016_v32 = vld [vmem:[#allocation9 + $0x60] ss:$8 sps:$4 sm:$0xff]  }
 0x321   :  { %5963 = vmatpush1.bf16.msra.mxu0 %v8941_v33 }
 0x322   :  { %6004 = vmatpush1.bf16.msra.mxu1 %v8944_v48  ;;  %5964 = vmatprep.subr.bf16.mxu0 %v8949_v49 }
 0x323   :  { %6005 = vmatprep.subr.bf16.mxu1 %v8952_v50 }
 0x325   :  { %5965 = vmatpush1.bf16.msra.mxu0 %v8947_v51 }
 0x326   :  { %6006 = vmatpush1.bf16.msra.mxu1 %v8950_v52  ;;  %5966 = vmatprep.subr.bf16.mxu0 %v8955_v21 }
 0x327   :  { %6007 = vmatprep.subr.bf16.mxu1 %v8958_v24 }
 0x329   :  { %5967 = vmatpush1.bf16.msra.mxu0 %v8953_v27  ;;  %v9061_v27 = vld [vmem:[#allocation9 + $0x170] ss:$8 sps:$4 sm:$0xff]  }
 0x32a   :  { %6008 = vmatpush1.bf16.msra.mxu1 %v8956_v61  ;;  %5968 = vmatprep.subr.bf16.mxu0 %v8961_v62  ;;  %v9063_v61 = vld [vmem:[#allocation9 + $0x174] ss:$8 sps:$4 sm:$0xff]   ;;  %v9066_v62 = vld [vmem:[#allocation9 + $0x164] ss:$8 sps:$4 sm:$0xff]  }
 0x32b   :  { %6009 = vmatprep.subr.bf16.mxu1 %v8964_v4  ;;  %v9022_v4 = vld [vmem:[#allocation9 + $0x40] ss:$8 sps:$4 sm:$0xff]  }
 0x32d   :  { %5969 = vmatpush1.bf16.msra.mxu0 %v8959_v44  ;;  %v9064_v44 = vld [vmem:[#allocation9 + $0x160] ss:$8 sps:$4 sm:$0xff]  }
 0x32e   :  { %6010 = vmatpush1.bf16.msra.mxu1 %v8962_v45  ;;  %5970 = vmatprep.subr.bf16.mxu0 %v8967_v36  ;;  %v9069_v45 = vld [vmem:[#allocation9 + $0x154] ss:$8 sps:$4 sm:$0xff]   ;;  %v9025_v36 = vld [vmem:[#allocation9 + $0x30] ss:$8 sps:$4 sm:$0xff]  }
 0x32f   :  { %6011 = vmatprep.subr.bf16.mxu1 %v8970_v11  ;;  %v9067_v11 = vld [vmem:[#allocation9 + $0x150] ss:$8 sps:$4 sm:$0xff]  }
 0x331   :  { %5971 = vmatpush2.bf16.msra.mxu0 %v8965_v16  ;;  %v9030_v16 = vld [vmem:[#allocation9 + $0x24] ss:$8 sps:$4 sm:$0xff]  }
 0x332   :  { %6012 = vmatpush2.bf16.msra.mxu1 %v8968_v19  ;;  %5972 = vmatprep.subr.bf16.mxu0 %v8973_v12  ;;  %v9072_v19 = vld [vmem:[#allocation9 + $0x144] ss:$8 sps:$4 sm:$0xff]   ;;  %v9028_v12 = vld [vmem:[#allocation9 + $0x20] ss:$8 sps:$4 sm:$0xff]  }
 0x333   :  { %6013 = vmatprep.subr.bf16.mxu1 %v8976_v14  ;;  %v9070_v14 = vld [vmem:[#allocation9 + $0x140] ss:$8 sps:$4 sm:$0xff]  }
 0x335   :  { %5973 = vmatpush2.bf16.msra.mxu0 %v8971_v17  ;;  %v9033_v17 = vld [vmem:[#allocation9 + $0x14] ss:$8 sps:$4 sm:$0xff]  }
 0x336   :  { %6014 = vmatpush2.bf16.msra.mxu1 %v8974_v18  ;;  %5974 = vmatprep.subr.bf16.mxu0 %v8979_v20  ;;  %v9075_v18 = vld [vmem:[#allocation9 + $0x134] ss:$8 sps:$4 sm:$0xff]   ;;  %v9031_v20 = vld [vmem:[#allocation9 + $0x10] ss:$8 sps:$4 sm:$0xff]  }
 0x337   :  { %6015 = vmatprep.subr.bf16.mxu1 %v8982_v29  ;;  %v9073_v29 = vld [vmem:[#allocation9 + $0x130] ss:$8 sps:$4 sm:$0xff]  }
 0x339   :  { %5975 = vmatpush2.bf16.msra.mxu0 %v8977_v22  ;;  %v9036_v22 = vld [vmem:[#allocation9 + $0x4] ss:$8 sps:$4 sm:$0xff]  }
 0x33a   :  { %6016 = vmatpush2.bf16.msra.mxu1 %v8980_v23  ;;  %5976 = vmatprep.subr.bf16.mxu0 %v8985_v59  ;;  %v9078_v23 = vld [vmem:[#allocation9 + $0x124] ss:$8 sps:$4 sm:$0xff]   ;;  %v9034_v59 = vld [vmem:[#allocation9] ss:$8 sps:$4 sm:$0xff]  }
 0x33b   :  { %6017 = vmatprep.subr.bf16.mxu1 %v8988_v1  ;;  %v9076_v1 = vld [vmem:[#allocation9 + $0x120] ss:$8 sps:$4 sm:$0xff]  }
 0x33d   :  { %5977 = vmatpush2.bf16.msra.mxu0 %v8983_v2  ;;  %v9039_v2 = vld [vmem:[#allocation9 + $0xf4] ss:$8 sps:$4 sm:$0xff]  }
 0x33e   :  { %6018 = vmatpush2.bf16.msra.mxu1 %v8986_v25  ;;  %5978 = vmatprep.subr.bf16.mxu0 %v8991_v26  ;;  %v9081_v25 = vld [vmem:[#allocation9 + $0x114] ss:$8 sps:$4 sm:$0xff]   ;;  %v9037_v26 = vld [vmem:[#allocation9 + $0xf0] ss:$8 sps:$4 sm:$0xff]  }
 0x33f   :  { %6019 = vmatprep.subr.bf16.mxu1 %v8994_v3  ;;  %v9079_v3 = vld [vmem:[#allocation9 + $0x110] ss:$8 sps:$4 sm:$0xff]  }
 0x341   :  { %5979 = vmatpush2.bf16.msra.mxu0 %v8989_v63  ;;  %v9042_v63 = vld [vmem:[#allocation9 + $0xe4] ss:$8 sps:$4 sm:$0xff]  }
 0x342   :  { %6020 = vmatpush2.bf16.msra.mxu1 %v8992_v34  ;;  %5980 = vmatprep.subr.bf16.mxu0 %v8997_v7  ;;  %v9084_v34 = vld [vmem:[#allocation9 + $0x104] ss:$8 sps:$4 sm:$0xff]   ;;  %v9040_v7 = vld [vmem:[#allocation9 + $0xe0] ss:$8 sps:$4 sm:$0xff]  }
 0x343   :  { %6021 = vmatprep.subr.bf16.mxu1 %v9000_v10  ;;  %v9082_v10 = vld [vmem:[#allocation9 + $0x100] ss:$8 sps:$4 sm:$0xff]  }
 0x345   :  { %5981 = vmatpush2.bf16.msra.mxu0 %v8995_v5  ;;  %v9045_v5 = vld [vmem:[#allocation9 + $0xd4] ss:$8 sps:$4 sm:$0xff]  }
 0x346   :  { %6022 = vmatpush2.bf16.msra.mxu1 %v8998_v35  ;;  %5982 = vmatprep.subr.bf16.mxu0 %v9003_v6  ;;  %v9087_v35 = vld [vmem:[#allocation9 + $0x1f4] ss:$8 sps:$4 sm:$0xff]   ;;  %v9043_v6 = vld [vmem:[#allocation9 + $0xd0] ss:$8 sps:$4 sm:$0xff]  }
 0x347   :  { %6023 = vmatprep.subr.bf16.mxu1 %v9006_v9  ;;  %v9085_v9 = vld [vmem:[#allocation9 + $0x1f0] ss:$8 sps:$4 sm:$0xff]  }
 0x349   :  { %5983 = vmatpush2.bf16.msra.mxu0 %v9001_v53  ;;  %v9048_v53 = vld [vmem:[#allocation9 + $0xc4] ss:$8 sps:$4 sm:$0xff]  }
 0x34a   :  { %6024 = vmatpush2.bf16.msra.mxu1 %v9004_v30  ;;  %5984 = vmatprep.subr.bf16.mxu0 %v9009_v38  ;;  %v9090_v30 = vld [vmem:[#allocation9 + $0x1e4] ss:$8 sps:$4 sm:$0xff]   ;;  %v9046_v38 = vld [vmem:[#allocation9 + $0xc0] ss:$8 sps:$4 sm:$0xff]  }
 0x34b   :  { %6025 = vmatprep.subr.bf16.mxu1 %v9012_v55  ;;  %v9088_v55 = vld [vmem:[#allocation9 + $0x1e0] ss:$8 sps:$4 sm:$0xff]  }
 0x34d   :  { %5985 = vmatpush2.bf16.msra.mxu0 %v9007_v56  ;;  %v9051_v56 = vld [vmem:[#allocation9 + $0xb4] ss:$8 sps:$4 sm:$0xff]  }
 0x34e   :  { %6026 = vmatpush2.bf16.msra.mxu1 %v9010_v57  ;;  %6470 = vmatprep.subr.bf16.mxu0 %v9015_v58  ;;  %v9093_v57 = vld [vmem:[#allocation9 + $0x1d4] ss:$8 sps:$4 sm:$0xff]   ;;  %v9049_v58 = vld [vmem:[#allocation9 + $0xb0] ss:$8 sps:$4 sm:$0xff]  }
 0x34f   :  { %6511 = vmatprep.subr.bf16.mxu1 %v9063_v61 }
 0x350   :  { %v5742_v15 = vpop.f32.mrf.mxu0  ;;  %5987 = vmatmul.mubr.bf16.vlgmr.msra.gmra.mxu0 %v9633_v54  ;;  %v9019_v54 = vld [vmem:[#allocation9 + $0x50] ss:$8 sps:$4 sm:$0xff]  }
 0x351   :  { %v5783_v42 = vpop.f32.mrf.mxu1  ;;  %6028 = vmatmul.mubr.bf16.vlgmr.msra.gmra.mxu1 %v9635_v60  ;;  %v5743_v43 = vadd.f32 %v5742_v15, %v9690_v31  ;;  %6471 = vmatpush1.bf16.msra.mxu0 %v9013_v40  ;;  %v9024_v31 = vld [vmem:[#allocation9 + $0x44] ss:$8 sps:$4 sm:$0xff]   ;;  %v9094_v15 = vld [vmem:[#allocation9 + $0x1c0] ss:$8 sps:$4 sm:$0xff]  }
 0x352   :  { %6502 = vmatprep.mubr.bf16.mxu0 %v7751_v41  ;;  %v5744_v33 = vpop.f32.mrf.mxu0  ;;  %6472 = vmatprep.subr.bf16.mxu0 %v9018_v47  ;;  %v9054_v40 = vld [vmem:[#allocation9 + $0xa4] ss:$8 sps:$4 sm:$0xff]   ;;  %v9052_v41 = vld [vmem:[#allocation9 + $0xa0] ss:$8 sps:$4 sm:$0xff]  }
 0x353   :  { %v5785_v48 = vpop.f32.mrf.mxu1  ;;  %v9701_v49 = vadd.f32 %v5783_v42, %v5743_v43  ;;  %v5745_v50 = vadd.f32 %v5744_v33, %v9695_v13  ;;  %6512 = vmatpush1.bf16.msra.mxu1 %v9061_v27  ;;  %v9027_v13 = vld [vmem:[#allocation9 + $0x34] ss:$8 sps:$4 sm:$0xff]   ;;  %v9096_v47 = vld [vmem:[#allocation9 + $0x1c4] ss:$8 sps:$4 sm:$0xff]   ;;  %v9097_v33 = vld [vmem:[#allocation9 + $0x1b0] ss:$8 sps:$4 sm:$0xff]  }
 0x354   :  { %v5746_v51 = vpop.f32.mrf.mxu0  ;;  %6513 = vmatprep.subr.bf16.mxu1 %v9066_v62  ;;  %v9057_v42 = vld [vmem:[#allocation9 + $0x94] ss:$8 sps:$4 sm:$0xff]  }
 0x355   :  { %v5787_v52 = vpop.f32.mrf.mxu1  ;;  %v9704_v21 = vadd.f32 %v5785_v48, %v5745_v50  ;;  %6473 = vmatpush1.bf16.msra.mxu0 %v9016_v32  ;;  %v9099_v43 = vld [vmem:[#allocation9 + $0x1b4] ss:$8 sps:$4 sm:$0xff]   ;;  %v9055_v32 = vld [vmem:[#allocation9 + $0x90] ss:$8 sps:$4 sm:$0xff]   ;;  %v9060_v48 = vld [vmem:[#allocation9 + $0x84] ss:$8 sps:$4 sm:$0xff]  }
 0x356   :  { %v5747_v60 = vpop.f32.mrf.mxu0  ;;  %6474 = vmatprep.subr.bf16.mxu0 %v9021_v28  ;;  %v9058_v28 = vld [vmem:[#allocation9 + $0x80] ss:$8 sps:$4 sm:$0xff]   ;;  %v6036_v50 = vmax.f32 %v9670_v37, 0.0  ;;  %v9102_v52 = vld [vmem:[#allocation9 + $0x1a4] ss:$8 sps:$4 sm:$0xff]  }
 0x357   :  { %v5788_v24 = vpop.f32.mrf.mxu1  ;;  %6514 = vmatpush1.bf16.msra.mxu1 %v9064_v44  ;;  %v9105_v62 = vld [vmem:[#allocation9 + $0x194] ss:$8 sps:$4 sm:$0xff]  }
 0x358   :  { %6515 = vmatprep.subr.bf16.mxu1 %v9069_v45  ;;  %v7750_v51 = vpack.c.bf16 %v6036_v50, %v6036_v50 }
 0x359   :  { %6475 = vmatpush1.bf16.msra.mxu0 %v9019_v54  ;;  %v9100_v54 = vld [vmem:[#allocation9 + $0x1a0] ss:$8 sps:$4 sm:$0xff]  }
 0x35a   :  { %6476 = vmatprep.subr.bf16.mxu0 %v9024_v31 }
 0x35b   :  { %6516 = vmatpush1.bf16.msra.mxu1 %v9067_v11 }
 0x35c   :  { %6517 = vmatprep.subr.bf16.mxu1 %v9072_v19  ;;  %v9108_v19 = vld [vmem:[#allocation9 + $0x184] ss:$8 sps:$4 sm:$0xff]  }
 0x35d   :  { %6477 = vmatpush1.bf16.msra.mxu0 %v9022_v4 }
 0x35e   :  { %6478 = vmatprep.subr.bf16.mxu0 %v9027_v13  ;;  %v9103_v13 = vld [vmem:[#allocation9 + $0x190] ss:$8 sps:$4 sm:$0xff]  }
 0x35f   :  { %6518 = vmatpush1.bf16.msra.mxu1 %v9070_v14 }
 0x360   :  { %6519 = vmatprep.subr.bf16.mxu1 %v9075_v18 }
 0x361   :  { %6479 = vmatpush1.bf16.msra.mxu0 %v9025_v36 }
 0x362   :  { %6480 = vmatprep.subr.bf16.mxu0 %v9030_v16 }
 0x363   :  { %6520 = vmatpush1.bf16.msra.mxu1 %v9073_v29 }
 0x364   :  { %6521 = vmatprep.subr.bf16.mxu1 %v9078_v23 }
 0x365   :  { %6481 = vmatpush1.bf16.msra.mxu0 %v9028_v12  ;;  %v9106_v12 = vld [vmem:[#allocation9 + $0x180] ss:$8 sps:$4 sm:$0xff]  }
 0x366   :  { %6482 = vmatprep.subr.bf16.mxu0 %v9033_v17 }
 0x367   :  { %6522 = vmatpush1.bf16.msra.mxu1 %v9076_v1  ;;  %v9109_v1 = vld [vmem:[#allocation12 + $0x78] sm:$0xff]  }
 0x368   :  { %6523 = vmatprep.subr.bf16.mxu1 %v9081_v25  ;;  %v9111_v25 = vld [vmem:[#allocation12 + $0x70] sm:$0xff]  }
 0x369   :  { %6483 = vmatpush1.bf16.msra.mxu0 %v9031_v20 }
 0x36a   :  { %6484 = vmatprep.subr.bf16.mxu0 %v9036_v22 }
 0x36b   :  { %6524 = vmatpush1.bf16.msra.mxu1 %v9079_v3  ;;  %v9113_v3 = vld [vmem:[#allocation12 + $0x68] sm:$0xff]  }
 0x36c   :  { %6525 = vmatprep.subr.bf16.mxu1 %v9084_v34  ;;  %v9115_v34 = vld [vmem:[#allocation12 + $0x60] sm:$0xff]  }
 0x36d   :  { %6485 = vmatpush1.bf16.msra.mxu0 %v9034_v59 }
 0x36e   :  { %6486 = vmatprep.subr.bf16.mxu0 %v9039_v2  ;;  %v9110_v2 = vld [vmem:[#allocation12 + $0x38] sm:$0xff]  }
 0x36f   :  { %6526 = vmatpush1.bf16.msra.mxu1 %v9082_v10  ;;  %v9117_v10 = vld [vmem:[#allocation12 + $0x58] sm:$0xff]  }
 0x370   :  { %6527 = vmatprep.subr.bf16.mxu1 %v9087_v35  ;;  %v9119_v35 = vld [vmem:[#allocation12 + $0x50] sm:$0xff]  }
 0x371   :  { %6487 = vmatpush2.bf16.msra.mxu0 %v9037_v26  ;;  %v9112_v26 = vld [vmem:[#allocation12 + $0x30] sm:$0xff]  }
 0x372   :  { %6488 = vmatprep.subr.bf16.mxu0 %v9042_v63  ;;  %v9114_v63 = vld [vmem:[#allocation12 + $0x28] sm:$0xff]  }
 0x373   :  { %6528 = vmatpush2.bf16.msra.mxu1 %v9085_v9 }
 0x374   :  { %6529 = vmatprep.subr.bf16.mxu1 %v9090_v30 }
 0x375   :  { %6489 = vmatpush2.bf16.msra.mxu0 %v9040_v7  ;;  %v9116_v7 = vld [vmem:[#allocation12 + $0x20] sm:$0xff]  }
 0x376   :  { %6490 = vmatprep.subr.bf16.mxu0 %v9045_v5  ;;  %v9118_v5 = vld [vmem:[#allocation12 + $0x18] sm:$0xff]  }
 0x377   :  { %6530 = vmatpush2.bf16.msra.mxu1 %v9088_v55 }
 0x378   :  { %6531 = vmatprep.subr.bf16.mxu1 %v9093_v57 }
 0x379   :  { %6491 = vmatpush2.bf16.msra.mxu0 %v9043_v6  ;;  %v9120_v6 = vld [vmem:[#allocation12 + $0x10] sm:$0xff]  }
 0x37a   :  { %6492 = vmatprep.subr.bf16.mxu0 %v9048_v53 }
 0x37b   :  { %6532 = vmatpush2.bf16.msra.mxu1 %v9091_v39 }
 0x37c   :  { %6533 = vmatprep.subr.bf16.mxu1 %v9096_v47 }
 0x37d   :  { %6493 = vmatpush2.bf16.msra.mxu0 %v9046_v38 }
 0x37e   :  { %6494 = vmatprep.subr.bf16.mxu0 %v9051_v56 }
 0x37f   :  { %6534 = vmatpush2.bf16.msra.mxu1 %v9094_v15 }
 0x380   :  { %6535 = vmatprep.subr.bf16.mxu1 %v9099_v43 }
 0x381   :  { %6495 = vmatpush2.bf16.msra.mxu0 %v9049_v58 }
 0x382   :  { %6496 = vmatprep.subr.bf16.mxu0 %v9054_v40 }
 0x383   :  { %6536 = vmatpush2.bf16.msra.mxu1 %v9097_v33 }
 0x384   :  { %6537 = vmatprep.subr.bf16.mxu1 %v9102_v52 }
 0x385   :  { %6497 = vmatpush2.bf16.msra.mxu0 %v9052_v41 }
 0x386   :  { %6498 = vmatprep.subr.bf16.mxu0 %v9057_v42 }
 0x387   :  { %6538 = vmatpush2.bf16.msra.mxu1 %v9100_v54  ;;  %v9121_v54 = vld [vmem:[#allocation12 + $0x48] sm:$0xff]  }
 0x388   :  { %6539 = vmatprep.subr.bf16.mxu1 %v9105_v62  ;;  %v9126_v62 = vld [vmem:[%s9750_s7 + $0x30] sm:$0xff]  }
 0x389   :  { %6499 = vmatpush2.bf16.msra.mxu0 %v9055_v32 }
 0x38a   :  { %6500 = vmatprep.subr.bf16.mxu0 %v9060_v48 }
 0x38b   :  { %6540 = vmatpush2.bf16.msra.mxu1 %v9103_v13  ;;  %v9129_v13 = vld [vmem:[%s9750_s7 + $0x18] sm:$0xff]  }
 0x38c   :  { %6541 = vmatprep.subr.bf16.mxu1 %v9108_v19 }
 0x38d   :  { %6501 = vmatpush2.bf16.msra.mxu0 %v9058_v28 }
 0x38e   :  { %7756 = vmatprep.subr.bf16.mxu0 %v9109_v1 }
 0x38f   :  { %6542 = vmatpush2.bf16.msra.mxu1 %v9106_v12 }
 0x390   :  { %v5824_v60 = vpop.f32.mrf.mxu0  ;;  %6503 = vmatmul.mubr.bf16.vlgmr.msra.gmra.mxu0 %v7750_v51 }
 0x391   :  { %v5865_v24 = vpop.f32.mrf.mxu1  ;;  %v5825_v31 = vadd.f32 %v5824_v60, %v9701_v49  ;;  %7757 = vmatpush3.bf16.msra.mxu0 %v9110_v2  ;;  %v9122_v60 = vld [vmem:[#allocation12 + $0x8] sm:$0xff]  }
 0x392   :  { %v5826_v27 = vpop.f32.mrf.mxu0  ;;  %7758 = vmatprep.subr.bf16.mxu0 %v9111_v25 }
 0x393   :  { %v5867_v61 = vpop.f32.mrf.mxu1  ;;  %v5866_v4 = vadd.f32 %v5865_v24, %v5825_v31  ;;  %v5827_v44 = vadd.f32 %v5826_v27, %v9704_v21  ;;  %v9123_v24 = vld [vmem:[#allocation12 + $0x40] sm:$0xff]   ;;  %v9125_v27 = vld [vmem:[%s9750_s7 + $0x38] sm:$0xff]  }
 0x394   :  { %v5828_v37 = vpop.f32.mrf.mxu0  ;;  %v9124_v31 = vld [vmem:[#allocation12] sm:$0xff]  }
 0x395   :  { %v5869_v45 = vpop.f32.mrf.mxu1  ;;  %v5868_v36 = vadd.f32 %v5867_v61, %v5827_v44  ;;  %7759 = vmatpush3.bf16.msra.mxu0 %v9112_v26  ;;  %v9297_v61 = vmov 0.0   ;;  %v9128_v44 = vld [vmem:[%s9750_s7 + $0x20] sm:$0xff]  }
 0x396   :  { %v5829_v11 = vpop.f32.mrf.mxu0  ;;  %7760 = vmatprep.subr.bf16.mxu0 %v9113_v3  ;;  %7787 = vmatprep.subr.bf16.mxu1 %v9297_v61  ;;  %v6124_v37 = vld [vmem:[#allocation10] sm:$0x3] }
 0x397   :  { %v5870_v16 = vpop.f32.mrf.mxu1  ;;  %v6129_v45 = vrot.slane %v6124_v37, %v1194_v0  ;;  %v9130_v0 = vld [vmem:[%s9750_s7 + $0x10] sm:$0xff]  }
 0x399   :  { %7761 = vmatpush3.bf16.msra.mxu0 %v9114_v63 }
 0x39a   :  { %7762 = vmatprep.subr.bf16.mxu0 %v9115_v34 }
 0x39d   :  { %7763 = vmatpush3.bf16.msra.mxu0 %v9116_v7  ;;  %v7738_v7 = vld [vmem:[%s9751_s8] ss:$0 sm:$0xff] }
 0x39e   :  { %7764 = vmatprep.subr.bf16.mxu0 %v9117_v10 }
 0x3a1   :  { %7765 = vmatpush3.bf16.msra.mxu0 %v9118_v5 }
 0x3a2   :  { %7766 = vmatprep.subr.bf16.mxu0 %v9119_v35 }
 0x3a5   :  { %7767 = vmatpush3.bf16.msra.mxu0 %v9120_v6 }
 0x3a6   :  { %7768 = vmatprep.subr.bf16.mxu0 %v9121_v54 }
 0x3a9   :  { %7769 = vmatpush3.bf16.msra.mxu0 %v9122_v60 }
 0x3aa   :  { %7770 = vmatprep.subr.bf16.mxu0 %v9123_v24 }
 0x3ad   :  { %7771 = vmatpush3.bf16.msra.mxu0 %v9124_v31 }
 0x3d0   :  { %v5906_v49 = vpop.f32.mrf.mxu0 }
 0x3d1   :  { %v5947_v14 = vpop.f32.mrf.mxu1  ;;  %v5907_v17 = vadd.f32 %v5906_v49, %v5866_v4  ;;  %v9127_v4 = vld [vmem:[%s9750_s7 + $0x28] sm:$0xff]  }
 0x3d2   :  { %v5908_v18 = vpop.f32.mrf.mxu0 }
 0x3d3   :  { %v5949_v20 = vpop.f32.mrf.mxu1  ;;  %v5948_v29 = vadd.f32 %v5947_v14, %v5907_v17  ;;  %v5909_v9 = vadd.f32 %v5908_v18, %v5868_v36  ;;  %v6133_v36 = vrot.slane %v6124_v37, %v1198_v8  ;;  %v9132_v8 = vld [vmem:[%s9750_s7] sm:$0xff]  }
 0x3d4   :  { %v5910_v22 = vpop.f32.mrf.mxu0 }
 0x3d5   :  { %v5951_v21 = vpop.f32.mrf.mxu1  ;;  %v5950_v38 = vadd.f32 %v5949_v20, %v5909_v9 }
 0x3d6   :  { %v5911_v23 = vpop.f32.mrf.mxu0 }
 0x3d7   :  { %v5952_v59 = vpop.f32.mrf.mxu1 }
 0x3d8   :  { %v7719_v59 = vld [vmem:[#allocation13] ss:$0 sm:$0xff] }
 0x410   :  { %v5988_v53 = vpop.f32.mrf.mxu0 }
 0x411   :  { %v6029_v30 = vpop.f32.mrf.mxu1  ;;  %v5989_v55 = vadd.f32 %v5988_v53, %v5948_v29 }
 0x412   :  { %v5990_v56 = vpop.f32.mrf.mxu0 }
 0x413   :  { %v6031_v57 = vpop.f32.mrf.mxu1  ;;  %v6030_v58 = vadd.f32 %v6029_v30, %v5989_v55  ;;  %v5991_v39 = vadd.f32 %v5990_v56, %v5950_v38 }
 0x414   :  { %v5992_v40 = vpop.f32.mrf.mxu0 }
 0x415   :  { %v6033_v47 = vpop.f32.mrf.mxu1  ;;  %v6032_v41 = vadd.f32 %v6031_v57, %v5991_v39  ;;  %v6038_v15 = vmax.f32 %v6030_v58, 0.0 }
 0x416   :  { %v5993_v42 = vpop.f32.mrf.mxu0 }
 0x417   :  { %v6034_v43 = vpop.f32.mrf.mxu1  ;;  %v6039_v32 = vmax.f32 %v6032_v41, 0.0  ;;  %v7752_v48 = vpack.c.bf16 %v6038_v15, %v6038_v15 }
 0x419   :  { %v7753_v33 = vpack.c.bf16 %v6039_v32, %v6039_v32 }
 0x41b   :  { %6543 = vmatprep.mubr.bf16.mxu1 %v7753_v33 }
 0x41c   :  { %6544 = vmatmul.mubr.bf16.vlgmr.msra.gmra.mxu1 %v7752_v48 }
 0x41d   :  { %7788 = vmatpush3.bf16.msra.mxu1 %v9125_v27  ;;  %7803 = vmatprep.mubr.msk.bf16.mxu1 %vm9298_vm0, %v9297_v61 }
 0x41e   :  { %7789 = vmatprep.subr.bf16.mxu1 %v9297_v61 }
 0x421   :  { %7790 = vmatpush3.bf16.msra.mxu1 %v9126_v62 }
 0x422   :  { %7791 = vmatprep.subr.bf16.mxu1 %v9297_v61 }
 0x425   :  { %7792 = vmatpush3.bf16.msra.mxu1 %v9127_v4 }
 0x426   :  { %7793 = vmatprep.subr.bf16.mxu1 %v9297_v61 }
 0x429   :  { %7794 = vmatpush3.bf16.msra.mxu1 %v9128_v44 }
 0x42a   :  { %7795 = vmatprep.subr.bf16.mxu1 %v9297_v61 }
 0x42d   :  { %7796 = vmatpush3.bf16.msra.mxu1 %v9129_v13 }
 0x42e   :  { %7797 = vmatprep.subr.bf16.mxu1 %v9297_v61 }
 0x431   :  { %7798 = vmatpush3.bf16.msra.mxu1 %v9130_v0 }
 0x432   :  { %7799 = vmatprep.subr.bf16.mxu1 %v9297_v61 }
 0x435   :  { %7800 = vmatpush3.bf16.msra.mxu1 %v9131_v46 }
 0x436   :  { %7801 = vmatprep.subr.bf16.mxu1 %v9297_v61 }
 0x439   :  { %7802 = vmatpush3.bf16.msra.mxu1 %v9132_v8 }
 0x450   :  { %v6504_v28 = vpop.f32.mrf.mxu0 }
 0x451   :  { %v6505_v11 = vadd.f32 %v6504_v28, %v6129_v45 }
 0x452   :  { %v6506_v50 = vpop.f32.mrf.mxu0 }
 0x453   :  { %v6507_v19 = vadd.f32 %v6506_v50, %v6133_v36 }
 0x454   :  { %v6508_v51 = vpop.f32.mrf.mxu0 }
 0x456   :  { %v6509_v52 = vpop.f32.mrf.mxu0 }
 0x4dc   :  { %v6545_v16 = vpop.f32.mrf.mxu1 }
 0x4dd   :  { %v6546_v12 = vadd.f32 %v6545_v16, %v6505_v11 }
 0x4de   :  { %v6547_v49 = vpop.f32.mrf.mxu1 }
 0x4df   :  { %v6548_v14 = vadd.f32 %v6547_v49, %v6507_v19  ;;  %v6552_v17 = vmax.f32 %v6546_v12, 0.0 }
 0x4e0   :  { %v6549_v18 = vpop.f32.mrf.mxu1 }
 0x4e1   :  { %v6553_v20 = vmax.f32 %v6548_v14, 0.0  ;;  %v7754_v21 = vpack.c.bf16 %v6552_v17, %v6552_v17 }
 0x4e2   :  { %v6550_v29 = vpop.f32.mrf.mxu1 }
 0x4e3   :  { %v7755_v22 = vpack.c.bf16 %v6553_v20, %v6553_v20 }
 0x4e5   :  { %6738 = vmatprep.mubr.bf16.mxu0 %v7755_v22 }
 0x4e6   :  { %6739 = vmatmul.mubr.bf16.vlgmr.msra.gmra.mxu0 %v7754_v21 }
 0x5a6   :  { %v7772_v23 = vpop.f32.mrf.mxu0 }
 0x5a8   :  { %v7773_v1 = vpop.f32.mrf.mxu0 }
 0x5a9   :  { %v7774_v2 = vadd.f32 %v7773_v1, %v7772_v23 }
 0x5aa   :  { %v7775_v25 = vpop.f32.mrf.mxu0 }
 0x5ab   :  { %v6741_v26 = vadd.f32 %v7774_v2, %v7719_v59 }
 0x5ac   :  { %v7776_v3 = vpop.f32.mrf.mxu0 }
 0x5ad   :  { %v6746_v63 = vmax.f32 %v6741_v26, 0.0 }
 0x5af   :  { %v6747_v34 = vpack.c.bf16 %v6746_v63, %v6746_v63 }
 0x5b1   :  { %7804 = vmatmul.mubr.bf16.vlgmr.msra.gmra.mxu1 %v6747_v34 }
 0x671   :  { %v6853_v10 = vpop.f32.mrf.mxu1 }
 0x672   :  { %v6854_v5 = vadd.f32 %v7738_v7, %v6853_v10 }
 0x673   :  { %v7805_v35 = vpop.f32.mrf.mxu1 }
 0x674   :  { %6859 = vst [vmem:[#allocation15] sm:$0xff] %v6854_v5 }
 0x675   :  { %v6856_v6 = vpop.f32.mrf.mxu1 }
 0x677   :  { %v7806_v9 = vpop.f32.mrf.mxu1 }
 0x678   :  { %6864 = vsyncadd [#allocation6], 96  ;;  %s9299_s7 = smov [#allocation15]  }
 0x679   :  { %s6865_s28 = sshll.u32 %s9299_s7, 4  ;;  %s6866_s28 = int_to_ptr.vmem [resolvable:$true] %s6865_s28 }
 0x67a   :  { %s9254_s29 = scalar_lea.vmem %s6866_s28, 32  ;;  %s9258_s30 = scalar_lea.vmem %s6866_s28, 128 }
 0x67b   :  { %p9255_p2 = scmp.ne.s32.totalorder %s6866_s28, %s9254_s29  ;;  %p9259_p3 = scmp.lt.s32.totalorder %s6866_s28, %s6866_s28 }
 0x67c   :  { %p9260_p4 = scmp.lt.s32.totalorder %s9258_s30, %s9254_s29 }
 0x67e   :  { %p9261_p5 = por %p9260_p4, %p9259_p3 }
 0x680   :  { %p9262_p6 = pnand %p9261_p5, %p9255_p2 }
 0x682   :  { %9265 = shalt.err (!%p9262_p6)
}
 0x683   :  { %s9300_s10 = smov 32   ;;  %s9301_s8 = smov 2  }
 0x684   :  { %6871 = dma.vmem_to_hbm [thread:$0]  %s6866_s28, 32, %s9752_s9, [#allocation6], %s9300_s10, %s9300_s10, %s9301_s8  }
 0x685   :  { %9282 = dma.done.wait [#allocation6], 128  }
 0x686   :  { %9283 = vsyncadd [#allocation6], 4294967168 }
 0x687   :  { %6875 = vsyncpa [#allocation5], 1 }
 0x688   :  { %6876 = vsyncpa [#allocation8], 1 }
 0x689   :  { %6877 = vsyncpa [#allocation11], 1 }
 0x68a   :  { %6878 = vsyncpa [#allocation14], 1 }
 0x68b   :  { %6879 = vsyncpa [#allocation6], 1 }

</bundles_post_ra>
